<compile_context>
chip_gen: v5e
topology: v5e:2x2
jax: 0.10.0
libtpu: 0.0.40
codegen_flags: <defaults>
</compile_context>

<pallas_src>
import jax
import jax.numpy as jnp
from jax import lax
from jax.experimental import pallas as pl
from jax.experimental.pallas import tpu as pltpu

EPS = 1e-5
LANE = 128                      # channel dims are zero-padded to multiples of this
STAT_ROWS = 8                   # sublane-aligned rows used for the BN partial outputs
VMEM_LIMIT = 32 * 1024 * 1024   # safe scoped-VMEM request on v5e/v6e/v7x


def _round_up(x, m):
    return (x + m - 1) // m * m


def _cparams(axes):
    return pltpu.CompilerParams(dimension_semantics=axes, vmem_limit_bytes=VMEM_LIMIT)


# ----------------------------- Pallas kernels ------------------------------ #

def _make_mm_stats_kernel(stat_rows):
    # y = x @ w (MXU, fp32 accumulate); also emit per-tile per-channel sum/sumsq.
    def kernel(x_ref, w_ref, y_ref, psum_ref, pssq_ref):
        cout = w_ref.shape[-1]
        y = jnp.dot(x_ref[...], w_ref[...], preferred_element_type=jnp.float32)
        yq = y.astype(y_ref.dtype)
        y_ref[...] = yq
        yf = yq.astype(jnp.float32)
        psum_ref[...] = jnp.broadcast_to(jnp.sum(yf, axis=0, keepdims=True), (stat_rows, cout))
        pssq_ref[...] = jnp.broadcast_to(jnp.sum(yf * yf, axis=0, keepdims=True), (stat_rows, cout))
    return kernel


def _make_bn_relu_mm_stats_kernel(tile_m, m_true, stat_rows):
    # Fused: h = relu(y_in * scale + shift)  ->  y = h @ w  (+ BN partials).
    def kernel(yin_ref, sc_ref, sh_ref, w_ref, y_ref, psum_ref, pssq_ref):
        cout = w_ref.shape[-1]
        h = jnp.maximum(yin_ref[...].astype(jnp.float32) * sc_ref[...] + sh_ref[...], 0.0)
        row = pl.program_id(0) * tile_m + lax.broadcasted_iota(jnp.int32, (tile_m, 1), 0)
        h = jnp.where(row < m_true, h, 0.0)     # zero padded rows so BN stats stay exact
        y = jnp.dot(h.astype(w_ref.dtype), w_ref[...], preferred_element_type=jnp.float32)
        yq = y.astype(y_ref.dtype)
        y_ref[...] = yq
        yf = yq.astype(jnp.float32)
        psum_ref[...] = jnp.broadcast_to(jnp.sum(yf, axis=0, keepdims=True), (stat_rows, cout))
        pssq_ref[...] = jnp.broadcast_to(jnp.sum(yf * yf, axis=0, keepdims=True), (stat_rows, cout))
    return kernel


def _make_conv3x3x3_stats_kernel(hh, ww, stat_rows):
    # Stream the 27 taps: 3 depth slabs of the spatially zero-padded activation are
    # provided as separate inputs; each (kh, kw) window is a static slice matmul.
    def kernel(xd0_ref, xd1_ref, xd2_ref, w_ref, y_ref, psum_ref, pssq_ref):
        slabs = (xd0_ref, xd1_ref, xd2_ref)
        cout = w_ref.shape[-1]
        acc = jnp.zeros((hh * ww, cout), jnp.float32)
        for kd in range(3):
            for kh in range(3):
                for kw in range(3):
                    patch = slabs[kd][kh:kh + hh, kw:kw + ww, :]
                    patch = patch.reshape(hh * ww, patch.shape[-1])
                    acc = acc + jnp.dot(patch, w_ref[kd * 9 + kh * 3 + kw],
                                        preferred_element_type=jnp.float32)
        yq = acc.astype(y_ref.dtype)
        y_ref[...] = yq
        yf = yq.astype(jnp.float32)
        psum_ref[...] = jnp.broadcast_to(jnp.sum(yf, axis=0, keepdims=True), (stat_rows, cout))
        pssq_ref[...] = jnp.broadcast_to(jnp.sum(yf * yf, axis=0, keepdims=True), (stat_rows, cout))
    return kernel


def _bn_relu_kernel(y_ref, sc_ref, sh_ref, o_ref):
    o_ref[...] = jnp.maximum(
        y_ref[...].astype(jnp.float32) * sc_ref[...] + sh_ref[...], 0.0).astype(o_ref.dtype)


def _bn_res_relu_kernel(y_ref, r_ref, sc_ref, sh_ref, o_ref):
    o_ref[...] = jnp.maximum(
        y_ref[...].astype(jnp.float32) * sc_ref[...] + sh_ref[...] + r_ref[...], 0.0
    ).astype(o_ref.dtype)


# ----------------------------- kernel wrappers ------------------------------ #

def _matmul_stats(x_rows, w, tile_m):
    m_pad, k = x_rows.shape
    cout = w.shape[1]
    n_tiles = m_pad // tile_m
    y, ps, pq = pl.pallas_call(
        _make_mm_stats_kernel(STAT_ROWS),
        grid=(n_tiles,),
        in_specs=[pl.BlockSpec((tile_m, k), lambda i: (i, 0)),
                  pl.BlockSpec((k, cout), lambda i: (0, 0))],
        out_specs=[pl.BlockSpec((tile_m, cout), lambda i: (i, 0)),
                   pl.BlockSpec((None, STAT_ROWS, cout), lambda i: (i, 0, 0)),
                   pl.BlockSpec((None, STAT_ROWS, cout), lambda i: (i, 0, 0))],
        out_shape=[jax.ShapeDtypeStruct((m_pad, cout), x_rows.dtype),
                   jax.ShapeDtypeStruct((n_tiles, STAT_ROWS, cout), jnp.float32),
                   jax.ShapeDtypeStruct((n_tiles, STAT_ROWS, cout), jnp.float32)],
        compiler_params=_cparams(("parallel",)),
        cost_estimate=pl.CostEstimate(
            flops=2 * m_pad * k * cout, transcendentals=0,
            bytes_accessed=(x_rows.size + w.size + m_pad * cout) * x_rows.dtype.itemsize
            + 2 * n_tiles * STAT_ROWS * cout * 4),
    )(x_rows, w)
    return y, ps[:, 0, :], pq[:, 0, :]


def _bn_relu_mm_stats(y_in, scale, shift, w, tile_m, m_true):
    m_pad, k = y_in.shape
    cout = w.shape[1]
    n_tiles = m_pad // tile_m
    y, ps, pq = pl.pallas_call(
        _make_bn_relu_mm_stats_kernel(tile_m, m_true, STAT_ROWS),
        grid=(n_tiles,),
        in_specs=[pl.BlockSpec((tile_m, k), lambda i: (i, 0)),
                  pl.BlockSpec((1, k), lambda i: (0, 0)),
                  pl.BlockSpec((1, k), lambda i: (0, 0)),
                  pl.BlockSpec((k, cout), lambda i: (0, 0))],
        out_specs=[pl.BlockSpec((tile_m, cout), lambda i: (i, 0)),
                   pl.BlockSpec((None, STAT_ROWS, cout), lambda i: (i, 0, 0)),
                   pl.BlockSpec((None, STAT_ROWS, cout), lambda i: (i, 0, 0))],
        out_shape=[jax.ShapeDtypeStruct((m_pad, cout), w.dtype),
                   jax.ShapeDtypeStruct((n_tiles, STAT_ROWS, cout), jnp.float32),
                   jax.ShapeDtypeStruct((n_tiles, STAT_ROWS, cout), jnp.float32)],
        compiler_params=_cparams(("parallel",)),
        cost_estimate=pl.CostEstimate(
            flops=2 * m_pad * k * cout + 3 * m_pad * k, transcendentals=0,
            bytes_accessed=(y_in.size + w.size + m_pad * cout) * w.dtype.itemsize
            + 2 * n_tiles * STAT_ROWS * cout * 4),
    )(y_in, scale, shift, w)
    return y, ps[:, 0, :], pq[:, 0, :]


def _conv3x3x3_stats(hp, w27):
    # hp: [N, D+2, H+2, W+2, Cin] zero-padded activation; w27: [27, Cin, Cout]
    n, dp2, hp2, wp2, cin = hp.shape
    d, hh, ww = dp2 - 2, hp2 - 2, wp2 - 2
    cout = w27.shape[-1]

    def slab_spec(off):
        def imap(ni, di):
            return (ni, di + off, 0, 0, 0)
        return pl.BlockSpec((None, None, hp2, wp2, cin), imap)

    y, ps, pq = pl.pallas_call(
        _make_conv3x3x3_stats_kernel(hh, ww, STAT_ROWS),
        grid=(n, d),
        in_specs=[slab_spec(0), slab_spec(1), slab_spec(2),
                  pl.BlockSpec((27, cin, cout), lambda ni, di: (0, 0, 0))],
        out_specs=[pl.BlockSpec((None, None, hh * ww, cout), lambda ni, di: (ni, di, 0, 0)),
                   pl.BlockSpec((None, None, STAT_ROWS, cout), lambda ni, di: (ni, di, 0, 0)),
                   pl.BlockSpec((None, None, STAT_ROWS, cout), lambda ni, di: (ni, di, 0, 0))],
        out_shape=[jax.ShapeDtypeStruct((n, d, hh * ww, cout), hp.dtype),
                   jax.ShapeDtypeStruct((n, d, STAT_ROWS, cout), jnp.float32),
                   jax.ShapeDtypeStruct((n, d, STAT_ROWS, cout), jnp.float32)],
        compiler_params=_cparams(("parallel", "parallel")),
        cost_estimate=pl.CostEstimate(
            flops=2 * n * d * hh * ww * 27 * cin * cout, transcendentals=0,
            bytes_accessed=(3 * hp.size + w27.size + n * d * hh * ww * cout) * hp.dtype.itemsize
            + 2 * n * d * STAT_ROWS * cout * 4),
    )(hp, hp, hp, w27)
    return y, ps[:, :, 0, :].reshape(n * d, cout), pq[:, :, 0, :].reshape(n * d, cout)


def _bn_relu_apply(y, scale, shift, tile_m, out_dtype):
    m_pad, c = y.shape
    n_tiles = m_pad // tile_m
    return pl.pallas_call(
        _bn_relu_kernel,
        grid=(n_tiles,),
        in_specs=[pl.BlockSpec((tile_m, c), lambda i: (i, 0)),
                  pl.BlockSpec((1, c), lambda i: (0, 0)),
                  pl.BlockSpec((1, c), lambda i: (0, 0))],
        out_specs=pl.BlockSpec((tile_m, c), lambda i: (i, 0)),
        out_shape=jax.ShapeDtypeStruct((m_pad, c), out_dtype),
        compiler_params=_cparams(("parallel",)),
        cost_estimate=pl.CostEstimate(
            flops=3 * m_pad * c, transcendentals=0,
            bytes_accessed=y.size * y.dtype.itemsize + m_pad * c * jnp.dtype(out_dtype).itemsize),
    )(y, scale, shift)


def _bn_res_relu_apply(y, res, scale, shift, tile_m):
    m_pad, c = y.shape
    n_tiles = m_pad // tile_m
    return pl.pallas_call(
        _bn_res_relu_kernel,
        grid=(n_tiles,),
        in_specs=[pl.BlockSpec((tile_m, c), lambda i: (i, 0)),
                  pl.BlockSpec((tile_m, c), lambda i: (i, 0)),
                  pl.BlockSpec((1, c), lambda i: (0, 0)),
                  pl.BlockSpec((1, c), lambda i: (0, 0))],
        out_specs=pl.BlockSpec((tile_m, c), lambda i: (i, 0)),
        out_shape=jax.ShapeDtypeStruct((m_pad, c), jnp.float32),
        compiler_params=_cparams(("parallel",)),
        cost_estimate=pl.CostEstimate(
            flops=4 * m_pad * c, transcendentals=0,
            bytes_accessed=y.size * y.dtype.itemsize + res.size * 4 + m_pad * c * 4),
    )(y, res, scale, shift)


def _bn_scale_shift(psum, pssq, count, gamma, beta):
    # Reduce per-tile partials -> per-channel affine (biased var, matches torch BN train).
    s = jnp.sum(psum, axis=0)
    q = jnp.sum(pssq, axis=0)
    mean = s / count
    var = jnp.maximum(q / count - mean * mean, 0.0)
    scale = gamma * lax.rsqrt(var + EPS)
    shift = beta - mean * scale
    return (scale.reshape(1, -1).astype(jnp.float32),
            shift.reshape(1, -1).astype(jnp.float32))


# ------------------------------- forward pass ------------------------------- #

def bottleneck_forward(x_ncdhw, params, *, tile_m=256, compute_dtype=jnp.bfloat16):
    """Bottleneck.forward (stride=1, downsample=None), mixed bf16/fp32 precision."""
    n, cin, d, hh, ww = x_ncdhw.shape
    planes = params["w1"].shape[0]
    cout3 = params["w3"].shape[0]
    if cout3 != cin:
        raise NotImplementedError("downsample=None requires in_planes == planes * expansion")

    m = n * d * hh * ww
    tile_m = min(tile_m, _round_up(m, 8))
    m_pad = _round_up(m, tile_m)
    cin_p = _round_up(cin, LANE)
    pln_p = _round_up(planes, LANE)
    co_p = _round_up(cout3, LANE)   # == cin_p since cout3 == cin
    cdt = compute_dtype

    # ---- NCDHW -> channels-last rows, zero-padded to lane / tile multiples ----
    x_rows = jnp.transpose(x_ncdhw, (0, 2, 3, 4, 1)).reshape(m, cin).astype(jnp.float32)
    x_rows = jnp.pad(x_rows, ((0, m_pad - m), (0, cin_p - cin)))   # fp32 residual
    x_rows_c = x_rows.astype(cdt)

    # ---- weights: torch OIDHW -> matmul layouts, zero-padded, compute dtype ----
    w1 = jnp.pad(params["w1"].reshape(planes, cin).T,
                 ((0, cin_p - cin), (0, pln_p - planes))).astype(cdt)
    w2 = jnp.transpose(params["w2"], (2, 3, 4, 1, 0)).reshape(27, planes, planes)
    w2 = jnp.pad(w2, ((0, 0), (0, pln_p - planes), (0, pln_p - planes))).astype(cdt)
    w3 = jnp.pad(params["w3"].reshape(cout3, planes).T,
                 ((0, pln_p - planes), (0, co_p - cout3))).astype(cdt)

    g1 = jnp.pad(params["g1"], (0, pln_p - planes)); b1 = jnp.pad(params["b1"], (0, pln_p - planes))
    g2 = jnp.pad(params["g2"], (0, pln_p - planes)); b2 = jnp.pad(params["b2"], (0, pln_p - planes))
    g3 = jnp.pad(params["g3"], (0, co_p - cout3));  b3 = jnp.pad(params["b3"], (0, co_p - cout3))

    # ---- stage 1: conv1x1x1 (+ BN partials), then BN1 + ReLU ----
    y1, s1, q1 = _matmul_stats(x_rows_c, w1, tile_m)
    sc1, sh1 = _bn_scale_shift(s1, q1, m, g1, b1)
    h1 = _bn_relu_apply(y1, sc1, sh1, tile_m, cdt)

    # ---- stage 2: conv3x3x3 via in-kernel tap streaming (no im2col) ----
    h1_sp = h1[:m].reshape(n, d, hh, ww, pln_p)
    hpad = jnp.pad(h1_sp, ((0, 0), (1, 1), (1, 1), (1, 1), (0, 0)))
    y2, s2, q2 = _conv3x3x3_stats(hpad, w2)
    sc2, sh2 = _bn_scale_shift(s2, q2, m, g2, b2)

    # ---- stage 3: fused BN2 + ReLU -> conv1x1x1 (+ BN partials) ----
    y2_rows = jnp.pad(y2.reshape(m, pln_p), ((0, m_pad - m), (0, 0)))
    y3, s3, q3 = _bn_relu_mm_stats(y2_rows, sc2, sh2, w3, tile_m, m)
    sc3, sh3 = _bn_scale_shift(s3, q3, m, g3, b3)

    # ---- BN3 + residual add + ReLU ----
    out_rows = _bn_res_relu_apply(y3, x_rows, sc3, sh3, tile_m)

    out = out_rows[:m, :cout3].reshape(n, d, hh, ww, cout3)
    return jnp.transpose(out, (0, 4, 1, 2, 3))


# --------------------------- pure-JAX references ----------------------------- #

def _ref_conv(inp, wt, padding, cdt):
    dn = lax.conv_dimension_numbers(inp.shape, wt.shape, ("NCDHW", "OIDHW", "NCDHW"))
    return lax.conv_general_dilated(
        inp.astype(cdt), wt.astype(cdt), (1, 1, 1), padding, dimension_numbers=dn,
        preferred_element_type=jnp.float32, precision=lax.Precision.HIGHEST)


def _ref_bn(y, g, b):
    mean = jnp.mean(y, axis=(0, 2, 3, 4), keepdims=True)
    var = jnp.mean(y * y, axis=(0, 2, 3, 4), keepdims=True) - mean * mean
    return ((y - mean) * lax.rsqrt(var + EPS) * g.reshape(1, -1, 1, 1, 1)
            + b.reshape(1, -1, 1, 1, 1))


def reference_forward(x, p, compute_dtype=jnp.float32):
    """Reference; compute_dtype=bfloat16 mirrors the kernel's rounding points."""
    rnd = lambda a: a.astype(compute_dtype).astype(jnp.float32)
    pad3 = ((1, 1), (1, 1), (1, 1))
    y1 = rnd(_ref_conv(x, p["w1"], "VALID", compute_dtype))
    h1 = rnd(jnp.maximum(_ref_bn(y1, p["g1"], p["b1"]), 0.0))
    y2 = rnd(_ref_conv(h1, p["w2"], pad3, compute_dtype))
    h2 = rnd(jnp.maximum(_ref_bn(y2, p["g2"], p["b2"]), 0.0))
    y3 = rnd(_ref_conv(h2, p["w3"], "VALID", compute_dtype))
    return jnp.maximum(_ref_bn(y3, p["g3"], p["b3"]) + x, 0.0)


# --------------------------------- main -------------------------------------- #

if __name__ == "__main__":
    # Small shapes consistent with the module: stride=1, downsample=None requires
    # in_planes == planes * expansion.
    N, D, H, W = 2, 4, 8, 8
    planes = 4
    in_planes = planes * 4        # expansion = 4

    key = jax.random.PRNGKey(0)
    ks = jax.random.split(key, 10)

    params = {
        # conv weights kept in torch layout [Cout, Cin, kD, kH, kW]
        "w1": 0.1 * jax.random.normal(ks[0], (planes, in_planes, 1, 1, 1), jnp.float32),
        "w2": 0.1 * jax.random.normal(ks[1], (planes, planes, 3, 3, 3), jnp.float32),
        "w3": 0.1 * jax.random.normal(ks[2], (planes * 4, planes, 1, 1, 1), jnp.float32),
        # BatchNorm affine params (gamma, beta)
        "g1": 0.5 + jax.random.uniform(ks[3], (planes,), jnp.float32),
        "b1": 0.1 * jax.random.normal(ks[4], (planes,), jnp.float32),
        "g2": 0.5 + jax.random.uniform(ks[5], (planes,), jnp.float32),
        "b2": 0.1 * jax.random.normal(ks[6], (planes,), jnp.float32),
        "g3": 0.5 + jax.random.uniform(ks[7], (planes * 4,), jnp.float32),
        "b3": 0.1 * jax.random.normal(ks[8], (planes * 4,), jnp.float32),
    }
    x = jax.random.normal(ks[9], (N, in_planes, D, H, W), jnp.float32)

    fwd = jax.jit(lambda xx: bottleneck_forward(xx, params))
    out = jax.block_until_ready(fwd(x))
    assert out.shape == (N, in_planes, D, H, W), out.shape

    # bf16-mirrored reference (same rounding points -> tight-ish check) and the full
    # fp32 reference (loose check: train-mode BN divides by small per-channel stds at
    # these toy channel counts, which amplifies bf16 quantisation noise).
    ref_bf16 = jax.block_until_ready(reference_forward(x, params, jnp.bfloat16))
    ref_f32 = jax.block_until_ready(reference_forward(x, params, jnp.float32))

    d_bf16 = jnp.abs(out - ref_bf16)
    d_f32 = jnp.abs(out - ref_f32)
    err_bf16_max, err_bf16_mean = float(jnp.max(d_bf16)), float(jnp.mean(d_bf16))
    err_f32_max, err_f32_mean = float(jnp.max(d_f32)), float(jnp.mean(d_f32))

    assert err_bf16_max < 1e-1 and err_bf16_mean < 5e-3, (err_bf16_max, err_bf16_mean)
    assert err_f32_max < 3e-1 and err_f32_mean < 3e-2, (err_f32_max, err_f32_mean)

    print("KERNEL_OK")
</pallas_src>

<mosaic_0001>
module attributes {stable_mosaic.version = 11 : i64} {
  func.func @kernel(%arg0: i32, %arg1: memref<256x128xbf16, #tpu.memory_space<vmem>>, %arg2: memref<128x128xbf16, #tpu.memory_space<vmem>>, %arg3: memref<256x128xbf16, #tpu.memory_space<vmem>>, %arg4: memref<1x8x128xf32, #tpu.memory_space<vmem>>, %arg5: memref<1x8x128xf32, #tpu.memory_space<vmem>>) attributes {dimension_semantics = [#tpu.dimension_semantics<parallel>], iteration_bounds = array<i64: 2>, scalar_prefetch = 0 : i64, scratch_operands = 0 : i64, tpu.core_type = #tpu.core_type<tc>, window_params = [{transform_indices = @transform_0, window_bounds = array<i64: 256, 128>}, {pipeline_mode = #tpu.pipeline_mode<synchronous>, transform_indices = @transform_1, window_bounds = array<i64: 128, 128>}, {transform_indices = @transform_2, window_bounds = array<i64: 256, 128>}, {transform_indices = @transform_3, window_bounds = array<i64: 1, 8, 128>}, {transform_indices = @transform_4, window_bounds = array<i64: 1, 8, 128>}]} {
    %c0 = arith.constant 0 : index
    %c0_0 = arith.constant 0 : index
    %0 = vector.load %arg1[%c0, %c0_0] : memref<256x128xbf16, #tpu.memory_space<vmem>>, vector<256x128xbf16>
    %c0_1 = arith.constant 0 : index
    %c0_2 = arith.constant 0 : index
    %1 = vector.load %arg2[%c0_1, %c0_2] : memref<128x128xbf16, #tpu.memory_space<vmem>>, vector<128x128xbf16>
    %cst = arith.constant dense<0.000000e+00> : vector<256x128xf32>
    %2 = tpu.matmul %0, %1, %cst {dimension_numbers = #tpu.dot_dimension_numbers<[1], [0], [0], [1], [0, 0, 1, 1], [], []>} : vector<256x128xbf16>, vector<128x128xbf16>, vector<256x128xf32> -> vector<256x128xf32>
    %3 = arith.truncf %2 : vector<256x128xf32> to vector<256x128xbf16>
    %c0_3 = arith.constant 0 : index
    %c0_4 = arith.constant 0 : index
    %4 = vector.load %arg3[%c0_3, %c0_4] : memref<256x128xbf16, #tpu.memory_space<vmem>>, vector<256x128xbf16>
    tpu.vector_store %arg3[%c0_3, %c0_4], %3 {strides = array<i32>} : memref<256x128xbf16, #tpu.memory_space<vmem>>, vector<256x128xbf16>,
    %5 = arith.extf %3 : vector<256x128xbf16> to vector<256x128xf32>
    %cst_5 = arith.constant dense<0.000000e+00> : vector<128xf32>
    %6 = vector.multi_reduction <add>, %5, %cst_5 [0] : vector<256x128xf32> to vector<128xf32>
    %7 = vector.shape_cast %6 : vector<128xf32> to vector<1x128xf32>
    %8 = vector.shape_cast %7 : vector<1x128xf32> to vector<1x128xf32>
    %9 = vector.broadcast %8 : vector<1x128xf32> to vector<8x128xf32>
    %c0_6 = arith.constant 0 : index
    %c0_7 = arith.constant 0 : index
    %c0_8 = arith.constant 0 : index
    %10 = vector.load %arg4[%c0_6, %c0_7, %c0_8] : memref<1x8x128xf32, #tpu.memory_space<vmem>>, vector<1x8x128xf32>
    %11 = vector.shape_cast %10 : vector<1x8x128xf32> to vector<8x128xf32>
    %12 = vector.shape_cast %9 : vector<8x128xf32> to vector<1x8x128xf32>
    tpu.vector_store %arg4[%c0_6, %c0_7, %c0_8], %12 {strides = array<i32>} : memref<1x8x128xf32, #tpu.memory_space<vmem>>, vector<1x8x128xf32>,
    %13 = arith.mulf %5, %5 : vector<256x128xf32>
    %cst_9 = arith.constant dense<0.000000e+00> : vector<128xf32>
    %14 = vector.multi_reduction <add>, %13, %cst_9 [0] : vector<256x128xf32> to vector<128xf32>
    %15 = vector.shape_cast %14 : vector<128xf32> to vector<1x128xf32>
    %16 = vector.shape_cast %15 : vector<1x128xf32> to vector<1x128xf32>
    %17 = vector.broadcast %16 : vector<1x128xf32> to vector<8x128xf32>
    %c0_10 = arith.constant 0 : index
    %c0_11 = arith.constant 0 : index
    %c0_12 = arith.constant 0 : index
    %18 = vector.load %arg5[%c0_10, %c0_11, %c0_12] : memref<1x8x128xf32, #tpu.memory_space<vmem>>, vector<1x8x128xf32>
    %19 = vector.shape_cast %18 : vector<1x8x128xf32> to vector<8x128xf32>
    %20 = vector.shape_cast %17 : vector<8x128xf32> to vector<1x8x128xf32>
    tpu.vector_store %arg5[%c0_10, %c0_11, %c0_12], %20 {strides = array<i32>} : memref<1x8x128xf32, #tpu.memory_space<vmem>>, vector<1x8x128xf32>,
    return
  }
  func.func @transform_0(%arg0: i32) -> (i32, i32) {
    %c0_i32 = arith.constant 0 : i32
    %c0_i32_0 = arith.constant 0 : i32
    return %arg0, %c0_i32 : i32, i32
  }
  func.func @transform_1(%arg0: i32) -> (i32, i32) {
    %c0_i32 = arith.constant 0 : i32
    %c0_i32_0 = arith.constant 0 : i32
    %c0_i32_1 = arith.constant 0 : i32
    return %c0_i32, %c0_i32_0 : i32, i32
  }
  func.func @transform_2(%arg0: i32) -> (i32, i32) {
    %c0_i32 = arith.constant 0 : i32
    %c0_i32_0 = arith.constant 0 : i32
    return %arg0, %c0_i32 : i32, i32
  }
  func.func @transform_3(%arg0: i32) -> (i32, i32, i32) {
    %c0_i32 = arith.constant 0 : i32
    %c0_i32_0 = arith.constant 0 : i32
    %c0_i32_1 = arith.constant 0 : i32
    return %arg0, %c0_i32, %c0_i32_0 : i32, i32, i32
  }
  func.func @transform_4(%arg0: i32) -> (i32, i32, i32) {
    %c0_i32 = arith.constant 0 : i32
    %c0_i32_0 = arith.constant 0 : i32
    %c0_i32_1 = arith.constant 0 : i32
    return %arg0, %c0_i32, %c0_i32_0 : i32, i32, i32
  }
}

module attributes {stable_mosaic.version = 11 : i64} {
  func.func @_bn_relu_kernel(%arg0: i32, %arg1: memref<256x128xbf16, #tpu.memory_space<vmem>>, %arg2: memref<1x128xf32, #tpu.memory_space<vmem>>, %arg3: memref<1x128xf32, #tpu.memory_space<vmem>>, %arg4: memref<256x128xbf16, #tpu.memory_space<vmem>>) attributes {dimension_semantics = [#tpu.dimension_semantics<parallel>], iteration_bounds = array<i64: 2>, scalar_prefetch = 0 : i64, scratch_operands = 0 : i64, tpu.core_type = #tpu.core_type<tc>, window_params = [{transform_indices = @transform_0, window_bounds = array<i64: 256, 128>}, {pipeline_mode = #tpu.pipeline_mode<synchronous>, transform_indices = @transform_1, window_bounds = array<i64: 1, 128>}, {pipeline_mode = #tpu.pipeline_mode<synchronous>, transform_indices = @transform_2, window_bounds = array<i64: 1, 128>}, {transform_indices = @transform_3, window_bounds = array<i64: 256, 128>}]} {
    %c0 = arith.constant 0 : index
    %c0_0 = arith.constant 0 : index
    %0 = vector.load %arg1[%c0, %c0_0] : memref<256x128xbf16, #tpu.memory_space<vmem>>, vector<256x128xbf16>
    %1 = arith.extf %0 : vector<256x128xbf16> to vector<256x128xf32>
    %c0_1 = arith.constant 0 : index
    %c0_2 = arith.constant 0 : index
    %2 = vector.load %arg2[%c0_1, %c0_2] : memref<1x128xf32, #tpu.memory_space<vmem>>, vector<1x128xf32>
    %3 = vector.broadcast %2 : vector<1x128xf32> to vector<256x128xf32>
    %4 = arith.mulf %1, %3 : vector<256x128xf32>
    %c0_3 = arith.constant 0 : index
    %c0_4 = arith.constant 0 : index
    %5 = vector.load %arg3[%c0_3, %c0_4] : memref<1x128xf32, #tpu.memory_space<vmem>>, vector<1x128xf32>
    %6 = vector.broadcast %5 : vector<1x128xf32> to vector<256x128xf32>
    %7 = arith.addf %4, %6 : vector<256x128xf32>
    %cst = arith.constant 0.000000e+00 : f32
    %8 = vector.broadcast %cst : f32 to vector<256x128xf32>
    %9 = arith.maximumf %7, %8 : vector<256x128xf32>
    %10 = arith.truncf %9 : vector<256x128xf32> to vector<256x128xbf16>
    %c0_5 = arith.constant 0 : index
    %c0_6 = arith.constant 0 : index
    %11 = vector.load %arg4[%c0_5, %c0_6] : memref<256x128xbf16, #tpu.memory_space<vmem>>, vector<256x128xbf16>
    tpu.vector_store %arg4[%c0_5, %c0_6], %10 {strides = array<i32>} : memref<256x128xbf16, #tpu.memory_space<vmem>>, vector<256x128xbf16>,
    return
  }
  func.func @transform_0(%arg0: i32) -> (i32, i32) {
    %c0_i32 = arith.constant 0 : i32
    %c0_i32_0 = arith.constant 0 : i32
    return %arg0, %c0_i32 : i32, i32
  }
  func.func @transform_1(%arg0: i32) -> (i32, i32) {
    %c0_i32 = arith.constant 0 : i32
    %c0_i32_0 = arith.constant 0 : i32
    %c0_i32_1 = arith.constant 0 : i32
    return %c0_i32, %c0_i32_0 : i32, i32
  }
  func.func @transform_2(%arg0: i32) -> (i32, i32) {
    %c0_i32 = arith.constant 0 : i32
    %c0_i32_0 = arith.constant 0 : i32
    %c0_i32_1 = arith.constant 0 : i32
    return %c0_i32, %c0_i32_0 : i32, i32
  }
  func.func @transform_3(%arg0: i32) -> (i32, i32) {
    %c0_i32 = arith.constant 0 : i32
    %c0_i32_0 = arith.constant 0 : i32
    return %arg0, %c0_i32 : i32, i32
  }
}

module attributes {stable_mosaic.version = 11 : i64} {
  func.func @kernel(%arg0: i32, %arg1: i32, %arg2: memref<1x1x10x10x128xbf16, #tpu.memory_space<vmem>>, %arg3: memref<1x1x10x10x128xbf16, #tpu.memory_space<vmem>>, %arg4: memref<1x1x10x10x128xbf16, #tpu.memory_space<vmem>>, %arg5: memref<27x128x128xbf16, #tpu.memory_space<vmem>>, %arg6: memref<1x1x64x128xbf16, #tpu.memory_space<vmem>>, %arg7: memref<1x1x8x128xf32, #tpu.memory_space<vmem>>, %arg8: memref<1x1x8x128xf32, #tpu.memory_space<vmem>>) attributes {dimension_semantics = [#tpu.dimension_semantics<parallel>, #tpu.dimension_semantics<parallel>], iteration_bounds = array<i64: 2, 4>, scalar_prefetch = 0 : i64, scratch_operands = 0 : i64, tpu.core_type = #tpu.core_type<tc>, window_params = [{transform_indices = @transform_0, window_bounds = array<i64: 1, 1, 10, 10, 128>}, {transform_indices = @transform_1, window_bounds = array<i64: 1, 1, 10, 10, 128>}, {transform_indices = @transform_2, window_bounds = array<i64: 1, 1, 10, 10, 128>}, {pipeline_mode = #tpu.pipeline_mode<synchronous>, transform_indices = @transform_3, window_bounds = array<i64: 27, 128, 128>}, {transform_indices = @transform_4, window_bounds = array<i64: 1, 1, 64, 128>}, {transform_indices = @transform_5, window_bounds = array<i64: 1, 1, 8, 128>}, {transform_indices = @transform_6, window_bounds = array<i64: 1, 1, 8, 128>}]} {
    %cst = arith.constant 0.000000e+00 : f32
    %0 = vector.broadcast %cst : f32 to vector<64x128xf32>
    %c0 = arith.constant 0 : index
    %c0_0 = arith.constant 0 : index
    %c0_1 = arith.constant 0 : index
    %c0_2 = arith.constant 0 : index
    %c0_3 = arith.constant 0 : index
    %1 = vector.load %arg2[%c0, %c0_0, %c0_1, %c0_2, %c0_3] : memref<1x1x10x10x128xbf16, #tpu.memory_space<vmem>>, vector<1x1x8x8x128xbf16>
    %2 = vector.shape_cast %1 : vector<1x1x8x8x128xbf16> to vector<8x8x128xbf16>
    %3 = vector.shape_cast %2 : vector<8x8x128xbf16> to vector<64x128xbf16>
    %c0_4 = arith.constant 0 : index
    %c0_5 = arith.constant 0 : index
    %c0_6 = arith.constant 0 : index
    %4 = vector.load %arg5[%c0_4, %c0_5, %c0_6] : memref<27x128x128xbf16, #tpu.memory_space<vmem>>, vector<1x128x128xbf16>
    %5 = vector.shape_cast %4 : vector<1x128x128xbf16> to vector<128x128xbf16>
    %cst_7 = arith.constant dense<0.000000e+00> : vector<64x128xf32>
    %6 = tpu.matmul %3, %5, %cst_7 {dimension_numbers = #tpu.dot_dimension_numbers<[1], [0], [0], [1], [0, 0, 1, 1], [], []>} : vector<64x128xbf16>, vector<128x128xbf16>, vector<64x128xf32> -> vector<64x128xf32>
    %7 = arith.addf %0, %6 : vector<64x128xf32>
    %c0_8 = arith.constant 0 : index
    %c0_9 = arith.constant 0 : index
    %c0_10 = arith.constant 0 : index
    %c1 = arith.constant 1 : index
    %c0_11 = arith.constant 0 : index
    %8 = vector.load %arg2[%c0_8, %c0_9, %c0_10, %c1, %c0_11] : memref<1x1x10x10x128xbf16, #tpu.memory_space<vmem>>, vector<1x1x8x8x128xbf16>
    %9 = vector.shape_cast %8 : vector<1x1x8x8x128xbf16> to vector<8x8x128xbf16>
    %10 = vector.shape_cast %9 : vector<8x8x128xbf16> to vector<64x128xbf16>
    %c1_12 = arith.constant 1 : index
    %c0_13 = arith.constant 0 : index
    %c0_14 = arith.constant 0 : index
    %11 = vector.load %arg5[%c1_12, %c0_13, %c0_14] : memref<27x128x128xbf16, #tpu.memory_space<vmem>>, vector<1x128x128xbf16>
    %12 = vector.shape_cast %11 : vector<1x128x128xbf16> to vector<128x128xbf16>
    %cst_15 = arith.constant dense<0.000000e+00> : vector<64x128xf32>
    %13 = tpu.matmul %10, %12, %cst_15 {dimension_numbers = #tpu.dot_dimension_numbers<[1], [0], [0], [1], [0, 0, 1, 1], [], []>} : vector<64x128xbf16>, vector<128x128xbf16>, vector<64x128xf32> -> vector<64x128xf32>
    %14 = arith.addf %7, %13 : vector<64x128xf32>
    %c0_16 = arith.constant 0 : index
    %c0_17 = arith.constant 0 : index
    %c0_18 = arith.constant 0 : index
    %c2 = arith.constant 2 : index
    %c0_19 = arith.constant 0 : index
    %15 = vector.load %arg2[%c0_16, %c0_17, %c0_18, %c2, %c0_19] : memref<1x1x10x10x128xbf16, #tpu.memory_space<vmem>>, vector<1x1x8x8x128xbf16>
    %16 = vector.shape_cast %15 : vector<1x1x8x8x128xbf16> to vector<8x8x128xbf16>
    %17 = vector.shape_cast %16 : vector<8x8x128xbf16> to vector<64x128xbf16>
    %c2_20 = arith.constant 2 : index
    %c0_21 = arith.constant 0 : index
    %c0_22 = arith.constant 0 : index
    %18 = vector.load %arg5[%c2_20, %c0_21, %c0_22] : memref<27x128x128xbf16, #tpu.memory_space<vmem>>, vector<1x128x128xbf16>
    %19 = vector.shape_cast %18 : vector<1x128x128xbf16> to vector<128x128xbf16>
    %cst_23 = arith.constant dense<0.000000e+00> : vector<64x128xf32>
    %20 = tpu.matmul %17, %19, %cst_23 {dimension_numbers = #tpu.dot_dimension_numbers<[1], [0], [0], [1], [0, 0, 1, 1], [], []>} : vector<64x128xbf16>, vector<128x128xbf16>, vector<64x128xf32> -> vector<64x128xf32>
    %21 = arith.addf %14, %20 : vector<64x128xf32>
    %c0_24 = arith.constant 0 : index
    %c0_25 = arith.constant 0 : index
    %c1_26 = arith.constant 1 : index
    %c0_27 = arith.constant 0 : index
    %c0_28 = arith.constant 0 : index
    %22 = vector.load %arg2[%c0_24, %c0_25, %c1_26, %c0_27, %c0_28] : memref<1x1x10x10x128xbf16, #tpu.memory_space<vmem>>, vector<1x1x8x8x128xbf16>
    %23 = vector.shape_cast %22 : vector<1x1x8x8x128xbf16> to vector<8x8x128xbf16>
    %24 = vector.shape_cast %23 : vector<8x8x128xbf16> to vector<64x128xbf16>
    %c3 = arith.constant 3 : index
    %c0_29 = arith.constant 0 : index
    %c0_30 = arith.constant 0 : index
    %25 = vector.load %arg5[%c3, %c0_29, %c0_30] : memref<27x128x128xbf16, #tpu.memory_space<vmem>>, vector<1x128x128xbf16>
    %26 = vector.shape_cast %25 : vector<1x128x128xbf16> to vector<128x128xbf16>
    %cst_31 = arith.constant dense<0.000000e+00> : vector<64x128xf32>
    %27 = tpu.matmul %24, %26, %cst_31 {dimension_numbers = #tpu.dot_dimension_numbers<[1], [0], [0], [1], [0, 0, 1, 1], [], []>} : vector<64x128xbf16>, vector<128x128xbf16>, vector<64x128xf32> -> vector<64x128xf32>
    %28 = arith.addf %21, %27 : vector<64x128xf32>
    %c0_32 = arith.constant 0 : index
    %c0_33 = arith.constant 0 : index
    %c1_34 = arith.constant 1 : index
    %c1_35 = arith.constant 1 : index
    %c0_36 = arith.constant 0 : index
    %29 = vector.load %arg2[%c0_32, %c0_33, %c1_34, %c1_35, %c0_36] : memref<1x1x10x10x128xbf16, #tpu.memory_space<vmem>>, vector<1x1x8x8x128xbf16>
    %30 = vector.shape_cast %29 : vector<1x1x8x8x128xbf16> to vector<8x8x128xbf16>
    %31 = vector.shape_cast %30 : vector<8x8x128xbf16> to vector<64x128xbf16>
    %c4 = arith.constant 4 : index
    %c0_37 = arith.constant 0 : index
    %c0_38 = arith.constant 0 : index
    %32 = vector.load %arg5[%c4, %c0_37, %c0_38] : memref<27x128x128xbf16, #tpu.memory_space<vmem>>, vector<1x128x128xbf16>
    %33 = vector.shape_cast %32 : vector<1x128x128xbf16> to vector<128x128xbf16>
    %cst_39 = arith.constant dense<0.000000e+00> : vector<64x128xf32>
    %34 = tpu.matmul %31, %33, %cst_39 {dimension_numbers = #tpu.dot_dimension_numbers<[1], [0], [0], [1], [0, 0, 1, 1], [], []>} : vector<64x128xbf16>, vector<128x128xbf16>, vector<64x128xf32> -> vector<64x128xf32>
    %35 = arith.addf %28, %34 : vector<64x128xf32>
    %c0_40 = arith.constant 0 : index
    %c0_41 = arith.constant 0 : index
    %c1_42 = arith.constant 1 : index
    %c2_43 = arith.constant 2 : index
    %c0_44 = arith.constant 0 : index
    %36 = vector.load %arg2[%c0_40, %c0_41, %c1_42, %c2_43, %c0_44] : memref<1x1x10x10x128xbf16, #tpu.memory_space<vmem>>, vector<1x1x8x8x128xbf16>
    %37 = vector.shape_cast %36 : vector<1x1x8x8x128xbf16> to vector<8x8x128xbf16>
    %38 = vector.shape_cast %37 : vector<8x8x128xbf16> to vector<64x128xbf16>
    %c5 = arith.constant 5 : index
    %c0_45 = arith.constant 0 : index
    %c0_46 = arith.constant 0 : index
    %39 = vector.load %arg5[%c5, %c0_45, %c0_46] : memref<27x128x128xbf16, #tpu.memory_space<vmem>>, vector<1x128x128xbf16>
    %40 = vector.shape_cast %39 : vector<1x128x128xbf16> to vector<128x128xbf16>
    %cst_47 = arith.constant dense<0.000000e+00> : vector<64x128xf32>
    %41 = tpu.matmul %38, %40, %cst_47 {dimension_numbers = #tpu.dot_dimension_numbers<[1], [0], [0], [1], [0, 0, 1, 1], [], []>} : vector<64x128xbf16>, vector<128x128xbf16>, vector<64x128xf32> -> vector<64x128xf32>
    %42 = arith.addf %35, %41 : vector<64x128xf32>
    %c0_48 = arith.constant 0 : index
    %c0_49 = arith.constant 0 : index
    %c2_50 = arith.constant 2 : index
    %c0_51 = arith.constant 0 : index
    %c0_52 = arith.constant 0 : index
    %43 = vector.load %arg2[%c0_48, %c0_49, %c2_50, %c0_51, %c0_52] : memref<1x1x10x10x128xbf16, #tpu.memory_space<vmem>>, vector<1x1x8x8x128xbf16>
    %44 = vector.shape_cast %43 : vector<1x1x8x8x128xbf16> to vector<8x8x128xbf16>
    %45 = vector.shape_cast %44 : vector<8x8x128xbf16> to vector<64x128xbf16>
    %c6 = arith.constant 6 : index
    %c0_53 = arith.constant 0 : index
    %c0_54 = arith.constant 0 : index
    %46 = vector.load %arg5[%c6, %c0_53, %c0_54] : memref<27x128x128xbf16, #tpu.memory_space<vmem>>, vector<1x128x128xbf16>
    %47 = vector.shape_cast %46 : vector<1x128x128xbf16> to vector<128x128xbf16>
    %cst_55 = arith.constant dense<0.000000e+00> : vector<64x128xf32>
    %48 = tpu.matmul %45, %47, %cst_55 {dimension_numbers = #tpu.dot_dimension_numbers<[1], [0], [0], [1], [0, 0, 1, 1], [], []>} : vector<64x128xbf16>, vector<128x128xbf16>, vector<64x128xf32> -> vector<64x128xf32>
    %49 = arith.addf %42, %48 : vector<64x128xf32>
    %c0_56 = arith.constant 0 : index
    %c0_57 = arith.constant 0 : index
    %c2_58 = arith.constant 2 : index
    %c1_59 = arith.constant 1 : index
    %c0_60 = arith.constant 0 : index
    %50 = vector.load %arg2[%c0_56, %c0_57, %c2_58, %c1_59, %c0_60] : memref<1x1x10x10x128xbf16, #tpu.memory_space<vmem>>, vector<1x1x8x8x128xbf16>
    %51 = vector.shape_cast %50 : vector<1x1x8x8x128xbf16> to vector<8x8x128xbf16>
    %52 = vector.shape_cast %51 : vector<8x8x128xbf16> to vector<64x128xbf16>
    %c7 = arith.constant 7 : index
    %c0_61 = arith.constant 0 : index
    %c0_62 = arith.constant 0 : index
    %53 = vector.load %arg5[%c7, %c0_61, %c0_62] : memref<27x128x128xbf16, #tpu.memory_space<vmem>>, vector<1x128x128xbf16>
    %54 = vector.shape_cast %53 : vector<1x128x128xbf16> to vector<128x128xbf16>
    %cst_63 = arith.constant dense<0.000000e+00> : vector<64x128xf32>
    %55 = tpu.matmul %52, %54, %cst_63 {dimension_numbers = #tpu.dot_dimension_numbers<[1], [0], [0], [1], [0, 0, 1, 1], [], []>} : vector<64x128xbf16>, vector<128x128xbf16>, vector<64x128xf32> -> vector<64x128xf32>
    %56 = arith.addf %49, %55 : vector<64x128xf32>
    %c0_64 = arith.constant 0 : index
    %c0_65 = arith.constant 0 : index
    %c2_66 = arith.constant 2 : index
    %c2_67 = arith.constant 2 : index
    %c0_68 = arith.constant 0 : index
    %57 = vector.load %arg2[%c0_64, %c0_65, %c2_66, %c2_67, %c0_68] : memref<1x1x10x10x128xbf16, #tpu.memory_space<vmem>>, vector<1x1x8x8x128xbf16>
    %58 = vector.shape_cast %57 : vector<1x1x8x8x128xbf16> to vector<8x8x128xbf16>
    %59 = vector.shape_cast %58 : vector<8x8x128xbf16> to vector<64x128xbf16>
    %c8 = arith.constant 8 : index
    %c0_69 = arith.constant 0 : index
    %c0_70 = arith.constant 0 : index
    %60 = vector.load %arg5[%c8, %c0_69, %c0_70] : memref<27x128x128xbf16, #tpu.memory_space<vmem>>, vector<1x128x128xbf16>
    %61 = vector.shape_cast %60 : vector<1x128x128xbf16> to vector<128x128xbf16>
    %cst_71 = arith.constant dense<0.000000e+00> : vector<64x128xf32>
    %62 = tpu.matmul %59, %61, %cst_71 {dimension_numbers = #tpu.dot_dimension_numbers<[1], [0], [0], [1], [0, 0, 1, 1], [], []>} : vector<64x128xbf16>, vector<128x128xbf16>, vector<64x128xf32> -> vector<64x128xf32>
    %63 = arith.addf %56, %62 : vector<64x128xf32>
    %c0_72 = arith.constant 0 : index
    %c0_73 = arith.constant 0 : index
    %c0_74 = arith.constant 0 : index
    %c0_75 = arith.constant 0 : index
    %c0_76 = arith.constant 0 : index
    %64 = vector.load %arg3[%c0_72, %c0_73, %c0_74, %c0_75, %c0_76] : memref<1x1x10x10x128xbf16, #tpu.memory_space<vmem>>, vector<1x1x8x8x128xbf16>
    %65 = vector.shape_cast %64 : vector<1x1x8x8x128xbf16> to vector<8x8x128xbf16>
    %66 = vector.shape_cast %65 : vector<8x8x128xbf16> to vector<64x128xbf16>
    %c9 = arith.constant 9 : index
    %c0_77 = arith.constant 0 : index
    %c0_78 = arith.constant 0 : index
    %67 = vector.load %arg5[%c9, %c0_77, %c0_78] : memref<27x128x128xbf16, #tpu.memory_space<vmem>>, vector<1x128x128xbf16>
    %68 = vector.shape_cast %67 : vector<1x128x128xbf16> to vector<128x128xbf16>
    %cst_79 = arith.constant dense<0.000000e+00> : vector<64x128xf32>
    %69 = tpu.matmul %66, %68, %cst_79 {dimension_numbers = #tpu.dot_dimension_numbers<[1], [0], [0], [1], [0, 0, 1, 1], [], []>} : vector<64x128xbf16>, vector<128x128xbf16>, vector<64x128xf32> -> vector<64x128xf32>
    %70 = arith.addf %63, %69 : vector<64x128xf32>
    %c0_80 = arith.constant 0 : index
    %c0_81 = arith.constant 0 : index
    %c0_82 = arith.constant 0 : index
    %c1_83 = arith.constant 1 : index
    %c0_84 = arith.constant 0 : index
    %71 = vector.load %arg3[%c0_80, %c0_81, %c0_82, %c1_83, %c0_84] : memref<1x1x10x10x128xbf16, #tpu.memory_space<vmem>>, vector<1x1x8x8x128xbf16>
    %72 = vector.shape_cast %71 : vector<1x1x8x8x128xbf16> to vector<8x8x128xbf16>
    %73 = vector.shape_cast %72 : vector<8x8x128xbf16> to vector<64x128xbf16>
    %c10 = arith.constant 10 : index
    %c0_85 = arith.constant 0 : index
    %c0_86 = arith.constant 0 : index
    %74 = vector.load %arg5[%c10, %c0_85, %c0_86] : memref<27x128x128xbf16, #tpu.memory_space<vmem>>, vector<1x128x128xbf16>
    %75 = vector.shape_cast %74 : vector<1x128x128xbf16> to vector<128x128xbf16>
    %cst_87 = arith.constant dense<0.000000e+00> : vector<64x128xf32>
    %76 = tpu.matmul %73, %75, %cst_87 {dimension_numbers = #tpu.dot_dimension_numbers<[1], [0], [0], [1], [0, 0, 1, 1], [], []>} : vector<64x128xbf16>, vector<128x128xbf16>, vector<64x128xf32> -> vector<64x128xf32>
    %77 = arith.addf %70, %76 : vector<64x128xf32>
    %c0_88 = arith.constant 0 : index
    %c0_89 = arith.constant 0 : index
    %c0_90 = arith.constant 0 : index
    %c2_91 = arith.constant 2 : index
    %c0_92 = arith.constant 0 : index
    %78 = vector.load %arg3[%c0_88, %c0_89, %c0_90, %c2_91, %c0_92] : memref<1x1x10x10x128xbf16, #tpu.memory_space<vmem>>, vector<1x1x8x8x128xbf16>
    %79 = vector.shape_cast %78 : vector<1x1x8x8x128xbf16> to vector<8x8x128xbf16>
    %80 = vector.shape_cast %79 : vector<8x8x128xbf16> to vector<64x128xbf16>
    %c11 = arith.constant 11 : index
    %c0_93 = arith.constant 0 : index
    %c0_94 = arith.constant 0 : index
    %81 = vector.load %arg5[%c11, %c0_93, %c0_94] : memref<27x128x128xbf16, #tpu.memory_space<vmem>>, vector<1x128x128xbf16>
    %82 = vector.shape_cast %81 : vector<1x128x128xbf16> to vector<128x128xbf16>
    %cst_95 = arith.constant dense<0.000000e+00> : vector<64x128xf32>
    %83 = tpu.matmul %80, %82, %cst_95 {dimension_numbers = #tpu.dot_dimension_numbers<[1], [0], [0], [1], [0, 0, 1, 1], [], []>} : vector<64x128xbf16>, vector<128x128xbf16>, vector<64x128xf32> -> vector<64x128xf32>
    %84 = arith.addf %77, %83 : vector<64x128xf32>
    %c0_96 = arith.constant 0 : index
    %c0_97 = arith.constant 0 : index
    %c1_98 = arith.constant 1 : index
    %c0_99 = arith.constant 0 : index
    %c0_100 = arith.constant 0 : index
    %85 = vector.load %arg3[%c0_96, %c0_97, %c1_98, %c0_99, %c0_100] : memref<1x1x10x10x128xbf16, #tpu.memory_space<vmem>>, vector<1x1x8x8x128xbf16>
    %86 = vector.shape_cast %85 : vector<1x1x8x8x128xbf16> to vector<8x8x128xbf16>
    %87 = vector.shape_cast %86 : vector<8x8x128xbf16> to vector<64x128xbf16>
    %c12 = arith.constant 12 : index
    %c0_101 = arith.constant 0 : index
    %c0_102 = arith.constant 0 : index
    %88 = vector.load %arg5[%c12, %c0_101, %c0_102] : memref<27x128x128xbf16, #tpu.memory_space<vmem>>, vector<1x128x128xbf16>
    %89 = vector.shape_cast %88 : vector<1x128x128xbf16> to vector<128x128xbf16>
    %cst_103 = arith.constant dense<0.000000e+00> : vector<64x128xf32>
    %90 = tpu.matmul %87, %89, %cst_103 {dimension_numbers = #tpu.dot_dimension_numbers<[1], [0], [0], [1], [0, 0, 1, 1], [], []>} : vector<64x128xbf16>, vector<128x128xbf16>, vector<64x128xf32> -> vector<64x128xf32>
    %91 = arith.addf %84, %90 : vector<64x128xf32>
    %c0_104 = arith.constant 0 : index
    %c0_105 = arith.constant 0 : index
    %c1_106 = arith.constant 1 : index
    %c1_107 = arith.constant 1 : index
    %c0_108 = arith.constant 0 : index
    %92 = vector.load %arg3[%c0_104, %c0_105, %c1_106, %c1_107, %c0_108] : memref<1x1x10x10x128xbf16, #tpu.memory_space<vmem>>, vector<1x1x8x8x128xbf16>
    %93 = vector.shape_cast %92 : vector<1x1x8x8x128xbf16> to vector<8x8x128xbf16>
    %94 = vector.shape_cast %93 : vector<8x8x128xbf16> to vector<64x128xbf16>
    %c13 = arith.constant 13 : index
    %c0_109 = arith.constant 0 : index
    %c0_110 = arith.constant 0 : index
    %95 = vector.load %arg5[%c13, %c0_109, %c0_110] : memref<27x128x128xbf16, #tpu.memory_space<vmem>>, vector<1x128x128xbf16>
    %96 = vector.shape_cast %95 : vector<1x128x128xbf16> to vector<128x128xbf16>
    %cst_111 = arith.constant dense<0.000000e+00> : vector<64x128xf32>
    %97 = tpu.matmul %94, %96, %cst_111 {dimension_numbers = #tpu.dot_dimension_numbers<[1], [0], [0], [1], [0, 0, 1, 1], [], []>} : vector<64x128xbf16>, vector<128x128xbf16>, vector<64x128xf32> -> vector<64x128xf32>
    %98 = arith.addf %91, %97 : vector<64x128xf32>
    %c0_112 = arith.constant 0 : index
    %c0_113 = arith.constant 0 : index
    %c1_114 = arith.constant 1 : index
    %c2_115 = arith.constant 2 : index
    %c0_116 = arith.constant 0 : index
    %99 = vector.load %arg3[%c0_112, %c0_113, %c1_114, %c2_115, %c0_116] : memref<1x1x10x10x128xbf16, #tpu.memory_space<vmem>>, vector<1x1x8x8x128xbf16>
    %100 = vector.shape_cast %99 : vector<1x1x8x8x128xbf16> to vector<8x8x128xbf16>
    %101 = vector.shape_cast %100 : vector<8x8x128xbf16> to vector<64x128xbf16>
    %c14 = arith.constant 14 : index
    %c0_117 = arith.constant 0 : index
    %c0_118 = arith.constant 0 : index
    %102 = vector.load %arg5[%c14, %c0_117, %c0_118] : memref<27x128x128xbf16, #tpu.memory_space<vmem>>, vector<1x128x128xbf16>
    %103 = vector.shape_cast %102 : vector<1x128x128xbf16> to vector<128x128xbf16>
    %cst_119 = arith.constant dense<0.000000e+00> : vector<64x128xf32>
    %104 = tpu.matmul %101, %103, %cst_119 {dimension_numbers = #tpu.dot_dimension_numbers<[1], [0], [0], [1], [0, 0, 1, 1], [], []>} : vector<64x128xbf16>, vector<128x128xbf16>, vector<64x128xf32> -> vector<64x128xf32>
    %105 = arith.addf %98, %104 : vector<64x128xf32>
    %c0_120 = arith.constant 0 : index
    %c0_121 = arith.constant 0 : index
    %c2_122 = arith.constant 2 : index
    %c0_123 = arith.constant 0 : index
    %c0_124 = arith.constant 0 : index
    %106 = vector.load %arg3[%c0_120, %c0_121, %c2_122, %c0_123, %c0_124] : memref<1x1x10x10x128xbf16, #tpu.memory_space<vmem>>, vector<1x1x8x8x128xbf16>
    %107 = vector.shape_cast %106 : vector<1x1x8x8x128xbf16> to vector<8x8x128xbf16>
    %108 = vector.shape_cast %107 : vector<8x8x128xbf16> to vector<64x128xbf16>
    %c15 = arith.constant 15 : index
    %c0_125 = arith.constant 0 : index
    %c0_126 = arith.constant 0 : index
    %109 = vector.load %arg5[%c15, %c0_125, %c0_126] : memref<27x128x128xbf16, #tpu.memory_space<vmem>>, vector<1x128x128xbf16>
    %110 = vector.shape_cast %109 : vector<1x128x128xbf16> to vector<128x128xbf16>
    %cst_127 = arith.constant dense<0.000000e+00> : vector<64x128xf32>
    %111 = tpu.matmul %108, %110, %cst_127 {dimension_numbers = #tpu.dot_dimension_numbers<[1], [0], [0], [1], [0, 0, 1, 1], [], []>} : vector<64x128xbf16>, vector<128x128xbf16>, vector<64x128xf32> -> vector<64x128xf32>
    %112 = arith.addf %105, %111 : vector<64x128xf32>
    %c0_128 = arith.constant 0 : index
    %c0_129 = arith.constant 0 : index
    %c2_130 = arith.constant 2 : index
    %c1_131 = arith.constant 1 : index
    %c0_132 = arith.constant 0 : index
    %113 = vector.load %arg3[%c0_128, %c0_129, %c2_130, %c1_131, %c0_132] : memref<1x1x10x10x128xbf16, #tpu.memory_space<vmem>>, vector<1x1x8x8x128xbf16>
    %114 = vector.shape_cast %113 : vector<1x1x8x8x128xbf16> to vector<8x8x128xbf16>
    %115 = vector.shape_cast %114 : vector<8x8x128xbf16> to vector<64x128xbf16>
    %c16 = arith.constant 16 : index
    %c0_133 = arith.constant 0 : index
    %c0_134 = arith.constant 0 : index
    %116 = vector.load %arg5[%c16, %c0_133, %c0_134] : memref<27x128x128xbf16, #tpu.memory_space<vmem>>, vector<1x128x128xbf16>
    %117 = vector.shape_cast %116 : vector<1x128x128xbf16> to vector<128x128xbf16>
    %cst_135 = arith.constant dense<0.000000e+00> : vector<64x128xf32>
    %118 = tpu.matmul %115, %117, %cst_135 {dimension_numbers = #tpu.dot_dimension_numbers<[1], [0], [0], [1], [0, 0, 1, 1], [], []>} : vector<64x128xbf16>, vector<128x128xbf16>, vector<64x128xf32> -> vector<64x128xf32>
    %119 = arith.addf %112, %118 : vector<64x128xf32>
    %c0_136 = arith.constant 0 : index
    %c0_137 = arith.constant 0 : index
    %c2_138 = arith.constant 2 : index
    %c2_139 = arith.constant 2 : index
    %c0_140 = arith.constant 0 : index
    %120 = vector.load %arg3[%c0_136, %c0_137, %c2_138, %c2_139, %c0_140] : memref<1x1x10x10x128xbf16, #tpu.memory_space<vmem>>, vector<1x1x8x8x128xbf16>
    %121 = vector.shape_cast %120 : vector<1x1x8x8x128xbf16> to vector<8x8x128xbf16>
    %122 = vector.shape_cast %121 : vector<8x8x128xbf16> to vector<64x128xbf16>
    %c17 = arith.constant 17 : index
    %c0_141 = arith.constant 0 : index
    %c0_142 = arith.constant 0 : index
    %123 = vector.load %arg5[%c17, %c0_141, %c0_142] : memref<27x128x128xbf16, #tpu.memory_space<vmem>>, vector<1x128x128xbf16>
    %124 = vector.shape_cast %123 : vector<1x128x128xbf16> to vector<128x128xbf16>
    %cst_143 = arith.constant dense<0.000000e+00> : vector<64x128xf32>
    %125 = tpu.matmul %122, %124, %cst_143 {dimension_numbers = #tpu.dot_dimension_numbers<[1], [0], [0], [1], [0, 0, 1, 1], [], []>} : vector<64x128xbf16>, vector<128x128xbf16>, vector<64x128xf32> -> vector<64x128xf32>
    %126 = arith.addf %119, %125 : vector<64x128xf32>
    %c0_144 = arith.constant 0 : index
    %c0_145 = arith.constant 0 : index
    %c0_146 = arith.constant 0 : index
    %c0_147 = arith.constant 0 : index
    %c0_148 = arith.constant 0 : index
    %127 = vector.load %arg4[%c0_144, %c0_145, %c0_146, %c0_147, %c0_148] : memref<1x1x10x10x128xbf16, #tpu.memory_space<vmem>>, vector<1x1x8x8x128xbf16>
    %128 = vector.shape_cast %127 : vector<1x1x8x8x128xbf16> to vector<8x8x128xbf16>
    %129 = vector.shape_cast %128 : vector<8x8x128xbf16> to vector<64x128xbf16>
    %c18 = arith.constant 18 : index
    %c0_149 = arith.constant 0 : index
    %c0_150 = arith.constant 0 : index
    %130 = vector.load %arg5[%c18, %c0_149, %c0_150] : memref<27x128x128xbf16, #tpu.memory_space<vmem>>, vector<1x128x128xbf16>
    %131 = vector.shape_cast %130 : vector<1x128x128xbf16> to vector<128x128xbf16>
    %cst_151 = arith.constant dense<0.000000e+00> : vector<64x128xf32>
    %132 = tpu.matmul %129, %131, %cst_151 {dimension_numbers = #tpu.dot_dimension_numbers<[1], [0], [0], [1], [0, 0, 1, 1], [], []>} : vector<64x128xbf16>, vector<128x128xbf16>, vector<64x128xf32> -> vector<64x128xf32>
    %133 = arith.addf %126, %132 : vector<64x128xf32>
    %c0_152 = arith.constant 0 : index
    %c0_153 = arith.constant 0 : index
    %c0_154 = arith.constant 0 : index
    %c1_155 = arith.constant 1 : index
    %c0_156 = arith.constant 0 : index
    %134 = vector.load %arg4[%c0_152, %c0_153, %c0_154, %c1_155, %c0_156] : memref<1x1x10x10x128xbf16, #tpu.memory_space<vmem>>, vector<1x1x8x8x128xbf16>
    %135 = vector.shape_cast %134 : vector<1x1x8x8x128xbf16> to vector<8x8x128xbf16>
    %136 = vector.shape_cast %135 : vector<8x8x128xbf16> to vector<64x128xbf16>
    %c19 = arith.constant 19 : index
    %c0_157 = arith.constant 0 : index
    %c0_158 = arith.constant 0 : index
    %137 = vector.load %arg5[%c19, %c0_157, %c0_158] : memref<27x128x128xbf16, #tpu.memory_space<vmem>>, vector<1x128x128xbf16>
    %138 = vector.shape_cast %137 : vector<1x128x128xbf16> to vector<128x128xbf16>
    %cst_159 = arith.constant dense<0.000000e+00> : vector<64x128xf32>
    %139 = tpu.matmul %136, %138, %cst_159 {dimension_numbers = #tpu.dot_dimension_numbers<[1], [0], [0], [1], [0, 0, 1, 1], [], []>} : vector<64x128xbf16>, vector<128x128xbf16>, vector<64x128xf32> -> vector<64x128xf32>
    %140 = arith.addf %133, %139 : vector<64x128xf32>
    %c0_160 = arith.constant 0 : index
    %c0_161 = arith.constant 0 : index
    %c0_162 = arith.constant 0 : index
    %c2_163 = arith.constant 2 : index
    %c0_164 = arith.constant 0 : index
    %141 = vector.load %arg4[%c0_160, %c0_161, %c0_162, %c2_163, %c0_164] : memref<1x1x10x10x128xbf16, #tpu.memory_space<vmem>>, vector<1x1x8x8x128xbf16>
    %142 = vector.shape_cast %141 : vector<1x1x8x8x128xbf16> to vector<8x8x128xbf16>
    %143 = vector.shape_cast %142 : vector<8x8x128xbf16> to vector<64x128xbf16>
    %c20 = arith.constant 20 : index
    %c0_165 = arith.constant 0 : index
    %c0_166 = arith.constant 0 : index
    %144 = vector.load %arg5[%c20, %c0_165, %c0_166] : memref<27x128x128xbf16, #tpu.memory_space<vmem>>, vector<1x128x128xbf16>
    %145 = vector.shape_cast %144 : vector<1x128x128xbf16> to vector<128x128xbf16>
    %cst_167 = arith.constant dense<0.000000e+00> : vector<64x128xf32>
    %146 = tpu.matmul %143, %145, %cst_167 {dimension_numbers = #tpu.dot_dimension_numbers<[1], [0], [0], [1], [0, 0, 1, 1], [], []>} : vector<64x128xbf16>, vector<128x128xbf16>, vector<64x128xf32> -> vector<64x128xf32>
    %147 = arith.addf %140, %146 : vector<64x128xf32>
    %c0_168 = arith.constant 0 : index
    %c0_169 = arith.constant 0 : index
    %c1_170 = arith.constant 1 : index
    %c0_171 = arith.constant 0 : index
    %c0_172 = arith.constant 0 : index
    %148 = vector.load %arg4[%c0_168, %c0_169, %c1_170, %c0_171, %c0_172] : memref<1x1x10x10x128xbf16, #tpu.memory_space<vmem>>, vector<1x1x8x8x128xbf16>
    %149 = vector.shape_cast %148 : vector<1x1x8x8x128xbf16> to vector<8x8x128xbf16>
    %150 = vector.shape_cast %149 : vector<8x8x128xbf16> to vector<64x128xbf16>
    %c21 = arith.constant 21 : index
    %c0_173 = arith.constant 0 : index
    %c0_174 = arith.constant 0 : index
    %151 = vector.load %arg5[%c21, %c0_173, %c0_174] : memref<27x128x128xbf16, #tpu.memory_space<vmem>>, vector<1x128x128xbf16>
    %152 = vector.shape_cast %151 : vector<1x128x128xbf16> to vector<128x128xbf16>
    %cst_175 = arith.constant dense<0.000000e+00> : vector<64x128xf32>
    %153 = tpu.matmul %150, %152, %cst_175 {dimension_numbers = #tpu.dot_dimension_numbers<[1], [0], [0], [1], [0, 0, 1, 1], [], []>} : vector<64x128xbf16>, vector<128x128xbf16>, vector<64x128xf32> -> vector<64x128xf32>
    %154 = arith.addf %147, %153 : vector<64x128xf32>
    %c0_176 = arith.constant 0 : index
    %c0_177 = arith.constant 0 : index
    %c1_178 = arith.constant 1 : index
    %c1_179 = arith.constant 1 : index
    %c0_180 = arith.constant 0 : index
    %155 = vector.load %arg4[%c0_176, %c0_177, %c1_178, %c1_179, %c0_180] : memref<1x1x10x10x128xbf16, #tpu.memory_space<vmem>>, vector<1x1x8x8x128xbf16>
    %156 = vector.shape_cast %155 : vector<1x1x8x8x128xbf16> to vector<8x8x128xbf16>
    %157 = vector.shape_cast %156 : vector<8x8x128xbf16> to vector<64x128xbf16>
    %c22 = arith.constant 22 : index
    %c0_181 = arith.constant 0 : index
    %c0_182 = arith.constant 0 : index
    %158 = vector.load %arg5[%c22, %c0_181, %c0_182] : memref<27x128x128xbf16, #tpu.memory_space<vmem>>, vector<1x128x128xbf16>
    %159 = vector.shape_cast %158 : vector<1x128x128xbf16> to vector<128x128xbf16>
    %cst_183 = arith.constant dense<0.000000e+00> : vector<64x128xf32>
    %160 = tpu.matmul %157, %159, %cst_183 {dimension_numbers = #tpu.dot_dimension_numbers<[1], [0], [0], [1], [0, 0, 1, 1], [], []>} : vector<64x128xbf16>, vector<128x128xbf16>, vector<64x128xf32> -> vector<64x128xf32>
    %161 = arith.addf %154, %160 : vector<64x128xf32>
    %c0_184 = arith.constant 0 : index
    %c0_185 = arith.constant 0 : index
    %c1_186 = arith.constant 1 : index
    %c2_187 = arith.constant 2 : index
    %c0_188 = arith.constant 0 : index
    %162 = vector.load %arg4[%c0_184, %c0_185, %c1_186, %c2_187, %c0_188] : memref<1x1x10x10x128xbf16, #tpu.memory_space<vmem>>, vector<1x1x8x8x128xbf16>
    %163 = vector.shape_cast %162 : vector<1x1x8x8x128xbf16> to vector<8x8x128xbf16>
    %164 = vector.shape_cast %163 : vector<8x8x128xbf16> to vector<64x128xbf16>
    %c23 = arith.constant 23 : index
    %c0_189 = arith.constant 0 : index
    %c0_190 = arith.constant 0 : index
    %165 = vector.load %arg5[%c23, %c0_189, %c0_190] : memref<27x128x128xbf16, #tpu.memory_space<vmem>>, vector<1x128x128xbf16>
    %166 = vector.shape_cast %165 : vector<1x128x128xbf16> to vector<128x128xbf16>
    %cst_191 = arith.constant dense<0.000000e+00> : vector<64x128xf32>
    %167 = tpu.matmul %164, %166, %cst_191 {dimension_numbers = #tpu.dot_dimension_numbers<[1], [0], [0], [1], [0, 0, 1, 1], [], []>} : vector<64x128xbf16>, vector<128x128xbf16>, vector<64x128xf32> -> vector<64x128xf32>
    %168 = arith.addf %161, %167 : vector<64x128xf32>
    %c0_192 = arith.constant 0 : index
    %c0_193 = arith.constant 0 : index
    %c2_194 = arith.constant 2 : index
    %c0_195 = arith.constant 0 : index
    %c0_196 = arith.constant 0 : index
    %169 = vector.load %arg4[%c0_192, %c0_193, %c2_194, %c0_195, %c0_196] : memref<1x1x10x10x128xbf16, #tpu.memory_space<vmem>>, vector<1x1x8x8x128xbf16>
    %170 = vector.shape_cast %169 : vector<1x1x8x8x128xbf16> to vector<8x8x128xbf16>
    %171 = vector.shape_cast %170 : vector<8x8x128xbf16> to vector<64x128xbf16>
    %c24 = arith.constant 24 : index
    %c0_197 = arith.constant 0 : index
    %c0_198 = arith.constant 0 : index
    %172 = vector.load %arg5[%c24, %c0_197, %c0_198] : memref<27x128x128xbf16, #tpu.memory_space<vmem>>, vector<1x128x128xbf16>
    %173 = vector.shape_cast %172 : vector<1x128x128xbf16> to vector<128x128xbf16>
    %cst_199 = arith.constant dense<0.000000e+00> : vector<64x128xf32>
    %174 = tpu.matmul %171, %173, %cst_199 {dimension_numbers = #tpu.dot_dimension_numbers<[1], [0], [0], [1], [0, 0, 1, 1], [], []>} : vector<64x128xbf16>, vector<128x128xbf16>, vector<64x128xf32> -> vector<64x128xf32>
    %175 = arith.addf %168, %174 : vector<64x128xf32>
    %c0_200 = arith.constant 0 : index
    %c0_201 = arith.constant 0 : index
    %c2_202 = arith.constant 2 : index
    %c1_203 = arith.constant 1 : index
    %c0_204 = arith.constant 0 : index
    %176 = vector.load %arg4[%c0_200, %c0_201, %c2_202, %c1_203, %c0_204] : memref<1x1x10x10x128xbf16, #tpu.memory_space<vmem>>, vector<1x1x8x8x128xbf16>
    %177 = vector.shape_cast %176 : vector<1x1x8x8x128xbf16> to vector<8x8x128xbf16>
    %178 = vector.shape_cast %177 : vector<8x8x128xbf16> to vector<64x128xbf16>
    %c25 = arith.constant 25 : index
    %c0_205 = arith.constant 0 : index
    %c0_206 = arith.constant 0 : index
    %179 = vector.load %arg5[%c25, %c0_205, %c0_206] : memref<27x128x128xbf16, #tpu.memory_space<vmem>>, vector<1x128x128xbf16>
    %180 = vector.shape_cast %179 : vector<1x128x128xbf16> to vector<128x128xbf16>
    %cst_207 = arith.constant dense<0.000000e+00> : vector<64x128xf32>
    %181 = tpu.matmul %178, %180, %cst_207 {dimension_numbers = #tpu.dot_dimension_numbers<[1], [0], [0], [1], [0, 0, 1, 1], [], []>} : vector<64x128xbf16>, vector<128x128xbf16>, vector<64x128xf32> -> vector<64x128xf32>
    %182 = arith.addf %175, %181 : vector<64x128xf32>
    %c0_208 = arith.constant 0 : index
    %c0_209 = arith.constant 0 : index
    %c2_210 = arith.constant 2 : index
    %c2_211 = arith.constant 2 : index
    %c0_212 = arith.constant 0 : index
    %183 = vector.load %arg4[%c0_208, %c0_209, %c2_210, %c2_211, %c0_212] : memref<1x1x10x10x128xbf16, #tpu.memory_space<vmem>>, vector<1x1x8x8x128xbf16>
    %184 = vector.shape_cast %183 : vector<1x1x8x8x128xbf16> to vector<8x8x128xbf16>
    %185 = vector.shape_cast %184 : vector<8x8x128xbf16> to vector<64x128xbf16>
    %c26 = arith.constant 26 : index
    %c0_213 = arith.constant 0 : index
    %c0_214 = arith.constant 0 : index
    %186 = vector.load %arg5[%c26, %c0_213, %c0_214] : memref<27x128x128xbf16, #tpu.memory_space<vmem>>, vector<1x128x128xbf16>
    %187 = vector.shape_cast %186 : vector<1x128x128xbf16> to vector<128x128xbf16>
    %cst_215 = arith.constant dense<0.000000e+00> : vector<64x128xf32>
    %188 = tpu.matmul %185, %187, %cst_215 {dimension_numbers = #tpu.dot_dimension_numbers<[1], [0], [0], [1], [0, 0, 1, 1], [], []>} : vector<64x128xbf16>, vector<128x128xbf16>, vector<64x128xf32> -> vector<64x128xf32>
    %189 = arith.addf %182, %188 : vector<64x128xf32>
    %190 = arith.truncf %189 : vector<64x128xf32> to vector<64x128xbf16>
    %c0_216 = arith.constant 0 : index
    %c0_217 = arith.constant 0 : index
    %c0_218 = arith.constant 0 : index
    %c0_219 = arith.constant 0 : index
    %191 = vector.load %arg6[%c0_216, %c0_217, %c0_218, %c0_219] : memref<1x1x64x128xbf16, #tpu.memory_space<vmem>>, vector<1x1x64x128xbf16>
    %192 = vector.shape_cast %191 : vector<1x1x64x128xbf16> to vector<64x128xbf16>
    %193 = vector.shape_cast %190 : vector<64x128xbf16> to vector<1x1x64x128xbf16>
    tpu.vector_store %arg6[%c0_216, %c0_217, %c0_218, %c0_219], %193 {strides = array<i32>} : memref<1x1x64x128xbf16, #tpu.memory_space<vmem>>, vector<1x1x64x128xbf16>,
    %194 = arith.extf %190 : vector<64x128xbf16> to vector<64x128xf32>
    %cst_220 = arith.constant dense<0.000000e+00> : vector<128xf32>
    %195 = vector.multi_reduction <add>, %194, %cst_220 [0] : vector<64x128xf32> to vector<128xf32>
    %196 = vector.shape_cast %195 : vector<128xf32> to vector<1x128xf32>
    %197 = vector.shape_cast %196 : vector<1x128xf32> to vector<1x128xf32>
    %198 = vector.broadcast %197 : vector<1x128xf32> to vector<8x128xf32>
    %c0_221 = arith.constant 0 : index
    %c0_222 = arith.constant 0 : index
    %c0_223 = arith.constant 0 : index
    %c0_224 = arith.constant 0 : index
    %199 = vector.load %arg7[%c0_221, %c0_222, %c0_223, %c0_224] : memref<1x1x8x128xf32, #tpu.memory_space<vmem>>, vector<1x1x8x128xf32>
    %200 = vector.shape_cast %199 : vector<1x1x8x128xf32> to vector<8x128xf32>
    %201 = vector.shape_cast %198 : vector<8x128xf32> to vector<1x1x8x128xf32>
    tpu.vector_store %arg7[%c0_221, %c0_222, %c0_223, %c0_224], %201 {strides = array<i32>} : memref<1x1x8x128xf32, #tpu.memory_space<vmem>>, vector<1x1x8x128xf32>,
    %202 = arith.mulf %194, %194 : vector<64x128xf32>
    %cst_225 = arith.constant dense<0.000000e+00> : vector<128xf32>
    %203 = vector.multi_reduction <add>, %202, %cst_225 [0] : vector<64x128xf32> to vector<128xf32>
    %204 = vector.shape_cast %203 : vector<128xf32> to vector<1x128xf32>
    %205 = vector.shape_cast %204 : vector<1x128xf32> to vector<1x128xf32>
    %206 = vector.broadcast %205 : vector<1x128xf32> to vector<8x128xf32>
    %c0_226 = arith.constant 0 : index
    %c0_227 = arith.constant 0 : index
    %c0_228 = arith.constant 0 : index
    %c0_229 = arith.constant 0 : index
    %207 = vector.load %arg8[%c0_226, %c0_227, %c0_228, %c0_229] : memref<1x1x8x128xf32, #tpu.memory_space<vmem>>, vector<1x1x8x128xf32>
    %208 = vector.shape_cast %207 : vector<1x1x8x128xf32> to vector<8x128xf32>
    %209 = vector.shape_cast %206 : vector<8x128xf32> to vector<1x1x8x128xf32>
    tpu.vector_store %arg8[%c0_226, %c0_227, %c0_228, %c0_229], %209 {strides = array<i32>} : memref<1x1x8x128xf32, #tpu.memory_space<vmem>>, vector<1x1x8x128xf32>,
    return
  }
  func.func @transform_0(%arg0: i32, %arg1: i32) -> (i32, i32, i32, i32, i32) {
    %c0_i32 = arith.constant 0 : i32
    %0 = arith.addi %arg1, %c0_i32 : i32
    %c0_i32_0 = arith.constant 0 : i32
    %c0_i32_1 = arith.constant 0 : i32
    %c0_i32_2 = arith.constant 0 : i32
    %c0_i32_3 = arith.constant 0 : i32
    return %arg0, %0, %c0_i32_0, %c0_i32_1, %c0_i32_2 : i32, i32, i32, i32, i32
  }
  func.func @transform_1(%arg0: i32, %arg1: i32) -> (i32, i32, i32, i32, i32) {
    %c1_i32 = arith.constant 1 : i32
    %0 = arith.addi %arg1, %c1_i32 : i32
    %c0_i32 = arith.constant 0 : i32
    %c0_i32_0 = arith.constant 0 : i32
    %c0_i32_1 = arith.constant 0 : i32
    %c0_i32_2 = arith.constant 0 : i32
    return %arg0, %0, %c0_i32, %c0_i32_0, %c0_i32_1 : i32, i32, i32, i32, i32
  }
  func.func @transform_2(%arg0: i32, %arg1: i32) -> (i32, i32, i32, i32, i32) {
    %c2_i32 = arith.constant 2 : i32
    %0 = arith.addi %arg1, %c2_i32 : i32
    %c0_i32 = arith.constant 0 : i32
    %c0_i32_0 = arith.constant 0 : i32
    %c0_i32_1 = arith.constant 0 : i32
    %c0_i32_2 = arith.constant 0 : i32
    return %arg0, %0, %c0_i32, %c0_i32_0, %c0_i32_1 : i32, i32, i32, i32, i32
  }
  func.func @transform_3(%arg0: i32, %arg1: i32) -> (i32, i32, i32) {
    %c0_i32 = arith.constant 0 : i32
    %c0_i32_0 = arith.constant 0 : i32
    %c0_i32_1 = arith.constant 0 : i32
    %c0_i32_2 = arith.constant 0 : i32
    return %c0_i32, %c0_i32_0, %c0_i32_1 : i32, i32, i32
  }
  func.func @transform_4(%arg0: i32, %arg1: i32) -> (i32, i32, i32, i32) {
    %c0_i32 = arith.constant 0 : i32
    %c0_i32_0 = arith.constant 0 : i32
    %c0_i32_1 = arith.constant 0 : i32
    return %arg0, %arg1, %c0_i32, %c0_i32_0 : i32, i32, i32, i32
  }
  func.func @transform_5(%arg0: i32, %arg1: i32) -> (i32, i32, i32, i32) {
    %c0_i32 = arith.constant 0 : i32
    %c0_i32_0 = arith.constant 0 : i32
    %c0_i32_1 = arith.constant 0 : i32
    return %arg0, %arg1, %c0_i32, %c0_i32_0 : i32, i32, i32, i32
  }
  func.func @transform_6(%arg0: i32, %arg1: i32) -> (i32, i32, i32, i32) {
    %c0_i32 = arith.constant 0 : i32
    %c0_i32_0 = arith.constant 0 : i32
    %c0_i32_1 = arith.constant 0 : i32
    return %arg0, %arg1, %c0_i32, %c0_i32_0 : i32, i32, i32, i32
  }
}

module attributes {stable_mosaic.version = 11 : i64} {
  func.func @kernel(%arg0: i32, %arg1: memref<256x128xbf16, #tpu.memory_space<vmem>>, %arg2: memref<1x128xf32, #tpu.memory_space<vmem>>, %arg3: memref<1x128xf32, #tpu.memory_space<vmem>>, %arg4: memref<128x128xbf16, #tpu.memory_space<vmem>>, %arg5: memref<256x128xbf16, #tpu.memory_space<vmem>>, %arg6: memref<1x8x128xf32, #tpu.memory_space<vmem>>, %arg7: memref<1x8x128xf32, #tpu.memory_space<vmem>>) attributes {dimension_semantics = [#tpu.dimension_semantics<parallel>], iteration_bounds = array<i64: 2>, scalar_prefetch = 0 : i64, scratch_operands = 0 : i64, tpu.core_type = #tpu.core_type<tc>, window_params = [{transform_indices = @transform_0, window_bounds = array<i64: 256, 128>}, {pipeline_mode = #tpu.pipeline_mode<synchronous>, transform_indices = @transform_1, window_bounds = array<i64: 1, 128>}, {pipeline_mode = #tpu.pipeline_mode<synchronous>, transform_indices = @transform_2, window_bounds = array<i64: 1, 128>}, {pipeline_mode = #tpu.pipeline_mode<synchronous>, transform_indices = @transform_3, window_bounds = array<i64: 128, 128>}, {transform_indices = @transform_4, window_bounds = array<i64: 256, 128>}, {transform_indices = @transform_5, window_bounds = array<i64: 1, 8, 128>}, {transform_indices = @transform_6, window_bounds = array<i64: 1, 8, 128>}]} {
    %c0 = arith.constant 0 : index
    %c0_0 = arith.constant 0 : index
    %0 = vector.load %arg1[%c0, %c0_0] : memref<256x128xbf16, #tpu.memory_space<vmem>>, vector<256x128xbf16>
    %1 = arith.extf %0 : vector<256x128xbf16> to vector<256x128xf32>
    %c0_1 = arith.constant 0 : index
    %c0_2 = arith.constant 0 : index
    %2 = vector.load %arg2[%c0_1, %c0_2] : memref<1x128xf32, #tpu.memory_space<vmem>>, vector<1x128xf32>
    %3 = vector.broadcast %2 : vector<1x128xf32> to vector<256x128xf32>
    %4 = arith.mulf %1, %3 : vector<256x128xf32>
    %c0_3 = arith.constant 0 : index
    %c0_4 = arith.constant 0 : index
    %5 = vector.load %arg3[%c0_3, %c0_4] : memref<1x128xf32, #tpu.memory_space<vmem>>, vector<1x128xf32>
    %6 = vector.broadcast %5 : vector<1x128xf32> to vector<256x128xf32>
    %7 = arith.addf %4, %6 : vector<256x128xf32>
    %cst = arith.constant 0.000000e+00 : f32
    %8 = vector.broadcast %cst : f32 to vector<256x128xf32>
    %9 = arith.maximumf %7, %8 : vector<256x128xf32>
    %c256_i32 = arith.constant 256 : i32
    %10 = arith.muli %arg0, %c256_i32 : i32
    %11 = tpu.iota {dimensions = array<i32: 0>} : vector<256x1xi32>
    %12 = vector.broadcast %10 : i32 to vector<256x1xi32>
    %13 = arith.addi %12, %11 : vector<256x1xi32>
    %c512_i32 = arith.constant 512 : i32
    %14 = vector.broadcast %c512_i32 : i32 to vector<256x1xi32>
    %15 = arith.cmpi slt, %13, %14 : vector<256x1xi32>
    %cst_5 = arith.constant 0.000000e+00 : f32
    %16 = vector.shape_cast %15 : vector<256x1xi1> to vector<256x1xi1>
    %17 = vector.broadcast %16 : vector<256x1xi1> to vector<256x128xi1>
    %18 = vector.broadcast %cst_5 : f32 to vector<256x128xf32>
    %19 = arith.select %17, %9, %18 : vector<256x128xi1>, vector<256x128xf32>
    %20 = arith.truncf %19 : vector<256x128xf32> to vector<256x128xbf16>
    %c0_6 = arith.constant 0 : index
    %c0_7 = arith.constant 0 : index
    %21 = vector.load %arg4[%c0_6, %c0_7] : memref<128x128xbf16, #tpu.memory_space<vmem>>, vector<128x128xbf16>
    %cst_8 = arith.constant dense<0.000000e+00> : vector<256x128xf32>
    %22 = tpu.matmul %20, %21, %cst_8 {dimension_numbers = #tpu.dot_dimension_numbers<[1], [0], [0], [1], [0, 0, 1, 1], [], []>} : vector<256x128xbf16>, vector<128x128xbf16>, vector<256x128xf32> -> vector<256x128xf32>
    %23 = arith.truncf %22 : vector<256x128xf32> to vector<256x128xbf16>
    %c0_9 = arith.constant 0 : index
    %c0_10 = arith.constant 0 : index
    %24 = vector.load %arg5[%c0_9, %c0_10] : memref<256x128xbf16, #tpu.memory_space<vmem>>, vector<256x128xbf16>
    tpu.vector_store %arg5[%c0_9, %c0_10], %23 {strides = array<i32>} : memref<256x128xbf16, #tpu.memory_space<vmem>>, vector<256x128xbf16>,
    %25 = arith.extf %23 : vector<256x128xbf16> to vector<256x128xf32>
    %cst_11 = arith.constant dense<0.000000e+00> : vector<128xf32>
    %26 = vector.multi_reduction <add>, %25, %cst_11 [0] : vector<256x128xf32> to vector<128xf32>
    %27 = vector.shape_cast %26 : vector<128xf32> to vector<1x128xf32>
    %28 = vector.shape_cast %27 : vector<1x128xf32> to vector<1x128xf32>
    %29 = vector.broadcast %28 : vector<1x128xf32> to vector<8x128xf32>
    %c0_12 = arith.constant 0 : index
    %c0_13 = arith.constant 0 : index
    %c0_14 = arith.constant 0 : index
    %30 = vector.load %arg6[%c0_12, %c0_13, %c0_14] : memref<1x8x128xf32, #tpu.memory_space<vmem>>, vector<1x8x128xf32>
    %31 = vector.shape_cast %30 : vector<1x8x128xf32> to vector<8x128xf32>
    %32 = vector.shape_cast %29 : vector<8x128xf32> to vector<1x8x128xf32>
    tpu.vector_store %arg6[%c0_12, %c0_13, %c0_14], %32 {strides = array<i32>} : memref<1x8x128xf32, #tpu.memory_space<vmem>>, vector<1x8x128xf32>,
    %33 = arith.mulf %25, %25 : vector<256x128xf32>
    %cst_15 = arith.constant dense<0.000000e+00> : vector<128xf32>
    %34 = vector.multi_reduction <add>, %33, %cst_15 [0] : vector<256x128xf32> to vector<128xf32>
    %35 = vector.shape_cast %34 : vector<128xf32> to vector<1x128xf32>
    %36 = vector.shape_cast %35 : vector<1x128xf32> to vector<1x128xf32>
    %37 = vector.broadcast %36 : vector<1x128xf32> to vector<8x128xf32>
    %c0_16 = arith.constant 0 : index
    %c0_17 = arith.constant 0 : index
    %c0_18 = arith.constant 0 : index
    %38 = vector.load %arg7[%c0_16, %c0_17, %c0_18] : memref<1x8x128xf32, #tpu.memory_space<vmem>>, vector<1x8x128xf32>
    %39 = vector.shape_cast %38 : vector<1x8x128xf32> to vector<8x128xf32>
    %40 = vector.shape_cast %37 : vector<8x128xf32> to vector<1x8x128xf32>
    tpu.vector_store %arg7[%c0_16, %c0_17, %c0_18], %40 {strides = array<i32>} : memref<1x8x128xf32, #tpu.memory_space<vmem>>, vector<1x8x128xf32>,
    return
  }
  func.func @transform_0(%arg0: i32) -> (i32, i32) {
    %c0_i32 = arith.constant 0 : i32
    %c0_i32_0 = arith.constant 0 : i32
    return %arg0, %c0_i32 : i32, i32
  }
  func.func @transform_1(%arg0: i32) -> (i32, i32) {
    %c0_i32 = arith.constant 0 : i32
    %c0_i32_0 = arith.constant 0 : i32
    %c0_i32_1 = arith.constant 0 : i32
    return %c0_i32, %c0_i32_0 : i32, i32
  }
  func.func @transform_2(%arg0: i32) -> (i32, i32) {
    %c0_i32 = arith.constant 0 : i32
    %c0_i32_0 = arith.constant 0 : i32
    %c0_i32_1 = arith.constant 0 : i32
    return %c0_i32, %c0_i32_0 : i32, i32
  }
  func.func @transform_3(%arg0: i32) -> (i32, i32) {
    %c0_i32 = arith.constant 0 : i32
    %c0_i32_0 = arith.constant 0 : i32
    %c0_i32_1 = arith.constant 0 : i32
    return %c0_i32, %c0_i32_0 : i32, i32
  }
  func.func @transform_4(%arg0: i32) -> (i32, i32) {
    %c0_i32 = arith.constant 0 : i32
    %c0_i32_0 = arith.constant 0 : i32
    return %arg0, %c0_i32 : i32, i32
  }
  func.func @transform_5(%arg0: i32) -> (i32, i32, i32) {
    %c0_i32 = arith.constant 0 : i32
    %c0_i32_0 = arith.constant 0 : i32
    %c0_i32_1 = arith.constant 0 : i32
    return %arg0, %c0_i32, %c0_i32_0 : i32, i32, i32
  }
  func.func @transform_6(%arg0: i32) -> (i32, i32, i32) {
    %c0_i32 = arith.constant 0 : i32
    %c0_i32_0 = arith.constant 0 : i32
    %c0_i32_1 = arith.constant 0 : i32
    return %arg0, %c0_i32, %c0_i32_0 : i32, i32, i32
  }
}

module attributes {stable_mosaic.version = 11 : i64} {
  func.func @_bn_res_relu_kernel(%arg0: i32, %arg1: memref<256x128xbf16, #tpu.memory_space<vmem>>, %arg2: memref<256x128xf32, #tpu.memory_space<vmem>>, %arg3: memref<1x128xf32, #tpu.memory_space<vmem>>, %arg4: memref<1x128xf32, #tpu.memory_space<vmem>>, %arg5: memref<256x128xf32, #tpu.memory_space<vmem>>) attributes {dimension_semantics = [#tpu.dimension_semantics<parallel>], iteration_bounds = array<i64: 2>, scalar_prefetch = 0 : i64, scratch_operands = 0 : i64, tpu.core_type = #tpu.core_type<tc>, window_params = [{transform_indices = @transform_0, window_bounds = array<i64: 256, 128>}, {transform_indices = @transform_1, window_bounds = array<i64: 256, 128>}, {pipeline_mode = #tpu.pipeline_mode<synchronous>, transform_indices = @transform_2, window_bounds = array<i64: 1, 128>}, {pipeline_mode = #tpu.pipeline_mode<synchronous>, transform_indices = @transform_3, window_bounds = array<i64: 1, 128>}, {transform_indices = @transform_4, window_bounds = array<i64: 256, 128>}]} {
    %c0 = arith.constant 0 : index
    %c0_0 = arith.constant 0 : index
    %0 = vector.load %arg1[%c0, %c0_0] : memref<256x128xbf16, #tpu.memory_space<vmem>>, vector<256x128xbf16>
    %1 = arith.extf %0 : vector<256x128xbf16> to vector<256x128xf32>
    %c0_1 = arith.constant 0 : index
    %c0_2 = arith.constant 0 : index
    %2 = vector.load %arg3[%c0_1, %c0_2] : memref<1x128xf32, #tpu.memory_space<vmem>>, vector<1x128xf32>
    %3 = vector.broadcast %2 : vector<1x128xf32> to vector<256x128xf32>
    %4 = arith.mulf %1, %3 : vector<256x128xf32>
    %c0_3 = arith.constant 0 : index
    %c0_4 = arith.constant 0 : index
    %5 = vector.load %arg4[%c0_3, %c0_4] : memref<1x128xf32, #tpu.memory_space<vmem>>, vector<1x128xf32>
    %6 = vector.broadcast %5 : vector<1x128xf32> to vector<256x128xf32>
    %7 = arith.addf %4, %6 : vector<256x128xf32>
    %c0_5 = arith.constant 0 : index
    %c0_6 = arith.constant 0 : index
    %8 = vector.load %arg2[%c0_5, %c0_6] : memref<256x128xf32, #tpu.memory_space<vmem>>, vector<256x128xf32>
    %9 = arith.addf %7, %8 : vector<256x128xf32>
    %cst = arith.constant 0.000000e+00 : f32
    %10 = vector.broadcast %cst : f32 to vector<256x128xf32>
    %11 = arith.maximumf %9, %10 : vector<256x128xf32>
    %c0_7 = arith.constant 0 : index
    %c0_8 = arith.constant 0 : index
    %12 = vector.load %arg5[%c0_7, %c0_8] : memref<256x128xf32, #tpu.memory_space<vmem>>, vector<256x128xf32>
    tpu.vector_store %arg5[%c0_7, %c0_8], %11 {strides = array<i32>} : memref<256x128xf32, #tpu.memory_space<vmem>>, vector<256x128xf32>,
    return
  }
  func.func @transform_0(%arg0: i32) -> (i32, i32) {
    %c0_i32 = arith.constant 0 : i32
    %c0_i32_0 = arith.constant 0 : i32
    return %arg0, %c0_i32 : i32, i32
  }
  func.func @transform_1(%arg0: i32) -> (i32, i32) {
    %c0_i32 = arith.constant 0 : i32
    %c0_i32_0 = arith.constant 0 : i32
    return %arg0, %c0_i32 : i32, i32
  }
  func.func @transform_2(%arg0: i32) -> (i32, i32) {
    %c0_i32 = arith.constant 0 : i32
    %c0_i32_0 = arith.constant 0 : i32
    %c0_i32_1 = arith.constant 0 : i32
    return %c0_i32, %c0_i32_0 : i32, i32
  }
  func.func @transform_3(%arg0: i32) -> (i32, i32) {
    %c0_i32 = arith.constant 0 : i32
    %c0_i32_0 = arith.constant 0 : i32
    %c0_i32_1 = arith.constant 0 : i32
    return %c0_i32, %c0_i32_0 : i32, i32
  }
  func.func @transform_4(%arg0: i32) -> (i32, i32) {
    %c0_i32 = arith.constant 0 : i32
    %c0_i32_0 = arith.constant 0 : i32
    return %arg0, %c0_i32 : i32, i32
  }
}

</mosaic_0001>

<bundles_post_ra>
// kernel: _lambda_.6
= control target key start
LH: loop header
LB: loop body
LE: loop exit
PB: predicated region body
PF: predicated region fallthrough
CT: control target
= control target key end

     0   :  { %s685_s12 = smov 0   ;;  %s819_s0 = inlined_call_operand.vmem [shape: bf16[512,128], index: 0, kind: input, shape index: {}]   ;;  %s820_s1 = inlined_call_operand.vmem [shape: f32[1,128], index: 1, kind: input, shape index: {}]   ;;  %s821_s2 = inlined_call_operand.vmem [shape: f32[1,128], index: 2, kind: input, shape index: {}]   ;;  %s822_s3 = inlined_call_operand.vmem [shape: bf16[512,128], index: 3, kind: output, shape index: {}]  }
   0x1 LB: > { %s462_s13 = sadd.s32 4294967295, %s663_s12   ;;  %p466_p0 = scmp.ge.s32.totalorder %s663_s12, 1  ;;  %s663_s12 = sphi %s685_s12, %s13_s12  }
   0x2   : > { %p138_p1 = scmp.lt.s32.totalorder %s663_s12, 3 }
   0x4   : > { %p139_p2 = pnand %p466_p0, %p138_p1 }
   0x5   : > { %s467_s14 = sshll.u32 (!%p139_p2), %s462_s13, 5 }
   0x6   : > { %142 = sbr.rel (%p139_p2) target bundleno = 57 (0x39), region = 32  ;;  %p163_p3 = scmp.lt.s32.totalorder (!%p139_p2), %s467_s14, 63 }
   0xb   : > { %s824_s14 = smov (!%p163_p3, %s467_s14), 63  ;;  %v706_v0 = vld [vmem:[%s820_s1] ss:$0 sm:$0xff] }
   0xc   : > { %s468_s15 = sshll.u32 %s824_s14, 2  ;;  %v714_v6 = vld [vmem:[%s821_s2] ss:$0 sm:$0xff] }
   0xd   : > { %s701_s18 = scalar_lea.vmem %s819_s0, %s468_s15  ;;  %s740_s25 = scalar_lea.vmem %s822_s3, %s468_s15 }
   0xe   : > { %v474_v1 = vld [vmem:[%s701_s18] sm:$0xff]   ;;  %v617_v2 = vld [vmem:[%s701_s18 + $0x8] sm:$0xff]   ;;  %v618_v3 = vld [vmem:[%s701_s18 + $0x10] sm:$0xff]  }
   0xf   : > { %v475_v4 = vunpack.c.l.bf16 %v474_v1  ;;  %v476_v5 = vunpack.c.h.bf16 %v474_v1  ;;  %v479_v7 = vunpack.c.l.bf16 %v617_v2  ;;  %v480_v8 = vunpack.c.h.bf16 %v617_v2  ;;  %v619_v9 = vld [vmem:[%s701_s18 + $0x18] sm:$0xff]   ;;  %v620_v30 = vld [vmem:[%s701_s18 + $0x20] sm:$0xff]   ;;  %v621_v35 = vld [vmem:[%s701_s18 + $0x28] sm:$0xff]  }
  0x10   : > { %v483_v10 = vunpack.c.l.bf16 %v618_v3  ;;  %v484_v11 = vunpack.c.h.bf16 %v618_v3  ;;  %v487_v12 = vunpack.c.l.bf16 %v619_v9  ;;  %v488_v13 = vunpack.c.h.bf16 %v619_v9  ;;  %v622_v40 = vld [vmem:[%s701_s18 + $0x30] sm:$0xff]   ;;  %v623_v45 = vld [vmem:[%s701_s18 + $0x38] sm:$0xff]   ;;  %v624_v3 = vld [vmem:[%s701_s18 + $0x40] sm:$0xff]  }
  0x11   : > { %v242_v14 = vmul.f32 %v706_v0, %v475_v4  ;;  %v243_v15 = vmul.f32 %v706_v0, %v476_v5  ;;  %v244_v16 = vmul.f32 %v706_v0, %v479_v7  ;;  %v245_v17 = vmul.f32 %v706_v0, %v480_v8 }
  0x12   : > { %v246_v18 = vmul.f32 %v706_v0, %v483_v10  ;;  %v247_v19 = vmul.f32 %v706_v0, %v484_v11  ;;  %v248_v20 = vmul.f32 %v706_v0, %v487_v12  ;;  %v249_v21 = vmul.f32 %v706_v0, %v488_v13  ;;  %v625_v13 = vld [vmem:[%s701_s18 + $0x48] sm:$0xff]  }
  0x13   : > { %v278_v22 = vadd.f32 %v714_v6, %v242_v14  ;;  %v279_v23 = vadd.f32 %v714_v6, %v243_v15  ;;  %v280_v24 = vadd.f32 %v714_v6, %v244_v16  ;;  %v281_v25 = vadd.f32 %v714_v6, %v245_v17 }
  0x14   : > { %v282_v26 = vadd.f32 %v714_v6, %v246_v18  ;;  %v283_v27 = vadd.f32 %v714_v6, %v247_v19  ;;  %v284_v28 = vadd.f32 %v714_v6, %v248_v20  ;;  %v285_v29 = vadd.f32 %v714_v6, %v249_v21  ;;  %v626_v18 = vld [vmem:[%s701_s18 + $0x50] sm:$0xff]  }
  0x15   : > { %v310_v31 = vmax.f32 %v278_v22, 0.0  ;;  %v311_v32 = vmax.f32 %v279_v23, 0.0  ;;  %v312_v33 = vmax.f32 %v280_v24, 0.0  ;;  %v313_v34 = vmax.f32 %v281_v25, 0.0  ;;  %v627_v23 = vld [vmem:[%s701_s18 + $0x58] sm:$0xff]  }
  0x16   : > { %v314_v36 = vmax.f32 %v282_v26, 0.0  ;;  %v315_v37 = vmax.f32 %v283_v27, 0.0  ;;  %v316_v38 = vmax.f32 %v284_v28, 0.0  ;;  %v317_v39 = vmax.f32 %v285_v29, 0.0 }
  0x17   : > { %v540_v41 = vpack.c.bf16 %v311_v32, %v310_v31  ;;  %v545_v42 = vpack.c.bf16 %v313_v34, %v312_v33  ;;  %v491_v43 = vunpack.c.l.bf16 %v620_v30  ;;  %v492_v44 = vunpack.c.h.bf16 %v620_v30 }
  0x18   : > { %v550_v46 = vpack.c.bf16 %v315_v37, %v314_v36  ;;  %v555_v47 = vpack.c.bf16 %v317_v39, %v316_v38  ;;  %v495_v48 = vunpack.c.l.bf16 %v621_v35  ;;  %v496_v49 = vunpack.c.h.bf16 %v621_v35 }
  0x19   : > { %541 = vst [vmem:[%s740_s25] sm:$0xff] %v540_v41   ;;  %v250_v50 = vmul.f32 %v706_v0, %v491_v43  ;;  %v251_v51 = vmul.f32 %v706_v0, %v492_v44  ;;  %v499_v52 = vunpack.c.l.bf16 %v622_v40  ;;  %v500_v53 = vunpack.c.h.bf16 %v622_v40  ;;  %v628_v40 = vld [vmem:[%s701_s18 + $0x60] sm:$0xff]  }
  0x1a   : > { %632 = vst [vmem:[%s740_s25 + $0x8] sm:$0xff] %v545_v42   ;;  %v252_v54 = vmul.f32 %v706_v0, %v495_v48  ;;  %v253_v55 = vmul.f32 %v706_v0, %v496_v49  ;;  %v503_v56 = vunpack.c.l.bf16 %v623_v45  ;;  %v504_v57 = vunpack.c.h.bf16 %v623_v45 }
  0x1b   : > { %633 = vst [vmem:[%s740_s25 + $0x10] sm:$0xff] %v550_v46   ;;  %v286_v58 = vadd.f32 %v714_v6, %v250_v50  ;;  %v287_v59 = vadd.f32 %v714_v6, %v251_v51  ;;  %v254_v60 = vmul.f32 %v706_v0, %v499_v52  ;;  %v255_v61 = vmul.f32 %v706_v0, %v500_v53  ;;  %v629_v53 = vld [vmem:[%s701_s18 + $0x68] sm:$0xff]  }
  0x1c   : > { %634 = vst [vmem:[%s740_s25 + $0x18] sm:$0xff] %v555_v47   ;;  %v288_v62 = vadd.f32 %v714_v6, %v252_v54  ;;  %v289_v63 = vadd.f32 %v714_v6, %v253_v55  ;;  %v256_v1 = vmul.f32 %v706_v0, %v503_v56  ;;  %v257_v2 = vmul.f32 %v706_v0, %v504_v57 }
  0x1d   : > { %v318_v4 = vmax.f32 %v286_v58, 0.0  ;;  %v319_v5 = vmax.f32 %v287_v59, 0.0  ;;  %v290_v7 = vadd.f32 %v714_v6, %v254_v60  ;;  %v291_v8 = vadd.f32 %v714_v6, %v255_v61  ;;  %v630_v58 = vld [vmem:[%s701_s18 + $0x70] sm:$0xff]  }
  0x1e   : > { %v320_v9 = vmax.f32 %v288_v62, 0.0  ;;  %v321_v10 = vmax.f32 %v289_v63, 0.0  ;;  %v292_v11 = vadd.f32 %v714_v6, %v256_v1  ;;  %v293_v12 = vadd.f32 %v714_v6, %v257_v2  ;;  %v631_v63 = vld [vmem:[%s701_s18 + $0x78] sm:$0xff]  }
  0x1f   : > { %v560_v14 = vpack.c.bf16 %v319_v5, %v318_v4  ;;  %v322_v15 = vmax.f32 %v290_v7, 0.0  ;;  %v323_v16 = vmax.f32 %v291_v8, 0.0  ;;  %v507_v17 = vunpack.c.l.bf16 %v624_v3 }
  0x20   : > { %v565_v19 = vpack.c.bf16 %v321_v10, %v320_v9  ;;  %v324_v20 = vmax.f32 %v292_v11, 0.0  ;;  %v325_v21 = vmax.f32 %v293_v12, 0.0  ;;  %v508_v22 = vunpack.c.h.bf16 %v624_v3 }
  0x21   : > { %635 = vst [vmem:[%s740_s25 + $0x20] sm:$0xff] %v560_v14   ;;  %v570_v24 = vpack.c.bf16 %v323_v16, %v322_v15  ;;  %v258_v25 = vmul.f32 %v706_v0, %v507_v17  ;;  %v511_v26 = vunpack.c.l.bf16 %v625_v13  ;;  %v512_v27 = vunpack.c.h.bf16 %v625_v13 }
  0x22   : > { %636 = vst [vmem:[%s740_s25 + $0x28] sm:$0xff] %v565_v19   ;;  %v575_v28 = vpack.c.bf16 %v325_v21, %v324_v20  ;;  %v259_v29 = vmul.f32 %v706_v0, %v508_v22  ;;  %v515_v30 = vunpack.c.l.bf16 %v626_v18  ;;  %v516_v31 = vunpack.c.h.bf16 %v626_v18 }
  0x23   : > { %637 = vst [vmem:[%s740_s25 + $0x30] sm:$0xff] %v570_v24   ;;  %v294_v32 = vadd.f32 %v714_v6, %v258_v25  ;;  %v260_v33 = vmul.f32 %v706_v0, %v511_v26  ;;  %v261_v34 = vmul.f32 %v706_v0, %v512_v27  ;;  %v519_v35 = vunpack.c.l.bf16 %v627_v23 }
  0x24   : > { %638 = vst [vmem:[%s740_s25 + $0x38] sm:$0xff] %v575_v28   ;;  %v295_v36 = vadd.f32 %v714_v6, %v259_v29  ;;  %v262_v37 = vmul.f32 %v706_v0, %v515_v30  ;;  %v263_v38 = vmul.f32 %v706_v0, %v516_v31  ;;  %v520_v39 = vunpack.c.h.bf16 %v627_v23 }
  0x25   : > { %v326_v41 = vmax.f32 %v294_v32, 0.0  ;;  %v296_v42 = vadd.f32 %v714_v6, %v260_v33  ;;  %v297_v43 = vadd.f32 %v714_v6, %v261_v34  ;;  %v264_v44 = vmul.f32 %v706_v0, %v519_v35 }
  0x26   : > { %v327_v45 = vmax.f32 %v295_v36, 0.0  ;;  %v298_v46 = vadd.f32 %v714_v6, %v262_v37  ;;  %v299_v47 = vadd.f32 %v714_v6, %v263_v38  ;;  %v265_v48 = vmul.f32 %v706_v0, %v520_v39 }
  0x27   : > { %v328_v49 = vmax.f32 %v296_v42, 0.0  ;;  %v329_v50 = vmax.f32 %v297_v43, 0.0  ;;  %v300_v51 = vadd.f32 %v714_v6, %v264_v44  ;;  %v523_v52 = vunpack.c.l.bf16 %v628_v40 }
  0x28   : > { %v580_v54 = vpack.c.bf16 %v327_v45, %v326_v41  ;;  %v330_v55 = vmax.f32 %v298_v46, 0.0  ;;  %v331_v56 = vmax.f32 %v299_v47, 0.0  ;;  %v301_v57 = vadd.f32 %v714_v6, %v265_v48 }
  0x29   : > { %v585_v59 = vpack.c.bf16 %v329_v50, %v328_v49  ;;  %v332_v60 = vmax.f32 %v300_v51, 0.0  ;;  %v524_v61 = vunpack.c.h.bf16 %v628_v40  ;;  %v266_v62 = vmul.f32 %v706_v0, %v523_v52 }
  0x2a   : > { %639 = vst [vmem:[%s740_s25 + $0x40] sm:$0xff] %v580_v54   ;;  %v590_v1 = vpack.c.bf16 %v331_v56, %v330_v55  ;;  %v333_v2 = vmax.f32 %v301_v57, 0.0  ;;  %v527_v3 = vunpack.c.l.bf16 %v629_v53  ;;  %v528_v4 = vunpack.c.h.bf16 %v629_v53 }
  0x2b   : > { %640 = vst [vmem:[%s740_s25 + $0x48] sm:$0xff] %v585_v59   ;;  %v267_v5 = vmul.f32 %v706_v0, %v524_v61  ;;  %v302_v7 = vadd.f32 %v714_v6, %v266_v62  ;;  %v531_v8 = vunpack.c.l.bf16 %v630_v58  ;;  %v532_v9 = vunpack.c.h.bf16 %v630_v58 }
  0x2c   : > { %641 = vst [vmem:[%s740_s25 + $0x50] sm:$0xff] %v590_v1   ;;  %v595_v10 = vpack.c.bf16 %v333_v2, %v332_v60  ;;  %v268_v11 = vmul.f32 %v706_v0, %v527_v3  ;;  %v269_v12 = vmul.f32 %v706_v0, %v528_v4  ;;  %v535_v13 = vunpack.c.l.bf16 %v631_v63 }
  0x2d   : > { %v303_v14 = vadd.f32 %v714_v6, %v267_v5  ;;  %v334_v15 = vmax.f32 %v302_v7, 0.0  ;;  %v270_v16 = vmul.f32 %v706_v0, %v531_v8  ;;  %v271_v17 = vmul.f32 %v706_v0, %v532_v9 }
  0x2e   : > { %642 = vst [vmem:[%s740_s25 + $0x58] sm:$0xff] %v595_v10   ;;  %v304_v18 = vadd.f32 %v714_v6, %v268_v11  ;;  %v305_v19 = vadd.f32 %v714_v6, %v269_v12  ;;  %v536_v20 = vunpack.c.h.bf16 %v631_v63  ;;  %v272_v21 = vmul.f32 %v706_v0, %v535_v13 }
  0x2f   : > { %v335_v22 = vmax.f32 %v303_v14, 0.0  ;;  %v306_v23 = vadd.f32 %v714_v6, %v270_v16  ;;  %v307_v24 = vadd.f32 %v714_v6, %v271_v17 }
  0x30   : > { %v336_v25 = vmax.f32 %v304_v18, 0.0  ;;  %v337_v26 = vmax.f32 %v305_v19, 0.0  ;;  %v273_v27 = vmul.f32 %v706_v0, %v536_v20  ;;  %v308_v28 = vadd.f32 %v714_v6, %v272_v21 }
  0x31   : > { %v600_v29 = vpack.c.bf16 %v335_v22, %v334_v15  ;;  %v338_v30 = vmax.f32 %v306_v23, 0.0  ;;  %v339_v31 = vmax.f32 %v307_v24, 0.0 }
  0x32   : > { %v605_v32 = vpack.c.bf16 %v337_v26, %v336_v25  ;;  %v309_v33 = vadd.f32 %v714_v6, %v273_v27  ;;  %v340_v34 = vmax.f32 %v308_v28, 0.0 }
  0x33   : > { %643 = vst [vmem:[%s740_s25 + $0x60] sm:$0xff] %v600_v29   ;;  %v610_v35 = vpack.c.bf16 %v339_v31, %v338_v30 }
  0x34   : > { %644 = vst [vmem:[%s740_s25 + $0x68] sm:$0xff] %v605_v32   ;;  %v341_v36 = vmax.f32 %v309_v33, 0.0 }
  0x35   : > { %645 = vst [vmem:[%s740_s25 + $0x70] sm:$0xff] %v610_v35  }
  0x36   : > { %v615_v37 = vpack.c.bf16 %v341_v36, %v340_v34 }
  0x38   : > { %646 = vst [vmem:[%s740_s25 + $0x78] sm:$0xff] %v615_v37  }
  0x39 PF: > { %s13_s12 = sadd.s32 1, %s663_s12  }
  0x3a   : > { %p10_p4 = scmp.ge.s32.totalorder %s13_s12, 4  }
  0x3c   :  { %12 = sbr.rel (!%p10_p4) target bundleno = 1 (0x1), region = 62 }

// kernel: _lambda_.5
= control target key start
LH: loop header
LB: loop body
LE: loop exit
PB: predicated region body
PF: predicated region fallthrough
CT: control target
= control target key end

     0   :  { %s1118_s15 = smov 0   ;;  %s1328_s0 = inlined_call_operand.vmem [shape: bf16[512,128], index: 0, kind: input, shape index: {}]   ;;  %s1329_s1 = inlined_call_operand.vmem [shape: bf16[128,128], index: 1, kind: input, shape index: {}]   ;;  %s1330_s2 = inlined_call_operand.vmem [shape: bf16[512,128], index: 2, kind: output, shape index: {0}]   ;;  %s1331_s3 = inlined_call_operand.vmem [shape: f32[2,8,128], index: 3, kind: output, shape index: {1}]   ;;  %s1332_s4 = inlined_call_operand.vmem [shape: f32[2,8,128], index: 4, kind: output, shape index: {2}]  }
   0x1 LB: > { %s1124_s16 = sadd.s32 4294967295, %s1091_s15   ;;  %p829_p0 = scmp.ge.s32.totalorder %s1091_s15, 1  ;;  %s1091_s15 = sphi %s1118_s15, %s15_s15  }
   0x2   : > { %p168_p1 = scmp.lt.s32.totalorder %s1091_s15, 3 }
   0x4   : > { %p169_p2 = pnand %p829_p0, %p168_p1 }
   0x5   : > { %s830_s25 = sshll.u32 (!%p169_p2), %s1124_s16, 5  ;;  %p214_p4 = scmp.lt.s32.totalorder (!%p169_p2), %s1124_s16, 1 }
   0x6   : > { %172 = sbr.rel (%p169_p2) target bundleno = 294 (0x126), region = 28  ;;  %p203_p3 = scmp.lt.s32.totalorder (!%p169_p2), %s830_s25, 63 }
   0xb   : > { %v957_v0 = vld [vmem:[%s1329_s1 + $0x38] sm:$0xff]  ;;  %v956_v1 = vld [vmem:[%s1329_s1 + $0x30] sm:$0xff]  ;;  %v955_v2 = vld [vmem:[%s1329_s1 + $0x28] sm:$0xff]  ;;  %s1334_s25 = smov (!%p203_p3, %s830_s25), 63  ;;  %s1336_s16 = smov (!%p214_p4, %s1124_s16), 1 }
   0xc   : > { %414 = vmatpush.bf16.msra.mxu0 %v957_v0  ;;  %1053 = vmatpush.bf16.msra.mxu1 %v957_v0  ;;  %v954_v3 = vld [vmem:[%s1329_s1 + $0x20] sm:$0xff]  ;;  %v953_v4 = vld [vmem:[%s1329_s1 + $0x18] sm:$0xff]  ;;  %v952_v5 = vld [vmem:[%s1329_s1 + $0x10] sm:$0xff]  ;;  %s831_s6 = sshll.u32 %s1334_s25, 2  ;;  %s834_s17 = sshll.u32 %s1336_s16, 3 }
   0xd   : > { %1054 = vmatpush.bf16.msra.mxu2 %v957_v0  ;;  %1055 = vmatpush.bf16.msra.mxu3 %v957_v0  ;;  %v951_v6 = vld [vmem:[%s1329_s1 + $0x8] sm:$0xff]  ;;  %v950_v7 = vld [vmem:[%s1329_s1] sm:$0xff]  ;;  %s1161_s11 = scalar_lea.vmem %s1328_s0, %s831_s6  ;;  %s1188_s14 = scalar_lea.vmem %s1330_s2, %s831_s6 }
   0xe   : > { %v934_v8 = vld [vmem:[%s1161_s11] sm:$0xff]  ;;  %v935_v12 = vld [vmem:[%s1161_s11 + $0x8] sm:$0xff]  ;;  %v936_v16 = vld [vmem:[%s1161_s11 + $0x10] sm:$0xff]  ;;  %s217_s20 = scalar_lea.vmem %s1331_s3, %s834_s17  ;;  %s221_s23 = scalar_lea.vmem %s1332_s4, %s834_s17 }
   0xf   : > { %v938_v9 = vld [vmem:[%s1161_s11 + $0x20] sm:$0xff]  ;;  %v939_v13 = vld [vmem:[%s1161_s11 + $0x28] sm:$0xff]  ;;  %v940_v17 = vld [vmem:[%s1161_s11 + $0x30] sm:$0xff] }
  0x10   : > { %415 = vmatpush.bf16.msra.mxu0 %v956_v1  ;;  %1056 = vmatpush.bf16.msra.mxu1 %v956_v1  ;;  %v942_v10 = vld [vmem:[%s1161_s11 + $0x40] sm:$0xff]  ;;  %v943_v14 = vld [vmem:[%s1161_s11 + $0x48] sm:$0xff]  ;;  %v944_v18 = vld [vmem:[%s1161_s11 + $0x50] sm:$0xff] }
  0x11   : > { %1057 = vmatpush.bf16.msra.mxu2 %v956_v1  ;;  %1058 = vmatpush.bf16.msra.mxu3 %v956_v1  ;;  %v946_v11 = vld [vmem:[%s1161_s11 + $0x60] sm:$0xff]  ;;  %v947_v15 = vld [vmem:[%s1161_s11 + $0x68] sm:$0xff]  ;;  %v948_v19 = vld [vmem:[%s1161_s11 + $0x70] sm:$0xff] }
  0x12   : > { %v937_v20 = vld [vmem:[%s1161_s11 + $0x18] sm:$0xff] }
  0x13   : > { %v941_v21 = vld [vmem:[%s1161_s11 + $0x38] sm:$0xff] }
  0x14   : > { %416 = vmatpush.bf16.msra.mxu0 %v955_v2  ;;  %1059 = vmatpush.bf16.msra.mxu1 %v955_v2  ;;  %v945_v22 = vld [vmem:[%s1161_s11 + $0x58] sm:$0xff] }
  0x15   : > { %1060 = vmatpush.bf16.msra.mxu2 %v955_v2  ;;  %1061 = vmatpush.bf16.msra.mxu3 %v955_v2  ;;  %v949_v23 = vld [vmem:[%s1161_s11 + $0x78] sm:$0xff] }
  0x18   : > { %417 = vmatpush.bf16.msra.mxu0 %v954_v3  ;;  %1062 = vmatpush.bf16.msra.mxu1 %v954_v3 }
  0x19   : > { %1063 = vmatpush.bf16.msra.mxu2 %v954_v3  ;;  %1064 = vmatpush.bf16.msra.mxu3 %v954_v3 }
  0x1c   : > { %418 = vmatpush.bf16.msra.mxu0 %v953_v4  ;;  %1065 = vmatpush.bf16.msra.mxu1 %v953_v4 }
  0x1d   : > { %1066 = vmatpush.bf16.msra.mxu2 %v953_v4  ;;  %1067 = vmatpush.bf16.msra.mxu3 %v953_v4 }
  0x20   : > { %419 = vmatpush.bf16.msra.mxu0 %v952_v5  ;;  %1068 = vmatpush.bf16.msra.mxu1 %v952_v5 }
  0x21   : > { %1069 = vmatpush.bf16.msra.mxu2 %v952_v5  ;;  %1070 = vmatpush.bf16.msra.mxu3 %v952_v5 }
  0x24   : > { %420 = vmatpush.bf16.msra.mxu0 %v951_v6  ;;  %1071 = vmatpush.bf16.msra.mxu1 %v951_v6 }
  0x25   : > { %1072 = vmatpush.bf16.msra.mxu2 %v951_v6  ;;  %1073 = vmatpush.bf16.msra.mxu3 %v951_v6 }
  0x28   : > { %421 = vmatpush.bf16.msra.mxu0 %v950_v7  ;;  %1074 = vmatpush.bf16.msra.mxu1 %v950_v7 }
  0x29   : > { %1075 = vmatpush.bf16.msra.mxu2 %v950_v7  ;;  %1076 = vmatpush.bf16.msra.mxu3 %v950_v7 }
  0x2b   : > { %422 = vmatmul.bf16.vlgmr.msra.gmra.mxu0 %v934_v8  ;;  %442 = vmatmul.bf16.vlgmr.msra.gmra.mxu1 %v938_v9 }
  0x2c   : > { %462 = vmatmul.bf16.vlgmr.msra.gmra.mxu2 %v942_v10  ;;  %482 = vmatmul.bf16.vlgmr.msra.gmra.mxu3 %v946_v11 }
  0x3b   : > { %427 = vmatmul.bf16.gmra.mxu0 %v935_v12  ;;  %447 = vmatmul.bf16.gmra.mxu1 %v939_v13 }
  0x3c   : > { %467 = vmatmul.bf16.gmra.mxu2 %v943_v14  ;;  %487 = vmatmul.bf16.gmra.mxu3 %v947_v15 }
  0x4b   : > { %432 = vmatmul.bf16.gmra.mxu0 %v936_v16  ;;  %452 = vmatmul.bf16.gmra.mxu1 %v940_v17 }
  0x4c   : > { %472 = vmatmul.bf16.gmra.mxu2 %v944_v18  ;;  %492 = vmatmul.bf16.gmra.mxu3 %v948_v19 }
  0x5b   : > { %437 = vmatmul.bf16.gmra.mxu0 %v937_v20  ;;  %457 = vmatmul.bf16.gmra.mxu1 %v941_v21 }
  0x5c   : > { %477 = vmatmul.bf16.gmra.mxu2 %v945_v22  ;;  %497 = vmatmul.bf16.gmra.mxu3 %v949_v23 }
  0xa8   : > { %v423_v24 = vpop.f32.mrf.mxu0  ;;  %v1179_v25 = vpop.f32.mrf.mxu1 }
  0xa9   : > { %v503_v51 = vpack.c.bf16 %v423_v24, %v423_v24 }
  0xab   : > { %v567_v61 = vunpack.c.l.bf16 %v503_v51 }
  0xad   : > { %v637_v2 = vmul.f32 %v567_v61, %v567_v61 }
  0xaf   : > { %v1181_v26 = vpop.f32.mrf.mxu2  ;;  %v1194_v31 = vpop.f32.mrf.mxu3 }
  0xb0   : > { %v425_v27 = vpop.f32.mrf.mxu0  ;;  %v1190_v28 = vpop.f32.mrf.mxu1 }
  0xb1   : > { %v961_v29 = vpack.c.bf16 %v425_v27, %v423_v24  ;;  %v981_v30 = vpack.c.bf16 %v1190_v28, %v1179_v25  ;;  %v504_v50 = vpack.c.bf16 %v425_v27, %v425_v27  ;;  %v511_v24 = vpack.c.bf16 %v1179_v25, %v1179_v25 }
  0xb3   : > { %962 = vst [vmem:[%s1188_s14] sm:$0xff] %v961_v29   ;;  %v568_v59 = vunpack.c.l.bf16 %v504_v50  ;;  %v575_v50 = vunpack.c.l.bf16 %v511_v24 }
  0xb4   : > { %1041 = vst [vmem:[%s1188_s14 + $0x20] sm:$0xff] %v981_v30   ;;  %v512_v30 = vpack.c.bf16 %v1190_v28, %v1190_v28 }
  0xb5   : > { %v638_v0 = vmul.f32 %v568_v59, %v568_v59  ;;  %v599_v5 = vadd.f32 %v568_v59, %v567_v61 }
  0xb7   : > { %v1198_v32 = vpop.f32.mrf.mxu2  ;;  %v1204_v36 = vpop.f32.mrf.mxu3  ;;  %v669_v13 = vadd.f32 %v638_v0, %v637_v2 }
  0xb8   : > { %v428_v33 = vpop.f32.mrf.mxu0  ;;  %v1200_v34 = vpop.f32.mrf.mxu1  ;;  %v1001_v35 = vpack.c.bf16 %v1198_v32, %v1181_v26  ;;  %v1021_v37 = vpack.c.bf16 %v1204_v36, %v1194_v31 }
  0xb9   : > { %v505_v53 = vpack.c.bf16 %v428_v33, %v428_v33  ;;  %v513_v25 = vpack.c.bf16 %v1200_v34, %v1200_v34 }
  0xba   : > { %1045 = vst [vmem:[%s1188_s14 + $0x40] sm:$0xff] %v1001_v35  }
  0xbb   : > { %1049 = vst [vmem:[%s1188_s14 + $0x60] sm:$0xff] %v1021_v37   ;;  %v569_v62 = vunpack.c.l.bf16 %v505_v53  ;;  %v577_v61 = vunpack.c.l.bf16 %v513_v25 }
  0xbd   : > { %v639_v6 = vmul.f32 %v569_v62, %v569_v62  ;;  %v600_v14 = vadd.f32 %v599_v5, %v569_v62  ;;  %v645_v62 = vmul.f32 %v575_v50, %v575_v50 }
  0xbf   : > { %v1210_v38 = vpop.f32.mrf.mxu2  ;;  %v1216_v43 = vpop.f32.mrf.mxu3  ;;  %v670_v18 = vadd.f32 %v669_v13, %v639_v6 }
  0xc0   : > { %v430_v39 = vpop.f32.mrf.mxu0  ;;  %v1212_v40 = vpop.f32.mrf.mxu1 }
  0xc1   : > { %v966_v41 = vpack.c.bf16 %v430_v39, %v428_v33  ;;  %v986_v42 = vpack.c.bf16 %v1212_v40, %v1200_v34  ;;  %v506_v60 = vpack.c.bf16 %v430_v39, %v430_v39 }
  0xc3   : > { %1038 = vst [vmem:[%s1188_s14 + $0x8] sm:$0xff] %v966_v41   ;;  %v570_v1 = vunpack.c.l.bf16 %v506_v60 }
  0xc4   : > { %1042 = vst [vmem:[%s1188_s14 + $0x28] sm:$0xff] %v986_v42  }
  0xc5   : > { %v640_v15 = vmul.f32 %v570_v1, %v570_v1  ;;  %v601_v19 = vadd.f32 %v600_v14, %v570_v1 }
  0xc7   : > { %v1220_v44 = vpop.f32.mrf.mxu2  ;;  %v1226_v48 = vpop.f32.mrf.mxu3  ;;  %v671_v22 = vadd.f32 %v670_v18, %v640_v15 }
  0xc8   : > { %v433_v45 = vpop.f32.mrf.mxu0  ;;  %v1222_v46 = vpop.f32.mrf.mxu1  ;;  %v1006_v47 = vpack.c.bf16 %v1220_v44, %v1210_v38  ;;  %v1026_v49 = vpack.c.bf16 %v1226_v48, %v1216_v43 }
  0xc9   : > { %v507_v63 = vpack.c.bf16 %v433_v45, %v433_v45 }
  0xca   : > { %1046 = vst [vmem:[%s1188_s14 + $0x48] sm:$0xff] %v1006_v47  }
  0xcb   : > { %1050 = vst [vmem:[%s1188_s14 + $0x68] sm:$0xff] %v1026_v49   ;;  %v571_v7 = vunpack.c.l.bf16 %v507_v63  ;;  %v515_v63 = vpack.c.bf16 %v1222_v46, %v1222_v46 }
  0xcd   : > { %v641_v20 = vmul.f32 %v571_v7, %v571_v7  ;;  %v602_v23 = vadd.f32 %v601_v19, %v571_v7 }
  0xcf   : > { %v1232_v52 = vpop.f32.mrf.mxu2  ;;  %v1238_v58 = vpop.f32.mrf.mxu3  ;;  %v672_v33 = vadd.f32 %v671_v22, %v641_v20  ;;  %v519_v20 = vpack.c.bf16 %v1181_v26, %v1181_v26  ;;  %v522_v26 = vpack.c.bf16 %v1220_v44, %v1220_v44 }
  0xd0   : > { %v435_v54 = vpop.f32.mrf.mxu0  ;;  %v1234_v55 = vpop.f32.mrf.mxu1 }
  0xd1   : > { %v971_v56 = vpack.c.bf16 %v435_v54, %v433_v45  ;;  %v991_v57 = vpack.c.bf16 %v1234_v55, %v1222_v46  ;;  %v508_v3 = vpack.c.bf16 %v435_v54, %v435_v54  ;;  %v514_v54 = vpack.c.bf16 %v1212_v40, %v1212_v40 }
  0xd2   : > { %v516_v5 = vpack.c.bf16 %v1234_v55, %v1234_v55 }
  0xd3   : > { %1039 = vst [vmem:[%s1188_s14 + $0x10] sm:$0xff] %v971_v56   ;;  %v572_v17 = vunpack.c.l.bf16 %v508_v3  ;;  %v576_v56 = vunpack.c.l.bf16 %v512_v30  ;;  %v578_v2 = vunpack.c.l.bf16 %v514_v54 }
  0xd4   : > { %1043 = vst [vmem:[%s1188_s14 + $0x30] sm:$0xff] %v991_v57  }
  0xd5   : > { %v642_v27 = vmul.f32 %v572_v17, %v572_v17  ;;  %v603_v35 = vadd.f32 %v602_v23, %v572_v17  ;;  %v646_v3 = vmul.f32 %v576_v56, %v576_v56  ;;  %v580_v17 = vunpack.c.l.bf16 %v516_v5 }
  0xd7   : > { %v1242_v4 = vpop.f32.mrf.mxu2  ;;  %v1248_v12 = vpop.f32.mrf.mxu3  ;;  %v673_v51 = vadd.f32 %v672_v33, %v642_v27  ;;  %v520_v27 = vpack.c.bf16 %v1198_v32, %v1198_v32  ;;  %v650_v30 = vmul.f32 %v580_v17, %v580_v17 }
  0xd8   : > { %v438_v8 = vpop.f32.mrf.mxu0  ;;  %v1244_v9 = vpop.f32.mrf.mxu1  ;;  %v1011_v10 = vpack.c.bf16 %v1242_v4, %v1232_v52  ;;  %v1031_v16 = vpack.c.bf16 %v1248_v12, %v1238_v58 }
  0xd9   : > { %v509_v11 = vpack.c.bf16 %v438_v8, %v438_v8  ;;  %v517_v15 = vpack.c.bf16 %v1244_v9, %v1244_v9 }
  0xda   : > { %1047 = vst [vmem:[%s1188_s14 + $0x50] sm:$0xff] %v1011_v10   ;;  %v647_v10 = vmul.f32 %v577_v61, %v577_v61 }
  0xdb   : > { %1051 = vst [vmem:[%s1188_s14 + $0x70] sm:$0xff] %v1031_v16   ;;  %v573_v21 = vunpack.c.l.bf16 %v509_v11  ;;  %v579_v11 = vunpack.c.l.bf16 %v515_v63  ;;  %v648_v16 = vmul.f32 %v578_v2, %v578_v2  ;;  %v581_v22 = vunpack.c.l.bf16 %v517_v15 }
  0xdd   : > { %v643_v41 = vmul.f32 %v573_v21, %v573_v21  ;;  %v604_v53 = vadd.f32 %v603_v35, %v573_v21  ;;  %v649_v21 = vmul.f32 %v579_v11, %v579_v11 }
  0xdf   : > { %v1256_v29 = vpop.f32.mrf.mxu2  ;;  %v1261_v49 = vpop.f32.mrf.mxu3  ;;  %v674_v57 = vadd.f32 %v673_v51, %v643_v41  ;;  %v583_v41 = vunpack.c.l.bf16 %v519_v20 }
  0xe0   : > { %v440_v37 = vpop.f32.mrf.mxu0  ;;  %v460_v39 = vpop.f32.mrf.mxu1 }
  0xe1   : > { %v510_v42 = vpack.c.bf16 %v440_v37, %v440_v37  ;;  %v976_v45 = vpack.c.bf16 %v440_v37, %v438_v8  ;;  %v996_v47 = vpack.c.bf16 %v460_v39, %v1244_v9  ;;  %v518_v19 = vpack.c.bf16 %v460_v39, %v460_v39 }
  0xe2   : > { %v521_v37 = vpack.c.bf16 %v1210_v38, %v1210_v38  ;;  %v651_v39 = vmul.f32 %v581_v22, %v581_v22  ;;  %v653_v32 = vmul.f32 %v583_v41, %v583_v41 }
  0xe3   : > { %1040 = vst [vmem:[%s1188_s14 + $0x18] sm:$0xff] %v976_v45   ;;  %v574_v28 = vunpack.c.l.bf16 %v510_v42  ;;  %v582_v9 = vunpack.c.l.bf16 %v518_v19 }
  0xe4   : > { %1044 = vst [vmem:[%s1188_s14 + $0x38] sm:$0xff] %v996_v47   ;;  %v584_v47 = vunpack.c.l.bf16 %v520_v27 }
  0xe5   : > { %v605_v59 = vadd.f32 %v604_v53, %v574_v28  ;;  %v644_v60 = vmul.f32 %v574_v28, %v574_v28  ;;  %v652_v51 = vmul.f32 %v582_v9, %v582_v9  ;;  %v585_v53 = vunpack.c.l.bf16 %v521_v37 }
  0xe6   : > { %v523_v28 = vpack.c.bf16 %v1232_v52, %v1232_v52  ;;  %v654_v38 = vmul.f32 %v584_v47, %v584_v47  ;;  %v532_v37 = vpack.c.bf16 %v1248_v12, %v1248_v12 }
  0xe7   : > { %v606_v34 = vadd.f32 %v605_v59, %v575_v50  ;;  %v675_v0 = vadd.f32 %v674_v57, %v644_v60  ;;  %v1271_v1 = vpop.f32.mrf.mxu2  ;;  %v1277_v8 = vpop.f32.mrf.mxu3  ;;  %v586_v57 = vunpack.c.l.bf16 %v522_v26 }
  0xe8   : > { %v1016_v40 = vpack.c.bf16 %v1271_v1, %v1256_v29  ;;  %v1036_v46 = vpack.c.bf16 %v1277_v8, %v1261_v49  ;;  %v587_v44 = vunpack.c.l.bf16 %v523_v28  ;;  %v526_v5 = vpack.c.bf16 %v1271_v1, %v1271_v1 }
  0xe9   : > { %v607_v6 = vadd.f32 %v606_v34, %v576_v56  ;;  %v676_v7 = vadd.f32 %v675_v0, %v645_v62  ;;  %v655_v62 = vmul.f32 %v585_v53, %v585_v53  ;;  %v525_v0 = vpack.c.bf16 %v1256_v29, %v1256_v29 }
  0xea   : > { %1048 = vst [vmem:[%s1188_s14 + $0x58] sm:$0xff] %v1016_v40   ;;  %v590_v15 = vunpack.c.l.bf16 %v526_v5 }
  0xeb   : > { %v608_v13 = vadd.f32 %v607_v6, %v577_v61  ;;  %v677_v14 = vadd.f32 %v676_v7, %v646_v3  ;;  %1052 = vst [vmem:[%s1188_s14 + $0x78] sm:$0xff] %v1036_v46   ;;  %v524_v61 = vpack.c.bf16 %v1242_v4, %v1242_v4  ;;  %v527_v6 = vpack.c.bf16 %v1194_v31, %v1194_v31 }
  0xec   : > { %v657_v7 = vmul.f32 %v587_v44, %v587_v44  ;;  %v589_v46 = vunpack.c.l.bf16 %v525_v0  ;;  %v530_v31 = vpack.c.bf16 %v1226_v48, %v1226_v48 }
  0xed   : > { %v678_v18 = vadd.f32 %v677_v14, %v647_v10  ;;  %v609_v55 = vadd.f32 %v608_v13, %v578_v2  ;;  %v656_v2 = vmul.f32 %v586_v57, %v586_v57  ;;  %v588_v3 = vunpack.c.l.bf16 %v524_v61 }
  0xef   : > { %v610_v23 = vadd.f32 %v609_v55, %v579_v11  ;;  %v679_v24 = vadd.f32 %v678_v18, %v648_v16  ;;  %v528_v11 = vpack.c.bf16 %v1204_v36, %v1204_v36  ;;  %v658_v14 = vmul.f32 %v588_v3, %v588_v3 }
  0xf0   : > { %v529_v16 = vpack.c.bf16 %v1216_v43, %v1216_v43  ;;  %v659_v55 = vmul.f32 %v589_v46, %v589_v46 }
  0xf1   : > { %v611_v33 = vadd.f32 %v610_v23, %v580_v17  ;;  %v680_v35 = vadd.f32 %v679_v24, %v649_v21  ;;  %v591_v17 = vunpack.c.l.bf16 %v527_v6  ;;  %v592_v19 = vunpack.c.l.bf16 %v528_v11 }
  0xf2   : > { %v593_v23 = vunpack.c.l.bf16 %v529_v16  ;;  %v531_v24 = vpack.c.bf16 %v1238_v58, %v1238_v58  ;;  %v596_v58 = vunpack.c.l.bf16 %v532_v37 }
  0xf3   : > { %v612_v42 = vadd.f32 %v611_v33, %v581_v22  ;;  %v681_v45 = vadd.f32 %v680_v35, %v650_v30  ;;  %v660_v22 = vmul.f32 %v590_v15, %v590_v15  ;;  %v661_v36 = vmul.f32 %v591_v17, %v591_v17 }
  0xf4   : > { %v594_v33 = vunpack.c.l.bf16 %v530_v31  ;;  %v662_v43 = vmul.f32 %v592_v19, %v592_v19  ;;  %v595_v48 = vunpack.c.l.bf16 %v531_v24 }
  0xf5   : > { %v682_v25 = vadd.f32 %v681_v45, %v651_v39  ;;  %v613_v50 = vadd.f32 %v612_v42, %v582_v9  ;;  %v533_v45 = vpack.c.bf16 %v1261_v49, %v1261_v49 }
  0xf6   : > { %v664_v26 = vmul.f32 %v594_v33, %v594_v33 }
  0xf7   : > { %v614_v54 = vadd.f32 %v613_v50, %v583_v41  ;;  %v683_v56 = vadd.f32 %v682_v25, %v652_v51  ;;  %v663_v41 = vmul.f32 %v593_v23, %v593_v23  ;;  %v534_v50 = vpack.c.bf16 %v1277_v8, %v1277_v8 }
  0xf8   : > { %v665_v51 = vmul.f32 %v595_v48, %v595_v48  ;;  %v597_v12 = vunpack.c.l.bf16 %v533_v45 }
  0xf9   : > { %v615_v59 = vadd.f32 %v614_v54, %v584_v47  ;;  %v684_v60 = vadd.f32 %v683_v56, %v653_v32  ;;  %v666_v54 = vmul.f32 %v596_v58, %v596_v58 }
  0xfa   : > { %v667_v49 = vmul.f32 %v597_v12, %v597_v12 }
  0xfb   : > { %v616_v63 = vadd.f32 %v615_v59, %v585_v53  ;;  %v685_v34 = vadd.f32 %v684_v60, %v654_v38 }
  0xfd   : > { %v686_v40 = vadd.f32 %v685_v34, %v655_v62  ;;  %v617_v52 = vadd.f32 %v616_v63, %v586_v57  ;;  %v598_v57 = vunpack.c.l.bf16 %v534_v50 }
  0xff   : > { %v618_v10 = vadd.f32 %v617_v52, %v587_v44  ;;  %v687_v4 = vadd.f32 %v686_v40, %v656_v2  ;;  %v668_v62 = vmul.f32 %v598_v57, %v598_v57 }
 0x101   : > { %v619_v13 = vadd.f32 %v618_v10, %v588_v3  ;;  %v688_v29 = vadd.f32 %v687_v4, %v657_v7 }
 0x103   : > { %v689_v18 = vadd.f32 %v688_v29, %v658_v14  ;;  %v620_v1 = vadd.f32 %v619_v13, %v589_v46 }
 0x105   : > { %v690_v20 = vadd.f32 %v689_v18, %v659_v55  ;;  %v621_v21 = vadd.f32 %v620_v1, %v590_v15 }
 0x107   : > { %v622_v27 = vadd.f32 %v621_v21, %v591_v17  ;;  %v691_v30 = vadd.f32 %v690_v20, %v660_v22 }
 0x109   : > { %v623_v35 = vadd.f32 %v622_v27, %v592_v19  ;;  %v692_v9 = vadd.f32 %v691_v30, %v661_v36 }
 0x10b   : > { %v624_v42 = vadd.f32 %v623_v35, %v593_v23  ;;  %v693_v39 = vadd.f32 %v692_v9, %v662_v43 }
 0x10d   : > { %v694_v47 = vadd.f32 %v693_v39, %v663_v41  ;;  %v625_v25 = vadd.f32 %v624_v42, %v594_v33 }
 0x10f   : > { %v626_v53 = vadd.f32 %v625_v25, %v595_v48  ;;  %v695_v32 = vadd.f32 %v694_v47, %v664_v26 }
 0x111   : > { %v627_v28 = vadd.f32 %v626_v53, %v596_v58  ;;  %v696_v56 = vadd.f32 %v695_v32, %v665_v51 }
 0x113   : > { %v697_v38 = vadd.f32 %v696_v56, %v666_v54  ;;  %v628_v59 = vadd.f32 %v627_v28, %v597_v12 }
 0x115   : > { %v698_v60 = vadd.f32 %v697_v38, %v667_v49  ;;  %v629_v61 = vadd.f32 %v628_v59, %v598_v57 }
 0x117   : > { %v630_v44 = vrot.slane %v629_v61, 4  ;;  %v699_v63 = vadd.f32 %v698_v60, %v668_v62 }
 0x119   : > { %v631_v8 = vadd.f32 %v630_v44, %v629_v61  ;;  %v700_v34 = vrot.slane %v699_v63, 4 }
 0x11b   : > { %v632_v0 = vrot.slane %v631_v8, 2  ;;  %v701_v2 = vadd.f32 %v700_v34, %v699_v63 }
 0x11d   : > { %v633_v40 = vadd.f32 %v632_v0, %v631_v8  ;;  %v702_v3 = vrot.slane %v701_v2, 2 }
 0x11f   : > { %v634_v52 = vrot.slane %v633_v40, 1  ;;  %v703_v5 = vadd.f32 %v702_v3, %v701_v2 }
 0x121   : > { %v635_v6 = vadd.f32 %v634_v52, %v633_v40  ;;  %v704_v7 = vrot.slane %v703_v5, 1 }
 0x123   : > { %636 = vst [vmem:[%s217_s20] sm:$0xff] %v635_v6  ;;  %v705_v10 = vadd.f32 %v704_v7, %v703_v5 }
 0x125   : > { %706 = vst [vmem:[%s221_s23] sm:$0xff] %v705_v10 }
 0x126 PF: > { %s15_s15 = sadd.s32 1, %s1091_s15  }
 0x127   : > { %p12_p5 = scmp.ge.s32.totalorder %s15_s15, 4  }
 0x129   :  { %14 = sbr.rel (!%p12_p5) target bundleno = 1 (0x1), region = 82 }

// kernel: _lambda_.8
= control target key start
LH: loop header
LB: loop body
LE: loop exit
PB: predicated region body
PF: predicated region fallthrough
CT: control target
= control target key end

     0   :  { %s1483_s21 = smov 0   ;;  %s1881_s0 = inlined_call_operand.vmem [shape: bf16[512,128], index: 0, kind: input, shape index: {}]   ;;  %s1882_s1 = inlined_call_operand.vmem [shape: f32[1,128], index: 1, kind: input, shape index: {}]   ;;  %s1883_s2 = inlined_call_operand.vmem [shape: f32[1,128], index: 2, kind: input, shape index: {}]   ;;  %s1884_s3 = inlined_call_operand.vmem [shape: bf16[128,128], index: 3, kind: input, shape index: {}]   ;;  %s1885_s4 = inlined_call_operand.vmem [shape: bf16[512,128], index: 4, kind: output, shape index: {0}]   ;;  %s1886_s5 = inlined_call_operand.vmem [shape: f32[2,8,128], index: 5, kind: output, shape index: {1}]   ;;  %s1887_s6 = inlined_call_operand.vmem [shape: f32[2,8,128], index: 6, kind: output, shape index: {2}]  }
   0x1 LB: > { %s1489_s22 = sadd.s32 4294967295, %s1446_s21   ;;  %p1134_p0 = scmp.ge.s32.totalorder %s1446_s21, 1  ;;  %s1446_s21 = sphi %s1483_s21, %s17_s21  }
   0x2   : > { %p218_p1 = scmp.lt.s32.totalorder %s1446_s21, 3 }
   0x4   : > { %p219_p2 = pnand %p1134_p0, %p218_p1 }
   0x5   : > { %s1135_s25 = sshll.u32 (!%p219_p2), %s1489_s22, 5  ;;  %s1141_s14 = sshll.u32 (!%p219_p2), %s1489_s22, 8 }
   0x6   : > { %222 = sbr.rel (%p219_p2) target bundleno = 294 (0x126), region = 36  ;;  %p257_p3 = scmp.lt.s32.totalorder (!%p219_p2), %s1135_s25, 63 }
   0x7   : > { %p268_p4 = scmp.lt.s32.totalorder (!%p219_p2), %s1489_s22, 1 }
   0xb   : > { %v1231_v0 = vld [vmem:[%s1884_s3 + $0x38] sm:$0xff]  ;;  %v1230_v1 = vld [vmem:[%s1884_s3 + $0x30] sm:$0xff]  ;;  %s1897_s25 = smov (!%p257_p3, %s1135_s25), 63  ;;  %v1229_v2 = vld [vmem:[%s1884_s3 + $0x28] sm:$0xff]  ;;  %v445_v4 = vlaneseq  ;;  %v1537_v20 = vstv %s1141_s14  ;;  %s1899_s22 = smov (!%p268_p4, %s1489_s22), 1 }
   0xc   : > { %719 = vmatpush.bf16.msra.mxu0 %v1231_v0  ;;  %1406 = vmatpush.bf16.msra.mxu1 %v1231_v0  ;;  %s1136_s28 = sshll.u32 %s1897_s25, 2  ;;  %v1228_v5 = vld [vmem:[%s1884_s3 + $0x20] sm:$0xff]  ;;  %v1227_v14 = vld [vmem:[%s1884_s3 + $0x18] sm:$0xff]  ;;  %v1226_v25 = vld [vmem:[%s1884_s3 + $0x10] sm:$0xff]  ;;  %s1139_s25 = sshll.u32 %s1899_s22, 3 }
   0xd   : > { %1407 = vmatpush.bf16.msra.mxu2 %v1231_v0  ;;  %1408 = vmatpush.bf16.msra.mxu3 %v1231_v0  ;;  %s1511_s9 = scalar_lea.vmem %s1881_s0, %s1136_s28  ;;  %v1521_v9 = vld [vmem:[%s1882_s1] ss:$0 sm:$0xff]  ;;  %v1525_v11 = vshrl.u32 %v445_v4, 7  ;;  %v1225_v40 = vld [vmem:[%s1884_s3 + $0x8] sm:$0xff]  ;;  %s1741_s7 = scalar_lea.vmem %s1885_s4, %s1136_s28 }
   0xe   : > { %v1233_v3 = vld [vmem:[%s1511_s9] sm:$0xff]   ;;  %v1376_v32 = vld [vmem:[%s1511_s9 + $0x8] sm:$0xff]   ;;  %s275_s12 = scalar_lea.vmem %s1887_s6, %s1139_s25 }
   0xf   : > { %v1379_v6 = vld [vmem:[%s1511_s9 + $0x20] sm:$0xff]   ;;  %v1234_v7 = vunpack.c.l.bf16 %v1233_v3  ;;  %v1235_v8 = vunpack.c.h.bf16 %v1233_v3  ;;  %v447_v21 = vadd.s32 8, %v1525_v11  ;;  %v454_v24 = vadd.s32 64, %v1525_v11  ;;  %v1380_v51 = vld [vmem:[%s1511_s9 + $0x28] sm:$0xff]  }
  0x10   : > { %720 = vmatpush.bf16.msra.mxu0 %v1230_v1  ;;  %1409 = vmatpush.bf16.msra.mxu1 %v1230_v1  ;;  %v1383_v10 = vld [vmem:[%s1511_s9 + $0x40] sm:$0xff]   ;;  %v1250_v12 = vunpack.c.l.bf16 %v1379_v6  ;;  %v1251_v13 = vunpack.c.h.bf16 %v1379_v6  ;;  %v455_v26 = vadd.s32 72, %v1525_v11  ;;  %v479_v31 = vadd.s32 %v1537_v20, %v1525_v11  ;;  %v1384_v58 = vld [vmem:[%s1511_s9 + $0x48] sm:$0xff]  }
  0x11   : > { %1410 = vmatpush.bf16.msra.mxu2 %v1230_v1  ;;  %1411 = vmatpush.bf16.msra.mxu3 %v1230_v1  ;;  %v1266_v15 = vunpack.c.l.bf16 %v1383_v10  ;;  %v1267_v16 = vunpack.c.h.bf16 %v1383_v10  ;;  %v344_v17 = vmul.f32 %v1521_v9, %v1234_v7  ;;  %v345_v18 = vmul.f32 %v1521_v9, %v1235_v8  ;;  %v1535_v19 = vld [vmem:[%s1883_s2] ss:$0 sm:$0xff] }
  0x12   : > { %v352_v22 = vmul.f32 %v1521_v9, %v1250_v12  ;;  %v353_v23 = vmul.f32 %v1521_v9, %v1251_v13  ;;  %v448_v33 = vadd.s32 16, %v1525_v11  ;;  %v462_v34 = vadd.s32 128, %v1525_v11  ;;  %v1387_v52 = vld [vmem:[%s1511_s9 + $0x60] sm:$0xff]  }
  0x13   : > { %v360_v27 = vmul.f32 %v1521_v9, %v1266_v15  ;;  %v361_v28 = vmul.f32 %v1521_v9, %v1267_v16  ;;  %v380_v29 = vadd.f32 %v1535_v19, %v344_v17  ;;  %v381_v30 = vadd.f32 %v1535_v19, %v345_v18  ;;  %v1224_v55 = vld [vmem:[%s1884_s3] sm:$0xff] }
  0x14   : > { %721 = vmatpush.bf16.msra.mxu0 %v1229_v2  ;;  %1412 = vmatpush.bf16.msra.mxu1 %v1229_v2  ;;  %v463_v35 = vadd.s32 136, %v1525_v11  ;;  %v480_v36 = vadd.s32 %v1537_v20, %v447_v21  ;;  %v388_v37 = vadd.f32 %v1535_v19, %v352_v22  ;;  %v389_v38 = vadd.f32 %v1535_v19, %v353_v23 }
  0x15   : > { %1413 = vmatpush.bf16.msra.mxu2 %v1229_v2  ;;  %1414 = vmatpush.bf16.msra.mxu3 %v1229_v2  ;;  %v487_v39 = vadd.s32 %v1537_v20, %v454_v24  ;;  %v488_v41 = vadd.s32 %v1537_v20, %v455_v26  ;;  %v396_v42 = vadd.f32 %v1535_v19, %v360_v27  ;;  %v412_v44 = vmax.f32 %v380_v29, 0.0 }
  0x16   : > { %v397_v43 = vadd.f32 %v1535_v19, %v361_v28  ;;  %v413_v45 = vmax.f32 %v381_v30, 0.0  ;;  %v1238_v46 = vunpack.c.l.bf16 %v1376_v32  ;;  %v1239_v47 = vunpack.c.h.bf16 %v1376_v32 }
  0x17   : > { %vm511_vm0 = vcmp.lt.s32.totalorder %v479_v31, 512  ;;  %v1568_v48 = vadd.s32 %v1537_v20, %v448_v33  ;;  %v495_v49 = vadd.s32 %v1537_v20, %v462_v34  ;;  %v496_v50 = vadd.s32 %v1537_v20, %v463_v35  ;;  %v1377_v35 = vld [vmem:[%s1511_s9 + $0x10] sm:$0xff]  }
  0x18   : > { %722 = vmatpush.bf16.msra.mxu0 %v1228_v5  ;;  %1415 = vmatpush.bf16.msra.mxu1 %v1228_v5  ;;  %vm512_vm1 = vcmp.lt.s32.totalorder %v480_v36, 512  ;;  %v420_v53 = vmax.f32 %v388_v37, 0.0  ;;  %v421_v54 = vmax.f32 %v389_v38, 0.0  ;;  %vm519_vm2 = vcmp.lt.s32.totalorder %v487_v39, 512 }
  0x19   : > { %1416 = vmatpush.bf16.msra.mxu2 %v1228_v5  ;;  %1417 = vmatpush.bf16.msra.mxu3 %v1228_v5  ;;  %vm520_vm3 = vcmp.lt.s32.totalorder %v488_v41, 512  ;;  %v428_v56 = vmax.f32 %v396_v42, 0.0  ;;  %v429_v57 = vmax.f32 %v397_v43, 0.0  ;;  %v1282_v59 = vunpack.c.l.bf16 %v1387_v52  ;;  %vm1583_vm6 = vmpackc.low %vm512_vm1, %vm511_vm0 }
  0x1a   : > { %v1175_v60 = vpack.c.bf16 %v413_v45, %v412_v44  ;;  %v346_v61 = vmul.f32 %v1521_v9, %v1238_v46  ;;  %v347_v62 = vmul.f32 %v1521_v9, %v1239_v47  ;;  %v1254_v63 = vunpack.c.l.bf16 %v1380_v51  ;;  %vm1589_vm7 = vmpackc.low %vm520_vm3, %vm519_vm2 }
  0x1b   : > { %vm527_vm4 = vcmp.lt.s32.totalorder %v495_v49, 512  ;;  %vm528_vm5 = vcmp.lt.s32.totalorder %v496_v50, 512  ;;  %v1283_v0 = vunpack.c.h.bf16 %v1387_v52  ;;  %v368_v1 = vmul.f32 %v1521_v9, %v1282_v59  ;;  %v1388_v52 = vld [vmem:[%s1511_s9 + $0x68] sm:$0xff]   ;;  %v1385_v59 = vld [vmem:[%s1511_s9 + $0x50] sm:$0xff]  }
  0x1c   : > { %723 = vmatpush.bf16.msra.mxu0 %v1227_v14  ;;  %1418 = vmatpush.bf16.msra.mxu1 %v1227_v14  ;;  %v1187_v3 = vpack.c.bf16 %v421_v54, %v420_v53  ;;  %v1255_v4 = vunpack.c.h.bf16 %v1380_v51  ;;  %v1270_v5 = vunpack.c.l.bf16 %v1384_v58  ;;  %v1271_v6 = vunpack.c.h.bf16 %v1384_v58  ;;  %vm1198_vm8 = vmpackc.low %vm528_vm5, %vm527_vm4  ;;  %v1381_v51 = vld [vmem:[%s1511_s9 + $0x30] sm:$0xff]  }
  0x1d   : > { %1419 = vmatpush.bf16.msra.mxu2 %v1227_v14  ;;  %1420 = vmatpush.bf16.msra.mxu3 %v1227_v14  ;;  %v1199_v8 = vpack.c.bf16 %v429_v57, %v428_v56  ;;  %v369_v10 = vmul.f32 %v1521_v9, %v1283_v0  ;;  %v404_v12 = vadd.f32 %v1535_v19, %v368_v1  ;;  %v470_v13 = vadd.s32 192, %v1525_v11 }
  0x1e   : > { %v382_v14 = vadd.f32 %v1535_v19, %v346_v61  ;;  %v383_v15 = vadd.f32 %v1535_v19, %v347_v62  ;;  %v449_v16 = vadd.s32 24, %v1525_v11  ;;  %v354_v17 = vmul.f32 %v1521_v9, %v1254_v63 }
  0x1f   : > { %v405_v18 = vadd.f32 %v1535_v19, %v369_v10  ;;  %v436_v21 = vmax.f32 %v404_v12, 0.0  ;;  %v471_v22 = vadd.s32 200, %v1525_v11  ;;  %v503_v23 = vadd.s32 %v1537_v20, %v470_v13 }
  0x20   : > { %724 = vmatpush.bf16.msra.mxu0 %v1226_v25  ;;  %1421 = vmatpush.bf16.msra.mxu1 %v1226_v25  ;;  %v355_v24 = vmul.f32 %v1521_v9, %v1255_v4  ;;  %v362_v26 = vmul.f32 %v1521_v9, %v1270_v5  ;;  %v363_v27 = vmul.f32 %v1521_v9, %v1271_v6  ;;  %v457_v28 = vadd.s32 88, %v1525_v11 }
  0x21   : > { %1422 = vmatpush.bf16.msra.mxu2 %v1226_v25  ;;  %1423 = vmatpush.bf16.msra.mxu3 %v1226_v25  ;;  %v456_v25 = vadd.s32 80, %v1525_v11  ;;  %v437_v29 = vmax.f32 %v405_v18, 0.0  ;;  %v504_v30 = vadd.s32 %v1537_v20, %v471_v22  ;;  %vm535_vm9 = vcmp.lt.s32.totalorder %v503_v23, 512 }
  0x22   : > { %v414_v31 = vmax.f32 %v382_v14, 0.0  ;;  %v415_v32 = vmax.f32 %v383_v15, 0.0  ;;  %v482_v33 = vadd.s32 %v1537_v20, %v449_v16  ;;  %v390_v34 = vadd.f32 %v1535_v19, %v354_v17 }
  0x23   : > { %v464_v36 = vadd.s32 144, %v1525_v11  ;;  %v465_v37 = vadd.s32 152, %v1525_v11  ;;  %vm536_vm10 = vcmp.lt.s32.totalorder %v504_v30, 512  ;;  %v1211_v38 = vpack.c.bf16 %v437_v29, %v436_v21 }
  0x24   : > { %725 = vmatpush.bf16.msra.mxu0 %v1225_v40  ;;  %1424 = vmatpush.bf16.msra.mxu1 %v1225_v40  ;;  %v391_v39 = vadd.f32 %v1535_v19, %v355_v24  ;;  %v399_v41 = vadd.f32 %v1535_v19, %v363_v27  ;;  %vm1210_vm11 = vmpackc.low %vm536_vm10, %vm535_vm9  ;;  %v489_v42 = vadd.s32 %v1537_v20, %v456_v25  ;;  %v1242_v44 = vunpack.c.l.bf16 %v1377_v35 }
  0x25   : > { %1425 = vmatpush.bf16.msra.mxu2 %v1225_v40  ;;  %1426 = vmatpush.bf16.msra.mxu3 %v1225_v40  ;;  %v398_v40 = vadd.f32 %v1535_v19, %v362_v26  ;;  %v490_v43 = vadd.s32 %v1537_v20, %v457_v28  ;;  %v1243_v45 = vunpack.c.h.bf16 %v1377_v35  ;;  %vm513_vm12 = vcmp.lt.s32.totalorder %v1568_v48, 512 }
  0x26   : > { %vm514_vm13 = vcmp.lt.s32.totalorder %v482_v33, 512  ;;  %v1178_v46 = vpack.c.bf16 %v415_v32, %v414_v31  ;;  %v422_v47 = vmax.f32 %v390_v34, 0.0  ;;  %v497_v49 = vadd.s32 %v1537_v20, %v464_v36 }
  0x27   : > { %v498_v50 = vadd.s32 %v1537_v20, %v465_v37  ;;  %v423_v53 = vmax.f32 %v391_v39, 0.0  ;;  %v430_v54 = vmax.f32 %v398_v40, 0.0  ;;  %v1286_v56 = vunpack.c.l.bf16 %v1388_v52  ;;  %vm1639_vm2 = vmpackc.low %vm514_vm13, %vm513_vm12  ;;  %v1378_v37 = vld [vmem:[%s1511_s9 + $0x18] sm:$0xff]  }
  0x28   : > { %726 = vmatpush.bf16.msra.mxu0 %v1224_v55  ;;  %1427 = vmatpush.bf16.msra.mxu1 %v1224_v55  ;;  %vm521_vm14 = vcmp.lt.s32.totalorder %v489_v42, 512  ;;  %vm522_vm15 = vcmp.lt.s32.totalorder %v490_v43, 512  ;;  %v348_v57 = vmul.f32 %v1521_v9, %v1242_v44  ;;  %v349_v58 = vmul.f32 %v1521_v9, %v1243_v45 }
  0x29   : > { %1428 = vmatpush.bf16.msra.mxu2 %v1224_v55  ;;  %1429 = vmatpush.bf16.msra.mxu3 %v1224_v55  ;;  %v431_v55 = vmax.f32 %v399_v41, 0.0  ;;  %v1259_v61 = vunpack.c.h.bf16 %v1381_v51  ;;  %v1287_v62 = vunpack.c.h.bf16 %v1388_v52  ;;  %v370_v63 = vmul.f32 %v1521_v9, %v1286_v56  ;;  %vm1189_vm3 = vmpackc.low %vm522_vm15, %vm521_vm14  ;;  %v1389_v41 = vld [vmem:[%s1511_s9 + $0x70] sm:$0xff]   ;;  %v1386_v56 = vld [vmem:[%s1511_s9 + $0x58] sm:$0xff]  }
  0x2a   : > { %v450_v0 = vadd.s32 32, %v1525_v11  ;;  %v451_v1 = vadd.s32 40, %v1525_v11  ;;  %vm529_vm0 = vcmp.lt.s32.totalorder %v497_v49, 512  ;;  %vm530_vm1 = vcmp.lt.s32.totalorder %v498_v50, 512  ;;  %v1382_v50 = vld [vmem:[%s1511_s9 + $0x38] sm:$0xff]  }
  0x2b   : > { %1176 = vmatmul.msk.bf16.vlgmr.msra.gmra.mxu0 %vm1583_vm6, %v1175_v60  ;;  %1188 = vmatmul.msk.bf16.vlgmr.msra.gmra.mxu1 %vm1589_vm7, %v1187_v3  ;;  %v1258_v60 = vunpack.c.l.bf16 %v1381_v51  ;;  %v1190_v3 = vpack.c.bf16 %v423_v53, %v422_v47  ;;  %v1202_v4 = vpack.c.bf16 %v431_v55, %v430_v54  ;;  %v1274_v5 = vunpack.c.l.bf16 %v1385_v59  ;;  %vm1201_vm4 = vmpackc.low %vm530_vm1, %vm529_vm0 }
  0x2c   : > { %1200 = vmatmul.msk.bf16.vlgmr.msra.gmra.mxu2 %vm1198_vm8, %v1199_v8  ;;  %1212 = vmatmul.msk.bf16.vlgmr.msra.gmra.mxu3 %vm1210_vm11, %v1211_v38  ;;  %v1275_v6 = vunpack.c.h.bf16 %v1385_v59  ;;  %v371_v7 = vmul.f32 %v1521_v9, %v1287_v62  ;;  %v406_v8 = vadd.f32 %v1535_v19, %v370_v63  ;;  %v472_v10 = vadd.s32 208, %v1525_v11 }
  0x2d   : > { %v473_v48 = vadd.s32 216, %v1525_v11  ;;  %v384_v12 = vadd.f32 %v1535_v19, %v348_v57  ;;  %v385_v13 = vadd.f32 %v1535_v19, %v349_v58  ;;  %v356_v14 = vmul.f32 %v1521_v9, %v1258_v60 }
  0x2e   : > { %v357_v15 = vmul.f32 %v1521_v9, %v1259_v61  ;;  %v407_v16 = vadd.f32 %v1535_v19, %v371_v7  ;;  %v438_v17 = vmax.f32 %v406_v8, 0.0  ;;  %v505_v18 = vadd.s32 %v1537_v20, %v472_v10 }
  0x2f   : > { %v506_v21 = vadd.s32 %v1537_v20, %v473_v48  ;;  %v483_v22 = vadd.s32 %v1537_v20, %v450_v0  ;;  %v458_v23 = vadd.s32 96, %v1525_v11  ;;  %v459_v24 = vadd.s32 104, %v1525_v11 }
  0x30   : > { %v364_v25 = vmul.f32 %v1521_v9, %v1274_v5  ;;  %v365_v26 = vmul.f32 %v1521_v9, %v1275_v6  ;;  %v439_v27 = vmax.f32 %v407_v16, 0.0  ;;  %vm537_vm5 = vcmp.lt.s32.totalorder %v505_v18, 512 }
  0x31   : > { %vm538_vm6 = vcmp.lt.s32.totalorder %v506_v21, 512  ;;  %v484_v28 = vadd.s32 %v1537_v20, %v451_v1  ;;  %v392_v29 = vadd.f32 %v1535_v19, %v356_v14  ;;  %v393_v30 = vadd.f32 %v1535_v19, %v357_v15 }
  0x32   : > { %v466_v31 = vadd.s32 160, %v1525_v11  ;;  %vm1213_vm7 = vmpackc.low %vm538_vm6, %vm537_vm5  ;;  %v416_v32 = vmax.f32 %v384_v12, 0.0  ;;  %v417_v33 = vmax.f32 %v385_v13, 0.0  ;;  %v467_v34 = vadd.s32 168, %v1525_v11  ;;  %v1390_v12 = vld [vmem:[%s1511_s9 + $0x78] sm:$0xff]   ;;  %s271_s9 = scalar_lea.vmem %s1886_s5, %s1139_s25 }
  0x33   : > { %v1214_v35 = vpack.c.bf16 %v439_v27, %v438_v17  ;;  %v491_v36 = vadd.s32 %v1537_v20, %v458_v23  ;;  %vm515_vm8 = vcmp.lt.s32.totalorder %v483_v22, 512  ;;  %v492_v38 = vadd.s32 %v1537_v20, %v459_v24 }
  0x34   : > { %v400_v39 = vadd.f32 %v1535_v19, %v364_v25  ;;  %v401_v40 = vadd.f32 %v1535_v19, %v365_v26  ;;  %vm516_vm9 = vcmp.lt.s32.totalorder %v484_v28, 512  ;;  %v424_v42 = vmax.f32 %v392_v29, 0.0 }
  0x35   : > { %v425_v43 = vmax.f32 %v393_v30, 0.0  ;;  %v499_v44 = vadd.s32 %v1537_v20, %v466_v31  ;;  %v1181_v45 = vpack.c.bf16 %v417_v33, %v416_v32  ;;  %v1247_v47 = vunpack.c.h.bf16 %v1378_v37  ;;  %vm1686_vm14 = vmpackc.low %vm516_vm9, %vm515_vm8 }
  0x36   : > { %v500_v49 = vadd.s32 %v1537_v20, %v467_v34  ;;  %vm523_vm10 = vcmp.lt.s32.totalorder %v491_v36, 512  ;;  %v1290_v51 = vunpack.c.l.bf16 %v1389_v41  ;;  %v1291_v52 = vunpack.c.h.bf16 %v1389_v41 }
  0x37   : > { %v474_v53 = vadd.s32 224, %v1525_v11  ;;  %vm524_vm11 = vcmp.lt.s32.totalorder %v492_v38, 512  ;;  %v432_v54 = vmax.f32 %v400_v39, 0.0  ;;  %v433_v55 = vmax.f32 %v401_v40, 0.0 }
  0x38   : > { %v475_v57 = vadd.s32 232, %v1525_v11  ;;  %v1193_v58 = vpack.c.bf16 %v425_v43, %v424_v42  ;;  %vm531_vm12 = vcmp.lt.s32.totalorder %v499_v44, 512  ;;  %v372_v59 = vmul.f32 %v1521_v9, %v1290_v51  ;;  %vm1192_vm15 = vmpackc.low %vm524_vm11, %vm523_vm10 }
  0x39   : > { %v373_v60 = vmul.f32 %v1521_v9, %v1291_v52  ;;  %vm532_vm13 = vcmp.lt.s32.totalorder %v500_v49, 512  ;;  %v1262_v61 = vunpack.c.l.bf16 %v1382_v50  ;;  %v507_v62 = vadd.s32 %v1537_v20, %v474_v53 }
  0x3a   : > { %v508_v63 = vadd.s32 %v1537_v20, %v475_v57  ;;  %v1263_v1 = vunpack.c.h.bf16 %v1382_v50  ;;  %v1278_v2 = vunpack.c.l.bf16 %v1386_v56  ;;  %v1205_v5 = vpack.c.bf16 %v433_v55, %v432_v54  ;;  %vm1204_vm0 = vmpackc.low %vm532_vm13, %vm531_vm12 }
  0x3b   : > { %1179 = vmatmul.msk.bf16.gmra.mxu0 %vm1639_vm2, %v1178_v46  ;;  %1191 = vmatmul.msk.bf16.gmra.mxu1 %vm1189_vm3, %v1190_v3  ;;  %v1246_v46 = vunpack.c.l.bf16 %v1378_v37  ;;  %v408_v3 = vadd.f32 %v1535_v19, %v372_v59  ;;  %v1279_v6 = vunpack.c.h.bf16 %v1386_v56  ;;  %v351_v8 = vmul.f32 %v1521_v9, %v1247_v47 }
  0x3c   : > { %1203 = vmatmul.msk.bf16.gmra.mxu2 %vm1201_vm4, %v1202_v4  ;;  %1215 = vmatmul.msk.bf16.gmra.mxu3 %vm1213_vm7, %v1214_v35  ;;  %v409_v4 = vadd.f32 %v1535_v19, %v373_v60  ;;  %v452_v13 = vadd.s32 48, %v1525_v11  ;;  %vm539_vm1 = vcmp.lt.s32.totalorder %v507_v62, 512  ;;  %vm540_vm2 = vcmp.lt.s32.totalorder %v508_v63, 512 }
  0x3d   : > { %v350_v7 = vmul.f32 %v1521_v9, %v1246_v46  ;;  %v440_v10 = vmax.f32 %v408_v3, 0.0  ;;  %v453_v14 = vadd.s32 56, %v1525_v11  ;;  %v358_v15 = vmul.f32 %v1521_v9, %v1262_v61  ;;  %vm1216_vm3 = vmpackc.low %vm540_vm2, %vm539_vm1 }
  0x3e   : > { %v441_v48 = vmax.f32 %v409_v4, 0.0  ;;  %v359_v16 = vmul.f32 %v1521_v9, %v1263_v1  ;;  %v366_v17 = vmul.f32 %v1521_v9, %v1278_v2  ;;  %v367_v18 = vmul.f32 %v1521_v9, %v1279_v6 }
  0x3f   : > { %v1294_v22 = vunpack.c.l.bf16 %v1390_v12  ;;  %v1295_v23 = vunpack.c.h.bf16 %v1390_v12  ;;  %v386_v24 = vadd.f32 %v1535_v19, %v350_v7  ;;  %v387_v25 = vadd.f32 %v1535_v19, %v351_v8 }
  0x40   : > { %v1217_v21 = vpack.c.bf16 %v441_v48, %v440_v10  ;;  %v460_v26 = vadd.s32 112, %v1525_v11  ;;  %v461_v27 = vadd.s32 120, %v1525_v11  ;;  %v468_v28 = vadd.s32 176, %v1525_v11 }
  0x41   : > { %v469_v29 = vadd.s32 184, %v1525_v11  ;;  %v485_v30 = vadd.s32 %v1537_v20, %v452_v13  ;;  %v486_v31 = vadd.s32 %v1537_v20, %v453_v14  ;;  %v394_v32 = vadd.f32 %v1535_v19, %v358_v15 }
  0x42   : > { %v395_v33 = vadd.f32 %v1535_v19, %v359_v16  ;;  %v402_v34 = vadd.f32 %v1535_v19, %v366_v17  ;;  %v403_v35 = vadd.f32 %v1535_v19, %v367_v18  ;;  %v374_v36 = vmul.f32 %v1521_v9, %v1294_v22 }
  0x43   : > { %v375_v37 = vmul.f32 %v1521_v9, %v1295_v23  ;;  %v418_v38 = vmax.f32 %v386_v24, 0.0  ;;  %v419_v39 = vmax.f32 %v387_v25, 0.0  ;;  %v493_v40 = vadd.s32 %v1537_v20, %v460_v26 }
  0x44   : > { %v494_v41 = vadd.s32 %v1537_v20, %v461_v27  ;;  %v501_v42 = vadd.s32 %v1537_v20, %v468_v28  ;;  %v502_v43 = vadd.s32 %v1537_v20, %v469_v29  ;;  %v476_v44 = vadd.s32 240, %v1525_v11 }
  0x45   : > { %vm517_vm4 = vcmp.lt.s32.totalorder %v485_v30, 512  ;;  %vm518_vm5 = vcmp.lt.s32.totalorder %v486_v31, 512  ;;  %v426_v46 = vmax.f32 %v394_v32, 0.0  ;;  %v427_v47 = vmax.f32 %v395_v33, 0.0 }
  0x46   : > { %v434_v49 = vmax.f32 %v402_v34, 0.0  ;;  %v435_v9 = vmax.f32 %v403_v35, 0.0  ;;  %v410_v50 = vadd.f32 %v1535_v19, %v374_v36  ;;  %v411_v51 = vadd.f32 %v1535_v19, %v375_v37  ;;  %vm1183_vm10 = vmpackc.low %vm518_vm5, %vm517_vm4 }
  0x47   : > { %vm525_vm6 = vcmp.lt.s32.totalorder %v493_v40, 512  ;;  %vm526_vm7 = vcmp.lt.s32.totalorder %v494_v41, 512  ;;  %vm533_vm8 = vcmp.lt.s32.totalorder %v501_v42, 512  ;;  %vm534_vm9 = vcmp.lt.s32.totalorder %v502_v43, 512 }
  0x48   : > { %v509_v52 = vadd.s32 %v1537_v20, %v476_v44  ;;  %v1196_v54 = vpack.c.bf16 %v427_v47, %v426_v46  ;;  %vm1195_vm11 = vmpackc.low %vm526_vm7, %vm525_vm6  ;;  %v1208_v55 = vpack.c.bf16 %v435_v9, %v434_v49  ;;  %v442_v56 = vmax.f32 %v410_v50, 0.0 }
  0x49   : > { %v443_v57 = vmax.f32 %v411_v51, 0.0  ;;  %vm1207_vm12 = vmpackc.low %vm534_vm9, %vm533_vm8 }
  0x4a   : > { %vm541_vm13 = vcmp.lt.s32.totalorder %v509_v52, 512 }
  0x4b   : > { %1182 = vmatmul.msk.bf16.gmra.mxu0 %vm1686_vm14, %v1181_v45  ;;  %1194 = vmatmul.msk.bf16.gmra.mxu1 %vm1192_vm15, %v1193_v58  ;;  %v477_v45 = vadd.s32 248, %v1525_v11  ;;  %v1184_v11 = vpack.c.bf16 %v419_v39, %v418_v38  ;;  %v1220_v19 = vpack.c.bf16 %v443_v57, %v442_v56 }
  0x4c   : > { %1206 = vmatmul.msk.bf16.gmra.mxu2 %vm1204_vm0, %v1205_v5  ;;  %1218 = vmatmul.msk.bf16.gmra.mxu3 %vm1216_vm3, %v1217_v21 }
  0x4d   : > { %v510_v53 = vadd.s32 %v1537_v20, %v477_v45 }
  0x4f   : > { %vm542_vm14 = vcmp.lt.s32.totalorder %v510_v53, 512 }
  0x50   : > { %vm1219_vm15 = vmpackc.low %vm542_vm14, %vm541_vm13 }
  0x5b   : > { %1185 = vmatmul.msk.bf16.gmra.mxu0 %vm1183_vm10, %v1184_v11  ;;  %1197 = vmatmul.msk.bf16.gmra.mxu1 %vm1195_vm11, %v1196_v54 }
  0x5c   : > { %1209 = vmatmul.msk.bf16.gmra.mxu2 %vm1207_vm12, %v1208_v55  ;;  %1221 = vmatmul.msk.bf16.gmra.mxu3 %vm1219_vm15, %v1220_v19 }
  0xa8   : > { %v728_v58 = vpop.f32.mrf.mxu0  ;;  %v1732_v59 = vpop.f32.mrf.mxu1 }
  0xa9   : > { %v808_v23 = vpack.c.bf16 %v728_v58, %v728_v58 }
  0xab   : > { %v872_v32 = vunpack.c.l.bf16 %v808_v23 }
  0xad   : > { %v942_v38 = vmul.f32 %v872_v32, %v872_v32 }
  0xaf   : > { %v1734_v20 = vpop.f32.mrf.mxu2  ;;  %v1748_v0 = vpop.f32.mrf.mxu3 }
  0xb0   : > { %v730_v60 = vpop.f32.mrf.mxu0  ;;  %v1743_v61 = vpop.f32.mrf.mxu1 }
  0xb1   : > { %v1299_v62 = vpack.c.bf16 %v730_v60, %v728_v58  ;;  %v1319_v63 = vpack.c.bf16 %v1743_v61, %v1732_v59  ;;  %v809_v22 = vpack.c.bf16 %v730_v60, %v730_v60  ;;  %v816_v58 = vpack.c.bf16 %v1732_v59, %v1732_v59 }
  0xb3   : > { %1300 = vst [vmem:[%s1741_s7] sm:$0xff] %v1299_v62   ;;  %v873_v30 = vunpack.c.l.bf16 %v809_v22 }
  0xb4   : > { %1394 = vst [vmem:[%s1741_s7 + $0x20] sm:$0xff] %v1319_v63   ;;  %v817_v63 = vpack.c.bf16 %v1743_v61, %v1743_v61 }
  0xb5   : > { %v943_v36 = vmul.f32 %v873_v30, %v873_v30  ;;  %v904_v41 = vadd.f32 %v873_v30, %v872_v32 }
  0xb7   : > { %v1751_v1 = vpop.f32.mrf.mxu2  ;;  %v1758_v5 = vpop.f32.mrf.mxu3  ;;  %v974_v49 = vadd.f32 %v943_v36, %v942_v38 }
  0xb8   : > { %v733_v2 = vpop.f32.mrf.mxu0  ;;  %v1753_v3 = vpop.f32.mrf.mxu1  ;;  %v1339_v4 = vpack.c.bf16 %v1751_v1, %v1734_v20  ;;  %v1359_v6 = vpack.c.bf16 %v1758_v5, %v1748_v0 }
  0xb9   : > { %v810_v25 = vpack.c.bf16 %v733_v2, %v733_v2  ;;  %v818_v59 = vpack.c.bf16 %v1753_v3, %v1753_v3 }
  0xba   : > { %1398 = vst [vmem:[%s1741_s7 + $0x40] sm:$0xff] %v1339_v4  }
  0xbb   : > { %1402 = vst [vmem:[%s1741_s7 + $0x60] sm:$0xff] %v1359_v6   ;;  %v874_v34 = vunpack.c.l.bf16 %v810_v25  ;;  %v882_v32 = vunpack.c.l.bf16 %v818_v59 }
  0xbd   : > { %v944_v42 = vmul.f32 %v874_v34, %v874_v34  ;;  %v905_v9 = vadd.f32 %v904_v41, %v874_v34 }
  0xbf   : > { %v1763_v7 = vpop.f32.mrf.mxu2  ;;  %v1770_v13 = vpop.f32.mrf.mxu3  ;;  %v975_v53 = vadd.f32 %v974_v49, %v944_v42 }
  0xc0   : > { %v735_v8 = vpop.f32.mrf.mxu0  ;;  %v1765_v10 = vpop.f32.mrf.mxu1 }
  0xc1   : > { %v1304_v48 = vpack.c.bf16 %v735_v8, %v733_v2  ;;  %v1324_v12 = vpack.c.bf16 %v1765_v10, %v1753_v3  ;;  %v811_v31 = vpack.c.bf16 %v735_v8, %v735_v8  ;;  %v819_v61 = vpack.c.bf16 %v1765_v10, %v1765_v10 }
  0xc3   : > { %1391 = vst [vmem:[%s1741_s7 + $0x8] sm:$0xff] %v1304_v48   ;;  %v875_v37 = vunpack.c.l.bf16 %v811_v31  ;;  %v883_v38 = vunpack.c.l.bf16 %v819_v61 }
  0xc4   : > { %1395 = vst [vmem:[%s1741_s7 + $0x28] sm:$0xff] %v1324_v12  }
  0xc5   : > { %v945_v50 = vmul.f32 %v875_v37, %v875_v37  ;;  %v906_v11 = vadd.f32 %v905_v9, %v875_v37 }
  0xc7   : > { %v1773_v14 = vpop.f32.mrf.mxu2  ;;  %v1780_v18 = vpop.f32.mrf.mxu3  ;;  %v976_v57 = vadd.f32 %v975_v53, %v945_v50  ;;  %v953_v50 = vmul.f32 %v883_v38, %v883_v38 }
  0xc8   : > { %v738_v15 = vpop.f32.mrf.mxu0  ;;  %v1775_v16 = vpop.f32.mrf.mxu1  ;;  %v1344_v17 = vpack.c.bf16 %v1773_v14, %v1763_v7  ;;  %v1364_v21 = vpack.c.bf16 %v1780_v18, %v1770_v13 }
  0xc9   : > { %v812_v35 = vpack.c.bf16 %v738_v15, %v738_v15  ;;  %v820_v3 = vpack.c.bf16 %v1775_v16, %v1775_v16 }
  0xca   : > { %1399 = vst [vmem:[%s1741_s7 + $0x48] sm:$0xff] %v1344_v17  }
  0xcb   : > { %1403 = vst [vmem:[%s1741_s7 + $0x68] sm:$0xff] %v1364_v21   ;;  %v876_v43 = vunpack.c.l.bf16 %v812_v35  ;;  %v880_v21 = vunpack.c.l.bf16 %v816_v58 }
  0xcd   : > { %v946_v54 = vmul.f32 %v876_v43, %v876_v43  ;;  %v907_v19 = vadd.f32 %v906_v11, %v876_v43  ;;  %v950_v34 = vmul.f32 %v880_v21, %v880_v21 }
  0xcf   : > { %v1785_v24 = vpop.f32.mrf.mxu2  ;;  %v1792_v33 = vpop.f32.mrf.mxu3  ;;  %v977_v2 = vadd.f32 %v976_v57, %v946_v54 }
  0xd0   : > { %v740_v26 = vpop.f32.mrf.mxu0  ;;  %v1787_v27 = vpop.f32.mrf.mxu1 }
  0xd1   : > { %v1309_v28 = vpack.c.bf16 %v740_v26, %v738_v15  ;;  %v1329_v29 = vpack.c.bf16 %v1787_v27, %v1775_v16  ;;  %v813_v39 = vpack.c.bf16 %v740_v26, %v740_v26  ;;  %v821_v41 = vpack.c.bf16 %v1787_v27, %v1787_v27 }
  0xd3   : > { %1392 = vst [vmem:[%s1741_s7 + $0x10] sm:$0xff] %v1309_v28   ;;  %v877_v51 = vunpack.c.l.bf16 %v813_v39  ;;  %v881_v28 = vunpack.c.l.bf16 %v817_v63  ;;  %v885_v53 = vunpack.c.l.bf16 %v821_v41 }
  0xd4   : > { %1396 = vst [vmem:[%s1741_s7 + $0x30] sm:$0xff] %v1329_v29  }
  0xd5   : > { %v947_v60 = vmul.f32 %v877_v51, %v877_v51  ;;  %v908_v4 = vadd.f32 %v907_v19, %v877_v51  ;;  %v951_v10 = vmul.f32 %v881_v28, %v881_v28 }
  0xd7   : > { %v1795_v40 = vpop.f32.mrf.mxu2  ;;  %v1802_v52 = vpop.f32.mrf.mxu3  ;;  %v978_v22 = vadd.f32 %v977_v2, %v947_v60  ;;  %v955_v60 = vmul.f32 %v885_v53, %v885_v53 }
  0xd8   : > { %v743_v44 = vpop.f32.mrf.mxu0  ;;  %v1797_v45 = vpop.f32.mrf.mxu1  ;;  %v1349_v46 = vpack.c.bf16 %v1795_v40, %v1785_v24  ;;  %v1369_v55 = vpack.c.bf16 %v1802_v52, %v1792_v33 }
  0xd9   : > { %v814_v47 = vpack.c.bf16 %v743_v44, %v743_v44  ;;  %v822_v49 = vpack.c.bf16 %v1797_v45, %v1797_v45 }
  0xda   : > { %1400 = vst [vmem:[%s1741_s7 + $0x50] sm:$0xff] %v1349_v46   ;;  %v884_v46 = vunpack.c.l.bf16 %v820_v3 }
  0xdb   : > { %v878_v56 = vunpack.c.l.bf16 %v814_v47  ;;  %1404 = vst [vmem:[%s1741_s7 + $0x70] sm:$0xff] %v1369_v55   ;;  %v824_v55 = vpack.c.bf16 %v1734_v20, %v1734_v20  ;;  %v886_v57 = vunpack.c.l.bf16 %v822_v49  ;;  %v827_v20 = vpack.c.bf16 %v1773_v14, %v1773_v14 }
  0xdd   : > { %v948_v48 = vmul.f32 %v878_v56, %v878_v56  ;;  %v909_v23 = vadd.f32 %v908_v4, %v878_v56  ;;  %v954_v56 = vmul.f32 %v884_v46, %v884_v46 }
  0xdf   : > { %v1809_v62 = vpop.f32.mrf.mxu2  ;;  %v1817_v26 = vpop.f32.mrf.mxu3  ;;  %v979_v29 = vadd.f32 %v978_v22, %v948_v48  ;;  %v888_v48 = vunpack.c.l.bf16 %v824_v55 }
  0xe0   : > { %v745_v6 = vpop.f32.mrf.mxu0  ;;  %v765_v8 = vpop.f32.mrf.mxu1 }
  0xe1   : > { %v815_v12 = vpack.c.bf16 %v745_v6, %v745_v6  ;;  %v1314_v15 = vpack.c.bf16 %v745_v6, %v743_v44  ;;  %v1334_v17 = vpack.c.bf16 %v765_v8, %v1797_v45  ;;  %v952_v44 = vmul.f32 %v882_v32, %v882_v32 }
  0xe2   : > { %v823_v54 = vpack.c.bf16 %v765_v8, %v765_v8  ;;  %v825_v45 = vpack.c.bf16 %v1751_v1, %v1751_v1  ;;  %v826_v6 = vpack.c.bf16 %v1763_v7, %v1763_v7  ;;  %v958_v1 = vmul.f32 %v888_v48, %v888_v48 }
  0xe3   : > { %1393 = vst [vmem:[%s1741_s7 + $0x18] sm:$0xff] %v1314_v15   ;;  %v879_v25 = vunpack.c.l.bf16 %v815_v12  ;;  %v956_v12 = vmul.f32 %v886_v57, %v886_v57 }
  0xe4   : > { %1397 = vst [vmem:[%s1741_s7 + $0x38] sm:$0xff] %v1334_v17   ;;  %v887_v4 = vunpack.c.l.bf16 %v823_v54  ;;  %v889_v17 = vunpack.c.l.bf16 %v825_v45 }
  0xe5   : > { %v910_v30 = vadd.f32 %v909_v23, %v879_v25  ;;  %v949_v31 = vmul.f32 %v879_v25, %v879_v25  ;;  %v890_v23 = vunpack.c.l.bf16 %v826_v6  ;;  %v828_v25 = vpack.c.bf16 %v1785_v24, %v1785_v24 }
  0xe6   : > { %v957_v22 = vmul.f32 %v887_v4, %v887_v4  ;;  %v959_v7 = vmul.f32 %v889_v17, %v889_v17  ;;  %v837_v6 = vpack.c.bf16 %v1802_v52, %v1802_v52 }
  0xe7   : > { %v911_v35 = vadd.f32 %v910_v30, %v880_v21  ;;  %v980_v36 = vadd.f32 %v979_v29, %v949_v31  ;;  %v1824_v37 = vpop.f32.mrf.mxu2  ;;  %v1833_v9 = vpop.f32.mrf.mxu3  ;;  %v891_v29 = vunpack.c.l.bf16 %v827_v20  ;;  %v892_v14 = vunpack.c.l.bf16 %v828_v25 }
  0xe8   : > { %v1354_v39 = vpack.c.bf16 %v1824_v37, %v1809_v62  ;;  %v1374_v51 = vpack.c.bf16 %v1833_v9, %v1817_v26  ;;  %v831_v41 = vpack.c.bf16 %v1824_v37, %v1824_v37 }
  0xe9   : > { %v912_v42 = vadd.f32 %v911_v35, %v881_v28  ;;  %v981_v43 = vadd.f32 %v980_v36, %v950_v34  ;;  %v960_v34 = vmul.f32 %v890_v23, %v890_v23  ;;  %v830_v36 = vpack.c.bf16 %v1809_v62, %v1809_v62 }
  0xea   : > { %1401 = vst [vmem:[%s1741_s7 + $0x58] sm:$0xff] %v1354_v39  }
  0xeb   : > { %v913_v47 = vadd.f32 %v912_v42, %v882_v32  ;;  %v982_v16 = vadd.f32 %v981_v43, %v951_v10  ;;  %1405 = vst [vmem:[%s1741_s7 + $0x78] sm:$0xff] %v1374_v51   ;;  %v829_v32 = vpack.c.bf16 %v1795_v40, %v1795_v40  ;;  %v832_v42 = vpack.c.bf16 %v1748_v0, %v1748_v0 }
  0xec   : > { %v962_v43 = vmul.f32 %v892_v14, %v892_v14  ;;  %v834_v51 = vpack.c.bf16 %v1770_v13, %v1770_v13  ;;  %v835_v0 = vpack.c.bf16 %v1780_v18, %v1780_v18 }
  0xed   : > { %v983_v11 = vadd.f32 %v982_v16, %v952_v44  ;;  %v914_v27 = vadd.f32 %v913_v47, %v883_v38  ;;  %v961_v38 = vmul.f32 %v891_v29, %v891_v29  ;;  %v893_v10 = vunpack.c.l.bf16 %v829_v32 }
  0xee   : > { %v833_v47 = vpack.c.bf16 %v1758_v5, %v1758_v5 }
  0xef   : > { %v915_v19 = vadd.f32 %v914_v27, %v884_v46  ;;  %v984_v58 = vadd.f32 %v983_v11, %v953_v50  ;;  %v894_v46 = vunpack.c.l.bf16 %v830_v36  ;;  %v963_v49 = vmul.f32 %v893_v10, %v893_v10 }
  0xf0   : > { %v895_v50 = vunpack.c.l.bf16 %v831_v41  ;;  %v897_v54 = vunpack.c.l.bf16 %v833_v47 }
  0xf1   : > { %v916_v63 = vadd.f32 %v915_v19, %v885_v53  ;;  %v985_v2 = vadd.f32 %v984_v58, %v954_v56  ;;  %v896_v53 = vunpack.c.l.bf16 %v832_v42  ;;  %v964_v27 = vmul.f32 %v894_v46, %v894_v46 }
  0xf2   : > { %v898_v19 = vunpack.c.l.bf16 %v834_v51  ;;  %v836_v58 = vpack.c.bf16 %v1792_v33, %v1792_v33  ;;  %v967_v13 = vmul.f32 %v897_v54, %v897_v54  ;;  %v901_v33 = vunpack.c.l.bf16 %v837_v6 }
  0xf3   : > { %v917_v8 = vadd.f32 %v916_v63, %v886_v57  ;;  %v986_v15 = vadd.f32 %v985_v2, %v955_v60  ;;  %v965_v57 = vmul.f32 %v895_v50, %v895_v50  ;;  %v966_v5 = vmul.f32 %v896_v53, %v896_v53 }
  0xf4   : > { %v899_v63 = vunpack.c.l.bf16 %v835_v0  ;;  %v900_v18 = vunpack.c.l.bf16 %v836_v58 }
  0xf5   : > { %v987_v59 = vadd.f32 %v986_v15, %v956_v12  ;;  %v918_v21 = vadd.f32 %v917_v8, %v887_v4  ;;  %v838_v15 = vpack.c.bf16 %v1817_v26, %v1817_v26 }
  0xf6   : > { %v969_v20 = vmul.f32 %v899_v63, %v899_v63 }
  0xf7   : > { %v919_v61 = vadd.f32 %v918_v21, %v888_v48  ;;  %v988_v28 = vadd.f32 %v987_v59, %v957_v22  ;;  %v968_v48 = vmul.f32 %v898_v19, %v898_v19  ;;  %v839_v21 = vpack.c.bf16 %v1833_v9, %v1833_v9 }
  0xf8   : > { %v970_v22 = vmul.f32 %v900_v18, %v900_v18  ;;  %v902_v52 = vunpack.c.l.bf16 %v838_v15 }
  0xf9   : > { %v920_v30 = vadd.f32 %v919_v61, %v889_v17  ;;  %v989_v31 = vadd.f32 %v988_v28, %v958_v1  ;;  %v971_v61 = vmul.f32 %v901_v33, %v901_v33 }
  0xfa   : > { %v972_v26 = vmul.f32 %v902_v52, %v902_v52 }
  0xfb   : > { %v921_v3 = vadd.f32 %v920_v30, %v890_v23  ;;  %v990_v35 = vadd.f32 %v989_v31, %v959_v7 }
  0xfd   : > { %v991_v39 = vadd.f32 %v990_v35, %v960_v34  ;;  %v922_v24 = vadd.f32 %v921_v3, %v891_v29  ;;  %v903_v29 = vunpack.c.l.bf16 %v839_v21 }
  0xff   : > { %v923_v44 = vadd.f32 %v922_v24, %v892_v14  ;;  %v992_v40 = vadd.f32 %v991_v39, %v961_v38  ;;  %v973_v34 = vmul.f32 %v903_v29, %v903_v29 }
 0x101   : > { %v924_v16 = vadd.f32 %v923_v44, %v893_v10  ;;  %v993_v62 = vadd.f32 %v992_v40, %v962_v43 }
 0x103   : > { %v994_v11 = vadd.f32 %v993_v62, %v963_v49  ;;  %v925_v37 = vadd.f32 %v924_v16, %v894_v46 }
 0x105   : > { %v995_v55 = vadd.f32 %v994_v11, %v964_v27  ;;  %v926_v56 = vadd.f32 %v925_v37, %v895_v50 }
 0x107   : > { %v927_v45 = vadd.f32 %v926_v56, %v896_v53  ;;  %v996_v60 = vadd.f32 %v995_v55, %v965_v57 }
 0x109   : > { %v928_v2 = vadd.f32 %v927_v45, %v897_v54  ;;  %v997_v4 = vadd.f32 %v996_v60, %v966_v5 }
 0x10b   : > { %v929_v8 = vadd.f32 %v928_v2, %v898_v19  ;;  %v998_v12 = vadd.f32 %v997_v4, %v967_v13 }
 0x10d   : > { %v999_v17 = vadd.f32 %v998_v12, %v968_v48  ;;  %v930_v59 = vadd.f32 %v929_v8, %v899_v63 }
 0x10f   : > { %v931_v23 = vadd.f32 %v930_v59, %v900_v18  ;;  %v1000_v1 = vadd.f32 %v999_v17, %v969_v20 }
 0x111   : > { %v932_v25 = vadd.f32 %v931_v23, %v901_v33  ;;  %v1001_v28 = vadd.f32 %v1000_v1, %v970_v22 }
 0x113   : > { %v1002_v7 = vadd.f32 %v1001_v28, %v971_v61  ;;  %v933_v30 = vadd.f32 %v932_v25, %v902_v52 }
 0x115   : > { %v1003_v31 = vadd.f32 %v1002_v7, %v972_v26  ;;  %v934_v32 = vadd.f32 %v933_v30, %v903_v29 }
 0x117   : > { %v935_v14 = vrot.slane %v934_v32, 4  ;;  %v1004_v3 = vadd.f32 %v1003_v31, %v973_v34 }
 0x119   : > { %v936_v9 = vadd.f32 %v935_v14, %v934_v32  ;;  %v1005_v35 = vrot.slane %v1004_v3, 4 }
 0x11b   : > { %v937_v36 = vrot.slane %v936_v9, 2  ;;  %v1006_v38 = vadd.f32 %v1005_v35, %v1004_v3 }
 0x11d   : > { %v938_v39 = vadd.f32 %v937_v36, %v936_v9  ;;  %v1007_v10 = vrot.slane %v1006_v38, 2 }
 0x11f   : > { %v939_v24 = vrot.slane %v938_v39, 1  ;;  %v1008_v41 = vadd.f32 %v1007_v10, %v1006_v38 }
 0x121   : > { %v940_v42 = vadd.f32 %v939_v24, %v938_v39  ;;  %v1009_v43 = vrot.slane %v1008_v41, 1 }
 0x123   : > { %941 = vst [vmem:[%s271_s9] sm:$0xff] %v940_v42  ;;  %v1010_v44 = vadd.f32 %v1009_v43, %v1008_v41 }
 0x125   : > { %1011 = vst [vmem:[%s275_s12] sm:$0xff] %v1010_v44 }
 0x126 PF: > { %s17_s21 = sadd.s32 1, %s1446_s21  }
 0x127   : > { %p14_p5 = scmp.ge.s32.totalorder %s17_s21, 4  }
 0x129   :  { %16 = sbr.rel (!%p14_p5) target bundleno = 1 (0x1), region = 90 }

// kernel: _lambda_.9
= control target key start
LH: loop header
LB: loop body
LE: loop exit
PB: predicated region body
PF: predicated region fallthrough
CT: control target
= control target key end

     0   :  { %9 = vsyncpa [#allocation3], 0  ;;  %s1058_s0 = inlined_call_operand.vmem [shape: bf16[512,128], index: 0, kind: input, shape index: {}]   ;;  %s1059_s1 = inlined_call_operand.vmem [shape: f32[512,128], index: 1, kind: input, shape index: {}]   ;;  %s1060_s2 = inlined_call_operand.vmem [shape: f32[1,128], index: 2, kind: input, shape index: {}]   ;;  %s1061_s3 = inlined_call_operand.vmem [shape: f32[1,128], index: 3, kind: input, shape index: {}]   ;;  %s1062_s4 = inlined_call_operand.hbm [shape: f32[512,128], index: 4, kind: output, shape index: {}]  }
   0x1   :  { %11 = vsyncpa [#allocation3 + $0x1], 0  ;;  %s803_s15 = smov 0   ;;  %s805_s16 = smov 0  }
   0x2   :  { %s807_s17 = smov 0   ;;  %s809_s18 = smov 0  }
   0x3 LB: > { %s824_s19 = sadd.s32 4294967295, %s774_s18   ;;  %s575_s20 = sadd.s32 4294967294, %s774_s18   ;;  %s774_s18 = sphi %s809_s18, %s1068_s18   ;;  %s770_s17 = sphi %s807_s17, %s1067_s17   ;;  %s766_s16 = sphi %s805_s16, %s1066_s16   ;;  %s762_s15 = sphi %s803_s15, %s1065_s15  }
   0x4   : > { %s828_s21 = sadd.s32 1, %s774_s18   ;;  %s118_s22 = sadd.s32 1, %s770_s17 }
   0x5   : > { %s115_s23 = ssub.s32 %s774_s18, %s828_s21  ;;  %p128_p0 = scmp.ne.s32.totalorder %s770_s17, %s766_s16 }
   0x6   : > { %p116_p1 = scmp.eq.s32.totalorder %s115_s23, 0  ;;  %p129_p2 = scmp.eq.s32.totalorder %s824_s19, 1 }
   0x7   : > { %p134_p3 = scmp.ne.s32.totalorder %s766_s16, %s762_s15  ;;  %p135_p4 = scmp.eq.s32.totalorder %s575_s20, 1 }
   0x8   : > { %s839_s24 = scalar_select %p116_p1, %s770_s17, %s118_s22  }
   0x9   : > { %p841_p5 = por %p129_p2, %p128_p0  ;;  %p845_p6 = por %p135_p4, %p134_p3 }
   0xa   : > { %p578_p7 = scmp.ge.s32.totalorder %s774_s18, 1  ;;  %p177_p8 = scmp.lt.s32.totalorder %s774_s18, 3 }
   0xc   : > { %p178_p9 = pnand %p578_p7, %p177_p8 }
   0xd   : > { %s580_s27 = sshll.u32 (!%p178_p9), %s824_s19, 5  ;;  %s205_s14 = sand.u32 (!%p178_p9), 1, %s766_s16  }
   0xe   : > { %181 = sbr.rel (%p178_p9) target bundleno = 73 (0x49), region = 36  ;;  %p209_p10 = scmp.lt.s32.totalorder (!%p178_p9), %s580_s27, 63 }
   0xf   : > { %s885_s20 = sshll.u32 (!%p178_p9), %s205_s14, 8  ;;  %s589_s23 = sshll.u32 (!%p178_p9), %s824_s19, 8 }
  0x10   : > { %s909_s22 = scalar_lea.vmem (!%p178_p9), [#allocation2], %s885_s20  ;;  %s486_s5 = scalar_lea.sflag (!%p178_p9), [#allocation3], %s205_s14 }
  0x11   : > { %s732_s10 = scalar_lea.hbm (!%p178_p9), %s1062_s4, 512 }
  0x13   : > { %s1070_s27 = smov (!%p209_p10, %s580_s27), 63  ;;  %v860_v0 = vld [vmem:[%s1060_s2] ss:$0 sm:$0xff] }
  0x14   : > { %s581_s28 = sshll.u32 %s1070_s27, 2  ;;  %s583_s29 = sshll.u32 %s1070_s27, 3  ;;  %v871_v3 = vld [vmem:[%s1061_s3] ss:$0 sm:$0xff] }
  0x15   : > { %s855_s6 = scalar_lea.vmem %s1058_s0, %s581_s28  ;;  %s866_s11 = scalar_lea.vmem %s1059_s1, %s583_s29 }
  0x16   : > { %v591_v1 = vld [vmem:[%s855_s6] sm:$0xff]   ;;  %v654_v5 = vld [vmem:[%s855_s6 + $0x8] sm:$0xff]   ;;  %v655_v8 = vld [vmem:[%s855_s6 + $0x10] sm:$0xff]   ;;  %s497_s28 = scalar_lea.hbm %s1062_s4, %s589_s23  ;;  %s498_s29 = sshll.u32 %s909_s22, 4  ;;  %s499_s29 = int_to_ptr.vmem [resolvable:$true] %s498_s29 }
  0x17   : > { %v592_v2 = vunpack.c.l.bf16 %v591_v1  ;;  %v593_v4 = vunpack.c.h.bf16 %v591_v1  ;;  %v596_v6 = vunpack.c.l.bf16 %v654_v5  ;;  %v597_v7 = vunpack.c.h.bf16 %v654_v5  ;;  %v656_v13 = vld [vmem:[%s855_s6 + $0x18] sm:$0xff]   ;;  %v357_v14 = vld [vmem:[%s866_s11] sm:$0xff]  ;;  %v358_v15 = vld [vmem:[%s866_s11 + $0x8] sm:$0xff]  ;;  %s500_s30 = sshll.u32 %s497_s28, 4  ;;  %s501_s30 = int_to_ptr.hbm [resolvable:$true] %s500_s30 }
  0x18   : > { %v600_v11 = vunpack.c.l.bf16 %v655_v8  ;;  %v601_v12 = vunpack.c.h.bf16 %v655_v8  ;;  %v604_v18 = vunpack.c.l.bf16 %v656_v13  ;;  %v605_v19 = vunpack.c.h.bf16 %v656_v13  ;;  %v359_v22 = vld [vmem:[%s866_s11 + $0x10] sm:$0xff]  ;;  %v360_v23 = vld [vmem:[%s866_s11 + $0x18] sm:$0xff]  ;;  %v361_v28 = vld [vmem:[%s866_s11 + $0x20] sm:$0xff] }
  0x19   : > { %v289_v9 = vmul.f32 %v860_v0, %v592_v2  ;;  %v290_v10 = vmul.f32 %v860_v0, %v593_v4  ;;  %v291_v16 = vmul.f32 %v860_v0, %v596_v6  ;;  %v292_v17 = vmul.f32 %v860_v0, %v597_v7  ;;  %v362_v29 = vld [vmem:[%s866_s11 + $0x28] sm:$0xff]  ;;  %v363_v36 = vld [vmem:[%s866_s11 + $0x30] sm:$0xff]  ;;  %v364_v37 = vld [vmem:[%s866_s11 + $0x38] sm:$0xff] }
  0x1a   : > { %v293_v24 = vmul.f32 %v860_v0, %v600_v11  ;;  %v294_v25 = vmul.f32 %v860_v0, %v601_v12  ;;  %v295_v30 = vmul.f32 %v860_v0, %v604_v18  ;;  %v296_v31 = vmul.f32 %v860_v0, %v605_v19  ;;  %v657_v42 = vld [vmem:[%s855_s6 + $0x20] sm:$0xff]   ;;  %v658_v47 = vld [vmem:[%s855_s6 + $0x28] sm:$0xff]   ;;  %v659_v52 = vld [vmem:[%s855_s6 + $0x30] sm:$0xff]  }
  0x1b   : > { %v325_v20 = vadd.f32 %v871_v3, %v289_v9  ;;  %v326_v21 = vadd.f32 %v871_v3, %v290_v10  ;;  %v327_v26 = vadd.f32 %v871_v3, %v291_v16  ;;  %v328_v27 = vadd.f32 %v871_v3, %v292_v17  ;;  %v660_v57 = vld [vmem:[%s855_s6 + $0x38] sm:$0xff]   ;;  %v365_v4 = vld [vmem:[%s866_s11 + $0x40] sm:$0xff]  ;;  %v366_v5 = vld [vmem:[%s866_s11 + $0x48] sm:$0xff] }
  0x1c   : > { %v329_v34 = vadd.f32 %v871_v3, %v293_v24  ;;  %v330_v35 = vadd.f32 %v871_v3, %v294_v25  ;;  %v331_v40 = vadd.f32 %v871_v3, %v295_v30  ;;  %v332_v41 = vadd.f32 %v871_v3, %v296_v31  ;;  %v367_v12 = vld [vmem:[%s866_s11 + $0x50] sm:$0xff]  ;;  %v368_v13 = vld [vmem:[%s866_s11 + $0x58] sm:$0xff]  ;;  %v369_v18 = vld [vmem:[%s866_s11 + $0x60] sm:$0xff] }
  0x1d   : > { %v389_v32 = vadd.f32 %v357_v14, %v325_v20  ;;  %v390_v33 = vadd.f32 %v358_v15, %v326_v21  ;;  %v391_v38 = vadd.f32 %v359_v22, %v327_v26  ;;  %v392_v39 = vadd.f32 %v360_v23, %v328_v27  ;;  %v370_v19 = vld [vmem:[%s866_s11 + $0x68] sm:$0xff]  ;;  %v371_v26 = vld [vmem:[%s866_s11 + $0x70] sm:$0xff]  ;;  %v372_v27 = vld [vmem:[%s866_s11 + $0x78] sm:$0xff] }
  0x1e   : > { %v393_v45 = vadd.f32 %v361_v28, %v329_v34  ;;  %v394_v46 = vadd.f32 %v362_v29, %v330_v35  ;;  %v395_v50 = vadd.f32 %v363_v36, %v331_v40  ;;  %v396_v51 = vadd.f32 %v364_v37, %v332_v41  ;;  %v662_v37 = vld [vmem:[%s855_s6 + $0x48] sm:$0xff]  }
  0x1f   : > { %v421_v43 = vmax.f32 %v389_v32, 0.0  ;;  %v422_v44 = vmax.f32 %v390_v33, 0.0  ;;  %v423_v48 = vmax.f32 %v391_v38, 0.0  ;;  %v424_v49 = vmax.f32 %v392_v39, 0.0  ;;  %v661_v32 = vld [vmem:[%s855_s6 + $0x40] sm:$0xff]  }
  0x20   : > { %v425_v53 = vmax.f32 %v393_v45, 0.0  ;;  %v426_v54 = vmax.f32 %v394_v46, 0.0  ;;  %v608_v55 = vunpack.c.l.bf16 %v657_v42  ;;  %v609_v56 = vunpack.c.h.bf16 %v657_v42  ;;  %v663_v42 = vld [vmem:[%s855_s6 + $0x50] sm:$0xff]  }
  0x21   : > { %453 = vst [vmem:[%s909_s22] sm:$0xff] %v421_v43  ;;  %v427_v58 = vmax.f32 %v395_v50, 0.0  ;;  %v428_v59 = vmax.f32 %v396_v51, 0.0  ;;  %v612_v60 = vunpack.c.l.bf16 %v658_v47  ;;  %v613_v61 = vunpack.c.h.bf16 %v658_v47  ;;  %v664_v47 = vld [vmem:[%s855_s6 + $0x58] sm:$0xff]  }
  0x22   : > { %454 = vst [vmem:[%s909_s22 + $0x8] sm:$0xff] %v422_v44  ;;  %v297_v62 = vmul.f32 %v860_v0, %v608_v55  ;;  %v298_v63 = vmul.f32 %v860_v0, %v609_v56  ;;  %v616_v1 = vunpack.c.l.bf16 %v659_v52  ;;  %v617_v2 = vunpack.c.h.bf16 %v659_v52  ;;  %v373_v56 = vld [vmem:[%s866_s11 + $0x80] sm:$0xff] }
  0x23   : > { %455 = vst [vmem:[%s909_s22 + $0x10] sm:$0xff] %v423_v48  ;;  %v299_v6 = vmul.f32 %v860_v0, %v612_v60  ;;  %v300_v7 = vmul.f32 %v860_v0, %v613_v61  ;;  %v620_v8 = vunpack.c.l.bf16 %v660_v57  ;;  %v621_v9 = vunpack.c.h.bf16 %v660_v57  ;;  %v374_v57 = vld [vmem:[%s866_s11 + $0x88] sm:$0xff] }
  0x24   : > { %456 = vst [vmem:[%s909_s22 + $0x18] sm:$0xff] %v424_v49  ;;  %v333_v10 = vadd.f32 %v871_v3, %v297_v62  ;;  %v334_v11 = vadd.f32 %v871_v3, %v298_v63  ;;  %v301_v14 = vmul.f32 %v860_v0, %v616_v1  ;;  %v302_v15 = vmul.f32 %v860_v0, %v617_v2  ;;  %v375_v1 = vld [vmem:[%s866_s11 + $0x90] sm:$0xff]  ;;  %v376_v2 = vld [vmem:[%s866_s11 + $0x98] sm:$0xff] }
  0x25   : > { %457 = vst [vmem:[%s909_s22 + $0x20] sm:$0xff] %v425_v53  ;;  %v335_v16 = vadd.f32 %v871_v3, %v299_v6  ;;  %v336_v17 = vadd.f32 %v871_v3, %v300_v7  ;;  %v303_v20 = vmul.f32 %v860_v0, %v620_v8  ;;  %v304_v21 = vmul.f32 %v860_v0, %v621_v9  ;;  %v377_v8 = vld [vmem:[%s866_s11 + $0xa0] sm:$0xff]  ;;  %v378_v9 = vld [vmem:[%s866_s11 + $0xa8] sm:$0xff] }
  0x26   : > { %458 = vst [vmem:[%s909_s22 + $0x28] sm:$0xff] %v426_v54  ;;  %v397_v22 = vadd.f32 %v365_v4, %v333_v10  ;;  %v398_v23 = vadd.f32 %v366_v5, %v334_v11  ;;  %v337_v24 = vadd.f32 %v871_v3, %v301_v14  ;;  %v338_v25 = vadd.f32 %v871_v3, %v302_v15 }
  0x27   : > { %459 = vst [vmem:[%s909_s22 + $0x30] sm:$0xff] %v427_v58  ;;  %v399_v28 = vadd.f32 %v367_v12, %v335_v16  ;;  %v400_v29 = vadd.f32 %v368_v13, %v336_v17  ;;  %v339_v30 = vadd.f32 %v871_v3, %v303_v20  ;;  %v340_v31 = vadd.f32 %v871_v3, %v304_v21  ;;  %v379_v16 = vld [vmem:[%s866_s11 + $0xb0] sm:$0xff]  ;;  %v380_v17 = vld [vmem:[%s866_s11 + $0xb8] sm:$0xff] }
  0x28   : > { %460 = vst [vmem:[%s909_s22 + $0x38] sm:$0xff] %v428_v59  ;;  %v429_v33 = vmax.f32 %v397_v22, 0.0  ;;  %v430_v34 = vmax.f32 %v398_v23, 0.0  ;;  %v401_v35 = vadd.f32 %v369_v18, %v337_v24  ;;  %v402_v36 = vadd.f32 %v370_v19, %v338_v25  ;;  %v665_v22 = vld [vmem:[%s855_s6 + $0x60] sm:$0xff]  }
  0x29   : > { %v431_v38 = vmax.f32 %v399_v28, 0.0  ;;  %v432_v39 = vmax.f32 %v400_v29, 0.0  ;;  %v403_v40 = vadd.f32 %v371_v26, %v339_v30  ;;  %v404_v41 = vadd.f32 %v372_v27, %v340_v31  ;;  %v666_v27 = vld [vmem:[%s855_s6 + $0x68] sm:$0xff]  }
  0x2a   : > { %461 = vst [vmem:[%s909_s22 + $0x40] sm:$0xff] %v429_v33  ;;  %v433_v43 = vmax.f32 %v401_v35, 0.0  ;;  %v434_v44 = vmax.f32 %v402_v36, 0.0  ;;  %v624_v45 = vunpack.c.l.bf16 %v661_v32  ;;  %v625_v46 = vunpack.c.h.bf16 %v661_v32  ;;  %v667_v32 = vld [vmem:[%s855_s6 + $0x70] sm:$0xff]  }
  0x2b   : > { %462 = vst [vmem:[%s909_s22 + $0x48] sm:$0xff] %v430_v34  ;;  %v435_v48 = vmax.f32 %v403_v40, 0.0  ;;  %v436_v49 = vmax.f32 %v404_v41, 0.0  ;;  %v628_v50 = vunpack.c.l.bf16 %v662_v37  ;;  %v629_v51 = vunpack.c.h.bf16 %v662_v37  ;;  %v668_v37 = vld [vmem:[%s855_s6 + $0x78] sm:$0xff]   ;;  %s726_s6 = sshra.s32 %s501_s30, 4  ;;  %s727_s6 = int_to_ptr.hbm [resolvable:$true] %s726_s6 }
  0x2c   : > { %463 = vst [vmem:[%s909_s22 + $0x50] sm:$0xff] %v431_v38  ;;  %v305_v52 = vmul.f32 %v860_v0, %v624_v45  ;;  %v306_v53 = vmul.f32 %v860_v0, %v625_v46  ;;  %v632_v54 = vunpack.c.l.bf16 %v663_v42  ;;  %v633_v55 = vunpack.c.h.bf16 %v663_v42  ;;  %v381_v46 = vld [vmem:[%s866_s11 + $0xc0] sm:$0xff]  ;;  %s728_s7 = scalar_lea.hbm %s727_s6, 256  ;;  %p733_p0 = scmp.lt.s32.totalorder %s727_s6, %s1062_s4 }
  0x2d   : > { %464 = vst [vmem:[%s909_s22 + $0x58] sm:$0xff] %v432_v39  ;;  %v307_v58 = vmul.f32 %v860_v0, %v628_v50  ;;  %v308_v59 = vmul.f32 %v860_v0, %v629_v51  ;;  %v636_v60 = vunpack.c.l.bf16 %v664_v47  ;;  %v637_v61 = vunpack.c.h.bf16 %v664_v47  ;;  %v382_v47 = vld [vmem:[%s866_s11 + $0xc8] sm:$0xff]  ;;  %p729_p11 = scmp.ne.s32.totalorder %s727_s6, %s728_s7  ;;  %p734_p1 = scmp.lt.s32.totalorder %s732_s10, %s728_s7 }
  0x2e   : > { %465 = vst [vmem:[%s909_s22 + $0x60] sm:$0xff] %v433_v43  ;;  %v341_v62 = vadd.f32 %v871_v3, %v305_v52  ;;  %v342_v63 = vadd.f32 %v871_v3, %v306_v53  ;;  %v309_v4 = vmul.f32 %v860_v0, %v632_v54  ;;  %v310_v5 = vmul.f32 %v860_v0, %v633_v55  ;;  %v383_v54 = vld [vmem:[%s866_s11 + $0xd0] sm:$0xff]  ;;  %v384_v55 = vld [vmem:[%s866_s11 + $0xd8] sm:$0xff] }
  0x2f   : > { %466 = vst [vmem:[%s909_s22 + $0x68] sm:$0xff] %v434_v44  ;;  %v343_v6 = vadd.f32 %v871_v3, %v307_v58  ;;  %v344_v7 = vadd.f32 %v871_v3, %v308_v59  ;;  %v311_v10 = vmul.f32 %v860_v0, %v636_v60  ;;  %v312_v11 = vmul.f32 %v860_v0, %v637_v61  ;;  %v385_v60 = vld [vmem:[%s866_s11 + $0xe0] sm:$0xff]  ;;  %v386_v61 = vld [vmem:[%s866_s11 + $0xe8] sm:$0xff]  ;;  %p730_p12 = pnand %p729_p11, %p841_p5  ;;  %p735_p2 = por %p734_p1, %p733_p0 }
  0x30   : > { %467 = vst [vmem:[%s909_s22 + $0x70] sm:$0xff] %v435_v48  ;;  %v405_v12 = vadd.f32 %v373_v56, %v341_v62  ;;  %v406_v13 = vadd.f32 %v374_v57, %v342_v63  ;;  %v345_v14 = vadd.f32 %v871_v3, %v309_v4  ;;  %v346_v15 = vadd.f32 %v871_v3, %v310_v5 }
  0x31   : > { %468 = vst [vmem:[%s909_s22 + $0x78] sm:$0xff] %v436_v49  ;;  %v407_v18 = vadd.f32 %v375_v1, %v343_v6  ;;  %v408_v19 = vadd.f32 %v376_v2, %v344_v7  ;;  %v347_v20 = vadd.f32 %v871_v3, %v311_v10  ;;  %v348_v21 = vadd.f32 %v871_v3, %v312_v11  ;;  %v387_v6 = vld [vmem:[%s866_s11 + $0xf0] sm:$0xff]  ;;  %v388_v7 = vld [vmem:[%s866_s11 + $0xf8] sm:$0xff]  ;;  %p731_p13 = pneg %p730_p12 }
  0x32   : > { %v437_v23 = vmax.f32 %v405_v12, 0.0  ;;  %v438_v24 = vmax.f32 %v406_v13, 0.0  ;;  %v409_v25 = vadd.f32 %v377_v8, %v345_v14  ;;  %v410_v26 = vadd.f32 %v378_v9, %v346_v15 }
  0x33   : > { %v439_v28 = vmax.f32 %v407_v18, 0.0  ;;  %v440_v29 = vmax.f32 %v408_v19, 0.0  ;;  %v411_v30 = vadd.f32 %v379_v16, %v347_v20  ;;  %v412_v31 = vadd.f32 %v380_v17, %v348_v21  ;;  %p736_p3 = pnand %p735_p2, %p731_p13 }
  0x34   : > { %469 = vst [vmem:[%s909_s22 + $0x80] sm:$0xff] %v437_v23  ;;  %v441_v33 = vmax.f32 %v409_v25, 0.0  ;;  %v442_v34 = vmax.f32 %v410_v26, 0.0  ;;  %v640_v35 = vunpack.c.l.bf16 %v665_v22  ;;  %v641_v36 = vunpack.c.h.bf16 %v665_v22 }
  0x35   : > { %470 = vst [vmem:[%s909_s22 + $0x88] sm:$0xff] %v438_v24  ;;  %v443_v38 = vmax.f32 %v411_v30, 0.0  ;;  %v444_v39 = vmax.f32 %v412_v31, 0.0  ;;  %v644_v40 = vunpack.c.l.bf16 %v666_v27  ;;  %v645_v41 = vunpack.c.h.bf16 %v666_v27 }
  0x36   : > { %471 = vst [vmem:[%s909_s22 + $0x90] sm:$0xff] %v439_v28  ;;  %v313_v42 = vmul.f32 %v860_v0, %v640_v35  ;;  %v314_v43 = vmul.f32 %v860_v0, %v641_v36  ;;  %v648_v44 = vunpack.c.l.bf16 %v667_v32  ;;  %v649_v45 = vunpack.c.h.bf16 %v667_v32 }
  0x37   : > { %472 = vst [vmem:[%s909_s22 + $0x98] sm:$0xff] %v440_v29  ;;  %v315_v48 = vmul.f32 %v860_v0, %v644_v40  ;;  %v316_v49 = vmul.f32 %v860_v0, %v645_v41  ;;  %v652_v50 = vunpack.c.l.bf16 %v668_v37  ;;  %v653_v51 = vunpack.c.h.bf16 %v668_v37 }
  0x38   : > { %473 = vst [vmem:[%s909_s22 + $0xa0] sm:$0xff] %v441_v33  ;;  %v349_v52 = vadd.f32 %v871_v3, %v313_v42  ;;  %v350_v53 = vadd.f32 %v871_v3, %v314_v43  ;;  %v317_v56 = vmul.f32 %v860_v0, %v648_v44  ;;  %v318_v57 = vmul.f32 %v860_v0, %v649_v45 }
  0x39   : > { %474 = vst [vmem:[%s909_s22 + $0xa8] sm:$0xff] %v442_v34  ;;  %v351_v58 = vadd.f32 %v871_v3, %v315_v48  ;;  %v352_v59 = vadd.f32 %v871_v3, %v316_v49  ;;  %v319_v62 = vmul.f32 %v860_v0, %v652_v50  ;;  %v320_v63 = vmul.f32 %v860_v0, %v653_v51 }
  0x3a   : > { %475 = vst [vmem:[%s909_s22 + $0xb0] sm:$0xff] %v443_v38  ;;  %v413_v1 = vadd.f32 %v381_v46, %v349_v52  ;;  %v414_v2 = vadd.f32 %v382_v47, %v350_v53  ;;  %v353_v4 = vadd.f32 %v871_v3, %v317_v56  ;;  %v354_v5 = vadd.f32 %v871_v3, %v318_v57 }
  0x3b   : > { %476 = vst [vmem:[%s909_s22 + $0xb8] sm:$0xff] %v444_v39  ;;  %v415_v8 = vadd.f32 %v383_v54, %v351_v58  ;;  %v416_v9 = vadd.f32 %v384_v55, %v352_v59  ;;  %v355_v10 = vadd.f32 %v871_v3, %v319_v62  ;;  %v356_v0 = vadd.f32 %v871_v3, %v320_v63 }
  0x3c   : > { %v445_v11 = vmax.f32 %v413_v1, 0.0  ;;  %v446_v12 = vmax.f32 %v414_v2, 0.0  ;;  %v417_v13 = vadd.f32 %v385_v60, %v353_v4  ;;  %v418_v14 = vadd.f32 %v386_v61, %v354_v5 }
  0x3d   : > { %v447_v15 = vmax.f32 %v415_v8, 0.0  ;;  %v448_v16 = vmax.f32 %v416_v9, 0.0  ;;  %v419_v17 = vadd.f32 %v387_v6, %v355_v10  ;;  %v420_v18 = vadd.f32 %v388_v7, %v356_v0 }
  0x3e   : > { %477 = vst [vmem:[%s909_s22 + $0xc0] sm:$0xff] %v445_v11  ;;  %v449_v3 = vmax.f32 %v417_v13, 0.0  ;;  %v450_v19 = vmax.f32 %v418_v14, 0.0 }
  0x3f   : > { %478 = vst [vmem:[%s909_s22 + $0xc8] sm:$0xff] %v446_v12  ;;  %v451_v20 = vmax.f32 %v419_v17, 0.0  ;;  %v452_v21 = vmax.f32 %v420_v18, 0.0 }
  0x40   : > { %479 = vst [vmem:[%s909_s22 + $0xd0] sm:$0xff] %v447_v15 }
  0x41   : > { %480 = vst [vmem:[%s909_s22 + $0xd8] sm:$0xff] %v448_v16 }
  0x42   : > { %481 = vst [vmem:[%s909_s22 + $0xe0] sm:$0xff] %v449_v3 }
  0x43   : > { %482 = vst [vmem:[%s909_s22 + $0xe8] sm:$0xff] %v450_v19 }
  0x44   : > { %483 = vst [vmem:[%s909_s22 + $0xf0] sm:$0xff] %v451_v20 }
  0x45   : > { %484 = vst [vmem:[%s909_s22 + $0xf8] sm:$0xff] %v452_v21 }
  0x46   : > { %739 = shalt.err (!%p736_p3)
}
  0x47   : > { %s776_s13 = smov 128   ;;  %s777_s14 = smov 8  }
  0x48   : > { %669 = dma.vmem_to_hbm [thread:$0]  (%p841_p5), %s499_s29, 4096, %s501_s30, %s486_s5, %s776_s13, %s776_s13, %s777_s14  }
  0x49 PF: > { %p675_p4 = scmp.ge.s32.totalorder %s774_s18, 2  ;;  %s515_s20 = sand.u32 1, %s762_s15  }
  0x4a   : > { %s516_s22 = scalar_lea.sflag [#allocation3], %s515_s20 }
  0x4b   : > { %p672_p7 = pnand %p675_p4, %p845_p6 }
  0x4d   : > { %p673_p8 = pneg %p672_p7 }
  0x4f   : > { %757 = dma.done.wait (%p673_p8), %s516_s22, 4096  }
  0x50   : > { %759 = vsyncadd (%p673_p8), %s516_s22, 4294963200  ;;  %p14_p9 = scmp.ge.s32.totalorder %s828_s21, 4   ;;  %s1065_s15 = smov %s766_s16 }
  0x51   : > { %s1066_s16 = smov %s770_s17  ;;  %s1067_s17 = smov %s839_s24 }
  0x52   : > { %s1068_s18 = smov %s828_s21  ;;  %16 = sbr.rel (!%p14_p9) target bundleno = 3 (0x3), region = 74 }
  0x57   :  { %522 = vsyncpa [#allocation3], 1 }
  0x58   :  { %524 = vsyncpa [#allocation3 + $0x1], 1 }

// kernel: _lambda_.7
= control target key start
LH: loop header
LB: loop body
LE: loop exit
PB: predicated region body
PF: predicated region fallthrough
CT: control target
= control target key end

     0   :  { %s7798_s21 = smov 0   ;;  %s7800_s22 = smov 0   ;;  %s9686_s0 = inlined_call_operand.vmem [shape: bf16[2,6,10,10,128], index: 0, kind: input, shape index: {}, may-alias: {0,1,2}]   ;;  %s9687_s1 = inlined_call_operand.vmem [shape: bf16[2,6,10,10,128], index: 1, kind: input, shape index: {}, may-alias: {0,1,2}]   ;;  %s9688_s2 = inlined_call_operand.vmem [shape: bf16[2,6,10,10,128], index: 2, kind: input, shape index: {}, may-alias: {0,1,2}]   ;;  %s9689_s3 = inlined_call_operand.vmem [shape: bf16[27,128,128], index: 3, kind: input, shape index: {}]   ;;  %s9690_s4 = inlined_call_operand.vmem [shape: bf16[2,4,64,128], index: 4, kind: output, shape index: {0}]   ;;  %s9691_s5 = inlined_call_operand.vmem [shape: f32[2,4,8,128], index: 5, kind: output, shape index: {1}]   ;;  %s9692_s6 = inlined_call_operand.vmem [shape: f32[2,4,8,128], index: 6, kind: output, shape index: {2}]  }
   0x1   :  { %s7802_s23 = smov 0   ;;  %s7804_s24 = smov 0  }
   0x2   :  { %s7806_s25 = smov 0  }
   0x3 LB: > { %s26_s26 = sadd.s32 1, %s7753_s23  ;;  %s29_s27 = sadd.s32 1, %s7757_s24  ;;  %s7761_s25 = sphi %s7806_s25, %s17_s25   ;;  %s7757_s24 = sphi %s7804_s24, %s9701_s24   ;;  %s7753_s23 = sphi %s7802_s23, %s9700_s23   ;;  %s7749_s22 = sphi %s7800_s22, %s9699_s22   ;;  %s7745_s21 = sphi %s7798_s21, %s9698_s21  }
   0x4   : > { %p27_p0 = scmp.ge.s32.totalorder %s26_s26, 4  ;;  %p5679_p1 = scmp.ge.s32.totalorder %s7761_s25, 1 }
   0x5   : > { %p281_p2 = scmp.lt.s32.totalorder %s7761_s25, 9 }
   0x6   : > { %s9703_s26 = smov (%p27_p0, %s26_s26), 0  ;;  %s9705_s27 = smov (!%p27_p0, %s29_s27), %s7757_s24 }
   0x7   : > { %p282_p3 = pnand %p5679_p1, %p281_p2  ;;  %p31_p4 = scmp.ge.s32.totalorder %s9705_s27, 2 }
   0x8   : > { %p355_p5 = scmp.lt.s32.totalorder (!%p282_p3), %s7749_s22, 1  ;;  %p357_p6 = scmp.lt.s32.totalorder (!%p282_p3), %s7745_s21, 5 }
   0x9   : > { %s9707_s27 = smov (%p31_p4, %s9705_s27), 0  ;;  %285 = sbr.rel (%p282_p3) target bundleno = 633 (0x279), region = 36 }
   0xa   : > { %s375_s29 = sadd.s32 (!%p282_p3), 2, %s7745_s21  ;;  %p388_p9 = scmp.lt.s32.totalorder (!%p282_p3), %s7745_s21, 3 }
   0xb   : > { %p8917_p8 = scmp.lt.s32.totalorder (!%p282_p3), %s375_s29, 5 }
   0xe   : > { %v7399_v0 = vld [vmem:[%s9689_s3 + $0x78] sm:$0xff]  ;;  %v7398_v3 = vld [vmem:[%s9689_s3 + $0x70] sm:$0xff]  ;;  %s9709_s22 = smov (!%p355_p5, %s7749_s22), 1  ;;  %v7397_v6 = vld [vmem:[%s9689_s3 + $0x68] sm:$0xff]  ;;  %vm443_vm0 = vsmask.f32 3328 }
   0xf   : > { %v7391_v1 = vld [vmem:[%s9689_s3 + $0x38] sm:$0xff]  ;;  %639 = vmatpush.bf16.msra.mxu0 %v7399_v0  ;;  %7655 = vmatpush.bf16.msra.mxu3 %v7399_v0  ;;  %v7390_v4 = vld [vmem:[%s9689_s3 + $0x30] sm:$0xff]  ;;  %s358_s16 = scalar_select %p357_p6, %s7745_s21, 5  ;;  %v7389_v7 = vld [vmem:[%s9689_s3 + $0x28] sm:$0xff]  ;;  %vm444_vm1 = vsmask.f32 7440 }
  0x10   : > { %v7407_v2 = vld [vmem:[%s9689_s3 + $0xb8] sm:$0xff]  ;;  %740 = vmatpush.bf16.msra.mxu1 %v7391_v1  ;;  %v7406_v5 = vld [vmem:[%s9689_s3 + $0xb0] sm:$0xff]  ;;  %s7853_s17 = smul.u32 120, %s9709_s22  ;;  %v7405_v8 = vld [vmem:[%s9689_s3 + $0xa8] sm:$0xff]  ;;  %vm793_vm2 = vcmask 1042432   ;;  %vm794_vm4 = vcmask 1046532  }
  0x11   : > { %909 = vmatpush.bf16.msra.mxu2 %v7407_v2  ;;  %s7679_s18 = smul.u32 20, %s358_s16  ;;  %v7396_v9 = vld [vmem:[%s9689_s3 + $0x60] sm:$0xff]  ;;  %v7395_v20 = vld [vmem:[%s9689_s3 + $0x58] sm:$0xff]  ;;  %vm7909_vm3 = vmor %vm443_vm0, %vm444_vm1  ;;  %s364_s16 = sadd.s32 1, %s7745_s21 }
  0x12   : > { %v7388_v10 = vld [vmem:[%s9689_s3 + $0x20] sm:$0xff]  ;;  %v7387_v35 = vld [vmem:[%s9689_s3 + $0x18] sm:$0xff]  ;;  %v7394_v50 = vld [vmem:[%s9689_s3 + $0x50] sm:$0xff]  ;;  %p367_p7 = scmp.lt.s32.totalorder %s364_s16, 5  ;;  %s9713_s29 = smov (!%p8917_p8, %s375_s29), 5 }
  0x13   : > { %640 = vmatpush.bf16.msra.mxu0 %v7398_v3  ;;  %7656 = vmatpush.bf16.msra.mxu3 %v7398_v3  ;;  %s361_s8 = sadd.s32 %s7853_s17, %s7679_s18  ;;  %v7404_v11 = vld [vmem:[%s9689_s3 + $0xa0] sm:$0xff]  ;;  %v7403_v36 = vld [vmem:[%s9689_s3 + $0x98] sm:$0xff]  ;;  %v7386_v56 = vld [vmem:[%s9689_s3 + $0x10] sm:$0xff]  ;;  %s7682_s18 = smul.u32 20, %s9713_s29 }
  0x14   : > { %741 = vmatpush.bf16.msra.mxu1 %v7390_v4  ;;  %s5680_s9 = sshll.u32 %s361_s8, 2  ;;  %v7402_v57 = vld [vmem:[%s9689_s3 + $0x90] sm:$0xff]  ;;  %vm7932_vm5 = vmor %vm793_vm2, %vm794_vm4  ;;  %s9711_s16 = smov (!%p367_p7, %s364_s16), 5 }
  0x15   : > { %910 = vmatpush.bf16.msra.mxu2 %v7406_v5  ;;  %s7877_s20 = scalar_lea.vmem %s9686_s0, %s5680_s9  ;;  %s7681_s28 = smul.u32 20, %s9711_s16 }
  0x16   : > { %v411_v12 = vld [vmem:[%s7877_s20] sm:$0xf]  ;;  %v412_v13 = vld [vmem:[%s7877_s20 + $0x8] sm:$0xf]  ;;  %v7882_v14 = vld [vmem:[%s7877_s20 + $0x4] sm:$0x1] }
  0x17   : > { %641 = vmatpush.bf16.msra.mxu0 %v7397_v6  ;;  %7657 = vmatpush.bf16.msra.mxu3 %v7397_v6  ;;  %v7885_v15 = vld [vmem:[%s7877_s20 + $0xc] sm:$0x1]  ;;  %v447_v16 = vshrl.u32 %v411_v12, 16  ;;  %v450_v17 = vshll.u32 %v411_v12, 16  ;;  %v456_v18 = vshll.u32 %v7882_v14, 16  ;;  %v461_v19 = vshrl.u32 %v412_v13, 16  ;;  %s8358_s16 = sadd.s32 %s7681_s28, %s7853_s17  ;;  %s8978_s28 = sadd.s32 %s7682_s18, %s7853_s17 }
  0x18   : > { %742 = vmatpush.bf16.msra.mxu1 %v7389_v7  ;;  %v464_v21 = vshll.u32 %v412_v13, 16  ;;  %v470_v22 = vshll.u32 %v7885_v15, 16  ;;  %v415_v23 = vld [vmem:[%s7877_s20 + $0x20] sm:$0xf]  ;;  %v416_v24 = vld [vmem:[%s7877_s20 + $0x28] sm:$0xf] }
  0x19   : > { %911 = vmatpush.bf16.msra.mxu2 %v7405_v8  ;;  %v449_v25 = vrot.slane %v447_v16, 4  ;;  %v452_v26 = vrot.slane %v450_v17, 5  ;;  %v458_v27 = vrot.slane %v456_v18, 5  ;;  %v463_v28 = vrot.slane %v461_v19, 4  ;;  %v7895_v29 = vld [vmem:[%s7877_s20 + $0x24] sm:$0x1] }
  0x1a   : > { %v466_v30 = vrot.slane %v464_v21, 5  ;;  %v472_v31 = vrot.slane %v470_v22, 5  ;;  %v7898_v32 = vld [vmem:[%s7877_s20 + $0x2c] sm:$0x1]  ;;  %v503_v33 = vshrl.u32 %v415_v23, 16  ;;  %v506_v34 = vshll.u32 %v415_v23, 16 }
  0x1b   : > { %642 = vmatpush.bf16.msra.mxu0 %v7396_v9  ;;  %7658 = vmatpush.bf16.msra.mxu3 %v7396_v9  ;;  %v453_v37 = vor.u32 %v452_v26, %v449_v25  ;;  %v512_v38 = vshll.u32 %v7895_v29, 16  ;;  %v517_v39 = vshrl.u32 %v416_v24, 16  ;;  %v520_v40 = vshll.u32 %v416_v24, 16  ;;  %v769_v49 = vld [vmem:[%s7877_s20] sm:$0xe]  ;;  %v7393_v6 = vld [vmem:[%s9689_s3 + $0x48] sm:$0xff] }
  0x1c   : > { %743 = vmatpush.bf16.msra.mxu1 %v7388_v10  ;;  %v467_v42 = vor.u32 %v466_v30, %v463_v28  ;;  %v505_v43 = vrot.slane %v503_v33, 4  ;;  %v508_v44 = vrot.slane %v506_v34, 5  ;;  %v526_v45 = vshll.u32 %v7898_v32, 16  ;;  %v770_v55 = vld [vmem:[%s7877_s20 + $0x8] sm:$0xe]  ;;  %v7392_v18 = vld [vmem:[%s9689_s3 + $0x40] sm:$0xff] }
  0x1d   : > { %912 = vmatpush.bf16.msra.mxu2 %v7404_v11  ;;  %v454_v46 = vrot.slane %v453_v37, 4  ;;  %v519_v47 = vrot.slane %v517_v39, 4  ;;  %v522_v48 = vrot.slane %v520_v40, 5  ;;  %v514_v53 = vrot.slane %v512_v38, 5  ;;  %v413_v2 = vld [vmem:[%s7877_s20 + $0x10] sm:$0xf] }
  0x1e   : > { %v468_v51 = vrot.slane %v467_v42, 4  ;;  %v509_v52 = vor.u32 %v508_v44, %v505_v43  ;;  %v528_v54 = vrot.slane %v526_v45, 5  ;;  %v5786_v60 = vrot.slane %v769_v49, 9  ;;  %v414_v9 = vld [vmem:[%s7877_s20 + $0x18] sm:$0xf]  ;;  %v7385_v12 = vld [vmem:[%s9689_s3 + $0x8] sm:$0xff] }
  0x1f   : > { %643 = vmatpush.bf16.msra.mxu0 %v7395_v20  ;;  %7659 = vmatpush.bf16.msra.mxu3 %v7395_v20  ;;  %v459_v58 = vsel %vm7909_vm3, %v454_v46, %v458_v27  ;;  %v523_v59 = vor.u32 %v522_v48, %v519_v47  ;;  %v798_v61 = vrot.slane %v7882_v14, 5  ;;  %v5787_v1 = vrot.slane %v770_v55, 9  ;;  %v7401_v13 = vld [vmem:[%s9689_s3 + $0x88] sm:$0xff]  ;;  %v417_v17 = vld [vmem:[%s7877_s20 + $0x30] sm:$0xf]  ;;  %v7384_v23 = vld [vmem:[%s9689_s3] sm:$0xff] }
  0x20   : > { %744 = vmatpush.bf16.msra.mxu1 %v7387_v35  ;;  %v473_v62 = vsel %vm7909_vm3, %v468_v51, %v472_v31  ;;  %v510_v63 = vrot.slane %v509_v52, 4  ;;  %v7937_v3 = vunpack.c.l.b16 %v459_v58  ;;  %v802_v5 = vrot.slane %v7885_v15, 5  ;;  %v7965_v19 = vld [vmem:[%s7877_s20 + $0x14] sm:$0x1]  ;;  %v7968_v20 = vld [vmem:[%s7877_s20 + $0x1c] sm:$0x1] }
  0x21   : > { %913 = vmatpush.bf16.msra.mxu2 %v7403_v36  ;;  %v524_v4 = vrot.slane %v523_v59, 4  ;;  %v7943_v7 = vunpack.c.l.b16 %v473_v62  ;;  %v475_v10 = vshrl.u32 %v413_v2, 16  ;;  %v478_v11 = vshll.u32 %v413_v2, 16  ;;  %v5740_v26 = vld [vmem:[%s7877_s20] sm:$0xf]  ;;  %v7427_v45 = vld [vmem:[%s9689_s3 + $0x138] sm:$0xff] }
  0x22   : > { %v515_v8 = vsel %vm7909_vm3, %v510_v63, %v514_v53  ;;  %v799_v15 = vsel %vm7932_vm5, %v5786_v60, %v798_v61  ;;  %v803_v16 = vsel %vm7932_vm5, %v5787_v1, %v802_v5  ;;  %v489_v27 = vshrl.u32 %v414_v9, 16  ;;  %v7975_v30 = vld [vmem:[%s7877_s20 + $0x34] sm:$0x1]  ;;  %v7400_v31 = vld [vmem:[%s9689_s3 + $0x80] sm:$0xff]  ;;  %v7380_v34 = vld [vmem:[%s7877_s20 + $0x4] sm:$0xf0] }
  0x23   : > { %644 = vmatpush.bf16.msra.mxu0 %v7394_v50  ;;  %7660 = vmatpush.bf16.msra.mxu3 %v7394_v50  ;;  %v529_v14 = vsel %vm7909_vm3, %v524_v4, %v528_v54  ;;  %v477_v21 = vrot.slane %v475_v10, 4  ;;  %v480_v22 = vrot.slane %v478_v11, 5  ;;  %v579_v24 = vunpack.c.l.b16 %v515_v8  ;;  %v418_v37 = vld [vmem:[%s7877_s20 + $0x38] sm:$0xf]  ;;  %v7987_v44 = vld [vmem:[%s7877_s20 + $0x3c] sm:$0x1] }
  0x24   : > { %745 = vmatpush.bf16.msra.mxu1 %v7386_v56  ;;  %v580_v25 = vunpack.c.l.b16 %v529_v14  ;;  %v492_v28 = vshll.u32 %v414_v9, 16  ;;  %v583_v33 = vpack.c.b16 %v7943_v7, %v7937_v3  ;;  %v845_v35 = vunpack.c.l.b16 %v799_v15  ;;  %v7419_v46 = vld [vmem:[%s9689_s3 + $0xf8] sm:$0xff]  ;;  %v771_v60 = vld [vmem:[%s7877_s20 + $0x10] sm:$0xe]  ;;  %s5681_s7 = sshll.u32 %s8358_s16, 2  ;;  %s5682_s17 = sshll.u32 %s8978_s28, 2 }
  0x25   : > { %914 = vmatpush.bf16.msra.mxu2 %v7402_v57  ;;  %v846_v36 = vunpack.c.l.b16 %v803_v16  ;;  %v531_v38 = vshrl.u32 %v417_v17, 16  ;;  %v484_v39 = vshll.u32 %v7965_v19, 16  ;;  %v491_v40 = vrot.slane %v489_v27, 4  ;;  %v7447_v57 = vld [vmem:[%s9689_s3 + $0x1b8] sm:$0xff]  ;;  %v7426_v3 = vld [vmem:[%s9689_s3 + $0x130] sm:$0xff]  ;;  %s8375_s10 = scalar_lea.vmem %s9687_s1, %s5681_s7  ;;  %s9715_s21 = smov (!%p388_p9, %s7745_s21), 3 }
  0x26   : > { %v494_v42 = vrot.slane %v492_v28, 5  ;;  %v498_v43 = vshll.u32 %v7968_v20, 16  ;;  %v481_v47 = vor.u32 %v480_v22, %v477_v21  ;;  %v534_v49 = vshll.u32 %v417_v17, 16  ;;  %v7435_v61 = vld [vmem:[%s9689_s3 + $0x178] sm:$0xff]  ;;  %v7418_v4 = vld [vmem:[%s9689_s3 + $0xf0] sm:$0xff]  ;;  %v7425_v21 = vld [vmem:[%s9689_s3 + $0x128] sm:$0xff] }
  0x27   : > { %645 = vmatpush.bf16.msra.mxu0 %v7393_v6  ;;  %7661 = vmatpush.bf16.msra.mxu3 %v7393_v6  ;;  %v533_v48 = vrot.slane %v531_v38, 4  ;;  %v540_v50 = vshll.u32 %v7975_v30, 16  ;;  %v585_v51 = vpack.c.b16 %v580_v25, %v579_v24  ;;  %v545_v53 = vshrl.u32 %v418_v37, 16  ;;  %v772_v2 = vld [vmem:[%s7877_s20 + $0x18] sm:$0xe]  ;;  %v7446_v17 = vld [vmem:[%s9689_s3 + $0x1b0] sm:$0xff] }
  0x28   : > { %746 = vmatpush.bf16.msra.mxu1 %v7385_v12  ;;  %v495_v52 = vor.u32 %v494_v42, %v491_v40  ;;  %v548_v54 = vshll.u32 %v418_v37, 16  ;;  %v5741_v55 = vor.u32 %v7380_v34, %v5740_v26  ;;  %v853_v56 = vpack.c.b16 %v846_v36, %v845_v35  ;;  %v5914_v22 = vld [vmem:[%s7877_s20 + $0x8] sm:$0xf]  ;;  %v5916_v26 = vld [vmem:[%s7877_s20 + $0x10] sm:$0xf]  ;;  %v7424_v37 = vld [vmem:[%s9689_s3 + $0x120] sm:$0xff] }
  0x29   : > { %915 = vmatpush.bf16.msra.mxu2 %v7401_v13  ;;  %v536_v58 = vrot.slane %v534_v49, 5  ;;  %v554_v59 = vshll.u32 %v7987_v44, 16  ;;  %v486_v62 = vrot.slane %v484_v39, 5  ;;  %v547_v63 = vrot.slane %v545_v53, 4  ;;  %v7433_v34 = vld [vmem:[%s9689_s3 + $0x168] sm:$0xff]  ;;  %v7416_v38 = vld [vmem:[%s9689_s3 + $0xe0] sm:$0xff] }
  0x2a   : > { %v550_v1 = vrot.slane %v548_v54, 5  ;;  %v482_v5 = vrot.slane %v481_v47, 4  ;;  %v500_v6 = vrot.slane %v498_v43, 5  ;;  %v542_v8 = vrot.slane %v540_v50, 5  ;;  %v5744_v47 = vld [vmem:[%s7877_s20 + $0x10] sm:$0xf] }
  0x2b   : > { %646 = vmatpush.bf16.msra.mxu0 %v7392_v18  ;;  %7662 = vmatpush.bf16.msra.mxu3 %v7392_v18  ;;  %v537_v7 = vor.u32 %v536_v58, %v533_v48  ;;  %v496_v9 = vrot.slane %v495_v52, 4  ;;  %v5788_v11 = vrot.slane %v771_v60, 9  ;;  %v806_v12 = vrot.slane %v7965_v19, 5  ;;  %v7434_v19 = vld [vmem:[%s9689_s3 + $0x170] sm:$0xff]  ;;  %v7381_v50 = vld [vmem:[%s7877_s20 + $0x14] sm:$0xf0] }
  0x2c   : > { %747 = vmatpush.bf16.msra.mxu1 %v7384_v23  ;;  %v551_v10 = vor.u32 %v550_v1, %v547_v63  ;;  %v556_v14 = vrot.slane %v554_v59, 5  ;;  %v5789_v15 = vrot.slane %v772_v2, 9  ;;  %v810_v16 = vrot.slane %v7968_v20, 5  ;;  %v7417_v20 = vld [vmem:[%s9689_s3 + $0xe8] sm:$0xff]  ;;  %v7432_v58 = vld [vmem:[%s9689_s3 + $0x160] sm:$0xff]  ;;  %v7423_v59 = vld [vmem:[%s9689_s3 + $0x118] sm:$0xff] }
  0x2d   : > { %916 = vmatpush.bf16.msra.mxu2 %v7400_v31  ;;  %v538_v13 = vrot.slane %v537_v7, 4  ;;  %v487_v23 = vsel %vm7909_vm3, %v482_v5, %v486_v62  ;;  %v501_v24 = vsel %vm7909_vm3, %v496_v9, %v500_v6  ;;  %v807_v25 = vsel %vm7932_vm5, %v5788_v11, %v806_v12  ;;  %v7415_v60 = vld [vmem:[%s9689_s3 + $0xd8] sm:$0xff]  ;;  %v773_v2 = vld [vmem:[%s7877_s20 + $0x20] sm:$0xe]  ;;  %v7414_v11 = vld [vmem:[%s9689_s3 + $0xd0] sm:$0xff]  ;;  %s5684_s18 = sshll.u32 %s9709_s22, 5 }
  0x2e   : > { %647 = vmatmul.bf16.vlgmr.msra.gmra.mxu0 %v583_v33  ;;  %657 = vmatmul.bf16.vlgmr.msra.gmra.mxu3 %v585_v51  ;;  %v552_v18 = vrot.slane %v551_v10, 4  ;;  %v811_v31 = vsel %vm7932_vm5, %v5789_v15, %v810_v16  ;;  %v7445_v33 = vld [vmem:[%s9689_s3 + $0x1a8] sm:$0xff]  ;;  %v1098_v35 = vshrl.u32 %v5914_v22, 16  ;;  %v1101_v36 = vshll.u32 %v5914_v22, 16  ;;  %v7444_v51 = vld [vmem:[%s9689_s3 + $0x1a0] sm:$0xff]  ;;  %v7431_v9 = vld [vmem:[%s9689_s3 + $0x158] sm:$0xff] }
  0x2f   : > { %1290 = vmatpush.bf16.msrb.mxu0 %v7427_v45  ;;  %1044 = vmatpush.bf16.msrb.mxu3 %v7419_v46  ;;  %v543_v27 = vsel %vm7909_vm3, %v538_v13, %v542_v8  ;;  %v577_v39 = vunpack.c.l.b16 %v487_v23  ;;  %v578_v40 = vunpack.c.l.b16 %v501_v24  ;;  %v847_v42 = vunpack.c.l.b16 %v807_v25  ;;  %v7443_v8 = vld [vmem:[%s9689_s3 + $0x198] sm:$0xff]  ;;  %v7422_v10 = vld [vmem:[%s9689_s3 + $0x110] sm:$0xff]  ;;  %v5920_v22 = vld [vmem:[%s7877_s20 + $0x20] sm:$0xf] }
  0x30   : > { %748 = vmatmul.bf16.vlgmr.msra.gmra.mxu1 %v5741_v55  ;;  %917 = vmatmul.bf16.vlgmr.msra.gmra.mxu2 %v853_v56  ;;  %v557_v28 = vsel %vm7909_vm3, %v552_v18, %v556_v14  ;;  %v1112_v43 = vshrl.u32 %v5916_v26, 16  ;;  %v581_v45 = vunpack.c.l.b16 %v543_v27  ;;  %v848_v48 = vunpack.c.l.b16 %v811_v31  ;;  %v8057_v55 = vld [vmem:[%s7877_s20 + $0xc] sm:$0x1]  ;;  %v8060_v56 = vld [vmem:[%s7877_s20 + $0x14] sm:$0x1] }
  0x31   : > { %1599 = vmatpush.bf16.msrb.mxu2 %v7447_v57  ;;  %1464 = vmatpush.bf16.msrb.mxu1 %v7435_v61  ;;  %v582_v46 = vunpack.c.l.b16 %v557_v28  ;;  %v1115_v49 = vshll.u32 %v5916_v26, 16  ;;  %v1100_v52 = vrot.slane %v1098_v35, 4  ;;  %v1103_v53 = vrot.slane %v1101_v36, 5  ;;  %v7413_v23 = vld [vmem:[%s9689_s3 + $0xc8] sm:$0xff]  ;;  %v7420_v28 = vld [vmem:[%s9689_s3 + $0x100] sm:$0xff] }
  0x32   : > { %v1114_v54 = vrot.slane %v1112_v43, 4  ;;  %v584_v61 = vpack.c.b16 %v578_v40, %v577_v39  ;;  %v5745_v63 = vor.u32 %v7381_v50, %v5744_v47  ;;  %v854_v1 = vpack.c.b16 %v848_v48, %v847_v42  ;;  %v7412_v36 = vld [vmem:[%s9689_s3 + $0xc0] sm:$0xff]  ;;  %v7382_v40 = vld [vmem:[%s7877_s20 + $0x24] sm:$0xf0]  ;;  %v7455_v50 = vld [vmem:[%s9689_s3 + $0x1f8] sm:$0xff] }
  0x33   : > { %1291 = vmatpush.bf16.msrb.mxu0 %v7426_v3  ;;  %1045 = vmatpush.bf16.msrb.mxu3 %v7418_v4  ;;  %v1117_v57 = vrot.slane %v1115_v49, 5  ;;  %v586_v62 = vpack.c.b16 %v582_v46, %v581_v45  ;;  %v774_v3 = vld [vmem:[%s7877_s20 + $0x28] sm:$0xe]  ;;  %v1104_v4 = vor.u32 %v1103_v53, %v1100_v52  ;;  %v1107_v5 = vshll.u32 %v8057_v55, 16  ;;  %v5748_v39 = vld [vmem:[%s7877_s20 + $0x20] sm:$0xf] }
  0x34   : > { %v1121_v7 = vshll.u32 %v8060_v56, 16  ;;  %v5790_v12 = vrot.slane %v773_v2, 9  ;;  %v814_v13 = vrot.slane %v7895_v29, 5  ;;  %v5791_v14 = vrot.slane %v774_v3, 9  ;;  %v7430_v29 = vld [vmem:[%s9689_s3 + $0x150] sm:$0xff]  ;;  %v7463_v49 = vld [vmem:[%s9689_s3 + $0x238] sm:$0xff] }
  0x35   : > { %1600 = vmatpush.bf16.msrb.mxu2 %v7446_v17  ;;  %1465 = vmatpush.bf16.msrb.mxu1 %v7434_v19  ;;  %v1118_v6 = vor.u32 %v1117_v57, %v1114_v54  ;;  %v818_v15 = vrot.slane %v7898_v32, 5  ;;  %v1105_v16 = vrot.slane %v1104_v4, 4  ;;  %v1109_v17 = vrot.slane %v1107_v5, 5  ;;  %v7421_v32 = vld [vmem:[%s9689_s3 + $0x108] sm:$0xff]  ;;  %v7408_v46 = vld [vmem:[%s7877_s20 + $0xc] sm:$0xf0] }
  0x36   : > { %v1123_v19 = vrot.slane %v1121_v7, 5  ;;  %v815_v24 = vsel %vm7932_vm5, %v5790_v12, %v814_v13  ;;  %v1143_v35 = vshll.u32 %v5920_v22, 16  ;;  %v5868_v42 = vld [vmem:[%s7877_s20 + $0x8] sm:$0xf]  ;;  %v775_v3 = vld [vmem:[%s7877_s20 + $0x30] sm:$0xe] }
  0x37   : > { %1292 = vmatpush.bf16.msrb.mxu0 %v7425_v21  ;;  %1046 = vmatpush.bf16.msrb.mxu3 %v7417_v20  ;;  %v1119_v18 = vrot.slane %v1118_v6, 4  ;;  %v5918_v21 = vld [vmem:[%s7877_s20 + $0x18] sm:$0xf]  ;;  %v7442_v20 = vld [vmem:[%s9689_s3 + $0x190] sm:$0xff]  ;;  %v819_v25 = vsel %vm7932_vm5, %v5791_v14, %v818_v15  ;;  %v1110_v31 = vsel %vm7909_vm3, %v1105_v16, %v1109_v17  ;;  %v849_v43 = vunpack.c.l.b16 %v815_v24  ;;  %v5922_v12 = vld [vmem:[%s7877_s20 + $0x28] sm:$0xf] }
  0x38   : > { %v1126_v26 = vshrl.u32 %v5918_v21, 16  ;;  %v1129_v27 = vshll.u32 %v5918_v21, 16  ;;  %v850_v45 = vunpack.c.l.b16 %v819_v25  ;;  %v1226_v47 = vunpack.c.l.b16 %v1110_v31  ;;  %v7462_v7 = vld [vmem:[%s9689_s3 + $0x230] sm:$0xff]  ;;  %v7483_v17 = vld [vmem:[%s9689_s3 + $0x2b8] sm:$0xff]  ;;  %v7460_v31 = vld [vmem:[%s9689_s3 + $0x220] sm:$0xff] }
  0x39   : > { %1601 = vmatpush.bf16.msrb.mxu2 %v7445_v33  ;;  %1466 = vmatpush.bf16.msrb.mxu1 %v7433_v34  ;;  %v1124_v33 = vsel %vm7909_vm3, %v1119_v18, %v1123_v19  ;;  %v1140_v34 = vshrl.u32 %v5920_v22, 16  ;;  %v1145_v57 = vrot.slane %v1143_v35, 5  ;;  %v5924_v16 = vld [vmem:[%s7877_s20 + $0x30] sm:$0xf]  ;;  %v822_v18 = vrot.slane %v7975_v30, 5  ;;  %v7453_v22 = vld [vmem:[%s9689_s3 + $0x1e8] sm:$0xff] }
  0x3a   : > { %v1227_v48 = vunpack.c.l.b16 %v1124_v33  ;;  %v1128_v52 = vrot.slane %v1126_v26, 4  ;;  %v1131_v53 = vrot.slane %v1129_v27, 5  ;;  %v855_v2 = vpack.c.b16 %v850_v45, %v849_v43  ;;  %v7482_v30 = vld [vmem:[%s9689_s3 + $0x2b0] sm:$0xff]  ;;  %v7452_v33 = vld [vmem:[%s9689_s3 + $0x1e0] sm:$0xff] }
  0x3b   : > { %1293 = vmatpush.bf16.msrb.mxu0 %v7424_v37  ;;  %1047 = vmatpush.bf16.msrb.mxu3 %v7416_v38  ;;  %v7441_v37 = vld [vmem:[%s9689_s3 + $0x188] sm:$0xff]  ;;  %v1142_v54 = vrot.slane %v1140_v34, 4  ;;  %v826_v21 = vrot.slane %v7987_v44, 5  ;;  %v1168_v44 = vshrl.u32 %v5924_v16, 16  ;;  %v1171_v24 = vshll.u32 %v5924_v16, 16 }
  0x3c   : > { %v7429_v38 = vld [vmem:[%s9689_s3 + $0x148] sm:$0xff]  ;;  %v1132_v4 = vor.u32 %v1131_v53, %v1128_v52  ;;  %v7451_v52 = vld [vmem:[%s9689_s3 + $0x1d8] sm:$0xff] }
  0x3d   : > { %1602 = vmatpush.bf16.msrb.mxu2 %v7444_v51  ;;  %1467 = vmatpush.bf16.msrb.mxu1 %v7432_v58  ;;  %v8134_v51 = vld [vmem:[%s7877_s20 + $0x1c] sm:$0x1]  ;;  %v8137_v58 = vld [vmem:[%s7877_s20 + $0x24] sm:$0x1]  ;;  %v1146_v5 = vor.u32 %v1145_v57, %v1142_v54  ;;  %v7449_v16 = vld [vmem:[%s9689_s3 + $0x1c8] sm:$0xff] }
  0x3e   : > { %652 = vmatmul.bf16.gmra.mxu0 %v584_v61  ;;  %662 = vmatmul.bf16.gmra.mxu3 %v586_v62  ;;  %v5749_v61 = vor.u32 %v7382_v40, %v5748_v39  ;;  %v5869_v62 = vor.u32 %v7408_v46, %v5868_v42  ;;  %v1149_v6 = vshll.u32 %v8137_v58, 16  ;;  %v1133_v13 = vrot.slane %v1132_v4, 4  ;;  %v8190_v39 = vld [vmem:[%s7877_s20 + $0x2c] sm:$0x1]  ;;  %v5872_v46 = vld [vmem:[%s7877_s20 + $0x18] sm:$0xf] }
  0x3f   : > { %1294 = vmatpush.bf16.msrb.mxu0 %v7423_v59  ;;  %1048 = vmatpush.bf16.msrb.mxu3 %v7415_v60  ;;  %v7440_v59 = vld [vmem:[%s9689_s3 + $0x180] sm:$0xff]  ;;  %v1147_v14 = vrot.slane %v1146_v5, 4  ;;  %v1170_v40 = vrot.slane %v1168_v44, 4  ;;  %v1173_v42 = vrot.slane %v1171_v24, 5  ;;  %v1163_v54 = vshll.u32 %v8190_v39, 16 }
  0x40   : > { %753 = vmatmul.bf16.gmra.mxu1 %v5745_v63  ;;  %922 = vmatmul.bf16.gmra.mxu2 %v854_v1  ;;  %v7428_v60 = vld [vmem:[%s9689_s3 + $0x140] sm:$0xff]  ;;  %v1234_v63 = vpack.c.b16 %v1227_v48, %v1226_v47  ;;  %v1135_v1 = vshll.u32 %v8134_v51, 16  ;;  %v1151_v15 = vrot.slane %v1149_v6, 5  ;;  %v8195_v48 = vld [vmem:[%s7877_s20 + $0x34] sm:$0x1] }
  0x41   : > { %1603 = vmatpush.bf16.msrb.mxu2 %v7443_v8  ;;  %1468 = vmatpush.bf16.msrb.mxu1 %v7431_v9  ;;  %v7454_v8 = vld [vmem:[%s9689_s3 + $0x1f0] sm:$0xff]  ;;  %v776_v9 = vld [vmem:[%s7877_s20 + $0x38] sm:$0xe]  ;;  %v7409_v47 = vld [vmem:[%s7877_s20 + $0x1c] sm:$0xf0]  ;;  %v1165_v5 = vrot.slane %v1163_v54, 5 }
  0x42   : > { %v5793_v19 = vrot.slane %v776_v9, 9  ;;  %v1152_v26 = vsel %vm7909_vm3, %v1147_v14, %v1151_v15  ;;  %v5873_v57 = vor.u32 %v7409_v47, %v5872_v46  ;;  %v7474_v14 = vld [vmem:[%s9689_s3 + $0x270] sm:$0xff]  ;;  %v7457_v15 = vld [vmem:[%s9689_s3 + $0x208] sm:$0xff]  ;;  %v7456_v44 = vld [vmem:[%s9689_s3 + $0x200] sm:$0xff] }
  0x43   : > { %1295 = vmatpush.bf16.msrb.mxu0 %v7422_v10  ;;  %1049 = vmatpush.bf16.msrb.mxu3 %v7414_v11  ;;  %v5792_v10 = vrot.slane %v775_v3, 9  ;;  %v1137_v11 = vrot.slane %v1135_v1, 5  ;;  %v7458_v3 = vld [vmem:[%s9689_s3 + $0x210] sm:$0xff]  ;;  %v7448_v24 = vld [vmem:[%s9689_s3 + $0x1c0] sm:$0xff] }
  0x45   : > { %1604 = vmatpush.bf16.msrb.mxu2 %v7442_v20  ;;  %1469 = vmatpush.bf16.msrb.mxu1 %v7430_v29  ;;  %v7461_v20 = vld [vmem:[%s9689_s3 + $0x228] sm:$0xff]  ;;  %v7475_v29 = vld [vmem:[%s9689_s3 + $0x278] sm:$0xff]  ;;  %v1138_v25 = vsel %vm7909_vm3, %v1133_v13, %v1137_v11  ;;  %v823_v27 = vsel %vm7932_vm5, %v5792_v10, %v822_v18  ;;  %v1357_v11 = vrot.slane %v8060_v56, 5  ;;  %v7450_v13 = vld [vmem:[%s9689_s3 + $0x1d0] sm:$0xff] }
  0x46   : > { %v851_v43 = vunpack.c.l.b16 %v823_v27  ;;  %v7481_v56 = vld [vmem:[%s9689_s3 + $0x2a8] sm:$0xff] }
  0x47   : > { %1296 = vmatpush.bf16.msrb.mxu0 %v7421_v32  ;;  %1050 = vmatpush.bf16.msrb.mxu3 %v7413_v23  ;;  %v1154_v32 = vshrl.u32 %v5922_v12, 16  ;;  %v1157_v23 = vshll.u32 %v5922_v12, 16  ;;  %v5926_v12 = vld [vmem:[%s7877_s20 + $0x38] sm:$0xf] }
  0x49   : > { %1605 = vmatpush.bf16.msrb.mxu2 %v7441_v37  ;;  %1470 = vmatpush.bf16.msrb.mxu1 %v7429_v38  ;;  %v1156_v34 = vrot.slane %v1154_v32, 4  ;;  %v1159_v35 = vrot.slane %v1157_v23, 5  ;;  %v1228_v37 = vunpack.c.l.b16 %v1138_v25  ;;  %v1229_v38 = vunpack.c.l.b16 %v1152_v26  ;;  %v5876_v25 = vld [vmem:[%s7877_s20 + $0x28] sm:$0xf]  ;;  %v7410_v26 = vld [vmem:[%s7877_s20 + $0x2c] sm:$0xf0] }
  0x4a   : > { %v1185_v32 = vshll.u32 %v5926_v12, 16 }
  0x4b   : > { %1297 = vmatpush.bf16.msrb.mxu0 %v7420_v28  ;;  %1051 = vmatpush.bf16.msrb.mxu3 %v7412_v36  ;;  %v827_v28 = vsel %vm7932_vm5, %v5793_v19, %v826_v21  ;;  %v5752_v36 = vld [vmem:[%s7877_s20 + $0x30] sm:$0xf]  ;;  %v1160_v53 = vor.u32 %v1159_v35, %v1156_v34  ;;  %v8253_v34 = vld [vmem:[%s7877_s20 + $0x3c] sm:$0x1]  ;;  %v8256_v35 = vld [vmem:[%s7877_s20 + $0x44] sm:$0x1] }
  0x4c   : > { %v852_v45 = vunpack.c.l.b16 %v827_v28  ;;  %v1191_v47 = vshll.u32 %v8253_v34, 16 }
  0x4d   : > { %1606 = vmatpush.bf16.msrb.mxu2 %v7440_v59  ;;  %1471 = vmatpush.bf16.msrb.mxu1 %v7428_v60  ;;  %v1235_v59 = vpack.c.b16 %v1229_v38, %v1228_v37  ;;  %v1174_v60 = vor.u32 %v1173_v42, %v1170_v40  ;;  %v1161_v4 = vrot.slane %v1160_v53, 4  ;;  %v1187_v37 = vrot.slane %v1185_v32, 5  ;;  %v6068_v42 = vld [vmem:[%s7877_s20 + $0x10] sm:$0xf]  ;;  %v7411_v32 = vld [vmem:[%s7877_s20 + $0x3c] sm:$0xf0] }
  0x4e   : > { %1052 = vmatmul.bf16.vlgmr.msrb.gmra.mxu3 %v5869_v62  ;;  %1298 = vmatmul.bf16.vlgmr.msrb.gmra.mxu0 %v1234_v63  ;;  %v5978_v62 = vld [vmem:[%s7877_s20 + $0x8] sm:$0xe]  ;;  %v856_v1 = vpack.c.b16 %v852_v45, %v851_v43  ;;  %v7436_v43 = vld [vmem:[%s7877_s20 + $0x14] sm:$0xf0]  ;;  %v5877_v45 = vor.u32 %v7410_v26, %v5876_v25  ;;  %v6072_v26 = vld [vmem:[%s7877_s20 + $0x20] sm:$0xf] }
  0x4f   : > { %2019 = vmatpush.bf16.msra.mxu0 %v7463_v49  ;;  %1845 = vmatpush.bf16.msra.mxu3 %v7455_v50  ;;  %v7383_v49 = vld [vmem:[%s7877_s20 + $0x34] sm:$0xf0]  ;;  %v5986_v6 = vrot.slane %v5978_v62, 9  ;;  %v1166_v18 = vsel %vm7909_vm3, %v1161_v4, %v1165_v5  ;;  %v6114_v62 = vld [vmem:[%s7877_s20 + $0x10] sm:$0xf]  ;;  %v7472_v4 = vld [vmem:[%s9689_s3 + $0x260] sm:$0xff] }
  0x50   : > { %758 = vmatmul.bf16.gmra.mxu1 %v5749_v61  ;;  %927 = vmatmul.bf16.gmra.mxu2 %v855_v2  ;;  %v7459_v50 = vld [vmem:[%s9689_s3 + $0x218] sm:$0xff]  ;;  %v1177_v61 = vshll.u32 %v8195_v48, 16  ;;  %v5753_v63 = vor.u32 %v7383_v49, %v5752_v36  ;;  %v5979_v2 = vld [vmem:[%s7877_s20 + $0x10] sm:$0xe]  ;;  %v1230_v27 = vunpack.c.l.b16 %v1166_v18  ;;  %v1205_v49 = vshll.u32 %v8256_v35, 16 }
  0x51   : > { %2399 = vmatpush.bf16.msra.mxu2 %v7483_v17  ;;  %2153 = vmatpush.bf16.msra.mxu1 %v7475_v29  ;;  %v5987_v10 = vrot.slane %v5979_v2, 9  ;;  %v7473_v17 = vld [vmem:[%s9689_s3 + $0x268] sm:$0xff]  ;;  %v1182_v29 = vshrl.u32 %v5926_v12, 16  ;;  %v7479_v5 = vld [vmem:[%s9689_s3 + $0x298] sm:$0xff]  ;;  %v1653_v12 = vshrl.u32 %v6114_v62, 16 }
  0x52   : > { %v1179_v9 = vrot.slane %v1177_v61, 5  ;;  %v1207_v61 = vrot.slane %v1205_v49, 5  ;;  %v5880_v18 = vld [vmem:[%s7877_s20 + $0x38] sm:$0xf]  ;;  %v1369_v49 = vrot.slane %v8190_v39, 5  ;;  %v7501_v39 = vld [vmem:[%s9689_s3 + $0x328] sm:$0xff] }
  0x53   : > { %2020 = vmatpush.bf16.msra.mxu0 %v7462_v7  ;;  %1846 = vmatpush.bf16.msra.mxu3 %v7454_v8  ;;  %v1353_v7 = vrot.slane %v8057_v55, 5  ;;  %v1175_v8 = vrot.slane %v1174_v60, 4  ;;  %v5928_v55 = vld [vmem:[%s7877_s20 + $0x40] sm:$0xf]  ;;  %v1184_v36 = vrot.slane %v1182_v29, 4  ;;  %v1193_v60 = vrot.slane %v1191_v47, 5 }
  0x54   : > { %v1196_v23 = vshrl.u32 %v5928_v55, 16  ;;  %v5983_v47 = vld [vmem:[%s7877_s20 + $0x30] sm:$0xe] }
  0x55   : > { %2400 = vmatpush.bf16.msra.mxu2 %v7482_v30  ;;  %2154 = vmatpush.bf16.msra.mxu1 %v7474_v14  ;;  %v1180_v19 = vsel %vm7909_vm3, %v1175_v8, %v1179_v9  ;;  %v1354_v21 = vsel %vm7932_vm5, %v5986_v6, %v1353_v7  ;;  %v1199_v30 = vshll.u32 %v5928_v55, 16  ;;  %v1188_v53 = vor.u32 %v1187_v37, %v1184_v36  ;;  %v6116_v9 = vld [vmem:[%s7877_s20 + $0x18] sm:$0xf] }
  0x56   : > { %v1231_v28 = vunpack.c.l.b16 %v1180_v19  ;;  %v1198_v38 = vrot.slane %v1196_v23, 4  ;;  %v1361_v6 = vrot.slane %v8134_v51, 5  ;;  %v1365_v8 = vrot.slane %v8137_v58, 5  ;;  %v7471_v51 = vld [vmem:[%s9689_s3 + $0x258] sm:$0xff]  ;;  %v7478_v58 = vld [vmem:[%s9689_s3 + $0x290] sm:$0xff] }
  0x57   : > { %2021 = vmatpush.bf16.msra.mxu0 %v7461_v20  ;;  %1847 = vmatpush.bf16.msra.mxu3 %v7453_v22  ;;  %v1358_v20 = vsel %vm7932_vm5, %v5987_v10, %v1357_v11  ;;  %v7480_v22 = vld [vmem:[%s9689_s3 + $0x2a0] sm:$0xff]  ;;  %v1201_v40 = vrot.slane %v1199_v30, 5  ;;  %v7491_v10 = vld [vmem:[%s9689_s3 + $0x2f8] sm:$0xff]  ;;  %v7502_v11 = vld [vmem:[%s9689_s3 + $0x330] sm:$0xff] }
  0x58   : > { %v1236_v46 = vpack.c.b16 %v1231_v28, %v1230_v27  ;;  %v7437_v27 = vld [vmem:[%s7877_s20 + $0x24] sm:$0xf0] }
  0x59   : > { %2401 = vmatpush.bf16.msra.mxu2 %v7481_v56  ;;  %2155 = vmatpush.bf16.msra.mxu1 %v7473_v17  ;;  %v1202_v54 = vor.u32 %v1201_v40, %v1198_v38  ;;  %v1670_v56 = vshll.u32 %v6116_v9, 16  ;;  %v6073_v40 = vor.u32 %v7437_v27, %v6072_v26 }
  0x5b   : > { %2022 = vmatpush.bf16.msra.mxu0 %v7460_v31  ;;  %1848 = vmatpush.bf16.msra.mxu3 %v7452_v33  ;;  %v1400_v31 = vunpack.c.l.b16 %v1354_v21  ;;  %v1401_v33 = vunpack.c.l.b16 %v1358_v20  ;;  %v6115_v20 = vld [vmem:[%s7877_s20 + $0x14] sm:$0x1]  ;;  %v1672_v25 = vrot.slane %v1670_v56, 5 }
  0x5c   : > { %v1662_v28 = vshll.u32 %v6115_v20, 16 }
  0x5d   : > { %2402 = vmatpush.bf16.msra.mxu2 %v7480_v22  ;;  %2156 = vmatpush.bf16.msra.mxu1 %v7472_v4  ;;  %v1655_v22 = vrot.slane %v1653_v12, 4  ;;  %v1373_v4 = vrot.slane %v8195_v48, 5  ;;  %v7476_v12 = vld [vmem:[%s9689_s3 + $0x280] sm:$0xff] }
  0x5e   : > { %1057 = vmatmul.bf16.gmra.mxu3 %v5873_v57  ;;  %1303 = vmatmul.bf16.gmra.mxu0 %v1235_v59  ;;  %v5980_v57 = vld [vmem:[%s7877_s20 + $0x18] sm:$0xe]  ;;  %v5981_v59 = vld [vmem:[%s7877_s20 + $0x20] sm:$0xe] }
  0x5f   : > { %2023 = vmatpush.bf16.msra.mxu0 %v7459_v50  ;;  %1849 = vmatpush.bf16.msra.mxu3 %v7451_v52  ;;  %v1408_v50 = vpack.c.b16 %v1401_v33, %v1400_v31  ;;  %v6069_v52 = vor.u32 %v7436_v43, %v6068_v42  ;;  %v5988_v2 = vrot.slane %v5980_v57, 9  ;;  %v5989_v7 = vrot.slane %v5981_v59, 9  ;;  %v6178_v43 = vld [vmem:[%s7877_s20 + $0x10] sm:$0xe]  ;;  %v6118_v59 = vld [vmem:[%s7877_s20 + $0x20] sm:$0xf] }
  0x60   : > { %763 = vmatmul.bf16.gmra.mxu1 %v5753_v63  ;;  %932 = vmatmul.bf16.gmra.mxu2 %v856_v1  ;;  %v1189_v63 = vrot.slane %v1188_v53, 4  ;;  %v1203_v1 = vrot.slane %v1202_v54, 4  ;;  %v5881_v31 = vor.u32 %v7411_v32, %v5880_v18  ;;  %v6186_v54 = vrot.slane %v6178_v43, 9 }
  0x61   : > { %2403 = vmatpush.bf16.msra.mxu2 %v7479_v5  ;;  %v1366_v17 = vsel %vm7932_vm5, %v5989_v7, %v1365_v8  ;;  %2157 = vmatpush.bf16.msra.mxu1 %v7471_v51  ;;  %v1908_v57 = vrot.slane %v6115_v20, 5  ;;  %v6120_v5 = vld [vmem:[%s7877_s20 + $0x28] sm:$0xf]  ;;  %v7500_v8 = vld [vmem:[%s9689_s3 + $0x320] sm:$0xff]  ;;  %v8353_v20 = vld [vmem:[%s7877_s20 + $0x2c] sm:$0x1] }
  0x62   : > { %v1194_v14 = vsel %vm7909_vm3, %v1189_v63, %v1193_v60  ;;  %v1208_v55 = vsel %vm7909_vm3, %v1203_v1, %v1207_v61  ;;  %v1403_v30 = vunpack.c.l.b16 %v1366_v17  ;;  %v7490_v63 = vld [vmem:[%s9689_s3 + $0x2f0] sm:$0xff]  ;;  %v7489_v7 = vld [vmem:[%s9689_s3 + $0x2e8] sm:$0xff]  ;;  %v1704_v27 = vshll.u32 %v8353_v20, 16 }
  0x63   : > { %2024 = vmatpush.bf16.msra.mxu0 %v7458_v3  ;;  %1850 = vmatpush.bf16.msra.mxu3 %v7450_v13  ;;  %v7503_v3 = vld [vmem:[%s9689_s3 + $0x338] sm:$0xff]  ;;  %v1656_v13 = vshll.u32 %v6114_v62, 16  ;;  %v1232_v19 = vunpack.c.l.b16 %v1194_v14  ;;  %v1233_v21 = vunpack.c.l.b16 %v1208_v55  ;;  %v7470_v1 = vld [vmem:[%s9689_s3 + $0x250] sm:$0xff]  ;;  %v1909_v48 = vsel %vm7932_vm5, %v6186_v54, %v1908_v57  ;;  %v7469_v51 = vld [vmem:[%s9689_s3 + $0x248] sm:$0xff] }
  0x64   : > { %v1695_v14 = vshrl.u32 %v6120_v5, 16  ;;  %v1698_v55 = vshll.u32 %v6120_v5, 16  ;;  %v1955_v17 = vunpack.c.l.b16 %v1909_v48  ;;  %v1706_v54 = vrot.slane %v1704_v27, 5  ;;  %v2192_v5 = vld [vmem:[%s8375_s10 + $0x8] sm:$0xf] }
  0x65   : > { %v1658_v29 = vrot.slane %v1656_v13, 5  ;;  %2404 = vmatpush.bf16.msra.mxu2 %v7478_v58  ;;  %v1237_v33 = vpack.c.b16 %v1233_v21, %v1232_v19  ;;  %2158 = vmatpush.bf16.msra.mxu1 %v7470_v1  ;;  %v6119_v21 = vld [vmem:[%s7877_s20 + $0x24] sm:$0x1]  ;;  %v7499_v1 = vld [vmem:[%s9689_s3 + $0x318] sm:$0xff] }
  0x66   : > { %v1690_v26 = vshll.u32 %v6119_v21, 16 }
  0x67   : > { %2025 = vmatpush.bf16.msra.mxu0 %v7457_v15  ;;  %1851 = vmatpush.bf16.msra.mxu3 %v7449_v16  ;;  %v1667_v15 = vshrl.u32 %v6116_v9, 16  ;;  %v1362_v16 = vsel %vm7932_vm5, %v5988_v2, %v1361_v6  ;;  %v1659_v36 = vor.u32 %v1658_v29, %v1655_v22  ;;  %v7477_v6 = vld [vmem:[%s9689_s3 + $0x288] sm:$0xff] }
  0x68   : > { %v1402_v23 = vunpack.c.l.b16 %v1362_v16 }
  0x69   : > { %2405 = vmatpush.bf16.msra.mxu2 %v7477_v6  ;;  %2159 = vmatpush.bf16.msra.mxu1 %v7469_v51 }
  0x6a   : > { %v1409_v38 = vpack.c.b16 %v1403_v30, %v1402_v23  ;;  %v1697_v30 = vrot.slane %v1695_v14, 4  ;;  %v2221_v14 = vshrl.u32 %v2192_v5, 16 }
  0x6b   : > { %2026 = vmatpush.bf16.msra.mxu0 %v7456_v44  ;;  %1852 = vmatpush.bf16.msra.mxu3 %v7448_v24  ;;  %v6117_v44 = vld [vmem:[%s7877_s20 + $0x1c] sm:$0x1]  ;;  %v1669_v24 = vrot.slane %v1667_v15, 4 }
  0x6c   : > { %v1676_v37 = vshll.u32 %v6117_v44, 16  ;;  %v1912_v62 = vrot.slane %v6117_v44, 5  ;;  %v1700_v44 = vrot.slane %v1698_v55, 5  ;;  %v2224_v55 = vshll.u32 %v2192_v5, 16  ;;  %v7486_v5 = vld [vmem:[%s9689_s3 + $0x2d0] sm:$0xff] }
  0x6d   : > { %v1673_v42 = vor.u32 %v1672_v25, %v1669_v24  ;;  %2406 = vmatpush.bf16.msra.mxu2 %v7476_v12  ;;  %v6076_v24 = vld [vmem:[%s7877_s20 + $0x30] sm:$0xf]  ;;  %v7438_v25 = vld [vmem:[%s7877_s20 + $0x34] sm:$0xf0] }
  0x6e   : > { %1062 = vmatmul.bf16.gmra.mxu3 %v5877_v45  ;;  %1308 = vmatmul.bf16.gmra.mxu0 %v1236_v46  ;;  %v6179_v45 = vld [vmem:[%s7877_s20 + $0x18] sm:$0xe]  ;;  %v5982_v46 = vld [vmem:[%s7877_s20 + $0x28] sm:$0xe]  ;;  %v1678_v53 = vrot.slane %v1676_v37, 5  ;;  %v1701_v43 = vor.u32 %v1700_v44, %v1697_v30 }
  0x6f   : > { %2708 = vmatpush.bf16.msrb.mxu0 %v7503_v3  ;;  %2573 = vmatpush.bf16.msrb.mxu3 %v7491_v10  ;;  %v1674_v60 = vrot.slane %v1673_v42, 4  ;;  %v6187_v61 = vrot.slane %v6179_v45, 9  ;;  %v5990_v2 = vrot.slane %v5982_v46, 9  ;;  %v5991_v3 = vrot.slane %v5983_v47, 9  ;;  %v6180_v45 = vld [vmem:[%s7877_s20 + $0x20] sm:$0xe] }
  0x70   : > { %1472 = vmatmul.bf16.vlgmr.msrb.gmra.mxu1 %v1408_v50  ;;  %1607 = vmatmul.bf16.vlgmr.msrb.gmra.mxu2 %v6069_v52  ;;  %v1664_v50 = vrot.slane %v1662_v28, 5  ;;  %v1660_v52 = vrot.slane %v1659_v36, 4  ;;  %v1681_v10 = vshrl.u32 %v6118_v59, 16  ;;  %v5985_v36 = vld [vmem:[%s7877_s20 + $0x40] sm:$0xe]  ;;  %v6077_v42 = vor.u32 %v7438_v25, %v6076_v24  ;;  %v7519_v12 = vld [vmem:[%s9689_s3 + $0x3b8] sm:$0xff] }
  0x71   : > { %v1679_v13 = vsel %vm7909_vm3, %v1674_v60, %v1678_v53  ;;  %v1913_v58 = vsel %vm7932_vm5, %v6187_v61, %v1912_v62  ;;  %v1370_v15 = vsel %vm7932_vm5, %v5990_v2, %v1369_v49  ;;  %v1374_v56 = vsel %vm7932_vm5, %v5991_v3, %v1373_v4  ;;  %v6181_v46 = vld [vmem:[%s7877_s20 + $0x28] sm:$0xe]  ;;  %v6122_v62 = vld [vmem:[%s7877_s20 + $0x30] sm:$0xf]  ;;  %v2190_v4 = vld [vmem:[%s8375_s10] sm:$0xf]  ;;  %3128 = vmatpush.bf16.msrb.mxu2 %v7519_v12 }
  0x72   : > { %v1665_v9 = vsel %vm7909_vm3, %v1660_v52, %v1664_v50  ;;  %v1782_v18 = vunpack.c.l.b16 %v1679_v13  ;;  %v1956_v19 = vunpack.c.l.b16 %v1913_v58  ;;  %v1683_v22 = vrot.slane %v1681_v10, 4  ;;  %v6080_v44 = vld [vmem:[%s7877_s20 + $0x40] sm:$0xf]  ;;  %v6125_v24 = vld [vmem:[%s7877_s20 + $0x3c] sm:$0x1] }
  0x73   : > { %2709 = vmatpush.bf16.msrb.mxu0 %v7502_v11  ;;  %2574 = vmatpush.bf16.msrb.mxu3 %v7490_v63  ;;  %v1684_v11 = vshll.u32 %v6118_v59, 16  ;;  %v1781_v16 = vunpack.c.l.b16 %v1665_v9  ;;  %v1404_v32 = vunpack.c.l.b16 %v1370_v15  ;;  %v1405_v23 = vunpack.c.l.b16 %v1374_v56  ;;  %v6124_v63 = vld [vmem:[%s7877_s20 + $0x38] sm:$0xf]  ;;  %v7439_v25 = vld [vmem:[%s7877_s20 + $0x44] sm:$0xf0] }
  0x74   : > { %v1377_v47 = vrot.slane %v8253_v34, 5  ;;  %v1381_v49 = vrot.slane %v8256_v35, 5  ;;  %v5993_v52 = vrot.slane %v5985_v36, 9  ;;  %v1692_v53 = vrot.slane %v1690_v26, 5  ;;  %v2196_v12 = vld [vmem:[%s8375_s10 + $0x18] sm:$0xf] }
  0x75   : > { %v1686_v29 = vrot.slane %v1684_v11, 5  ;;  %v1789_v28 = vpack.c.b16 %v1782_v18, %v1781_v16  ;;  %v6188_v59 = vrot.slane %v6180_v45, 9  ;;  %v1916_v60 = vrot.slane %v6119_v21, 5  ;;  %v7487_v18 = vld [vmem:[%s9689_s3 + $0x2d8] sm:$0xff] }
  0x76   : > { %v6189_v61 = vrot.slane %v6181_v46, 9  ;;  %v1702_v34 = vrot.slane %v1701_v43, 4  ;;  %v1920_v35 = vrot.slane %v8353_v20, 5  ;;  %v1709_v2 = vshrl.u32 %v6122_v62, 16 }
  0x77   : > { %2710 = vmatpush.bf16.msrb.mxu0 %v7501_v39  ;;  %2575 = vmatpush.bf16.msrb.mxu3 %v7489_v7  ;;  %v1687_v37 = vor.u32 %v1686_v29, %v1683_v22  ;;  %v7488_v39 = vld [vmem:[%s9689_s3 + $0x2e0] sm:$0xff]  ;;  %v1712_v3 = vshll.u32 %v6122_v62, 16  ;;  %v1917_v7 = vsel %vm7932_vm5, %v6188_v59, %v1916_v60  ;;  %v1726_v9 = vshll.u32 %v6124_v63, 16  ;;  %v8409_v22 = vld [vmem:[%s7877_s20 + $0x34] sm:$0x1] }
  0x78   : > { %v1382_v10 = vsel %vm7932_vm5, %v5993_v52, %v1381_v49  ;;  %v1707_v11 = vsel %vm7909_vm3, %v1702_v34, %v1706_v54  ;;  %v1921_v51 = vsel %vm7932_vm5, %v6189_v61, %v1920_v35  ;;  %v2207_v13 = vshrl.u32 %v2190_v4, 16  ;;  %v6182_v49 = vld [vmem:[%s7877_s20 + $0x30] sm:$0xe] }
  0x79   : > { %v1688_v57 = vrot.slane %v1687_v37, 4  ;;  %v2210_v58 = vshll.u32 %v2190_v4, 16  ;;  %v1957_v56 = vunpack.c.l.b16 %v1917_v7  ;;  %v1711_v16 = vrot.slane %v1709_v2, 4  ;;  %v8416_v37 = vld [vmem:[%s8375_s10 + $0x4] sm:$0x1]  ;;  %v7518_v52 = vld [vmem:[%s9689_s3 + $0x3b0] sm:$0xff] }
  0x7a   : > { %v1784_v21 = vunpack.c.l.b16 %v1707_v11  ;;  %v1958_v20 = vunpack.c.l.b16 %v1921_v51  ;;  %v1407_v30 = vunpack.c.l.b16 %v1382_v10  ;;  %v2209_v26 = vrot.slane %v2207_v13, 4  ;;  %3129 = vmatpush.bf16.msrb.mxu2 %v7518_v52  ;;  %v6128_v4 = vld [vmem:[%s7877_s20 + $0x48] sm:$0xf]  ;;  %v2194_v10 = vld [vmem:[%s8375_s10 + $0x10] sm:$0xf] }
  0x7b   : > { %2711 = vmatpush.bf16.msrb.mxu0 %v7500_v8  ;;  %2576 = vmatpush.bf16.msrb.mxu3 %v7488_v39  ;;  %v1693_v6 = vsel %vm7909_vm3, %v1688_v57, %v1692_v53  ;;  %v1723_v8 = vshrl.u32 %v6124_v63, 16  ;;  %v2212_v27 = vrot.slane %v2210_v58, 5  ;;  %v1718_v36 = vshll.u32 %v8409_v22, 16  ;;  %v6183_v53 = vld [vmem:[%s7877_s20 + $0x38] sm:$0xe] }
  0x7c   : > { %v1783_v15 = vunpack.c.l.b16 %v1693_v6  ;;  %v1732_v45 = vshll.u32 %v6125_v24, 16  ;;  %v2216_v57 = vshll.u32 %v8416_v37, 16  ;;  %v6190_v63 = vrot.slane %v6182_v49, 9  ;;  %v7497_v6 = vld [vmem:[%s9689_s3 + $0x308] sm:$0xff]  ;;  %v8473_v49 = vld [vmem:[%s8375_s10 + $0x14] sm:$0x1] }
  0x7d   : > { %v1725_v29 = vrot.slane %v1723_v8, 4  ;;  %v2213_v54 = vor.u32 %v2212_v27, %v2209_v26  ;;  %v1720_v62 = vrot.slane %v1718_v36, 5  ;;  %v1924_v39 = vrot.slane %v8409_v22, 5  ;;  %v6260_v36 = vld [vmem:[%s8375_s10] sm:$0xf] }
  0x7e   : > { %1067 = vmatmul.bf16.gmra.mxu3 %v5881_v31  ;;  %1313 = vmatmul.bf16.gmra.mxu0 %v1237_v33  ;;  %v1963_v31 = vpack.c.b16 %v1956_v19, %v1955_v17  ;;  %v5984_v33 = vld [vmem:[%s7877_s20 + $0x38] sm:$0xe]  ;;  %v1714_v17 = vrot.slane %v1712_v3, 5  ;;  %v7498_v19 = vld [vmem:[%s9689_s3 + $0x310] sm:$0xff]  ;;  %v1734_v35 = vrot.slane %v1732_v45, 5  ;;  %v6191_v2 = vrot.slane %v6183_v53, 9 }
  0x7f   : > { %v5992_v50 = vrot.slane %v5984_v33, 9  ;;  %2712 = vmatpush.bf16.msrb.mxu0 %v7499_v1  ;;  %2577 = vmatpush.bf16.msrb.mxu3 %v7487_v18  ;;  %v6126_v1 = vld [vmem:[%s7877_s20 + $0x40] sm:$0xf]  ;;  %v1928_v3 = vrot.slane %v6125_v24, 5  ;;  %v2214_v7 = vrot.slane %v2213_v54, 4  ;;  %v2218_v8 = vrot.slane %v2216_v57, 5 }
  0x80   : > { %1477 = vmatmul.bf16.gmra.mxu1 %v1409_v38  ;;  %1612 = vmatmul.bf16.gmra.mxu2 %v6073_v40  ;;  %v7468_v38 = vld [vmem:[%s9689_s3 + $0x240] sm:$0xff]  ;;  %v1410_v40 = vpack.c.b16 %v1405_v23, %v1404_v32  ;;  %v1728_v32 = vrot.slane %v1726_v9, 5  ;;  %v1715_v33 = vor.u32 %v1714_v17, %v1711_v16  ;;  %v1737_v11 = vshrl.u32 %v6126_v1, 16  ;;  %v7510_v18 = vld [vmem:[%s9689_s3 + $0x370] sm:$0xff]  ;;  %v7485_v24 = vld [vmem:[%s9689_s3 + $0x2c8] sm:$0xff] }
  0x81   : > { %2160 = vmatpush.bf16.msra.mxu1 %v7468_v38  ;;  %v1378_v48 = vsel %vm7932_vm5, %v5992_v50, %v1377_v47  ;;  %v8419_v38 = vld [vmem:[%s8375_s10 + $0xc] sm:$0x1]  ;;  %v6081_v47 = vor.u32 %v7439_v25, %v6080_v44  ;;  %v7511_v50 = vld [vmem:[%s9689_s3 + $0x378] sm:$0xff]  ;;  %v1740_v51 = vshll.u32 %v6126_v1, 16  ;;  %v2235_v16 = vshrl.u32 %v2194_v10, 16  ;;  %v7496_v25 = vld [vmem:[%s9689_s3 + $0x300] sm:$0xff] }
  0x82   : > { %v1406_v23 = vunpack.c.l.b16 %v1378_v48  ;;  %v1729_v43 = vor.u32 %v1728_v32, %v1725_v29  ;;  %v2230_v60 = vshll.u32 %v8419_v38, 16  ;;  %v1716_v61 = vrot.slane %v1715_v33, 4  ;;  %v8477_v57 = vld [vmem:[%s8375_s10 + $0x1c] sm:$0x1]  ;;  %v6184_v1 = vld [vmem:[%s7877_s20 + $0x40] sm:$0xe] }
  0x83   : > { %2713 = vmatpush.bf16.msrb.mxu0 %v7498_v19  ;;  %2578 = vmatpush.bf16.msrb.mxu3 %v7486_v5  ;;  %v2238_v17 = vshll.u32 %v2194_v10, 16  ;;  %v7517_v19 = vld [vmem:[%s9689_s3 + $0x3a8] sm:$0xff]  ;;  %v2249_v22 = vshrl.u32 %v2196_v12, 16  ;;  %v2252_v29 = vshll.u32 %v2196_v12, 16  ;;  %v1742_v44 = vrot.slane %v1740_v51, 5  ;;  %v7516_v5 = vld [vmem:[%s9689_s3 + $0x3a0] sm:$0xff] }
  0x84   : > { %v1411_v46 = vpack.c.b16 %v1407_v30, %v1406_v23  ;;  %v1730_v34 = vrot.slane %v1729_v43, 4  ;;  %v2232_v48 = vrot.slane %v2230_v60, 5  ;;  %v1721_v13 = vsel %vm7909_vm3, %v1716_v61, %v1720_v62  ;;  %3130 = vmatpush.bf16.msrb.mxu2 %v7517_v19  ;;  %v6129_v43 = vld [vmem:[%s7877_s20 + $0x4c] sm:$0x1]  ;;  %v2198_v19 = vld [vmem:[%s8375_s10 + $0x20] sm:$0xf] }
  0x85   : > { %2954 = vmatpush.bf16.msrb.mxu1 %v7511_v50  ;;  %v1785_v32 = vunpack.c.l.b16 %v1721_v13  ;;  %v1739_v30 = vrot.slane %v1737_v11, 4  ;;  %v2237_v45 = vrot.slane %v2235_v16, 4  ;;  %v2251_v50 = vrot.slane %v2249_v22, 4  ;;  %v7539_v16 = vld [vmem:[%s9689_s3 + $0x438] sm:$0xff] }
  0x86   : > { %v1735_v58 = vsel %vm7909_vm3, %v1730_v34, %v1734_v35  ;;  %v2254_v52 = vrot.slane %v2252_v29, 5  ;;  %v1760_v62 = vshll.u32 %v6129_v43, 16  ;;  %v7484_v34 = vld [vmem:[%s9689_s3 + $0x2c0] sm:$0xff]  ;;  %v6192_v13 = vrot.slane %v6184_v1, 9 }
  0x87   : > { %2714 = vmatpush.bf16.msrb.mxu0 %v7497_v6  ;;  %v1786_v23 = vunpack.c.l.b16 %v1735_v58  ;;  %2579 = vmatpush.bf16.msrb.mxu3 %v7485_v24  ;;  %v1743_v53 = vor.u32 %v1742_v44, %v1739_v30  ;;  %v8531_v1 = vld [vmem:[%s8375_s10 + $0x24] sm:$0x1] }
  0x88   : > { %3131 = vmatpush.bf16.msrb.mxu2 %v7516_v5  ;;  %v1762_v12 = vrot.slane %v1760_v62, 5 }
  0x89   : > { %2955 = vmatpush.bf16.msrb.mxu1 %v7510_v18  ;;  %v1744_v10 = vrot.slane %v1743_v53, 4 }
  0x8b   : > { %2715 = vmatpush.bf16.msrb.mxu0 %v7496_v25  ;;  %2580 = vmatpush.bf16.msrb.mxu3 %v7484_v34 }
  0x8e   : > { %1853 = vmatmul.bf16.vlgmr.msra.gmra.mxu3 %v1789_v28  ;;  %2027 = vmatmul.bf16.vlgmr.msra.gmra.mxu0 %v1963_v31  ;;  %v2223_v28 = vrot.slane %v2221_v14, 4  ;;  %v2226_v31 = vrot.slane %v2224_v55, 5  ;;  %v1751_v14 = vshrl.u32 %v6128_v4, 16  ;;  %v1754_v55 = vshll.u32 %v6128_v4, 16  ;;  %v7509_v4 = vld [vmem:[%s9689_s3 + $0x368] sm:$0xff] }
  0x8f   : > { %2956 = vmatpush.bf16.msrb.mxu1 %v7509_v4  ;;  %3509 = vmatpush.bf16.msra.mxu0 %v7539_v16  ;;  %v2462_v16 = vrot.slane %v8416_v37, 5  ;;  %v2204_v37 = vld [vmem:[%s8375_s10 + $0x38] sm:$0xf] }
  0x90   : > { %1482 = vmatmul.bf16.gmra.mxu1 %v1410_v40  ;;  %1617 = vmatmul.bf16.gmra.mxu2 %v6077_v42  ;;  %v1790_v40 = vpack.c.b16 %v1784_v21, %v1783_v15  ;;  %v1964_v42 = vpack.c.b16 %v1958_v20, %v1957_v56  ;;  %v2227_v59 = vor.u32 %v2226_v31, %v2223_v28  ;;  %v8467_v28 = vld [vmem:[%s7877_s20 + $0x44] sm:$0x1]  ;;  %v1753_v31 = vrot.slane %v1751_v14, 4 }
  0x91   : > { %v1925_v15 = vsel %vm7932_vm5, %v6190_v63, %v1924_v39  ;;  %v1929_v56 = vsel %vm7932_vm5, %v6191_v2, %v1928_v3  ;;  %v2219_v21 = vsel %vm7909_vm3, %v2214_v7, %v2218_v8  ;;  %v1756_v33 = vrot.slane %v1754_v55, 5  ;;  %v6185_v7 = vld [vmem:[%s7877_s20 + $0x48] sm:$0xe]  ;;  %s9012_s20 = scalar_lea.vmem %s9688_s2, %s5682_s17  ;;  %s5686_s17 = sshll.u32 %s9709_s22, 2 }
  0x92   : > { %v2228_v9 = vrot.slane %v2227_v59, 4  ;;  %v1959_v26 = vunpack.c.l.b16 %v1925_v15  ;;  %v1960_v27 = vunpack.c.l.b16 %v1929_v56  ;;  %v1746_v54 = vshll.u32 %v8467_v28, 16  ;;  %s400_s8 = sadd.s32 %s5686_s17, %s9715_s21 }
  0x93   : > { %v1791_v59 = vpack.c.b16 %v1786_v23, %v1785_v32  ;;  %v1757_v61 = vor.u32 %v1756_v33, %v1753_v31  ;;  %v2244_v3 = vshll.u32 %v8473_v49, 16  ;;  %v2255_v8 = vor.u32 %v2254_v52, %v2251_v50  ;;  %s5687_s9 = sshll.u32 %s400_s8, 3 }
  0x94   : > { %v2233_v20 = vsel %vm7909_vm3, %v2228_v9, %v2232_v48  ;;  %v1965_v60 = vpack.c.b16 %v1960_v27, %v1959_v26  ;;  %v2258_v9 = vshll.u32 %v8477_v57, 16  ;;  %v1748_v11 = vrot.slane %v1746_v54, 5  ;;  %v7508_v27 = vld [vmem:[%s9689_s3 + $0x360] sm:$0xff]  ;;  %v6264_v54 = vld [vmem:[%s8375_s10 + $0x10] sm:$0xf]  ;;  %s402_s12 = scalar_lea.vmem %s9691_s5, %s5687_s9  ;;  %s410_s14 = scalar_lea.vmem %s9692_s6, %s5687_s9 }
  0x95   : > { %v1758_v51 = vrot.slane %v1757_v61, 4  ;;  %v1932_v58 = vrot.slane %v8467_v28, 5  ;;  %v6193_v14 = vrot.slane %v6185_v7, 9  ;;  %v1936_v55 = vrot.slane %v6129_v43, 5  ;;  %v7515_v28 = vld [vmem:[%s9689_s3 + $0x398] sm:$0xff]  ;;  %2957 = vmatpush.bf16.msrb.mxu1 %v7508_v27  ;;  %v7506_v27 = vld [vmem:[%s9689_s3 + $0x350] sm:$0xff] }
  0x96   : > { %v2246_v56 = vrot.slane %v2244_v3, 5  ;;  %v2260_v18 = vrot.slane %v2258_v9, 5  ;;  %v1749_v29 = vsel %vm7909_vm3, %v1744_v10, %v1748_v11  ;;  %v2263_v26 = vshrl.u32 %v2198_v19, 16  ;;  %3132 = vmatpush.bf16.msrb.mxu2 %v7515_v28  ;;  %v7465_v61 = vld [vmem:[%s8375_s10 + $0x14] sm:$0xf0]  ;;  %v7514_v11 = vld [vmem:[%s9689_s3 + $0x390] sm:$0xff] }
  0x97   : > { %v1763_v32 = vsel %vm7909_vm3, %v1758_v51, %v1762_v12  ;;  %v1933_v23 = vsel %vm7932_vm5, %v6192_v13, %v1932_v58  ;;  %v1937_v24 = vsel %vm7932_vm5, %v6193_v14, %v1936_v55  ;;  %v7507_v10 = vld [vmem:[%s9689_s3 + $0x358] sm:$0xff]  ;;  %v2272_v13 = vshll.u32 %v8531_v1, 16  ;;  %v2437_v55 = vld [vmem:[%s8375_s10 + $0x8] sm:$0xe] }
  0x98   : > { %v1788_v50 = vunpack.c.l.b16 %v1763_v32  ;;  %v1961_v52 = vunpack.c.l.b16 %v1933_v23  ;;  %v1962_v53 = vunpack.c.l.b16 %v1937_v24  ;;  %v2265_v62 = vrot.slane %v2263_v26, 4 }
  0x99   : > { %2958 = vmatpush.bf16.msrb.mxu1 %v7507_v10  ;;  %v2274_v32 = vrot.slane %v2272_v13, 5  ;;  %v8595_v10 = vld [vmem:[%s8375_s10 + $0x3c] sm:$0x1] }
  0x9a   : > { %v1966_v5 = vpack.c.b16 %v1962_v53, %v1961_v52  ;;  %3133 = vmatpush.bf16.msrb.mxu2 %v7514_v11  ;;  %v7529_v52 = vld [vmem:[%s9689_s3 + $0x3e8] sm:$0xff]  ;;  %v7536_v53 = vld [vmem:[%s9689_s3 + $0x420] sm:$0xff] }
  0x9d   : > { %2959 = vmatpush.bf16.msrb.mxu1 %v7506_v27 }
  0x9e   : > { %1858 = vmatmul.bf16.gmra.mxu3 %v1790_v40  ;;  %2032 = vmatmul.bf16.gmra.mxu0 %v1964_v42  ;;  %v2335_v40 = vunpack.c.l.b16 %v2219_v21  ;;  %v2336_v42 = vunpack.c.l.b16 %v2233_v20  ;;  %v2200_v20 = vld [vmem:[%s8375_s10 + $0x28] sm:$0xf] }
  0xa0   : > { %1487 = vmatmul.bf16.gmra.mxu1 %v1411_v46  ;;  %1622 = vmatmul.bf16.gmra.mxu2 %v6081_v47  ;;  %v2240_v46 = vrot.slane %v2238_v17, 5  ;;  %v7464_v47 = vld [vmem:[%s8375_s10 + $0x4] sm:$0xf0]  ;;  %v2343_v39 = vpack.c.b16 %v2336_v42, %v2335_v40  ;;  %v2256_v17 = vrot.slane %v2255_v8, 4  ;;  %v2277_v40 = vshrl.u32 %v2200_v20, 16 }
  0xa1   : > { %v6261_v63 = vor.u32 %v7464_v47, %v6260_v36  ;;  %v2266_v36 = vshll.u32 %v2198_v19, 16  ;;  %v2280_v42 = vshll.u32 %v2200_v20, 16  ;;  %v1787_v47 = vunpack.c.l.b16 %v1749_v29  ;;  %v2202_v19 = vld [vmem:[%s8375_s10 + $0x30] sm:$0xf] }
  0xa2   : > { %v2241_v2 = vor.u32 %v2240_v46, %v2237_v45  ;;  %v2261_v33 = vsel %vm7909_vm3, %v2256_v17, %v2260_v18  ;;  %v7531_v45 = vld [vmem:[%s9689_s3 + $0x3f8] sm:$0xff]  ;;  %v7538_v46 = vld [vmem:[%s9689_s3 + $0x430] sm:$0xff]  ;;  %v6265_v8 = vor.u32 %v7465_v61, %v6264_v54  ;;  %v6355_v17 = vrot.slane %v2437_v55, 9  ;;  %v7505_v54 = vld [vmem:[%s9689_s3 + $0x348] sm:$0xff] }
  0xa3   : > { %3263 = vmatpush.bf16.msra.mxu3 %v7531_v45  ;;  %3510 = vmatpush.bf16.msra.mxu0 %v7538_v46  ;;  %v2268_v34 = vrot.slane %v2266_v36, 5  ;;  %v1792_v4 = vpack.c.b16 %v1788_v50, %v1787_v47  ;;  %v2466_v18 = vrot.slane %v8419_v38, 5  ;;  %v7530_v20 = vld [vmem:[%s9689_s3 + $0x3f0] sm:$0xff]  ;;  %v2291_v38 = vshrl.u32 %v2202_v19, 16  ;;  %v7504_v55 = vld [vmem:[%s9689_s3 + $0x340] sm:$0xff] }
  0xa4   : > { %v2242_v15 = vrot.slane %v2241_v2, 4  ;;  %v8534_v2 = vld [vmem:[%s8375_s10 + $0x2c] sm:$0x1]  ;;  %v2294_v26 = vshll.u32 %v2202_v19, 16  ;;  %v2305_v46 = vshrl.u32 %v2204_v37, 16  ;;  %v2308_v47 = vshll.u32 %v2204_v37, 16  ;;  %2960 = vmatpush.bf16.msrb.mxu1 %v7505_v54 }
  0xa5   : > { %v2269_v12 = vor.u32 %v2268_v34, %v2265_v62  ;;  %v2286_v14 = vshll.u32 %v8534_v2, 16  ;;  %v2467_v36 = vsel %vm7932_vm5, %v6355_v17, %v2466_v18  ;;  %v2293_v61 = vrot.slane %v2291_v38, 4 }
  0xa6   : > { %v2247_v25 = vsel %vm7909_vm3, %v2242_v15, %v2246_v56  ;;  %v2296_v62 = vrot.slane %v2294_v26, 5  ;;  %v2470_v26 = vrot.slane %v8473_v49, 5 }
  0xa7   : > { %v2270_v29 = vrot.slane %v2269_v12, 4  ;;  %3264 = vmatpush.bf16.msra.mxu3 %v7530_v20  ;;  %v2314_v20 = vshll.u32 %v8595_v10, 16 }
  0xa8   : > { %v2297_v13 = vor.u32 %v2296_v62, %v2293_v61  ;;  %2961 = vmatpush.bf16.msrb.mxu1 %v7504_v55  ;;  %v6440_v55 = vld [vmem:[%s8375_s10 + $0x18] sm:$0xf] }
  0xab   : > { %v648_v35 = vpop.f32.mrf.mxu0  ;;  %3265 = vmatpush.bf16.msra.mxu3 %v7529_v52 }
  0xad   : > { %v749_v6 = vpop.f32.mrf.mxu1 }
  0xae   : > { %v750_v48 = vadd.f32 %v749_v6, %v648_v35  ;;  %1863 = vmatmul.bf16.gmra.mxu3 %v1791_v59  ;;  %2037 = vmatmul.bf16.gmra.mxu0 %v1965_v60  ;;  %v2337_v59 = vunpack.c.l.b16 %v2247_v25  ;;  %v2338_v60 = vunpack.c.l.b16 %v2261_v33  ;;  %v2279_v35 = vrot.slane %v2277_v40, 4  ;;  %v7513_v40 = vld [vmem:[%s9689_s3 + $0x388] sm:$0xff] }
  0xaf   : > { %3134 = vmatpush.bf16.msrb.mxu2 %v7513_v40  ;;  %v2316_v40 = vrot.slane %v2314_v20, 5 }
  0xb0   : > { %2161 = vmatmul.bf16.vlgmr.msra.gmra.mxu1 %v6261_v63  ;;  %2407 = vmatmul.bf16.vlgmr.msra.gmra.mxu2 %v2343_v39  ;;  %v2282_v63 = vrot.slane %v2280_v42, 5  ;;  %v2344_v9 = vpack.c.b16 %v2338_v60, %v2337_v59  ;;  %v2510_v60 = vunpack.c.l.b16 %v2467_v36 }
  0xb1   : > { %v8497_v21 = vpop.f32.mrf.mxu3 }
  0xb2   : > { %v2283_v58 = vor.u32 %v2282_v63, %v2279_v35  ;;  %v6436_v63 = vld [vmem:[%s8375_s10 + $0x8] sm:$0xf] }
  0xb3   : > { %v918_v22 = vpop.f32.mrf.mxu2  ;;  %v650_v44 = vpop.f32.mrf.mxu0 }
  0xb4   : > { %v8506_v30 = vadd.f32 %v918_v22, %v750_v48  ;;  %v2436_v48 = vld [vmem:[%s8375_s10] sm:$0xe]  ;;  %v7537_v22 = vld [vmem:[%s9689_s3 + $0x428] sm:$0xff]  ;;  %v2284_v23 = vrot.slane %v2283_v58, 4 }
  0xb5   : > { %v751_v31 = vpop.f32.mrf.mxu1  ;;  %v6354_v56 = vrot.slane %v2436_v48, 9  ;;  %3511 = vmatpush.bf16.msra.mxu0 %v7537_v22  ;;  %v2438_v22 = vld [vmem:[%s8375_s10 + $0x10] sm:$0xe] }
  0xb6   : > { %v752_v43 = vadd.f32 %v751_v31, %v650_v44  ;;  %v2288_v44 = vrot.slane %v2286_v14, 5  ;;  %v7512_v14 = vld [vmem:[%s9689_s3 + $0x380] sm:$0xff]  ;;  %v6356_v38 = vrot.slane %v2438_v22, 9 }
  0xb7   : > { %v2463_v33 = vsel %vm7932_vm5, %v6354_v56, %v2462_v16  ;;  %3135 = vmatpush.bf16.msrb.mxu2 %v7512_v14 }
  0xb8   : > { %v2289_v45 = vsel %vm7909_vm3, %v2284_v23, %v2288_v44  ;;  %v2509_v59 = vunpack.c.l.b16 %v2463_v33  ;;  %v6482_v23 = vld [vmem:[%s8375_s10 + $0x8] sm:$0xf]  ;;  %v2298_v44 = vrot.slane %v2297_v13, 4  ;;  %v7528_v33 = vld [vmem:[%s9689_s3 + $0x3e0] sm:$0xff]  ;;  %v2471_v54 = vsel %vm7932_vm5, %v6356_v38, %v2470_v26 }
  0xb9   : > { %v8528_v39 = vpop.f32.mrf.mxu3  ;;  %v2340_v35 = vunpack.c.l.b16 %v2289_v45  ;;  %3512 = vmatpush.bf16.msra.mxu0 %v7536_v53  ;;  %3266 = vmatpush.bf16.msra.mxu3 %v7528_v33  ;;  %v6546_v26 = vld [vmem:[%s8375_s10 + $0x8] sm:$0xe] }
  0xbb   : > { %v920_v3 = vpop.f32.mrf.mxu2  ;;  %v653_v7 = vpop.f32.mrf.mxu0 }
  0xbc   : > { %v8536_v6 = vadd.f32 %v920_v3, %v752_v43  ;;  %v2275_v43 = vsel %vm7909_vm3, %v2270_v29, %v2274_v32  ;;  %v7492_v3 = vld [vmem:[%s8375_s10 + $0xc] sm:$0xf0]  ;;  %v2439_v29 = vld [vmem:[%s8375_s10 + $0x18] sm:$0xe] }
  0xbd   : > { %v754_v51 = vpop.f32.mrf.mxu1  ;;  %v2339_v34 = vunpack.c.l.b16 %v2275_v43  ;;  %v6437_v12 = vor.u32 %v7492_v3, %v6436_v63  ;;  %v6357_v27 = vrot.slane %v2439_v29, 9  ;;  %v2765_v43 = vshll.u32 %v6482_v23, 16  ;;  %v8638_v3 = vld [vmem:[%s8375_s10 + $0xc] sm:$0x1] }
  0xbe   : > { %v755_v15 = vadd.f32 %v754_v51, %v653_v7  ;;  %1868 = vmatmul.bf16.gmra.mxu3 %v1792_v4  ;;  %2042 = vmatmul.bf16.gmra.mxu0 %v1966_v5  ;;  %v8588_v4 = vld [vmem:[%s8375_s10 + $0x34] sm:$0x1]  ;;  %v6268_v5 = vld [vmem:[%s8375_s10 + $0x20] sm:$0xf]  ;;  %v7466_v7 = vld [vmem:[%s8375_s10 + $0x24] sm:$0xf0]  ;;  %v2517_v51 = vpack.c.b16 %v2510_v60, %v2509_v59 }
  0xbf   : > { %v2300_v58 = vshll.u32 %v8588_v4, 16  ;;  %v6269_v16 = vor.u32 %v7466_v7, %v6268_v5  ;;  %v2345_v17 = vpack.c.b16 %v2340_v35, %v2339_v34  ;;  %v7559_v60 = vld [vmem:[%s9689_s3 + $0x4b8] sm:$0xff]  ;;  %v2767_v35 = vrot.slane %v2765_v43, 5 }
  0xc0   : > { %2166 = vmatmul.bf16.gmra.mxu1 %v6265_v8  ;;  %2412 = vmatmul.bf16.gmra.mxu2 %v2344_v9  ;;  %v2307_v8 = vrot.slane %v2305_v46, 4  ;;  %v2310_v9 = vrot.slane %v2308_v47, 5  ;;  %v6486_v43 = vld [vmem:[%s8375_s10 + $0x18] sm:$0xf] }
  0xc1   : > { %v8557_v24 = vpop.f32.mrf.mxu3  ;;  %v2302_v37 = vrot.slane %v2300_v58, 5  ;;  %3817 = vmatpush.bf16.msra.mxu2 %v7559_v60  ;;  %v6554_v60 = vrot.slane %v6546_v26, 9  ;;  %v7525_v26 = vld [vmem:[%s9689_s3 + $0x3c8] sm:$0xff] }
  0xc2   : > { %v2311_v19 = vor.u32 %v2310_v9, %v2307_v8  ;;  %v7527_v8 = vld [vmem:[%s9689_s3 + $0x3d8] sm:$0xff]  ;;  %v7534_v9 = vld [vmem:[%s9689_s3 + $0x410] sm:$0xff] }
  0xc3   : > { %v923_v25 = vpop.f32.mrf.mxu2  ;;  %v655_v31 = vpop.f32.mrf.mxu0  ;;  %v2303_v53 = vsel %vm7909_vm3, %v2298_v44, %v2302_v37  ;;  %3267 = vmatpush.bf16.msra.mxu3 %v7527_v8 }
  0xc4   : > { %v8563_v28 = vadd.f32 %v923_v25, %v755_v15  ;;  %v6484_v25 = vld [vmem:[%s8375_s10 + $0x10] sm:$0xf]  ;;  %v2312_v36 = vrot.slane %v2311_v19, 4  ;;  %v2341_v58 = vunpack.c.l.b16 %v2303_v53  ;;  %v2771_v19 = vshll.u32 %v8638_v3, 16  ;;  %v6488_v53 = vld [vmem:[%s8375_s10 + $0x20] sm:$0xf] }
  0xc5   : > { %v756_v42 = vpop.f32.mrf.mxu1  ;;  %v2776_v46 = vshrl.u32 %v6484_v25, 16  ;;  %v2779_v47 = vshll.u32 %v6484_v25, 16 }
  0xc6   : > { %v757_v50 = vadd.f32 %v756_v42, %v655_v31  ;;  %v2474_v31 = vrot.slane %v8477_v57, 5  ;;  %v2762_v42 = vshrl.u32 %v6482_v23, 16 }
  0xc7   : > { %v2778_v5 = vrot.slane %v2776_v46, 4  ;;  %v2781_v7 = vrot.slane %v2779_v47, 5  ;;  %v2482_v46 = vrot.slane %v8534_v2, 5  ;;  %v2790_v2 = vshrl.u32 %v6486_v43, 16 }
  0xc8   : > { %v2475_v59 = vsel %vm7932_vm5, %v6357_v27, %v2474_v31  ;;  %v2764_v34 = vrot.slane %v2762_v42, 4  ;;  %v6547_v27 = vld [vmem:[%s8375_s10 + $0x10] sm:$0xe]  ;;  %v7547_v42 = vld [vmem:[%s9689_s3 + $0x478] sm:$0xff] }
  0xc9   : > { %v8592_v48 = vpop.f32.mrf.mxu3  ;;  %v2512_v13 = vunpack.c.l.b16 %v2475_v59  ;;  %v2782_v29 = vor.u32 %v2781_v7, %v2778_v5  ;;  %3683 = vmatpush.bf16.msra.mxu1 %v7547_v42  ;;  %v7533_v5 = vld [vmem:[%s9689_s3 + $0x408] sm:$0xff] }
  0xcb   : > { %v925_v11 = vpop.f32.mrf.mxu2  ;;  %v1299_v56 = vpop.f32.mrf.mxu0 }
  0xcc   : > { %v8604_v15 = vadd.f32 %v925_v11, %v757_v50  ;;  %v6272_v11 = vld [vmem:[%s8375_s10 + $0x30] sm:$0xf] }
  0xcd   : > { %v759_v18 = vpop.f32.mrf.mxu1 }
  0xce   : > { %v760_v32 = vadd.f32 %v759_v18, %v8497_v21  ;;  %2581 = vmatmul.bf16.vlgmr.msrb.gmra.mxu3 %v2517_v51  ;;  %2716 = vmatmul.bf16.vlgmr.msrb.gmra.mxu0 %v6437_v12  ;;  %v7535_v21 = vld [vmem:[%s9689_s3 + $0x418] sm:$0xff]  ;;  %v2511_v12 = vunpack.c.l.b16 %v2471_v54  ;;  %v2768_v18 = vor.u32 %v2767_v35, %v2764_v34  ;;  %v2783_v54 = vrot.slane %v2782_v29, 4 }
  0xcf   : > { %3513 = vmatpush.bf16.msra.mxu0 %v7535_v21  ;;  %v7467_v51 = vld [vmem:[%s8375_s10 + $0x34] sm:$0xf0]  ;;  %v2804_v35 = vshrl.u32 %v6488_v53, 16  ;;  %v8707_v29 = vld [vmem:[%s8375_s10 + $0x1c] sm:$0x1] }
  0xd0   : > { %2171 = vmatmul.bf16.gmra.mxu1 %v6269_v16  ;;  %2417 = vmatmul.bf16.gmra.mxu2 %v2345_v17  ;;  %v2440_v16 = vld [vmem:[%s8375_s10 + $0x20] sm:$0xe]  ;;  %v2441_v17 = vld [vmem:[%s8375_s10 + $0x28] sm:$0xe]  ;;  %v6273_v22 = vor.u32 %v7467_v51, %v6272_v11  ;;  %v2518_v37 = vpack.c.b16 %v2512_v13, %v2511_v12  ;;  %v2769_v47 = vrot.slane %v2768_v18, 4  ;;  %v7546_v18 = vld [vmem:[%s9689_s3 + $0x470] sm:$0xff] }
  0xd1   : > { %v1053_v45 = vpop.f32.mrf.mxu3  ;;  %v6358_v38 = vrot.slane %v2440_v16, 9  ;;  %v2806_v16 = vrot.slane %v2804_v35, 4  ;;  %3684 = vmatpush.bf16.msra.mxu1 %v7546_v18 }
  0xd2   : > { %v1073_v57 = vadd.f32 %v1053_v45, %v8506_v30  ;;  %v2317_v30 = vsel %vm7909_vm3, %v2312_v36, %v2316_v40  ;;  %v2478_v36 = vrot.slane %v8531_v1, 5  ;;  %v6359_v40 = vrot.slane %v2441_v17, 9 }
  0xd3   : > { %v928_v49 = vpop.f32.mrf.mxu2  ;;  %v1301_v52 = vpop.f32.mrf.mxu0  ;;  %v2342_v14 = vunpack.c.l.b16 %v2317_v30  ;;  %3514 = vmatpush.bf16.msra.mxu0 %v7534_v9  ;;  %v6555_v30 = vrot.slane %v6547_v27, 9  ;;  %v7532_v27 = vld [vmem:[%s9689_s3 + $0x400] sm:$0xff] }
  0xd4   : > { %v8621_v50 = vadd.f32 %v928_v49, %v760_v32  ;;  %v8634_v62 = vadd.f32 %v1299_v56, %v1073_v57  ;;  %v7493_v56 = vld [vmem:[%s8375_s10 + $0x1c] sm:$0xf0]  ;;  %v2773_v49 = vrot.slane %v2771_v19, 5  ;;  %v2483_v8 = vsel %vm7932_vm5, %v6359_v40, %v2482_v46 }
  0xd5   : > { %v761_v61 = vpop.f32.mrf.mxu1  ;;  %v6441_v25 = vor.u32 %v7493_v56, %v6440_v55  ;;  %v2346_v21 = vpack.c.b16 %v2342_v14, %v2341_v58  ;;  %v2792_v58 = vrot.slane %v2790_v2, 4  ;;  %v2486_v46 = vrot.slane %v8588_v4, 5  ;;  %v7524_v4 = vld [vmem:[%s9689_s3 + $0x3c0] sm:$0xff] }
  0xd6   : > { %v762_v63 = vadd.f32 %v761_v61, %v8528_v39  ;;  %v8649_v39 = vld [vmem:[%s8375_s10 + $0x14] sm:$0x1]  ;;  %v3017_v61 = vrot.slane %v8638_v3, 5  ;;  %v2479_v3 = vsel %vm7932_vm5, %v6358_v38, %v2478_v36  ;;  %v2774_v9 = vsel %vm7909_vm3, %v2769_v47, %v2773_v49  ;;  %v2442_v38 = vld [vmem:[%s8375_s10 + $0x30] sm:$0xe] }
  0xd7   : > { %v2785_v32 = vshll.u32 %v8649_v39, 16  ;;  %v3021_v34 = vrot.slane %v8649_v39, 5  ;;  %3515 = vmatpush.bf16.msra.mxu0 %v7533_v5  ;;  %v2490_v2 = vrot.slane %v8595_v10, 5  ;;  %v7556_v10 = vld [vmem:[%s9689_s3 + $0x4a0] sm:$0xff] }
  0xd8   : > { %v3018_v13 = vsel %vm7932_vm5, %v6554_v60, %v3017_v61 }
  0xd9   : > { %v1055_v20 = vpop.f32.mrf.mxu3  ;;  %v2787_v59 = vrot.slane %v2785_v32, 5  ;;  %v3022_v39 = vsel %vm7932_vm5, %v6555_v30, %v3021_v34  ;;  %v8710_v32 = vld [vmem:[%s8375_s10 + $0x24] sm:$0x1]  ;;  %v3064_v36 = vunpack.c.l.b16 %v3018_v13 }
  0xda   : > { %v1074_v44 = vadd.f32 %v1055_v20, %v8536_v6  ;;  %v7558_v6 = vld [vmem:[%s9689_s3 + $0x4b0] sm:$0xff]  ;;  %v2513_v20 = vunpack.c.l.b16 %v2479_v3  ;;  %v3065_v40 = vunpack.c.l.b16 %v3022_v39  ;;  %v2813_v47 = vshll.u32 %v8710_v32, 16 }
  0xdb   : > { %v930_v23 = vpop.f32.mrf.mxu2  ;;  %v1304_v33 = vpop.f32.mrf.mxu0  ;;  %3818 = vmatpush.bf16.msra.mxu2 %v7558_v6  ;;  %v2788_v11 = vsel %vm7909_vm3, %v2783_v54, %v2787_v59  ;;  %v2799_v6 = vshll.u32 %v8707_v29, 16  ;;  %3516 = vmatpush.bf16.msra.mxu0 %v7532_v27  ;;  %v6548_v59 = vld [vmem:[%s8375_s10 + $0x18] sm:$0xe]  ;;  %v3025_v39 = vrot.slane %v8707_v29, 5 }
  0xdc   : > { %v8660_v31 = vadd.f32 %v930_v23, %v762_v63  ;;  %v8671_v57 = vadd.f32 %v1301_v52, %v1074_v44  ;;  %v2793_v52 = vshll.u32 %v6486_v43, 16  ;;  %v2807_v63 = vshll.u32 %v6488_v53, 16 }
  0xdd   : > { %v764_v45 = vpop.f32.mrf.mxu1  ;;  %v2514_v44 = vunpack.c.l.b16 %v2483_v8  ;;  %v3072_v30 = vpack.c.b16 %v3065_v40, %v3064_v36  ;;  %v2801_v5 = vrot.slane %v2799_v6, 5 }
  0xde   : > { %v765_v1 = vadd.f32 %v764_v45, %v8557_v24  ;;  %2586 = vmatmul.bf16.gmra.mxu3 %v2518_v37  ;;  %2721 = vmatmul.bf16.gmra.mxu0 %v6441_v25  ;;  %v7526_v24 = vld [vmem:[%s9689_s3 + $0x3d0] sm:$0xff]  ;;  %v2795_v56 = vrot.slane %v2793_v52, 5  ;;  %v2809_v17 = vrot.slane %v2807_v63, 5  ;;  %v2890_v37 = vunpack.c.l.b16 %v2774_v9  ;;  %v6549_v52 = vld [vmem:[%s8375_s10 + $0x20] sm:$0xe] }
  0xdf   : > { %3268 = vmatpush.bf16.msra.mxu3 %v7526_v24  ;;  %v2891_v25 = vunpack.c.l.b16 %v2788_v11  ;;  %v6360_v45 = vrot.slane %v2442_v38, 9  ;;  %v2519_v53 = vpack.c.b16 %v2514_v44, %v2513_v20  ;;  %v2815_v9 = vrot.slane %v2813_v47, 5 }
  0xe0   : > { %2176 = vmatmul.bf16.gmra.mxu1 %v6273_v22  ;;  %2422 = vmatmul.bf16.gmra.mxu2 %v2346_v21  ;;  %v7494_v21 = vld [vmem:[%s8375_s10 + $0x2c] sm:$0xf0]  ;;  %v2796_v42 = vor.u32 %v2795_v56, %v2792_v58  ;;  %v2810_v43 = vor.u32 %v2809_v17, %v2806_v16  ;;  %v6556_v11 = vrot.slane %v6548_v59, 9  ;;  %v6557_v58 = vrot.slane %v6549_v52, 9  ;;  %v8784_v59 = vld [vmem:[%s8375_s10 + $0x2c] sm:$0x1] }
  0xe1   : > { %v1058_v7 = vpop.f32.mrf.mxu3  ;;  %v2898_v54 = vpack.c.b16 %v2891_v25, %v2890_v37  ;;  %v8743_v8 = vsel %vm7932_vm5, %v6360_v45, %v2486_v46  ;;  %v3029_v56 = vrot.slane %v8710_v32, 5  ;;  %v6492_v16 = vld [vmem:[%s8375_s10 + $0x30] sm:$0xf]  ;;  %v7544_v46 = vld [vmem:[%s9689_s3 + $0x460] sm:$0xff] }
  0xe2   : > { %v1075_v12 = vadd.f32 %v1058_v7, %v8563_v28  ;;  %v7557_v28 = vld [vmem:[%s9689_s3 + $0x4a8] sm:$0xff]  ;;  %v2797_v24 = vrot.slane %v2796_v42, 4  ;;  %v2811_v3 = vrot.slane %v2810_v43, 4  ;;  %v6682_v17 = vld [vmem:[%s8375_s10 + $0x10] sm:$0xf]  ;;  %v2515_v20 = vunpack.c.l.b16 %v8743_v8 }
  0xe3   : > { %v933_v51 = vpop.f32.mrf.mxu2  ;;  %v1306_v55 = vpop.f32.mrf.mxu0  ;;  %3819 = vmatpush.bf16.msra.mxu2 %v7557_v28  ;;  %3269 = vmatpush.bf16.msra.mxu3 %v7525_v26  ;;  %v2832_v32 = vshrl.u32 %v6492_v16, 16  ;;  %v3026_v25 = vsel %vm7932_vm5, %v6556_v11, %v3025_v39  ;;  %v3030_v38 = vsel %vm7932_vm5, %v6557_v58, %v3029_v56  ;;  %v3317_v26 = vshrl.u32 %v6682_v17, 16  ;;  %v6550_v39 = vld [vmem:[%s8375_s10 + $0x28] sm:$0xe] }
  0xe4   : > { %v8696_v14 = vadd.f32 %v933_v51, %v765_v1  ;;  %v8704_v22 = vadd.f32 %v1304_v33, %v1075_v12  ;;  %v6444_v33 = vld [vmem:[%s8375_s10 + $0x28] sm:$0xf]  ;;  %v2802_v29 = vsel %vm7909_vm3, %v2797_v24, %v2801_v5  ;;  %v2816_v37 = vsel %vm7909_vm3, %v2811_v3, %v2815_v9  ;;  %v7574_v24 = vld [vmem:[%s9689_s3 + $0x530] sm:$0xff]  ;;  %v8801_v9 = vld [vmem:[%s8375_s10 + $0x1c] sm:$0x1] }
  0xe5   : > { %v766_v19 = vpop.f32.mrf.mxu1  ;;  %v6445_v1 = vor.u32 %v7494_v21, %v6444_v33  ;;  %v6490_v12 = vld [vmem:[%s8375_s10 + $0x28] sm:$0xf]  ;;  %v3320_v21 = vshll.u32 %v6682_v17, 16  ;;  %v3067_v52 = vunpack.c.l.b16 %v3030_v38  ;;  %v8797_v5 = vld [vmem:[%s8375_s10 + $0x14] sm:$0x1]  ;;  %v2827_v8 = vshll.u32 %v8784_v59, 16 }
  0xe6   : > { %v767_v23 = vadd.f32 %v766_v19, %v8592_v48  ;;  %v2443_v48 = vld [vmem:[%s8375_s10 + $0x38] sm:$0xe]  ;;  %v2818_v18 = vshrl.u32 %v6490_v12, 16  ;;  %v2821_v28 = vshll.u32 %v6490_v12, 16 }
  0xe7   : > { %v6361_v34 = vrot.slane %v2443_v48, 9  ;;  %3270 = vmatpush.bf16.msra.mxu3 %v7524_v4  ;;  %3820 = vmatpush.bf16.msra.mxu2 %v7556_v10  ;;  %v6684_v19 = vld [vmem:[%s8375_s10 + $0x18] sm:$0xf]  ;;  %v8788_v4 = vld [vmem:[%s8375_s10 + $0x34] sm:$0x1]  ;;  %v3322_v3 = vrot.slane %v3320_v21, 5 }
  0xe8   : > { %v3331_v36 = vshrl.u32 %v6684_v19, 16  ;;  %v3334_v40 = vshll.u32 %v6684_v19, 16  ;;  %v2820_v43 = vrot.slane %v2818_v18, 4  ;;  %v2823_v45 = vrot.slane %v2821_v28, 5  ;;  %v6551_v19 = vld [vmem:[%s8375_s10 + $0x30] sm:$0xe] }
  0xe9   : > { %v1060_v49 = vpop.f32.mrf.mxu3  ;;  %v7543_v38 = vld [vmem:[%s9689_s3 + $0x458] sm:$0xff]  ;;  %v3033_v21 = vrot.slane %v8784_v59, 5 }
  0xea   : > { %v1076_v61 = vadd.f32 %v1060_v49, %v8604_v15  ;;  %v7545_v15 = vld [vmem:[%s9689_s3 + $0x468] sm:$0xff]  ;;  %v6448_v49 = vld [vmem:[%s8375_s10 + $0x38] sm:$0xf]  ;;  %v3336_v10 = vrot.slane %v3334_v40, 5 }
  0xeb   : > { %v935_v60 = vpop.f32.mrf.mxu2  ;;  %v1309_v63 = vpop.f32.mrf.mxu0  ;;  %3685 = vmatpush.bf16.msra.mxu1 %v7545_v15  ;;  %v3333_v15 = vrot.slane %v3331_v36, 4 }
  0xec   : > { %v8733_v35 = vadd.f32 %v935_v60, %v767_v23  ;;  %v8745_v51 = vadd.f32 %v1306_v55, %v1076_v61  ;;  %v2491_v55 = vsel %vm7932_vm5, %v6361_v34, %v2490_v2  ;;  %v2835_v23 = vshll.u32 %v6492_v16, 16 }
  0xed   : > { %v1473_v7 = vpop.f32.mrf.mxu1  ;;  %v2516_v6 = vunpack.c.l.b16 %v2491_v55  ;;  %v2834_v60 = vrot.slane %v2832_v32, 4  ;;  %v2893_v34 = vunpack.c.l.b16 %v2816_v37  ;;  %v3066_v2 = vunpack.c.l.b16 %v3026_v25 }
  0xee   : > { %v1493_v13 = vadd.f32 %v1473_v7, %v8634_v62  ;;  %2591 = vmatmul.bf16.gmra.mxu3 %v2519_v53  ;;  %2726 = vmatmul.bf16.gmra.mxu0 %v6445_v1  ;;  %v7575_v62 = vld [vmem:[%s9689_s3 + $0x538] sm:$0xff]  ;;  %v7495_v53 = vld [vmem:[%s8375_s10 + $0x3c] sm:$0xf0]  ;;  %v8779_v1 = vunpack.c.l.b16 %v2802_v29  ;;  %v2837_v61 = vrot.slane %v2835_v23, 5  ;;  %v2824_v7 = vor.u32 %v2823_v45, %v2820_v43 }
  0xef   : > { %4237 = vmatpush.bf16.msrb.mxu0 %v7575_v62  ;;  %3686 = vmatpush.bf16.msra.mxu1 %v7544_v46  ;;  %v2520_v11 = vpack.c.b16 %v2516_v6, %v2515_v20  ;;  %v6449_v56 = vor.u32 %v7495_v53, %v6448_v49  ;;  %v3073_v17 = vpack.c.b16 %v3067_v52, %v3066_v2  ;;  %v3326_v55 = vshll.u32 %v8797_v5, 16  ;;  %v6494_v45 = vld [vmem:[%s8375_s10 + $0x38] sm:$0xf]  ;;  %v6496_v53 = vld [vmem:[%s8375_s10 + $0x40] sm:$0xf] }
  0xf0   : > { %2962 = vmatmul.bf16.vlgmr.msrb.gmra.mxu1 %v2898_v54  ;;  %3136 = vmatmul.bf16.vlgmr.msrb.gmra.mxu2 %v3072_v30  ;;  %v2838_v12 = vor.u32 %v2837_v61, %v2834_v60  ;;  %v2899_v16 = vpack.c.b16 %v2893_v34, %v8779_v1  ;;  %v3337_v29 = vor.u32 %v3336_v10, %v3333_v15  ;;  %v3340_v32 = vshll.u32 %v8801_v9, 16  ;;  %v7573_v1 = vld [vmem:[%s9689_s3 + $0x528] sm:$0xff] }
  0xf1   : > { %v1063_v44 = vpop.f32.mrf.mxu3  ;;  %v2829_v37 = vrot.slane %v2827_v8, 5  ;;  %v6558_v25 = vrot.slane %v6550_v39, 9  ;;  %v6559_v6 = vrot.slane %v6551_v19, 9  ;;  %v3037_v43 = vrot.slane %v8788_v4, 5  ;;  %v6688_v34 = vld [vmem:[%s8375_s10 + $0x28] sm:$0xf] }
  0xf2   : > { %v1077_v27 = vadd.f32 %v1063_v44, %v8621_v50  ;;  %v7555_v50 = vld [vmem:[%s9689_s3 + $0x498] sm:$0xff]  ;;  %v2825_v44 = vrot.slane %v2824_v7, 4  ;;  %v3342_v49 = vrot.slane %v3340_v32, 5  ;;  %v7542_v8 = vld [vmem:[%s9689_s3 + $0x450] sm:$0xff]  ;;  %v3359_v39 = vshrl.u32 %v6688_v34, 16 }
  0xf3   : > { %v1608_v33 = vpop.f32.mrf.mxu2  ;;  %v1311_v42 = vpop.f32.mrf.mxu0  ;;  %3821 = vmatpush.bf16.msra.mxu2 %v7555_v50  ;;  %4238 = vmatpush.bf16.msrb.mxu0 %v7574_v24  ;;  %v3328_v50 = vrot.slane %v3326_v55, 5  ;;  %v8838_v61 = vsel %vm7932_vm5, %v6558_v25, %v3033_v21  ;;  %v8843_v52 = vsel %vm7932_vm5, %v6559_v6, %v3037_v43  ;;  %v2863_v24 = vshll.u32 %v6496_v53, 16  ;;  %v8869_v19 = vld [vmem:[%s8375_s10 + $0x3c] sm:$0x1]  ;;  %v7565_v25 = vld [vmem:[%s9689_s3 + $0x4e8] sm:$0xff] }
  0xf4   : > { %v8769_v48 = vadd.f32 %v1608_v33, %v1493_v13  ;;  %v8781_v54 = vadd.f32 %v1309_v63, %v1077_v27  ;;  %v7567_v63 = vld [vmem:[%s9689_s3 + $0x4f8] sm:$0xff]  ;;  %v2841_v13 = vshll.u32 %v8788_v4, 16  ;;  %v2839_v27 = vrot.slane %v2838_v12, 4  ;;  %3687 = vmatpush.bf16.msra.mxu1 %v7543_v38  ;;  %v7541_v38 = vld [vmem:[%s9689_s3 + $0x448] sm:$0xff]  ;;  %v8887_v21 = vld [vmem:[%s8375_s10 + $0x24] sm:$0x1] }
  0xf5   : > { %v1475_v47 = vpop.f32.mrf.mxu1  ;;  %4063 = vmatpush.bf16.msrb.mxu3 %v7567_v63  ;;  %v2830_v59 = vsel %vm7909_vm3, %v2825_v44, %v2829_v37  ;;  %v2849_v4 = vshll.u32 %v6494_v45, 16  ;;  %v2860_v63 = vshrl.u32 %v6496_v53, 16  ;;  %v2865_v37 = vrot.slane %v2863_v24, 5 }
  0xf6   : > { %v1494_v30 = vadd.f32 %v1475_v47, %v8671_v57  ;;  %v3319_v57 = vrot.slane %v3317_v26, 4  ;;  %v2843_v33 = vrot.slane %v2841_v13, 5  ;;  %v3338_v47 = vrot.slane %v3337_v29, 4  ;;  %v8856_v13 = vld [vmem:[%s8375_s10 + $0x10] sm:$0xf] }
  0xf7   : > { %4239 = vmatpush.bf16.msrb.mxu0 %v7573_v1  ;;  %v2851_v32 = vrot.slane %v2849_v4, 5  ;;  %v2862_v44 = vrot.slane %v2860_v63, 4 }
  0xf8   : > { %v3323_v62 = vor.u32 %v3322_v3, %v3319_v57  ;;  %v2844_v60 = vsel %vm7909_vm3, %v2839_v27, %v2843_v33  ;;  %v3343_v10 = vsel %vm7909_vm3, %v3338_v47, %v3342_v49  ;;  %3688 = vmatpush.bf16.msra.mxu1 %v7542_v8  ;;  %v8884_v33 = vld [vmem:[%s8375_s10 + $0x44] sm:$0x1]  ;;  %v2855_v47 = vshll.u32 %v8869_v19, 16 }
  0xf9   : > { %v1065_v58 = vpop.f32.mrf.mxu3  ;;  %v8863_v55 = vunpack.c.l.b16 %v2844_v60  ;;  %v3446_v27 = vunpack.c.l.b16 %v3343_v10  ;;  %v2869_v1 = vshll.u32 %v8884_v33, 16  ;;  %v6552_v10 = vld [vmem:[%s8375_s10 + $0x38] sm:$0xe] }
  0xfa   : > { %v1078_v18 = vadd.f32 %v1065_v58, %v8660_v31  ;;  %v7554_v31 = vld [vmem:[%s9689_s3 + $0x490] sm:$0xff]  ;;  %v3324_v46 = vrot.slane %v3323_v62, 4  ;;  %v3362_v58 = vshll.u32 %v6688_v34, 16 }
  0xfb   : > { %v1610_v28 = vpop.f32.mrf.mxu2  ;;  %v1314_v23 = vpop.f32.mrf.mxu0  ;;  %3822 = vmatpush.bf16.msra.mxu2 %v7554_v31  ;;  %v3068_v31 = vunpack.c.l.b16 %v8838_v61 }
  0xfc   : > { %v8810_v20 = vadd.f32 %v1610_v28, %v1494_v30  ;;  %v8819_v36 = vadd.f32 %v1311_v42, %v1078_v18  ;;  %v6686_v42 = vld [vmem:[%s8375_s10 + $0x20] sm:$0xf]  ;;  %v2846_v30 = vshrl.u32 %v6494_v45, 16  ;;  %v3329_v15 = vsel %vm7909_vm3, %v3324_v46, %v3328_v50  ;;  %v7520_v18 = vld [vmem:[%s8375_s10 + $0x14] sm:$0xf0]  ;;  %3689 = vmatpush.bf16.msra.mxu1 %v7541_v38 }
  0xfd   : > { %v1478_v26 = vpop.f32.mrf.mxu1  ;;  %v3345_v7 = vshrl.u32 %v6686_v42, 16  ;;  %v3361_v45 = vrot.slane %v3359_v39, 4  ;;  %v3364_v46 = vrot.slane %v3362_v58, 5  ;;  %v6637_v50 = vor.u32 %v7520_v18, %v8856_v13  ;;  %v6553_v58 = vld [vmem:[%s8375_s10 + $0x40] sm:$0xe] }
  0xfe   : > { %v1495_v40 = vadd.f32 %v1478_v26, %v8704_v22  ;;  %2596 = vmatmul.bf16.gmra.mxu3 %v2520_v11  ;;  %2731 = vmatmul.bf16.gmra.mxu0 %v6449_v56  ;;  %v7566_v22 = vld [vmem:[%s9689_s3 + $0x4f0] sm:$0xff]  ;;  %v7553_v56 = vld [vmem:[%s9689_s3 + $0x488] sm:$0xff]  ;;  %v2848_v62 = vrot.slane %v2846_v30, 4  ;;  %v3445_v26 = vunpack.c.l.b16 %v3329_v15  ;;  %v3354_v30 = vshll.u32 %v8887_v21, 16  ;;  %v6692_v18 = vld [vmem:[%s8375_s10 + $0x38] sm:$0xf] }
  0xff   : > { %4064 = vmatpush.bf16.msrb.mxu3 %v7566_v22  ;;  %3823 = vmatpush.bf16.msra.mxu2 %v7553_v56  ;;  %v3347_v6 = vrot.slane %v3345_v7, 4  ;;  %v2866_v22 = vor.u32 %v2865_v37, %v2862_v44  ;;  %v2857_v15 = vrot.slane %v2855_v47, 5  ;;  %v2871_v39 = vrot.slane %v2869_v1, 5 }
 0x100   : > { %2967 = vmatmul.bf16.gmra.mxu1 %v2899_v16  ;;  %3141 = vmatmul.bf16.gmra.mxu2 %v3073_v17  ;;  %v8861_v17 = vunpack.c.l.b16 %v2830_v59  ;;  %v3453_v61 = vpack.c.b16 %v3446_v27, %v3445_v26  ;;  %v3356_v56 = vrot.slane %v3354_v30, 5  ;;  %v6561_v44 = vrot.slane %v6553_v58, 9  ;;  %v7521_v30 = vld [vmem:[%s8375_s10 + $0x24] sm:$0xf0] }
 0x101   : > { %v1068_v2 = vpop.f32.mrf.mxu3  ;;  %v3045_v37 = vrot.slane %v8884_v33, 5 }
 0x102   : > { %v1079_v57 = vadd.f32 %v1068_v2, %v8696_v14  ;;  %v3348_v14 = vshll.u32 %v6686_v42, 16  ;;  %v2900_v53 = vpack.c.b16 %v8863_v55, %v8861_v17  ;;  %v2852_v42 = vor.u32 %v2851_v32, %v2848_v62  ;;  %v7552_v2 = vld [vmem:[%s9689_s3 + $0x480] sm:$0xff]  ;;  %v6690_v17 = vld [vmem:[%s8375_s10 + $0x30] sm:$0xf]  ;;  %v7571_v62 = vld [vmem:[%s9689_s3 + $0x518] sm:$0xff] }
 0x103   : > { %v1613_v3 = vpop.f32.mrf.mxu2  ;;  %v1316_v12 = vpop.f32.mrf.mxu0  ;;  %4065 = vmatpush.bf16.msrb.mxu3 %v7565_v25  ;;  %3824 = vmatpush.bf16.msra.mxu2 %v7552_v2  ;;  %v3041_v32 = vrot.slane %v8869_v19, 5  ;;  %v3373_v26 = vshrl.u32 %v6690_v17, 16  ;;  %v3376_v27 = vshll.u32 %v6690_v17, 16  ;;  %v3387_v19 = vshrl.u32 %v6692_v18, 16 }
 0x104   : > { %v8853_v11 = vadd.f32 %v1613_v3, %v1495_v40  ;;  %v8866_v28 = vadd.f32 %v1314_v23, %v1079_v57  ;;  %v7572_v23 = vld [vmem:[%s9689_s3 + $0x520] sm:$0xff]  ;;  %v8890_v40 = vld [vmem:[%s8375_s10 + $0x2c] sm:$0x1]  ;;  %v3350_v43 = vrot.slane %v3348_v14, 5  ;;  %v3365_v57 = vor.u32 %v3364_v46, %v3361_v45 }
 0x105   : > { %v1480_v16 = vpop.f32.mrf.mxu1  ;;  %4240 = vmatpush.bf16.msrb.mxu0 %v7572_v23  ;;  %v3368_v34 = vshll.u32 %v8890_v40, 16  ;;  %v2853_v13 = vrot.slane %v2852_v42, 4  ;;  %v2867_v14 = vrot.slane %v2866_v22, 4  ;;  %v3390_v46 = vshll.u32 %v6692_v18, 16 }
 0x106   : > { %v1496_v29 = vadd.f32 %v1480_v16, %v8745_v51  ;;  %v3069_v51 = vunpack.c.l.b16 %v8843_v52  ;;  %v7540_v52 = vld [vmem:[%s9689_s3 + $0x440] sm:$0xff]  ;;  %v3366_v55 = vrot.slane %v3365_v57, 4  ;;  %v3389_v57 = vrot.slane %v3387_v19, 4 }
 0x107   : > { %3690 = vmatpush.bf16.msra.mxu1 %v7540_v52  ;;  %v3370_v16 = vrot.slane %v3368_v34, 5  ;;  %v2858_v23 = vsel %vm7909_vm3, %v2853_v13, %v2857_v15  ;;  %v2872_v38 = vsel %vm7909_vm3, %v2867_v14, %v2871_v39  ;;  %v3375_v52 = vrot.slane %v3373_v26, 4  ;;  %v8970_v15 = vld [vmem:[%s8375_s10 + $0x3c] sm:$0x1]  ;;  %v6694_v26 = vld [vmem:[%s8375_s10 + $0x40] sm:$0xf] }
 0x108   : > { %v3074_v24 = vpack.c.b16 %v3069_v51, %v3068_v31  ;;  %v2896_v22 = vunpack.c.l.b16 %v2858_v23  ;;  %v2897_v1 = vunpack.c.l.b16 %v2872_v38 }
 0x109   : > { %v1070_v49 = vpop.f32.mrf.mxu3  ;;  %4241 = vmatpush.bf16.msrb.mxu0 %v7571_v62  ;;  %v3371_v45 = vsel %vm7909_vm3, %v3366_v55, %v3370_v16  ;;  %v7587_v62 = vld [vmem:[%s9689_s3 + $0x578] sm:$0xff] }
 0x10a   : > { %v1080_v59 = vadd.f32 %v1070_v49, %v8733_v35  ;;  %v3351_v35 = vor.u32 %v3350_v43, %v3347_v6  ;;  %v3046_v49 = vsel %vm7932_vm5, %v6561_v44, %v3045_v37  ;;  %v3448_v2 = vunpack.c.l.b16 %v3371_v45  ;;  %v6746_v37 = vld [vmem:[%s8375_s10 + $0x10] sm:$0xe] }
 0x10b   : > { %v1615_v60 = vpop.f32.mrf.mxu2  ;;  %v2028_v63 = vpop.f32.mrf.mxu0  ;;  %4372 = vmatpush.bf16.msrb.mxu1 %v7587_v62  ;;  %v6754_v19 = vrot.slane %v6746_v37, 9  ;;  %v3576_v45 = vrot.slane %v8801_v9, 5 }
 0x10c   : > { %v8906_v4 = vadd.f32 %v1615_v60, %v1496_v29  ;;  %v8910_v7 = vadd.f32 %v1316_v12, %v1080_v59  ;;  %v3352_v12 = vrot.slane %v3351_v35, 4  ;;  %v6560_v29 = vrot.slane %v6552_v10, 9  ;;  %v7563_v59 = vld [vmem:[%s9689_s3 + $0x4d8] sm:$0xff]  ;;  %v7570_v60 = vld [vmem:[%s9689_s3 + $0x510] sm:$0xff] }
 0x10d   : > { %v1483_v3 = vpop.f32.mrf.mxu1  ;;  %v8966_v35 = vld [vmem:[%s8375_s10 + $0x34] sm:$0x1]  ;;  %4242 = vmatpush.bf16.msrb.mxu0 %v7570_v60 }
 0x10e   : > { %v1497_v8 = vadd.f32 %v1483_v3, %v8781_v54  ;;  %3271 = vmatmul.bf16.vlgmr.msra.gmra.mxu3 %v6637_v50  ;;  %3517 = vmatmul.bf16.vlgmr.msra.gmra.mxu0 %v3453_v61  ;;  %v7564_v54 = vld [vmem:[%s9689_s3 + $0x4e0] sm:$0xff]  ;;  %v3357_v43 = vsel %vm7909_vm3, %v3352_v12, %v3356_v56  ;;  %v3042_v47 = vsel %vm7932_vm5, %v6560_v29, %v3041_v32  ;;  %v3392_v3 = vrot.slane %v3390_v46, 5  ;;  %v6696_v46 = vld [vmem:[%s8375_s10 + $0x48] sm:$0xf] }
 0x10f   : > { %4066 = vmatpush.bf16.msrb.mxu3 %v7564_v54  ;;  %v6640_v61 = vld [vmem:[%s8375_s10 + $0x20] sm:$0xf]  ;;  %v3447_v34 = vunpack.c.l.b16 %v3357_v43  ;;  %v3382_v16 = vshll.u32 %v8966_v35, 16  ;;  %v3396_v54 = vshll.u32 %v8970_v15, 16  ;;  %v3418_v60 = vshll.u32 %v6696_v46, 16 }
 0x110   : > { %2972 = vmatmul.bf16.gmra.mxu1 %v2900_v53  ;;  %3146 = vmatmul.bf16.gmra.mxu2 %v3074_v24  ;;  %v3071_v24 = vunpack.c.l.b16 %v3046_v49  ;;  %v6641_v13 = vor.u32 %v7521_v30, %v6640_v61  ;;  %v3393_v18 = vor.u32 %v3392_v3, %v3389_v57  ;;  %v7593_v61 = vld [vmem:[%s9689_s3 + $0x5a8] sm:$0xff]  ;;  %v7568_v3 = vld [vmem:[%s9689_s3 + $0x500] sm:$0xff] }
 0x111   : > { %v1854_v25 = vpop.f32.mrf.mxu3  ;;  %v3454_v58 = vpack.c.b16 %v3448_v2, %v3447_v34  ;;  %v3384_v38 = vrot.slane %v3382_v16, 5  ;;  %v6644_v34 = vld [vmem:[%s8375_s10 + $0x30] sm:$0xf]  ;;  %v7561_v57 = vld [vmem:[%s9689_s3 + $0x4c8] sm:$0xff]  ;;  %v9038_v16 = vld [vmem:[%s8375_s10 + $0x44] sm:$0x1] }
 0x112   : > { %v1874_v51 = vadd.f32 %v1854_v25, %v8769_v48  ;;  %v7595_v48 = vld [vmem:[%s9689_s3 + $0x5b8] sm:$0xff] }
 0x113   : > { %v1618_v31 = vpop.f32.mrf.mxu2  ;;  %v2030_v33 = vpop.f32.mrf.mxu0  ;;  %4618 = vmatpush.bf16.msrb.mxu2 %v7595_v48  ;;  %4067 = vmatpush.bf16.msrb.mxu3 %v7563_v59  ;;  %v6747_v25 = vld [vmem:[%s8375_s10 + $0x18] sm:$0xe]  ;;  %v3415_v59 = vshrl.u32 %v6696_v46, 16 }
 0x114   : > { %v8935_v6 = vadd.f32 %v1618_v31, %v1497_v8  ;;  %v8954_v53 = vadd.f32 %v2028_v63, %v1874_v51  ;;  %v3378_v63 = vrot.slane %v3376_v27, 5  ;;  %v2901_v8 = vpack.c.b16 %v2897_v1, %v2896_v22  ;;  %v7562_v27 = vld [vmem:[%s9689_s3 + $0x4d0] sm:$0xff] }
 0x115   : > { %v1485_v50 = vpop.f32.mrf.mxu1  ;;  %v3394_v31 = vrot.slane %v3393_v18, 4  ;;  %v3398_v51 = vrot.slane %v3396_v54, 5  ;;  %v6755_v43 = vrot.slane %v6747_v25, 9  ;;  %v3404_v22 = vshll.u32 %v6694_v26, 16  ;;  %v9041_v18 = vld [vmem:[%s8375_s10 + $0x4c] sm:$0x1] }
 0x116   : > { %v1498_v42 = vadd.f32 %v1485_v50, %v8819_v36  ;;  %v3070_v36 = vunpack.c.l.b16 %v3042_v47  ;;  %v3379_v56 = vor.u32 %v3378_v63, %v3375_v52 }
 0x117   : > { %4068 = vmatpush.bf16.msrb.mxu3 %v7562_v27  ;;  %v3399_v9 = vsel %vm7909_vm3, %v3394_v31, %v3398_v51  ;;  %v3577_v52 = vsel %vm7932_vm5, %v6755_v43, %v3576_v45  ;;  %v6749_v45 = vld [vmem:[%s8375_s10 + $0x28] sm:$0xe] }
 0x118   : > { %v3075_v55 = vpack.c.b16 %v3071_v24, %v3070_v36  ;;  %v3380_v23 = vrot.slane %v3379_v56, 4  ;;  %v7522_v24 = vld [vmem:[%s8375_s10 + $0x34] sm:$0xf0] }
 0x119   : > { %v1856_v10 = vpop.f32.mrf.mxu3  ;;  %v6645_v62 = vor.u32 %v7522_v24, %v6644_v34 }
 0x11a   : > { %v1875_v39 = vadd.f32 %v1856_v10, %v8810_v20  ;;  %v7594_v20 = vld [vmem:[%s9689_s3 + $0x5b0] sm:$0xff]  ;;  %v3385_v49 = vsel %vm7909_vm3, %v3380_v23, %v3384_v38  ;;  %v3410_v23 = vshll.u32 %v9038_v16, 16  ;;  %v7560_v38 = vld [vmem:[%s9689_s3 + $0x4c0] sm:$0xff] }
 0x11b   : > { %v1620_v14 = vpop.f32.mrf.mxu2  ;;  %v2033_v12 = vpop.f32.mrf.mxu0  ;;  %4619 = vmatpush.bf16.msrb.mxu2 %v7594_v20  ;;  %v3449_v10 = vunpack.c.l.b16 %v3385_v49  ;;  %4069 = vmatpush.bf16.msrb.mxu3 %v7561_v57 }
 0x11c   : > { %v8974_v17 = vadd.f32 %v1620_v14, %v1498_v42  ;;  %v8986_v32 = vadd.f32 %v2030_v33, %v1875_v39  ;;  %v3572_v33 = vrot.slane %v8797_v5, 5  ;;  %v3401_v42 = vshrl.u32 %v6694_v26, 16  ;;  %v7548_v14 = vld [vmem:[%s9012_s20 + $0x4] sm:$0xf0] }
 0x11d   : > { %v1488_v29 = vpop.f32.mrf.mxu1  ;;  %v3412_v49 = vrot.slane %v3410_v23, 5 }
 0x11e   : > { %v1499_v44 = vadd.f32 %v1488_v29, %v8866_v28  ;;  %3276 = vmatmul.bf16.gmra.mxu3 %v6641_v13  ;;  %3522 = vmatmul.bf16.gmra.mxu0 %v3454_v58  ;;  %v7569_v28 = vld [vmem:[%s9689_s3 + $0x508] sm:$0xff]  ;;  %v3573_v2 = vsel %vm7932_vm5, %v6754_v19, %v3572_v33  ;;  %v6828_v13 = vld [vmem:[%s9012_s20] sm:$0xf]  ;;  %v3403_v39 = vrot.slane %v3401_v42, 4  ;;  %v3406_v58 = vrot.slane %v3404_v22, 5 }
 0x11f   : > { %4243 = vmatpush.bf16.msrb.mxu0 %v7569_v28  ;;  %4620 = vmatpush.bf16.msrb.mxu2 %v7593_v61  ;;  %v3619_v56 = vunpack.c.l.b16 %v3573_v2  ;;  %v6829_v20 = vor.u32 %v7548_v14, %v6828_v13  ;;  %v3424_v28 = vshll.u32 %v9041_v18, 16  ;;  %v6748_v19 = vld [vmem:[%s8375_s10 + $0x20] sm:$0xe]  ;;  %v3580_v22 = vrot.slane %v8887_v21, 5  ;;  %v7591_v13 = vld [vmem:[%s9689_s3 + $0x598] sm:$0xff] }
 0x120   : > { %2977 = vmatmul.bf16.gmra.mxu1 %v2901_v8  ;;  %3151 = vmatmul.bf16.gmra.mxu2 %v3075_v55  ;;  %v3450_v8 = vunpack.c.l.b16 %v3399_v9  ;;  %v3420_v55 = vrot.slane %v3418_v60, 5  ;;  %v3407_v25 = vor.u32 %v3406_v58, %v3403_v39  ;;  %v7592_v33 = vld [vmem:[%s9689_s3 + $0x5a0] sm:$0xff]  ;;  %v6756_v42 = vrot.slane %v6748_v19, 9  ;;  %v3856_v9 = vld [vmem:[%s9012_s20 + $0x8] sm:$0xf] }
 0x121   : > { %v1859_v48 = vpop.f32.mrf.mxu3  ;;  %4070 = vmatpush.bf16.msrb.mxu3 %v7560_v38  ;;  %v3426_v60 = vrot.slane %v3424_v28, 5  ;;  %v3885_v2 = vshrl.u32 %v3856_v9, 16  ;;  %v9101_v38 = vld [vmem:[%s9012_s20 + $0xc] sm:$0x1]  ;;  %v6751_v28 = vld [vmem:[%s8375_s10 + $0x38] sm:$0xe] }
 0x122   : > { %v1876_v47 = vadd.f32 %v1859_v48, %v8853_v11  ;;  %v7586_v11 = vld [vmem:[%s9689_s3 + $0x570] sm:$0xff]  ;;  %v3455_v37 = vpack.c.b16 %v3450_v8, %v3449_v10  ;;  %v3581_v10 = vsel %vm7932_vm5, %v6756_v42, %v3580_v22 }
 0x123   : > { %v1623_v50 = vpop.f32.mrf.mxu2  ;;  %v2035_v5 = vpop.f32.mrf.mxu0  ;;  %4373 = vmatpush.bf16.msrb.mxu1 %v7586_v11  ;;  %4244 = vmatpush.bf16.msrb.mxu0 %v7568_v3  ;;  %v3584_v11 = vrot.slane %v8890_v40, 5 }
 0x124   : > { %v9005_v1 = vadd.f32 %v1623_v50, %v1499_v44  ;;  %v9025_v63 = vadd.f32 %v2033_v12, %v1876_v47  ;;  %v3417_v12 = vrot.slane %v3415_v59, 4  ;;  %4621 = vmatpush.bf16.msrb.mxu2 %v7592_v33  ;;  %v3854_v50 = vld [vmem:[%s9012_s20] sm:$0xf]  ;;  %v3408_v47 = vrot.slane %v3407_v25, 4 }
 0x125   : > { %v1490_v30 = vpop.f32.mrf.mxu1  ;;  %v3871_v61 = vshrl.u32 %v3854_v50, 16  ;;  %v3621_v25 = vunpack.c.l.b16 %v3581_v10 }
 0x126   : > { %v1500_v36 = vadd.f32 %v1490_v30, %v8910_v7  ;;  %v3620_v7 = vunpack.c.l.b16 %v3577_v52  ;;  %v3421_v27 = vor.u32 %v3420_v55, %v3417_v12  ;;  %v3874_v30 = vshll.u32 %v3854_v50, 16  ;;  %v9090_v12 = vld [vmem:[%s9012_s20 + $0x4] sm:$0x1] }
 0x127   : > { %v3888_v52 = vshll.u32 %v3856_v9, 16  ;;  %v3413_v24 = vsel %vm7909_vm3, %v3408_v47, %v3412_v49  ;;  %v3873_v58 = vrot.slane %v3871_v61, 4  ;;  %v3887_v55 = vrot.slane %v3885_v2, 4  ;;  %v4100_v9 = vld [vmem:[%s9012_s20] sm:$0xe] }
 0x128   : > { %v3627_v26 = vpack.c.b16 %v3620_v7, %v3619_v56  ;;  %v3422_v59 = vrot.slane %v3421_v27, 4  ;;  %v3876_v56 = vrot.slane %v3874_v30, 5  ;;  %4622 = vmatpush.bf16.msrb.mxu2 %v7591_v13  ;;  %v7549_v27 = vld [vmem:[%s9012_s20 + $0x14] sm:$0xf0]  ;;  %v6759_v61 = vrot.slane %v6751_v28, 9 }
 0x129   : > { %v1861_v54 = vpop.f32.mrf.mxu3  ;;  %v7583_v30 = vld [vmem:[%s9689_s3 + $0x558] sm:$0xff]  ;;  %v4126_v13 = vrot.slane %v9090_v12, 5 }
 0x12a   : > { %v1877_v44 = vadd.f32 %v1861_v54, %v8906_v4  ;;  %v7585_v4 = vld [vmem:[%s9689_s3 + $0x568] sm:$0xff]  ;;  %v3427_v3 = vsel %vm7909_vm3, %v3422_v59, %v3426_v60  ;;  %v3890_v54 = vrot.slane %v3888_v52, 5  ;;  %v3877_v19 = vor.u32 %v3876_v56, %v3873_v58 }
 0x12b   : > { %v1625_v29 = vpop.f32.mrf.mxu2  ;;  %v2038_v51 = vpop.f32.mrf.mxu0  ;;  %4374 = vmatpush.bf16.msrb.mxu1 %v7585_v4  ;;  %v3880_v4 = vshll.u32 %v9090_v12, 16  ;;  %v4101_v59 = vld [vmem:[%s9012_s20 + $0x8] sm:$0xe]  ;;  %v3592_v52 = vrot.slane %v8970_v15, 5  ;;  %v4130_v58 = vrot.slane %v9101_v38, 5 }
 0x12c   : > { %v9048_v31 = vadd.f32 %v1625_v29, %v1500_v36  ;;  %v9059_v46 = vadd.f32 %v2035_v5, %v1877_v44  ;;  %v6757_v5 = vrot.slane %v6749_v45, 9  ;;  %v6648_v29 = vld [vmem:[%s8375_s10 + $0x40] sm:$0xf]  ;;  %v7523_v44 = vld [vmem:[%s8375_s10 + $0x44] sm:$0xf0]  ;;  %v3891_v45 = vor.u32 %v3890_v54, %v3887_v55 }
 0x12d   : > { %v2162_v43 = vpop.f32.mrf.mxu1  ;;  %v7613_v55 = vld [vmem:[%s9689_s3 + $0x628] sm:$0xff] }
 0x12e   : > { %v2182_v48 = vadd.f32 %v2162_v43, %v8954_v53  ;;  %3281 = vmatmul.bf16.gmra.mxu3 %v6645_v62  ;;  %3527 = vmatmul.bf16.gmra.mxu0 %v3455_v37  ;;  %v7615_v53 = vld [vmem:[%s9689_s3 + $0x638] sm:$0xff]  ;;  %v3585_v8 = vsel %vm7932_vm5, %v6757_v5, %v3584_v11  ;;  %v3452_v37 = vunpack.c.l.b16 %v3427_v3  ;;  %v6649_v43 = vor.u32 %v7523_v44, %v6648_v29 }
 0x12f   : > { %4927 = vmatpush.bf16.msra.mxu0 %v7615_v53  ;;  %v7603_v62 = vld [vmem:[%s9689_s3 + $0x5f8] sm:$0xff]  ;;  %v3622_v23 = vunpack.c.l.b16 %v3585_v8  ;;  %v3588_v53 = vrot.slane %v8966_v35, 5  ;;  %v3892_v10 = vrot.slane %v3891_v45, 4 }
 0x130   : > { %3691 = vmatmul.bf16.vlgmr.msra.gmra.mxu1 %v3627_v26  ;;  %3825 = vmatmul.bf16.vlgmr.msra.gmra.mxu2 %v6829_v20  ;;  %v7614_v20 = vld [vmem:[%s9689_s3 + $0x630] sm:$0xff]  ;;  %v3860_v3 = vld [vmem:[%s9012_s20 + $0x18] sm:$0xf] }
 0x131   : > { %v1864_v34 = vpop.f32.mrf.mxu3  ;;  %v6750_v26 = vld [vmem:[%s8375_s10 + $0x30] sm:$0xe]  ;;  %4792 = vmatpush.bf16.msra.mxu3 %v7603_v62  ;;  %v3628_v42 = vpack.c.b16 %v3622_v23, %v3621_v25  ;;  %v3913_v56 = vshrl.u32 %v3860_v3, 16  ;;  %v3593_v62 = vsel %vm7932_vm5, %v6759_v61, %v3592_v52 }
 0x132   : > { %v1878_v21 = vadd.f32 %v1864_v34, %v8935_v6  ;;  %v7584_v6 = vld [vmem:[%s9689_s3 + $0x560] sm:$0xff]  ;;  %v6758_v22 = vrot.slane %v6750_v26, 9  ;;  %v3858_v34 = vld [vmem:[%s9012_s20 + $0x10] sm:$0xf] }
 0x133   : > { %v2408_v36 = vpop.f32.mrf.mxu2  ;;  %v2040_v40 = vpop.f32.mrf.mxu0  ;;  %4375 = vmatpush.bf16.msrb.mxu1 %v7584_v6  ;;  %4928 = vmatpush.bf16.msra.mxu0 %v7614_v20  ;;  %v6922_v6 = vrot.slane %v4100_v9, 9  ;;  %v3899_v15 = vshrl.u32 %v3858_v34, 16  ;;  %v3915_v28 = vrot.slane %v3913_v56, 4  ;;  %v7612_v9 = vld [vmem:[%s9689_s3 + $0x620] sm:$0xff]  ;;  %v4103_v56 = vld [vmem:[%s9012_s20 + $0x18] sm:$0xe] }
 0x134   : > { %v9072_v57 = vadd.f32 %v2408_v36, %v2182_v48  ;;  %v9086_v39 = vadd.f32 %v2038_v51, %v1878_v21  ;;  %v6832_v51 = vld [vmem:[%s9012_s20 + $0x10] sm:$0xf]  ;;  %v3894_v48 = vshll.u32 %v9101_v38, 16  ;;  %v3878_v21 = vrot.slane %v3877_v19, 4  ;;  %v7589_v19 = vld [vmem:[%s9689_s3 + $0x588] sm:$0xff] }
 0x135   : > { %v2164_v14 = vpop.f32.mrf.mxu1  ;;  %v6833_v11 = vor.u32 %v7549_v27, %v6832_v51  ;;  %v3882_v36 = vrot.slane %v3880_v4, 5  ;;  %v3589_v12 = vsel %vm7932_vm5, %v6758_v22, %v3588_v53  ;;  %v3901_v23 = vrot.slane %v3899_v15, 4  ;;  %v7582_v38 = vld [vmem:[%s9689_s3 + $0x550] sm:$0xff]  ;;  %v7601_v22 = vld [vmem:[%s9689_s3 + $0x5e8] sm:$0xff] }
 0x136   : > { %v2183_v7 = vadd.f32 %v2164_v14, %v8986_v32  ;;  %v3451_v32 = vunpack.c.l.b16 %v3413_v24  ;;  %v3896_v8 = vrot.slane %v3894_v48, 5  ;;  %v6923_v14 = vrot.slane %v4101_v59, 9  ;;  %v9159_v48 = vld [vmem:[%s9012_s20 + $0x14] sm:$0x1]  ;;  %v7581_v59 = vld [vmem:[%s9689_s3 + $0x548] sm:$0xff] }
 0x137   : > { %4376 = vmatpush.bf16.msrb.mxu1 %v7583_v30  ;;  %v3883_v20 = vsel %vm7909_vm3, %v3878_v21, %v3882_v36  ;;  %4929 = vmatpush.bf16.msra.mxu0 %v7613_v55  ;;  %v6753_v30 = vld [vmem:[%s8375_s10 + $0x48] sm:$0xe] }
 0x138   : > { %v3456_v49 = vpack.c.b16 %v3452_v37, %v3451_v32  ;;  %v3897_v29 = vsel %vm7909_vm3, %v3892_v10, %v3896_v8  ;;  %v4127_v37 = vsel %vm7932_vm5, %v6922_v6, %v4126_v13  ;;  %v4131_v25 = vsel %vm7932_vm5, %v6923_v14, %v4130_v58  ;;  %v4102_v6 = vld [vmem:[%s9012_s20 + $0x10] sm:$0xe] }
 0x139   : > { %v1866_v33 = vpop.f32.mrf.mxu3  ;;  %v4173_v53 = vunpack.c.l.b16 %v4127_v37  ;;  %v4174_v61 = vunpack.c.l.b16 %v4131_v25  ;;  %v3596_v8 = vrot.slane %v9038_v16, 5  ;;  %v6761_v15 = vrot.slane %v6753_v30, 9 }
 0x13a   : > { %v1879_v50 = vadd.f32 %v1866_v33, %v8974_v17  ;;  %v7590_v17 = vld [vmem:[%s9689_s3 + $0x590] sm:$0xff]  ;;  %v3623_v33 = vunpack.c.l.b16 %v3589_v12 }
 0x13b   : > { %v2410_v47 = vpop.f32.mrf.mxu2  ;;  %v2043_v5 = vpop.f32.mrf.mxu0  ;;  %4623 = vmatpush.bf16.msrb.mxu2 %v7590_v17  ;;  %4377 = vmatpush.bf16.msrb.mxu1 %v7582_v38  ;;  %v4181_v58 = vpack.c.b16 %v4174_v61, %v4173_v53 }
 0x13c   : > { %v9112_v60 = vadd.f32 %v2410_v47, %v2183_v7  ;;  %v9123_v24 = vadd.f32 %v2040_v40, %v1879_v50  ;;  %v3902_v40 = vshll.u32 %v3858_v34, 16  ;;  %v3916_v7 = vshll.u32 %v3860_v3, 16  ;;  %v9162_v50 = vld [vmem:[%s9012_s20 + $0x1c] sm:$0x1]  ;;  %4930 = vmatpush.bf16.msra.mxu0 %v7612_v9 }
 0x13d   : > { %v2167_v2 = vpop.f32.mrf.mxu1  ;;  %v3908_v34 = vshll.u32 %v9159_v48, 16  ;;  %v3922_v21 = vshll.u32 %v9162_v50, 16  ;;  %v4138_v38 = vrot.slane %v9162_v50, 5 }
 0x13e   : > { %v2184_v35 = vadd.f32 %v2167_v2, %v9025_v63  ;;  %3286 = vmatmul.bf16.gmra.mxu3 %v6649_v43  ;;  %3532 = vmatmul.bf16.gmra.mxu0 %v3456_v49  ;;  %v7602_v63 = vld [vmem:[%s9689_s3 + $0x5f0] sm:$0xff]  ;;  %v3904_v27 = vrot.slane %v3902_v40, 5  ;;  %v3624_v43 = vunpack.c.l.b16 %v3593_v62  ;;  %v3999_v49 = vunpack.c.l.b16 %v3883_v20  ;;  %v3862_v62 = vld [vmem:[%s9012_s20 + $0x20] sm:$0xf] }
 0x13f   : > { %4793 = vmatpush.bf16.msra.mxu3 %v7602_v63  ;;  %4624 = vmatpush.bf16.msrb.mxu2 %v7589_v19  ;;  %v3600_v40 = vrot.slane %v9041_v18, 5  ;;  %v7580_v63 = vld [vmem:[%s9689_s3 + $0x540] sm:$0xff]  ;;  %v3924_v18 = vrot.slane %v3922_v21, 5  ;;  %v7050_v19 = vld [vmem:[%s9012_s20 + $0x8] sm:$0xf]  ;;  %v9229_v21 = vld [vmem:[%s9689_s3 + $0x6b8] sm:$0xff] }
 0x140   : > { %3696 = vmatmul.bf16.gmra.mxu1 %v3628_v42  ;;  %3830 = vmatmul.bf16.gmra.mxu2 %v6833_v11  ;;  %v4000_v42 = vunpack.c.l.b16 %v3897_v29  ;;  %v7550_v11 = vld [vmem:[%s9012_s20 + $0x24] sm:$0xf0]  ;;  %v3905_v17 = vor.u32 %v3904_v27, %v3901_v23  ;;  %v3629_v52 = vpack.c.b16 %v3624_v43, %v3623_v33  ;;  %v6924_v29 = vrot.slane %v4102_v6, 9  ;;  %v9237_v6 = vld [vmem:[%s9012_s20 + $0x24] sm:$0x1] }
 0x141   : > { %v1869_v54 = vpop.f32.mrf.mxu3  ;;  %4378 = vmatpush.bf16.msrb.mxu1 %v7581_v59  ;;  %v6925_v23 = vrot.slane %v4103_v56, 9  ;;  %v3864_v27 = vld [vmem:[%s9012_s20 + $0x28] sm:$0xf]  ;;  %v4426_v59 = vshrl.u32 %v7050_v19, 16  ;;  %v7599_v56 = vld [vmem:[%s9689_s3 + $0x5d8] sm:$0xff] }
 0x142   : > { %v1880_v44 = vadd.f32 %v1869_v54, %v9005_v1  ;;  %v3918_v1 = vrot.slane %v3916_v7, 5  ;;  %v7588_v7 = vld [vmem:[%s9689_s3 + $0x580] sm:$0xff]  ;;  %v3906_v12 = vrot.slane %v3905_v17, 4  ;;  %v3910_v54 = vrot.slane %v3908_v34, 5 }
 0x143   : > { %v2413_v32 = vpop.f32.mrf.mxu2  ;;  %v2045_v26 = vpop.f32.mrf.mxu0  ;;  %4794 = vmatpush.bf16.msra.mxu3 %v7601_v22  ;;  %4625 = vmatpush.bf16.msrb.mxu2 %v7588_v7  ;;  %v3941_v22 = vshrl.u32 %v3864_v27, 16  ;;  %v3944_v9 = vshll.u32 %v3864_v27, 16  ;;  %v7610_v7 = vld [vmem:[%s9689_s3 + $0x610] sm:$0xff] }
 0x144   : > { %v9151_v51 = vadd.f32 %v2413_v32, %v2184_v35  ;;  %v9156_v45 = vadd.f32 %v2043_v5, %v1880_v44  ;;  %v6836_v5 = vld [vmem:[%s9012_s20 + $0x20] sm:$0xf]  ;;  %v3919_v2 = vor.u32 %v3918_v1, %v3915_v28  ;;  %v4007_v35 = vpack.c.b16 %v4000_v42, %v3999_v49 }
 0x145   : > { %v2169_v4 = vpop.f32.mrf.mxu1  ;;  %v6837_v3 = vor.u32 %v7550_v11, %v6836_v5  ;;  %v4134_v44 = vrot.slane %v9159_v48, 5  ;;  %4379 = vmatpush.bf16.msrb.mxu1 %v7580_v63  ;;  %v3927_v28 = vshrl.u32 %v3862_v62, 16  ;;  %v3930_v1 = vshll.u32 %v3862_v62, 16  ;;  %v3865_v63 = vld [vmem:[%s9012_s20 + $0x2c] sm:$0x1] }
 0x146   : > { %v2185_v47 = vadd.f32 %v2169_v4, %v9059_v46  ;;  %v6752_v46 = vld [vmem:[%s8375_s10 + $0x40] sm:$0xe]  ;;  %v7611_v4 = vld [vmem:[%s9689_s3 + $0x618] sm:$0xff]  ;;  %v3911_v43 = vsel %vm7909_vm3, %v3906_v12, %v3910_v54  ;;  %v4139_v42 = vsel %vm7932_vm5, %v6925_v23, %v4138_v38  ;;  %v4428_v12 = vrot.slane %v4426_v59, 4 }
 0x147   : > { %v6760_v10 = vrot.slane %v6752_v46, 9  ;;  %v4135_v50 = vsel %vm7932_vm5, %v6924_v29, %v4134_v44  ;;  %4931 = vmatpush.bf16.msra.mxu0 %v7611_v4  ;;  %v3929_v53 = vrot.slane %v3927_v28, 4  ;;  %v3932_v61 = vrot.slane %v3930_v1, 5  ;;  %5347 = vmatpush.bf16.msra.mxu2 %v9229_v21  ;;  %v9255_v44 = vld [vmem:[%s9012_s20 + $0x14] sm:$0x1] }
 0x148   : > { %v4429_v46 = vshll.u32 %v7050_v19, 16  ;;  %v3936_v54 = vshll.u32 %v9237_v6, 16  ;;  %v3950_v27 = vshll.u32 %v3865_v63, 16  ;;  %v4104_v28 = vld [vmem:[%s9012_s20 + $0x20] sm:$0xe]  ;;  %v4142_v59 = vrot.slane %v9237_v6, 5 }
 0x149   : > { %v1871_v36 = vpop.f32.mrf.mxu3  ;;  %v9200_v25 = vsel %vm7932_vm5, %v6760_v10, %v3596_v8  ;;  %v4175_v10 = vunpack.c.l.b16 %v4135_v50  ;;  %v4105_v1 = vld [vmem:[%s9012_s20 + $0x28] sm:$0xe] }
 0x14a   : > { %v1881_v13 = vadd.f32 %v1871_v36, %v9048_v31  ;;  %v3920_v31 = vrot.slane %v3919_v2, 4  ;;  %v3625_v33 = vunpack.c.l.b16 %v9200_v25  ;;  %v3938_v50 = vrot.slane %v3936_v54, 5 }
 0x14b   : > { %v2415_v14 = vpop.f32.mrf.mxu2  ;;  %v2717_v16 = vpop.f32.mrf.mxu0  ;;  %4932 = vmatpush.bf16.msra.mxu0 %v7610_v7  ;;  %v7056_v7 = vld [vmem:[%s9012_s20 + $0x20] sm:$0xf] }
 0x14c   : > { %v9191_v55 = vadd.f32 %v2415_v14, %v2185_v47  ;;  %v9195_v32 = vadd.f32 %v2045_v26, %v1881_v13  ;;  %v3601_v26 = vsel %vm7932_vm5, %v6761_v15, %v3600_v40  ;;  %v3925_v48 = vsel %vm7909_vm3, %v3920_v31, %v3924_v18  ;;  %v7052_v47 = vld [vmem:[%s9012_s20 + $0x10] sm:$0xf]  ;;  %v7551_v14 = vld [vmem:[%s9012_s20 + $0x34] sm:$0xf0]  ;;  %v9251_v31 = vld [vmem:[%s9012_s20 + $0xc] sm:$0x1] }
 0x14d   : > { %v2172_v20 = vpop.f32.mrf.mxu1  ;;  %v3626_v34 = vunpack.c.l.b16 %v3601_v26  ;;  %v4440_v2 = vshrl.u32 %v7052_v47, 16  ;;  %v3943_v15 = vrot.slane %v3941_v22, 4  ;;  %v3946_v40 = vrot.slane %v3944_v9, 5 }
 0x14e   : > { %v2186_v37 = vadd.f32 %v2172_v20, %v9086_v39  ;;  %4071 = vmatmul.bf16.vlgmr.msrb.gmra.mxu3 %v4007_v35  ;;  %4245 = vmatmul.bf16.vlgmr.msrb.gmra.mxu0 %v4181_v58  ;;  %v7600_v39 = vld [vmem:[%s9689_s3 + $0x5e0] sm:$0xff]  ;;  %v4002_v35 = vunpack.c.l.b16 %v3925_v48  ;;  %v4176_v58 = vunpack.c.l.b16 %v4139_v42  ;;  %v9267_v42 = vld [vmem:[%s9689_s3 + $0x678] sm:$0xff]  ;;  %v6926_v9 = vrot.slane %v4104_v28, 9 }
 0x14f   : > { %4795 = vmatpush.bf16.msra.mxu3 %v7600_v39  ;;  %v4442_v62 = vrot.slane %v4440_v2, 4  ;;  %v3630_v18 = vpack.c.b16 %v3626_v34, %v3625_v33  ;;  %v3947_v38 = vor.u32 %v3946_v40, %v3943_v15  ;;  %v4146_v34 = vrot.slane %v3865_v63, 5  ;;  %7663 = vmatpush.bf16.msra.mxu1 %v9267_v42 }
 0x150   : > { %3701 = vmatmul.bf16.gmra.mxu1 %v3629_v52  ;;  %3835 = vmatmul.bf16.gmra.mxu2 %v6837_v3  ;;  %v4443_v52 = vshll.u32 %v7052_v47, 16  ;;  %v9232_v3 = vld [vmem:[%s9012_s20 + $0x30] sm:$0xf]  ;;  %v4182_v23 = vpack.c.b16 %v4176_v58, %v4175_v10  ;;  %v7609_v10 = vld [vmem:[%s9689_s3 + $0x608] sm:$0xff]  ;;  %v4143_v6 = vsel %vm7932_vm5, %v6926_v9, %v4142_v59 }
 0x151   : > { %v2582_v49 = vpop.f32.mrf.mxu3  ;;  %v6841_v29 = vor.u32 %v7551_v14, %v9232_v3  ;;  %4933 = vmatpush.bf16.msra.mxu0 %v7609_v10  ;;  %v9340_v10 = vld [vmem:[%s9012_s20 + $0x24] sm:$0x1] }
 0x152   : > { %v2602_v11 = vadd.f32 %v2582_v49, %v9072_v57  ;;  %v4001_v57 = vunpack.c.l.b16 %v3911_v43  ;;  %v4445_v20 = vrot.slane %v4443_v52, 5  ;;  %v4435_v43 = vshll.u32 %v9251_v31, 16 }
 0x153   : > { %v2418_v5 = vpop.f32.mrf.mxu2  ;;  %v2719_v17 = vpop.f32.mrf.mxu0  ;;  %4796 = vmatpush.bf16.msra.mxu3 %v7599_v56  ;;  %v4449_v49 = vshll.u32 %v9255_v44, 16 }
 0x154   : > { %v9224_v30 = vadd.f32 %v2418_v5, %v2186_v37  ;;  %v9234_v8 = vadd.f32 %v2717_v16, %v2602_v11  ;;  %v3933_v16 = vor.u32 %v3932_v61, %v3929_v53  ;;  %v4008_v25 = vpack.c.b16 %v4002_v35, %v4001_v57  ;;  %v3868_v57 = vld [vmem:[%s9012_s20 + $0x38] sm:$0xf]  ;;  %v7598_v35 = vld [vmem:[%s9689_s3 + $0x5d0] sm:$0xff] }
 0x155   : > { %v2174_v36 = vpop.f32.mrf.mxu1  ;;  %v4446_v47 = vor.u32 %v4445_v20, %v4442_v62  ;;  %v6927_v5 = vrot.slane %v4105_v1, 9  ;;  %v3948_v61 = vrot.slane %v3947_v38, 4  ;;  %v4437_v52 = vrot.slane %v4435_v43, 5 }
 0x156   : > { %v2187_v13 = vadd.f32 %v2174_v36, %v9123_v24  ;;  %v4431_v24 = vrot.slane %v4429_v46, 5  ;;  %v3934_v39 = vrot.slane %v3933_v16, 4  ;;  %v3952_v46 = vrot.slane %v3950_v27, 5  ;;  %v3866_v36 = vld [vmem:[%s9012_s20 + $0x30] sm:$0xf] }
 0x157   : > { %v4451_v3 = vrot.slane %v4449_v49, 5  ;;  %v4147_v15 = vsel %vm7932_vm5, %v6927_v5, %v4146_v34  ;;  %v3955_v40 = vshrl.u32 %v3866_v36, 16  ;;  %v3958_v56 = vshll.u32 %v3866_v36, 16  ;;  %4797 = vmatpush.bf16.msra.mxu3 %v7598_v35  ;;  %v9318_v27 = vld [vmem:[%s9012_s20 + $0x34] sm:$0x1] }
 0x158   : > { %v4432_v4 = vor.u32 %v4431_v24, %v4428_v12  ;;  %v3953_v58 = vsel %vm7909_vm3, %v3948_v61, %v3952_v46  ;;  %v3969_v24 = vshrl.u32 %v3868_v57, 16  ;;  %v3972_v54 = vshll.u32 %v3868_v57, 16  ;;  %v9331_v61 = vld [vmem:[%s9012_s20 + $0x3c] sm:$0x1] }
 0x159   : > { %v2584_v37 = vpop.f32.mrf.mxu3  ;;  %v4468_v1 = vshrl.u32 %v7056_v7, 16  ;;  %v3960_v43 = vrot.slane %v3958_v56, 5  ;;  %v4178_v49 = vunpack.c.l.b16 %v4147_v15  ;;  %v3964_v46 = vshll.u32 %v9318_v27, 16  ;;  %v9335_v34 = vld [vmem:[%s9012_s20 + $0x1c] sm:$0x1] }
 0x15a   : > { %v2603_v26 = vadd.f32 %v2584_v37, %v9112_v60  ;;  %v9272_v60 = vld [vmem:[%s9689_s3 + $0x6b0] sm:$0xff]  ;;  %v4433_v2 = vrot.slane %v4432_v4, 4  ;;  %v3957_v4 = vrot.slane %v3955_v40, 4  ;;  %v3971_v9 = vrot.slane %v3969_v24, 4  ;;  %v9357_v24 = vld [vmem:[%s9689_s3 + $0x6a0] sm:$0xff] }
 0x15b   : > { %v2420_v19 = vpop.f32.mrf.mxu2  ;;  %v2722_v33 = vpop.f32.mrf.mxu0  ;;  %5348 = vmatpush.bf16.msra.mxu2 %v9272_v60  ;;  %v3974_v59 = vrot.slane %v3972_v54, 5  ;;  %v4470_v36 = vrot.slane %v4468_v1, 4  ;;  %v3978_v15 = vshll.u32 %v9331_v61, 16  ;;  %v4106_v40 = vld [vmem:[%s9012_s20 + $0x30] sm:$0xe] }
 0x15c   : > { %v9261_v48 = vadd.f32 %v2420_v19, %v2187_v13  ;;  %v9275_v11 = vadd.f32 %v2719_v17, %v2603_v26  ;;  %v4447_v17 = vrot.slane %v4446_v47, 4  ;;  %v7054_v13 = vld [vmem:[%s9012_s20 + $0x18] sm:$0xf]  ;;  %v4471_v19 = vshll.u32 %v7056_v7, 16 }
 0x15d   : > { %v2177_v22 = vpop.f32.mrf.mxu1  ;;  %v4454_v37 = vshrl.u32 %v7054_v13, 16  ;;  %v4457_v28 = vshll.u32 %v7054_v13, 16  ;;  %v4177_v47 = vunpack.c.l.b16 %v4143_v6  ;;  %v3961_v35 = vor.u32 %v3960_v43, %v3957_v4 }
 0x15e   : > { %v2188_v53 = vadd.f32 %v2177_v22, %v9156_v45  ;;  %4076 = vmatmul.bf16.gmra.mxu3 %v4008_v25  ;;  %4250 = vmatmul.bf16.gmra.mxu0 %v4182_v23  ;;  %v3939_v45 = vsel %vm7909_vm3, %v3934_v39, %v3938_v50  ;;  %v7622_v25 = vld [vmem:[%s9689_s3 + $0x670] sm:$0xff]  ;;  %v4004_v39 = vunpack.c.l.b16 %v3953_v58  ;;  %v7608_v50 = vld [vmem:[%s9689_s3 + $0x600] sm:$0xff]  ;;  %v7004_v22 = vld [vmem:[%s9012_s20 + $0x8] sm:$0xf]  ;;  %v3975_v58 = vor.u32 %v3974_v59, %v3971_v9 }
 0x15f   : > { %v9299_v12 = vunpack.c.l.b16 %v3939_v45  ;;  %7664 = vmatpush.bf16.msra.mxu1 %v7622_v25  ;;  %4934 = vmatpush.bf16.msra.mxu0 %v7608_v50  ;;  %v4473_v45 = vrot.slane %v4471_v19, 5  ;;  %v3962_v19 = vrot.slane %v3961_v35, 4  ;;  %v3980_v43 = vrot.slane %v3978_v15, 5 }
 0x160   : > { %3706 = vmatmul.bf16.gmra.mxu1 %v3630_v18  ;;  %3840 = vmatmul.bf16.gmra.mxu2 %v6841_v29  ;;  %v4438_v18 = vsel %vm7909_vm3, %v4433_v2, %v4437_v52  ;;  %v4452_v29 = vsel %vm7909_vm3, %v4447_v17, %v4451_v3  ;;  %v4456_v2 = vrot.slane %v4454_v37, 4  ;;  %v4459_v52 = vrot.slane %v4457_v28, 5 }
 0x161   : > { %v2587_v14 = vpop.f32.mrf.mxu3  ;;  %v4554_v5 = vunpack.c.l.b16 %v4438_v18  ;;  %v4009_v3 = vpack.c.b16 %v4004_v39, %v9299_v12  ;;  %v4463_v12 = vshll.u32 %v9335_v34, 16  ;;  %v4107_v18 = vld [vmem:[%s9012_s20 + $0x38] sm:$0xe]  ;;  %v4474_v37 = vor.u32 %v4473_v45, %v4470_v36 }
 0x162   : > { %v2604_v16 = vadd.f32 %v2587_v14, %v9151_v51  ;;  %v9313_v51 = vld [vmem:[%s9689_s3 + $0x6a8] sm:$0xff]  ;;  %v4183_v14 = vpack.c.b16 %v4178_v49, %v4177_v47  ;;  %v4150_v39 = vrot.slane %v9318_v27, 5  ;;  %v3976_v4 = vrot.slane %v3975_v58, 4 }
 0x163   : > { %v2423_v63 = vpop.f32.mrf.mxu2  ;;  %v2724_v20 = vpop.f32.mrf.mxu0  ;;  %5349 = vmatpush.bf16.msra.mxu2 %v9313_v51  ;;  %5173 = vmatpush.bf16.msrb.mxu0 %v9267_v42  ;;  %v7596_v42 = vld [vmem:[%s9689_s3 + $0x5c0] sm:$0xff]  ;;  %v4475_v47 = vrot.slane %v4474_v37, 4 }
 0x164   : > { %v9301_v62 = vadd.f32 %v2423_v63, %v2188_v53  ;;  %v9315_v38 = vadd.f32 %v2722_v33, %v2604_v16  ;;  %v7597_v33 = vld [vmem:[%s9689_s3 + $0x5c8] sm:$0xff]  ;;  %v4555_v53 = vunpack.c.l.b16 %v4452_v29  ;;  %v3966_v16 = vrot.slane %v3964_v46, 5 }
 0x165   : > { %v2179_v23 = vpop.f32.mrf.mxu1  ;;  %4798 = vmatpush.bf16.msra.mxu3 %v7597_v33  ;;  %v4460_v29 = vor.u32 %v4459_v52, %v4456_v2  ;;  %v4154_v33 = vrot.slane %v9331_v61, 5 }
 0x166   : > { %v2189_v26 = vadd.f32 %v2179_v23, %v9195_v32  ;;  %v7576_v32 = vld [vmem:[%s9012_s20 + $0xc] sm:$0xf0]  ;;  %v4562_v63 = vpack.c.b16 %v4555_v53, %v4554_v5  ;;  %v4477_v23 = vshll.u32 %v9340_v10, 16  ;;  %v3981_v53 = vsel %vm7909_vm3, %v3976_v4, %v3980_v43 }
 0x167   : > { %v7005_v57 = vor.u32 %v7576_v32, %v7004_v22  ;;  %5174 = vmatpush.bf16.msrb.mxu0 %v7622_v25  ;;  %5350 = vmatpush.bf16.msra.mxu2 %v9357_v24  ;;  %v7058_v25 = vld [vmem:[%s9012_s20 + $0x28] sm:$0xf]  ;;  %v4461_v50 = vrot.slane %v4460_v29, 4  ;;  %v7060_v22 = vld [vmem:[%s9012_s20 + $0x30] sm:$0xf]  ;;  %v3967_v32 = vsel %vm7909_vm3, %v3962_v19, %v3966_v16  ;;  %v4006_v58 = vunpack.c.l.b16 %v3981_v53 }
 0x168   : > { %v4479_v49 = vrot.slane %v4477_v23, 5  ;;  %v4482_v61 = vshrl.u32 %v7058_v25, 16  ;;  %v4485_v46 = vshll.u32 %v7058_v25, 16  ;;  %v4496_v36 = vshrl.u32 %v7060_v22, 16 }
 0x169   : > { %v2589_v17 = vpop.f32.mrf.mxu3  ;;  %4799 = vmatpush.bf16.msra.mxu3 %v7596_v42  ;;  %v4499_v45 = vshll.u32 %v7060_v22, 16  ;;  %v7008_v42 = vld [vmem:[%s9012_s20 + $0x18] sm:$0xf] }
 0x16a   : > { %v2605_v13 = vadd.f32 %v2589_v17, %v9191_v55  ;;  %v7621_v55 = vld [vmem:[%s9689_s3 + $0x668] sm:$0xff]  ;;  %v9387_v17 = vld [vmem:[%s9689_s3 + $0x698] sm:$0xff]  ;;  %v4480_v35 = vsel %vm7909_vm3, %v4475_v47, %v4479_v49  ;;  %v4484_v16 = vrot.slane %v4482_v61, 4  ;;  %v7115_v49 = vld [vmem:[%s9012_s20 + $0x10] sm:$0xe]  ;;  %v4681_v61 = vrot.slane %v9251_v31, 5 }
 0x16b   : > { %v2425_v6 = vpop.f32.mrf.mxu2  ;;  %v2727_v7 = vpop.f32.mrf.mxu0  ;;  %7665 = vmatpush.bf16.msra.mxu1 %v7621_v55  ;;  %5175 = vmatpush.bf16.msrb.mxu0 %v7621_v55  ;;  %v4557_v55 = vunpack.c.l.b16 %v4480_v35 }
 0x16c   : > { %v9348_v56 = vadd.f32 %v2425_v6, %v2189_v26  ;;  %v9361_v28 = vadd.f32 %v2724_v20, %v2605_v13  ;;  %v6928_v26 = vrot.slane %v4106_v40, 9  ;;  %v6929_v20 = vrot.slane %v4107_v18, 9  ;;  %5351 = vmatpush.bf16.msra.mxu2 %v9387_v17 }
 0x16d   : > { %v2963_v54 = vpop.f32.mrf.mxu1  ;;  %7671 = vmatpush.bf16.msrb.mxu3 %v9229_v21  ;;  %v4501_v18 = vrot.slane %v4499_v45, 5 }
 0x16e   : > { %v2983_v1 = vadd.f32 %v2963_v54, %v9234_v8  ;;  %4081 = vmatmul.bf16.gmra.mxu3 %v4009_v3  ;;  %4255 = vmatmul.bf16.gmra.mxu0 %v4183_v14  ;;  %v4465_v8 = vrot.slane %v4463_v12, 5  ;;  %v4151_v9 = vsel %vm7932_vm5, %v6928_v26, %v4150_v39  ;;  %v4155_v21 = vsel %vm7932_vm5, %v6929_v20, %v4154_v33  ;;  %v9401_v54 = vld [vmem:[%s9012_s20 + $0x2c] sm:$0x1] }
 0x16f   : > { %v4005_v14 = vunpack.c.l.b16 %v3967_v32  ;;  %v4179_v15 = vunpack.c.l.b16 %v4151_v9  ;;  %v4180_v40 = vunpack.c.l.b16 %v4155_v21  ;;  %v4487_v12 = vrot.slane %v4485_v46, 5  ;;  %v7062_v32 = vld [vmem:[%s9012_s20 + $0x38] sm:$0xf]  ;;  %v7064_v9 = vld [vmem:[%s9012_s20 + $0x40] sm:$0xf] }
 0x170   : > { %4380 = vmatmul.bf16.vlgmr.msrb.gmra.mxu1 %v7005_v57  ;;  %4626 = vmatmul.bf16.vlgmr.msrb.gmra.mxu2 %v4562_v63  ;;  %v4466_v57 = vsel %vm7909_vm3, %v4461_v50, %v4465_v8  ;;  %v7577_v63 = vld [vmem:[%s9012_s20 + $0x1c] sm:$0xf0]  ;;  %v4491_v4 = vshll.u32 %v9401_v54, 16  ;;  %v7114_v50 = vld [vmem:[%s9012_s20 + $0x8] sm:$0xe]  ;;  %v7619_v8 = vld [vmem:[%s9689_s3 + $0x658] sm:$0xff] }
 0x171   : > { %v2592_v27 = vpop.f32.mrf.mxu3  ;;  %7672 = vmatpush.bf16.msrb.mxu3 %v9272_v60  ;;  %v4498_v60 = vrot.slane %v4496_v36, 4  ;;  %v4010_v37 = vpack.c.b16 %v4006_v58, %v4005_v14  ;;  %v7009_v23 = vor.u32 %v7577_v63, %v7008_v42  ;;  %v4184_v26 = vpack.c.b16 %v4180_v40, %v4179_v15  ;;  %v7625_v15 = vld [vmem:[%s9689_s3 + $0x688] sm:$0xff] }
 0x172   : > { %v2606_v59 = vadd.f32 %v2592_v27, %v9224_v30  ;;  %v7620_v30 = vld [vmem:[%s9689_s3 + $0x660] sm:$0xff]  ;;  %v4488_v39 = vor.u32 %v4487_v12, %v4484_v16  ;;  %v7122_v53 = vrot.slane %v7114_v50, 9  ;;  %v7123_v21 = vrot.slane %v7115_v49, 9 }
 0x173   : > { %v3137_v5 = vpop.f32.mrf.mxu2  ;;  %v2729_v52 = vpop.f32.mrf.mxu0  ;;  %7666 = vmatpush.bf16.msra.mxu1 %v7620_v30  ;;  %5176 = vmatpush.bf16.msrb.mxu0 %v7620_v30  ;;  %v4502_v25 = vor.u32 %v4501_v18, %v4498_v60  ;;  %v4510_v36 = vshrl.u32 %v7062_v32, 16  ;;  %v4524_v45 = vshrl.u32 %v7064_v9, 16  ;;  %v9453_v60 = vld [vmem:[%s9012_s20 + $0x44] sm:$0x1] }
 0x174   : > { %v9377_v2 = vadd.f32 %v3137_v5, %v2983_v1  ;;  %v9393_v6 = vadd.f32 %v2727_v7, %v2606_v59  ;;  %v4556_v7 = vunpack.c.l.b16 %v4466_v57  ;;  %v4489_v59 = vrot.slane %v4488_v39, 4  ;;  %v7604_v39 = vld [vmem:[%s9012_s20 + $0x14] sm:$0xf0] }
 0x175   : > { %v2965_v3 = vpop.f32.mrf.mxu1  ;;  %7673 = vmatpush.bf16.msrb.mxu3 %v9313_v51  ;;  %v4493_v5 = vrot.slane %v4491_v4, 5  ;;  %v4503_v46 = vrot.slane %v4502_v25, 4  ;;  %v4682_v31 = vsel %vm7932_vm5, %v7122_v53, %v4681_v61  ;;  %v4512_v63 = vrot.slane %v4510_v36, 4  ;;  %v7012_v4 = vld [vmem:[%s9012_s20 + $0x28] sm:$0xf] }
 0x176   : > { %v2984_v13 = vadd.f32 %v2965_v3, %v9275_v11  ;;  %v9404_v11 = vld [vmem:[%s9012_s20 + $0x34] sm:$0x1]  ;;  %v4563_v33 = vpack.c.b16 %v4557_v55, %v4556_v7  ;;  %v4527_v3 = vshll.u32 %v7064_v9, 16  ;;  %v4526_v12 = vrot.slane %v4524_v45, 4  ;;  %v9450_v55 = vld [vmem:[%s9012_s20 + $0x3c] sm:$0x1] }
 0x177   : > { %v4505_v51 = vshll.u32 %v9404_v11, 16  ;;  %7667 = vmatpush.bf16.msra.mxu1 %v7619_v8  ;;  %5177 = vmatpush.bf16.msrb.mxu0 %v7619_v8  ;;  %v4533_v25 = vshll.u32 %v9453_v60, 16  ;;  %v7616_v9 = vld [vmem:[%s9689_s3 + $0x640] sm:$0xff] }
 0x178   : > { %v4529_v18 = vrot.slane %v4527_v3, 5  ;;  %v4689_v3 = vrot.slane %v9335_v34, 5 }
 0x179   : > { %v2594_v29 = vpop.f32.mrf.mxu3  ;;  %7674 = vmatpush.bf16.msrb.mxu3 %v9357_v24  ;;  %v4685_v24 = vrot.slane %v9255_v44, 5 }
 0x17a   : > { %v2607_v1 = vadd.f32 %v2594_v29, %v9261_v48  ;;  %v7626_v48 = vld [vmem:[%s9689_s3 + $0x690] sm:$0xff]  ;;  %v7617_v29 = vld [vmem:[%s9689_s3 + $0x648] sm:$0xff]  ;;  %v4530_v50 = vor.u32 %v4529_v18, %v4526_v12 }
 0x17b   : > { %v3139_v19 = vpop.f32.mrf.mxu2  ;;  %v2732_v20 = vpop.f32.mrf.mxu0  ;;  %5352 = vmatpush.bf16.msra.mxu2 %v7626_v48 }
 0x17c   : > { %v9409_v43 = vadd.f32 %v3139_v19, %v2984_v13  ;;  %v9420_v22 = vadd.f32 %v2729_v52, %v2607_v1  ;;  %v4507_v52 = vrot.slane %v4505_v51, 5  ;;  %v7618_v13 = vld [vmem:[%s9689_s3 + $0x650] sm:$0xff]  ;;  %v4531_v45 = vrot.slane %v4530_v50, 4 }
 0x17d   : > { %v2968_v47 = vpop.f32.mrf.mxu1  ;;  %7675 = vmatpush.bf16.msrb.mxu3 %v9387_v17  ;;  %v4494_v17 = vsel %vm7909_vm3, %v4489_v59, %v4493_v5  ;;  %7668 = vmatpush.bf16.msra.mxu1 %v7618_v13 }
 0x17e   : > { %v2985_v27 = vadd.f32 %v2968_v47, %v9315_v38  ;;  %4086 = vmatmul.bf16.gmra.mxu3 %v4010_v37  ;;  %4260 = vmatmul.bf16.gmra.mxu0 %v4184_v26  ;;  %v4513_v38 = vshll.u32 %v7062_v32, 16  ;;  %v4508_v58 = vsel %vm7909_vm3, %v4503_v46, %v4507_v52  ;;  %v4728_v37 = vunpack.c.l.b16 %v4682_v31  ;;  %v7204_v26 = vld [vmem:[%s9012_s20 + $0x10] sm:$0xf]  ;;  %v7624_v32 = vld [vmem:[%s9689_s3 + $0x680] sm:$0xff] }
 0x17f   : > { %5178 = vmatpush.bf16.msrb.mxu0 %v7618_v13  ;;  %5353 = vmatpush.bf16.msra.mxu2 %v7625_v15  ;;  %v4558_v1 = vunpack.c.l.b16 %v4494_v17  ;;  %v4559_v19 = vunpack.c.l.b16 %v4508_v58  ;;  %v7205_v49 = vor.u32 %v7604_v39, %v7204_v26  ;;  %v7117_v46 = vld [vmem:[%s9012_s20 + $0x20] sm:$0xe]  ;;  %v7256_v13 = vld [vmem:[%s9012_s20 + $0x28] sm:$0xf] }
 0x180   : > { %4385 = vmatmul.bf16.gmra.mxu1 %v7009_v23  ;;  %4631 = vmatmul.bf16.gmra.mxu2 %v4563_v33  ;;  %v4515_v16 = vrot.slane %v4513_v38, 5  ;;  %v4519_v33 = vshll.u32 %v9450_v55, 16  ;;  %v7254_v31 = vld [vmem:[%s9012_s20 + $0x20] sm:$0xf]  ;;  %v5023_v12 = vshrl.u32 %v7256_v13, 16 }
 0x181   : > { %v2597_v30 = vpop.f32.mrf.mxu3  ;;  %7676 = vmatpush.bf16.msrb.mxu3 %v7626_v48  ;;  %7669 = vmatpush.bf16.msra.mxu1 %v7617_v29  ;;  %v4564_v61 = vpack.c.b16 %v4559_v19, %v4558_v1  ;;  %v7579_v1 = vld [vmem:[%s9012_s20 + $0x3c] sm:$0xf0] }
 0x182   : > { %v2608_v57 = vadd.f32 %v2597_v30, %v9301_v62  ;;  %v4686_v62 = vsel %vm7932_vm5, %v7123_v21, %v4685_v24  ;;  %v4521_v21 = vrot.slane %v4519_v33, 5  ;;  %v4535_v24 = vrot.slane %v4533_v25, 5  ;;  %v9501_v25 = vld [vmem:[%s9012_s20 + $0x24] sm:$0x1] }
 0x183   : > { %v3142_v35 = vpop.f32.mrf.mxu2  ;;  %v2734_v14 = vpop.f32.mrf.mxu0  ;;  %v4729_v23 = vunpack.c.l.b16 %v4686_v62  ;;  %5179 = vmatpush.bf16.msrb.mxu0 %v7617_v29  ;;  %5354 = vmatpush.bf16.msra.mxu2 %v7624_v32  ;;  %v5025_v50 = vrot.slane %v5023_v12, 4 }
 0x184   : > { %v9435_v44 = vadd.f32 %v3142_v35, %v2985_v27  ;;  %v9446_v42 = vadd.f32 %v2732_v20, %v2608_v57  ;;  %v4516_v20 = vor.u32 %v4515_v16, %v4512_v63  ;;  %v7116_v27 = vld [vmem:[%s9012_s20 + $0x18] sm:$0xe]  ;;  %v7125_v57 = vrot.slane %v7117_v46, 9 }
 0x185   : > { %v2970_v40 = vpop.f32.mrf.mxu1  ;;  %7677 = vmatpush.bf16.msrb.mxu3 %v7625_v15  ;;  %v4736_v47 = vpack.c.b16 %v4729_v23, %v4728_v37  ;;  %7670 = vmatpush.bf16.msra.mxu1 %v7616_v9  ;;  %v7124_v30 = vrot.slane %v7116_v27, 9  ;;  %v4693_v35 = vrot.slane %v9340_v10, 5  ;;  %v5009_v15 = vshrl.u32 %v7254_v31, 16  ;;  %v7016_v23 = vld [vmem:[%s9012_s20 + $0x38] sm:$0xf] }
 0x186   : > { %v2986_v7 = vadd.f32 %v2970_v40, %v9361_v28  ;;  %v7578_v28 = vld [vmem:[%s9012_s20 + $0x2c] sm:$0xf0]  ;;  %v5012_v40 = vshll.u32 %v7254_v31, 16 }
 0x187   : > { %v7013_v53 = vor.u32 %v7578_v28, %v7012_v4  ;;  %5180 = vmatpush.bf16.msrb.mxu0 %v7616_v9  ;;  %v4690_v34 = vsel %vm7932_vm5, %v7124_v30, %v4689_v3  ;;  %v4694_v10 = vsel %vm7932_vm5, %v7125_v57, %v4693_v35  ;;  %v7208_v4 = vld [vmem:[%s9012_s20 + $0x20] sm:$0xf]  ;;  %v7605_v28 = vld [vmem:[%s9012_s20 + $0x24] sm:$0xf0]  ;;  %v9515_v3 = vld [vmem:[%s9012_s20 + $0x14] sm:$0x1] }
 0x188   : > { %v4730_v26 = vunpack.c.l.b16 %v4690_v34  ;;  %v4731_v39 = vunpack.c.l.b16 %v4694_v10  ;;  %v5014_v33 = vrot.slane %v5012_v40, 5  ;;  %v9521_v35 = vld [vmem:[%s9012_s20 + $0x1c] sm:$0x1]  ;;  %v7314_v31 = vld [vmem:[%s9012_s20 + $0x10] sm:$0xe]  ;;  %v5236_v40 = vrot.slane %v9515_v3, 5 }
 0x189   : > { %v2599_v51 = vpop.f32.mrf.mxu3  ;;  %7678 = vmatpush.bf16.msrb.mxu3 %v7624_v32  ;;  %v7209_v32 = vor.u32 %v7605_v28, %v7208_v4  ;;  %v7260_v10 = vld [vmem:[%s9012_s20 + $0x38] sm:$0xf]  ;;  %v5240_v12 = vrot.slane %v9521_v35, 5 }
 0x18a   : > { %v2609_v8 = vadd.f32 %v2599_v51, %v9348_v56  ;;  %v4517_v56 = vrot.slane %v4516_v20, 4  ;;  %v5011_v20 = vrot.slane %v5009_v15, 4  ;;  %v9504_v51 = vld [vmem:[%s9012_s20 + $0x2c] sm:$0x1]  ;;  %v4737_v27 = vpack.c.b16 %v4731_v39, %v4730_v26 }
 0x18b   : > { %v3144_v48 = vpop.f32.mrf.mxu2  ;;  %v3518_v5 = vpop.f32.mrf.mxu0  ;;  %v5032_v46 = vshll.u32 %v9504_v51, 16  ;;  %v7322_v15 = vrot.slane %v7314_v31, 9 }
 0x18c   : > { %v9472_v59 = vadd.f32 %v3144_v48, %v2986_v7  ;;  %v9475_v36 = vadd.f32 %v2734_v14, %v2609_v8  ;;  %v4522_v17 = vsel %vm7909_vm3, %v4517_v56, %v4521_v21  ;;  %v5026_v7 = vshll.u32 %v7256_v13, 16  ;;  %v7118_v48 = vld [vmem:[%s9012_s20 + $0x28] sm:$0xe]  ;;  %v7119_v21 = vld [vmem:[%s9012_s20 + $0x30] sm:$0xe] }
 0x18d   : > { %v2973_v52 = vpop.f32.mrf.mxu1  ;;  %v4560_v29 = vunpack.c.l.b16 %v4522_v17  ;;  %v7315_v13 = vld [vmem:[%s9012_s20 + $0x18] sm:$0xe]  ;;  %v4701_v17 = vrot.slane %v9404_v11, 5 }
 0x18e   : > { %v2987_v38 = vadd.f32 %v2973_v52, %v9393_v6  ;;  %4800 = vmatmul.bf16.vlgmr.msra.gmra.mxu3 %v4736_v47  ;;  %4935 = vmatmul.bf16.vlgmr.msra.gmra.mxu0 %v7205_v49  ;;  %v4536_v6 = vsel %vm7909_vm3, %v4531_v45, %v4535_v24  ;;  %v5028_v8 = vrot.slane %v5026_v7, 5  ;;  %v7017_v49 = vor.u32 %v7579_v1, %v7016_v23 }
 0x18f   : > { %v4561_v19 = vunpack.c.l.b16 %v4536_v6  ;;  %v7126_v24 = vrot.slane %v7118_v48, 9  ;;  %v5051_v1 = vshrl.u32 %v7260_v10, 16 }
 0x190   : > { %4390 = vmatmul.bf16.gmra.mxu1 %v7013_v53  ;;  %4636 = vmatmul.bf16.gmra.mxu2 %v4564_v61  ;;  %v5015_v53 = vor.u32 %v5014_v33, %v5011_v20  ;;  %v5018_v61 = vshll.u32 %v9501_v25, 16  ;;  %v5029_v45 = vor.u32 %v5028_v8, %v5025_v50 }
 0x191   : > { %v3272_v14 = vpop.f32.mrf.mxu3 }
 0x192   : > { %v3292_v62 = vadd.f32 %v3272_v14, %v9377_v2  ;;  %v7127_v14 = vrot.slane %v7119_v21, 9  ;;  %v5016_v6 = vrot.slane %v5015_v53, 4  ;;  %v5053_v53 = vrot.slane %v5051_v1, 4 }
 0x193   : > { %v3147_v58 = vpop.f32.mrf.mxu2  ;;  %v3520_v16 = vpop.f32.mrf.mxu0 }
 0x194   : > { %v9491_v63 = vadd.f32 %v3147_v58, %v2987_v38  ;;  %v9493_v37 = vadd.f32 %v3518_v5, %v3292_v62  ;;  %v4697_v38 = vrot.slane %v9401_v54, 5  ;;  %v7258_v54 = vld [vmem:[%s9012_s20 + $0x30] sm:$0xf]  ;;  %v5020_v58 = vrot.slane %v5018_v61, 5 }
 0x195   : > { %v2975_v18 = vpop.f32.mrf.mxu1  ;;  %v5030_v62 = vrot.slane %v5029_v45, 4  ;;  %v5040_v11 = vshll.u32 %v7258_v54, 16  ;;  %v4702_v23 = vsel %vm7932_vm5, %v7127_v14, %v4701_v17  ;;  %v7121_v45 = vld [vmem:[%s9012_s20 + $0x40] sm:$0xe] }
 0x196   : > { %v2988_v2 = vadd.f32 %v2975_v18, %v9420_v22  ;;  %v4565_v22 = vpack.c.b16 %v4561_v19, %v4560_v29  ;;  %v4698_v34 = vsel %vm7932_vm5, %v7126_v24, %v4697_v38  ;;  %v5037_v18 = vshrl.u32 %v7258_v54, 16 }
 0x197   : > { %v5054_v19 = vshll.u32 %v7260_v10, 16  ;;  %v4732_v4 = vunpack.c.l.b16 %v4698_v34  ;;  %v5021_v28 = vsel %vm7909_vm3, %v5016_v6, %v5020_v58  ;;  %v7129_v34 = vrot.slane %v7121_v45, 9 }
 0x198   : > { %v4709_v58 = vrot.slane %v9453_v60, 5 }
 0x199   : > { %v3274_v47 = vpop.f32.mrf.mxu3  ;;  %v5056_v61 = vrot.slane %v5054_v19, 5  ;;  %v7252_v19 = vld [vmem:[%s9012_s20 + $0x18] sm:$0xf] }
 0x19a   : > { %v3293_v5 = vadd.f32 %v3274_v47, %v9409_v43  ;;  %v4733_v47 = vunpack.c.l.b16 %v4702_v23 }
 0x19b   : > { %v3149_v9 = vpop.f32.mrf.mxu2  ;;  %v3523_v56 = vpop.f32.mrf.mxu0 }
 0x19c   : > { %v9510_v52 = vadd.f32 %v3149_v9, %v2988_v2  ;;  %v9517_v57 = vadd.f32 %v3520_v16, %v3293_v5  ;;  %v7323_v16 = vrot.slane %v7315_v13, 9  ;;  %v7606_v9 = vld [vmem:[%s9012_s20 + $0x34] sm:$0xf0]  ;;  %v9552_v5 = vld [vmem:[%s9012_s20 + $0x34] sm:$0x1]  ;;  %v4738_v31 = vpack.c.b16 %v4733_v47, %v4732_v4 }
 0x19d   : > { %v2978_v30 = vpop.f32.mrf.mxu1  ;;  %v5046_v17 = vshll.u32 %v9552_v5, 16  ;;  %v7262_v4 = vld [vmem:[%s9012_s20 + $0x40] sm:$0xf] }
 0x19e   : > { %v2989_v43 = vadd.f32 %v2978_v30, %v9446_v42  ;;  %4805 = vmatmul.bf16.gmra.mxu3 %v4737_v27  ;;  %4940 = vmatmul.bf16.gmra.mxu0 %v7209_v32  ;;  %v5034_v42 = vrot.slane %v5032_v46, 5  ;;  %v5241_v50 = vsel %vm7932_vm5, %v7323_v16, %v5240_v12  ;;  %v5039_v27 = vrot.slane %v5037_v18, 4 }
 0x19f   : > { %v5042_v32 = vrot.slane %v5040_v11, 5  ;;  %v5111_v46 = vunpack.c.l.b16 %v5021_v28  ;;  %v5284_v38 = vunpack.c.l.b16 %v5241_v50  ;;  %v4705_v30 = vrot.slane %v9450_v55, 5  ;;  %v7317_v11 = vld [vmem:[%s9012_s20 + $0x28] sm:$0xe] }
 0x1a0   : > { %4395 = vmatmul.bf16.gmra.mxu1 %v7017_v49  ;;  %4641 = vmatmul.bf16.gmra.mxu2 %v4565_v22  ;;  %v5035_v33 = vsel %vm7909_vm3, %v5030_v62, %v5034_v42  ;;  %v7212_v49 = vld [vmem:[%s9012_s20 + $0x30] sm:$0xf]  ;;  %v7120_v22 = vld [vmem:[%s9012_s20 + $0x38] sm:$0xe]  ;;  %v5057_v62 = vor.u32 %v5056_v61, %v5053_v53  ;;  %v5048_v23 = vrot.slane %v5046_v17, 5  ;;  %v5248_v50 = vrot.slane %v9504_v51, 5 }
 0x1a1   : > { %v3277_v7 = vpop.f32.mrf.mxu3  ;;  %v5112_v21 = vunpack.c.l.b16 %v5035_v33  ;;  %v7213_v13 = vor.u32 %v7606_v9, %v7212_v49  ;;  %v5043_v14 = vor.u32 %v5042_v32, %v5039_v27  ;;  %v7264_v33 = vld [vmem:[%s9012_s20 + $0x48] sm:$0xf]  ;;  %v4995_v27 = vshrl.u32 %v7252_v19, 16  ;;  %v7216_v17 = vld [vmem:[%s9012_s20 + $0x40] sm:$0xf] }
 0x1a2   : > { %v3294_v2 = vadd.f32 %v3277_v7, %v9435_v44  ;;  %v5237_v44 = vsel %vm7932_vm5, %v7322_v15, %v5236_v40  ;;  %v7316_v7 = vld [vmem:[%s9012_s20 + $0x20] sm:$0xe]  ;;  %v5058_v1 = vrot.slane %v5057_v62, 4  ;;  %v4998_v32 = vshll.u32 %v7252_v19, 16 }
 0x1a3   : > { %v3152_v29 = vpop.f32.mrf.mxu2  ;;  %v3525_v39 = vpop.f32.mrf.mxu0  ;;  %v5283_v24 = vunpack.c.l.b16 %v5237_v44  ;;  %v5118_v10 = vpack.c.b16 %v5112_v21, %v5111_v46  ;;  %v5044_v60 = vrot.slane %v5043_v14, 4  ;;  %v7325_v44 = vrot.slane %v7317_v11, 9 }
 0x1a4   : > { %v9535_v26 = vadd.f32 %v3152_v29, %v2989_v43  ;;  %v9545_v8 = vadd.f32 %v3523_v56, %v3294_v2  ;;  %v7128_v56 = vrot.slane %v7120_v22, 9  ;;  %v7250_v29 = vld [vmem:[%s9012_s20 + $0x10] sm:$0xf]  ;;  %v4710_v2 = vsel %vm7932_vm5, %v7129_v34, %v4709_v58  ;;  %v9597_v58 = vld [vmem:[%s9012_s20 + $0x44] sm:$0x1] }
 0x1a5   : > { %v2980_v20 = vpop.f32.mrf.mxu1  ;;  %v5291_v15 = vpack.c.b16 %v5284_v38, %v5283_v24  ;;  %v4984_v47 = vshll.u32 %v7250_v29, 16  ;;  %v4735_v22 = vunpack.c.l.b16 %v4710_v2  ;;  %v5065_v9 = vshrl.u32 %v7262_v4, 16 }
 0x1a6   : > { %v2990_v48 = vadd.f32 %v2980_v20, %v9475_v36  ;;  %v9557_v36 = vld [vmem:[%s9012_s20 + $0x3c] sm:$0x1]  ;;  %v4706_v12 = vsel %vm7932_vm5, %v7128_v56, %v4705_v30  ;;  %v7324_v20 = vrot.slane %v7316_v7, 9  ;;  %v5068_v46 = vshll.u32 %v7262_v4, 16 }
 0x1a7   : > { %v5060_v40 = vshll.u32 %v9557_v36, 16  ;;  %v4734_v28 = vunpack.c.l.b16 %v4706_v12  ;;  %v5079_v21 = vshrl.u32 %v7264_v33, 16  ;;  %v5082_v24 = vshll.u32 %v7264_v33, 16 }
 0x1a8   : > { %v5049_v51 = vsel %vm7909_vm3, %v5044_v60, %v5048_v23  ;;  %v5249_v30 = vsel %vm7932_vm5, %v7325_v44, %v5248_v50  ;;  %v5000_v34 = vrot.slane %v4998_v32, 5  ;;  %v5067_v62 = vrot.slane %v5065_v9, 4 }
 0x1a9   : > { %v3279_v43 = vpop.f32.mrf.mxu3  ;;  %v4739_v60 = vpack.c.b16 %v4735_v22, %v4734_v28  ;;  %v4990_v2 = vshll.u32 %v9515_v3, 16  ;;  %v5074_v19 = vshll.u32 %v9597_v58, 16  ;;  %v7318_v3 = vld [vmem:[%s9012_s20 + $0x30] sm:$0xe]  ;;  %v7320_v22 = vld [vmem:[%s9012_s20 + $0x40] sm:$0xe] }
 0x1aa   : > { %v3295_v54 = vadd.f32 %v3279_v43, %v9472_v59 }
 0x1ab   : > { %v3154_v6 = vpop.f32.mrf.mxu2  ;;  %v3528_v55 = vpop.f32.mrf.mxu0 }
 0x1ac   : > { %v9562_v42 = vadd.f32 %v3154_v6, %v2990_v48  ;;  %v9568_v59 = vadd.f32 %v3525_v39, %v3295_v54  ;;  %v5062_v39 = vrot.slane %v5060_v40, 5  ;;  %v4981_v48 = vshrl.u32 %v7250_v29, 16  ;;  %v7607_v6 = vld [vmem:[%s9012_s20 + $0x44] sm:$0xf0] }
 0x1ad   : > { %v3692_v16 = vpop.f32.mrf.mxu1  ;;  %v4997_v54 = vrot.slane %v4995_v27, 4  ;;  %v5084_v40 = vrot.slane %v5082_v24, 5  ;;  %v7217_v11 = vor.u32 %v7607_v6, %v7216_v17  ;;  %v7321_v27 = vld [vmem:[%s9012_s20 + $0x48] sm:$0xe] }
 0x1ae   : > { %v3712_v18 = vadd.f32 %v3692_v16, %v9493_v37  ;;  %4810 = vmatmul.bf16.gmra.mxu3 %v4738_v31  ;;  %4945 = vmatmul.bf16.gmra.mxu0 %v7213_v13  ;;  %v5244_v37 = vrot.slane %v9501_v25, 5  ;;  %v5063_v45 = vsel %vm7909_vm3, %v5058_v1, %v5062_v39  ;;  %v4983_v31 = vrot.slane %v4981_v48, 4 }
 0x1af   : > { %v4986_v13 = vrot.slane %v4984_v47, 5  ;;  %v5113_v16 = vunpack.c.l.b16 %v5049_v51  ;;  %v5114_v12 = vunpack.c.l.b16 %v5063_v45  ;;  %v5001_v23 = vor.u32 %v5000_v34, %v4997_v54 }
 0x1b0   : > { %5186 = vmatmul.bf16.vlgmr.msra.gmra.mxu1 %v5118_v10  ;;  %5355 = vmatmul.bf16.vlgmr.msra.gmra.mxu2 %v5291_v15  ;;  %v5245_v56 = vsel %vm7932_vm5, %v7324_v20, %v5244_v37  ;;  %v5070_v10 = vrot.slane %v5068_v46, 5  ;;  %v5081_v15 = vrot.slane %v5079_v21, 4  ;;  %v5004_v1 = vshll.u32 %v9521_v35, 16 }
 0x1b1   : > { %v3282_v49 = vpop.f32.mrf.mxu3  ;;  %v5285_v7 = vunpack.c.l.b16 %v5245_v56  ;;  %v4987_v29 = vor.u32 %v4986_v13, %v4983_v31  ;;  %v5119_v50 = vpack.c.b16 %v5114_v12, %v5113_v16  ;;  %v5002_v9 = vrot.slane %v5001_v23, 4 }
 0x1b2   : > { %v3296_v53 = vadd.f32 %v3282_v49, %v9491_v63  ;;  %v5071_v20 = vor.u32 %v5070_v10, %v5067_v62  ;;  %v5085_v37 = vor.u32 %v5084_v40, %v5081_v15  ;;  %v5076_v21 = vrot.slane %v5074_v19, 5 }
 0x1b3   : > { %v3826_v61 = vpop.f32.mrf.mxu2  ;;  %v3530_v38 = vpop.f32.mrf.mxu0  ;;  %v4988_v49 = vrot.slane %v4987_v29, 4  ;;  %v5260_v45 = vrot.slane %v9597_v58, 5  ;;  %v5256_v13 = vrot.slane %v9557_v36, 5 }
 0x1b4   : > { %v9581_v25 = vadd.f32 %v3826_v61, %v3712_v18  ;;  %v9591_v43 = vadd.f32 %v3528_v55, %v3296_v53  ;;  %v5286_v55 = vunpack.c.l.b16 %v5249_v30  ;;  %v7265_v18 = vld [vmem:[%s9012_s20 + $0x4c] sm:$0x1]  ;;  %v5006_v53 = vrot.slane %v5004_v1, 5  ;;  %v7319_v61 = vld [vmem:[%s9012_s20 + $0x38] sm:$0xe]  ;;  %s5683_s20 = sshll.u32 %s9715_s21, 3 }
 0x1b5   : > { %v3694_v63 = vpop.f32.mrf.mxu1  ;;  %v5088_v28 = vshll.u32 %v7265_v18, 16  ;;  %v5072_v46 = vrot.slane %v5071_v20, 4  ;;  %v5086_v24 = vrot.slane %v5085_v37, 4  ;;  %v5264_v56 = vrot.slane %v7265_v18, 5  ;;  %s392_s28 = sadd.s32 %s5684_s18, %s5683_s20 }
 0x1b6   : > { %v3713_v14 = vadd.f32 %v3694_v63, %v9517_v57  ;;  %v5292_v48 = vpack.c.b16 %v5286_v55, %v5285_v7  ;;  %v7328_v63 = vrot.slane %v7320_v22, 9  ;;  %v7326_v30 = vrot.slane %v7318_v3, 9  ;;  %s5685_s16 = sshll.u32 %s392_s28, 2 }
 0x1b7   : > { %v5090_v51 = vrot.slane %v5088_v28, 5  ;;  %v7327_v31 = vrot.slane %v7319_v61, 9  ;;  %v5007_v34 = vsel %vm7909_vm3, %v5002_v9, %v5006_v53  ;;  %v5077_v10 = vsel %vm7909_vm3, %v5072_v46, %v5076_v21  ;;  %s9654_s7 = scalar_lea.vmem %s9690_s4, %s5685_s16 }
 0x1b8   : > { %v5110_v18 = vunpack.c.l.b16 %v5007_v34  ;;  %v5115_v29 = vunpack.c.l.b16 %v5077_v10 }
 0x1b9   : > { %v3284_v57 = vpop.f32.mrf.mxu3  ;;  %v5257_v16 = vsel %vm7932_vm5, %v7327_v31, %v5256_v13 }
 0x1ba   : > { %v3297_v4 = vadd.f32 %v3284_v57, %v9510_v52  ;;  %v4992_v52 = vrot.slane %v4990_v2, 5  ;;  %v5288_v23 = vunpack.c.l.b16 %v5257_v16 }
 0x1bb   : > { %v3828_v39 = vpop.f32.mrf.mxu2  ;;  %v3533_v44 = vpop.f32.mrf.mxu0 }
 0x1bc   : > { %v9604_v33 = vadd.f32 %v3828_v39, %v3713_v14  ;;  %v9609_v35 = vadd.f32 %v3530_v38, %v3297_v4  ;;  %v7329_v38 = vrot.slane %v7321_v27, 9  ;;  %v4993_v54 = vsel %vm7909_vm3, %v4988_v49, %v4992_v52 }
 0x1bd   : > { %v3697_v47 = vpop.f32.mrf.mxu1  ;;  %v5109_v55 = vunpack.c.l.b16 %v4993_v54 }
 0x1be   : > { %v3714_v32 = vadd.f32 %v3697_v47, %v9545_v8  ;;  %4815 = vmatmul.bf16.gmra.mxu3 %v4739_v60  ;;  %4950 = vmatmul.bf16.gmra.mxu0 %v7217_v11  ;;  %v5252_v8 = vrot.slane %v9552_v5, 5  ;;  %v5261_v5 = vsel %vm7932_vm5, %v7328_v63, %v5260_v45  ;;  %v5265_v36 = vsel %vm7932_vm5, %v7329_v38, %v5264_v56 }
 0x1bf   : > { %v5289_v60 = vunpack.c.l.b16 %v5261_v5  ;;  %v5290_v11 = vunpack.c.l.b16 %v5265_v36  ;;  %v5117_v4 = vpack.c.b16 %v5110_v18, %v5109_v55 }
 0x1c0   : > { %5191 = vmatmul.bf16.gmra.mxu1 %v5119_v50  ;;  %5360 = vmatmul.bf16.gmra.mxu2 %v5292_v48  ;;  %v5253_v40 = vsel %vm7932_vm5, %v7326_v30, %v5252_v8 }
 0x1c1   : > { %v3287_v14 = vpop.f32.mrf.mxu3  ;;  %v5287_v2 = vunpack.c.l.b16 %v5253_v40  ;;  %v5294_v39 = vpack.c.b16 %v5290_v11, %v5289_v60 }
 0x1c2   : > { %v3298_v17 = vadd.f32 %v3287_v14, %v9535_v26  ;;  %v5091_v26 = vsel %vm7909_vm3, %v5086_v24, %v5090_v51 }
 0x1c3   : > { %v3831_v6 = vpop.f32.mrf.mxu2  ;;  %v3535_v62 = vpop.f32.mrf.mxu0  ;;  %v5116_v57 = vunpack.c.l.b16 %v5091_v26  ;;  %v5293_v28 = vpack.c.b16 %v5288_v23, %v5287_v2 }
 0x1c4   : > { %v3848_v58 = vadd.f32 %v3831_v6, %v3714_v32  ;;  %v3544_v12 = vadd.f32 %v3533_v44, %v3298_v17 }
 0x1c5   : > { %v3699_v15 = vpop.f32.mrf.mxu1  ;;  %v5120_v37 = vpack.c.b16 %v5116_v57, %v5115_v29 }
 0x1c6   : > { %v3715_v7 = vadd.f32 %v3699_v15, %v9568_v59 }
 0x1c9   : > { %v3289_v1 = vpop.f32.mrf.mxu3 }
 0x1ca   : > { %v3299_v41 = vadd.f32 %v3289_v1, %v9562_v42 }
 0x1cb   : > { %v3833_v19 = vpop.f32.mrf.mxu2  ;;  %v4246_v0 = vpop.f32.mrf.mxu0 }
 0x1cc   : > { %v3849_v20 = vadd.f32 %v3833_v19, %v3715_v7  ;;  %v3545_v59 = vadd.f32 %v3535_v62, %v3299_v41 }
 0x1cd   : > { %v3702_v44 = vpop.f32.mrf.mxu1 }
 0x1ce   : > { %v3716_v50 = vadd.f32 %v3702_v44, %v9591_v43  ;;  %5181 = vmatmul.bf16.vlgmr.msrb.gmra.mxu0 %v5117_v4  ;;  %5370 = vmatmul.bf16.vlgmr.msrb.gmra.mxu3 %v5294_v39 }
 0x1d0   : > { %5196 = vmatmul.bf16.gmra.mxu1 %v5120_v37  ;;  %5365 = vmatmul.bf16.gmra.mxu2 %v5293_v28 }
 0x1d1   : > { %v4072_v48 = vpop.f32.mrf.mxu3 }
 0x1d2   : > { %v4092_v47 = vadd.f32 %v4072_v48, %v9581_v25 }
 0x1d3   : > { %v3836_v3 = vpop.f32.mrf.mxu2  ;;  %v4248_v49 = vpop.f32.mrf.mxu0 }
 0x1d4   : > { %v3850_v42 = vadd.f32 %v3836_v3, %v3716_v50  ;;  %v4266_v27 = vadd.f32 %v4246_v0, %v4092_v47 }
 0x1d5   : > { %v3704_v22 = vpop.f32.mrf.mxu1 }
 0x1d6   : > { %v3717_v32 = vadd.f32 %v3704_v22, %v9609_v35 }
 0x1d9   : > { %v4074_v52 = vpop.f32.mrf.mxu3 }
 0x1da   : > { %v4093_v53 = vadd.f32 %v4074_v52, %v9604_v33 }
 0x1db   : > { %v3838_v9 = vpop.f32.mrf.mxu2  ;;  %v4251_v43 = vpop.f32.mrf.mxu0 }
 0x1dc   : > { %v3851_v61 = vadd.f32 %v3838_v9, %v3717_v32  ;;  %v4267_v21 = vadd.f32 %v4248_v49, %v4093_v53 }
 0x1dd   : > { %v3707_v46 = vpop.f32.mrf.mxu1 }
 0x1de   : > { %v3718_v24 = vadd.f32 %v3707_v46, %v3544_v12 }
 0x1e1   : > { %v4077_v51 = vpop.f32.mrf.mxu3 }
 0x1e2   : > { %v4094_v56 = vadd.f32 %v4077_v51, %v3848_v58 }
 0x1e3   : > { %v3841_v45 = vpop.f32.mrf.mxu2  ;;  %v4253_v25 = vpop.f32.mrf.mxu0 }
 0x1e4   : > { %v3852_v63 = vadd.f32 %v3841_v45, %v3718_v24  ;;  %v4268_v30 = vadd.f32 %v4251_v43, %v4094_v56 }
 0x1e5   : > { %v3709_v38 = vpop.f32.mrf.mxu1 }
 0x1e6   : > { %v3719_v8 = vadd.f32 %v3709_v38, %v3545_v59 }
 0x1e9   : > { %v4079_v31 = vpop.f32.mrf.mxu3 }
 0x1ea   : > { %v4095_v35 = vadd.f32 %v4079_v31, %v3849_v20 }
 0x1eb   : > { %v3843_v13 = vpop.f32.mrf.mxu2  ;;  %v4256_v17 = vpop.f32.mrf.mxu0 }
 0x1ec   : > { %v3853_v14 = vadd.f32 %v3843_v13, %v3719_v8  ;;  %v4269_v33 = vadd.f32 %v4253_v25, %v4095_v35 }
 0x1ed   : > { %v4381_v6 = vpop.f32.mrf.mxu1 }
 0x1ee   : > { %v4401_v54 = vadd.f32 %v4381_v6, %v4266_v27 }
 0x1f1   : > { %v4082_v34 = vpop.f32.mrf.mxu3 }
 0x1f2   : > { %v4096_v62 = vadd.f32 %v4082_v34, %v3850_v42 }
 0x1f3   : > { %v4627_v10 = vpop.f32.mrf.mxu2  ;;  %v4258_v36 = vpop.f32.mrf.mxu0 }
 0x1f4   : > { %v4647_v5 = vadd.f32 %v4627_v10, %v4401_v54  ;;  %v4270_v58 = vadd.f32 %v4256_v17, %v4096_v62 }
 0x1f5   : > { %v4383_v15 = vpop.f32.mrf.mxu1 }
 0x1f6   : > { %v4402_v26 = vadd.f32 %v4383_v15, %v4267_v21 }
 0x1f9   : > { %v4084_v40 = vpop.f32.mrf.mxu3 }
 0x1fa   : > { %v4097_v16 = vadd.f32 %v4084_v40, %v3851_v61 }
 0x1fb   : > { %v4629_v12 = vpop.f32.mrf.mxu2  ;;  %v4261_v55 = vpop.f32.mrf.mxu0 }
 0x1fc   : > { %v9639_v7 = vadd.f32 %v4629_v12, %v4402_v26  ;;  %v9641_v60 = vadd.f32 %v4258_v36, %v4097_v16 }
 0x1fd   : > { %v4386_v18 = vpop.f32.mrf.mxu1 }
 0x1fe   : > { %v4403_v11 = vadd.f32 %v4386_v18, %v4268_v30 }
 0x201   : > { %v4087_v29 = vpop.f32.mrf.mxu3 }
 0x202   : > { %v4098_v57 = vadd.f32 %v4087_v29, %v3852_v63 }
 0x203   : > { %v4632_v2 = vpop.f32.mrf.mxu2  ;;  %v4263_v1 = vpop.f32.mrf.mxu0 }
 0x204   : > { %v4649_v23 = vadd.f32 %v4632_v2, %v4403_v11  ;;  %v4272_v19 = vadd.f32 %v4261_v55, %v4098_v57 }
 0x205   : > { %v4388_v41 = vpop.f32.mrf.mxu1 }
 0x206   : > { %v4404_v13 = vadd.f32 %v4388_v41, %v4269_v33 }
 0x209   : > { %v4089_v4 = vpop.f32.mrf.mxu3 }
 0x20a   : > { %v4099_v39 = vadd.f32 %v4089_v4, %v3853_v14 }
 0x20b   : > { %v4634_v20 = vpop.f32.mrf.mxu2  ;;  %v4936_v0 = vpop.f32.mrf.mxu0 }
 0x20c   : > { %v4273_v28 = vadd.f32 %v4263_v1, %v4099_v39  ;;  %v4650_v35 = vadd.f32 %v4634_v20, %v4404_v13 }
 0x20d   : > { %v4391_v37 = vpop.f32.mrf.mxu1 }
 0x20e   : > { %v4405_v44 = vadd.f32 %v4391_v37, %v4270_v58 }
 0x211   : > { %v4801_v59 = vpop.f32.mrf.mxu3 }
 0x212   : > { %v4821_v48 = vadd.f32 %v4801_v59, %v4647_v5 }
 0x213   : > { %v4637_v50 = vpop.f32.mrf.mxu2  ;;  %v9643_v47 = vpop.f32.mrf.mxu0 }
 0x214   : > { %v4651_v3 = vadd.f32 %v4637_v50, %v4405_v44  ;;  %v4956_v49 = vadd.f32 %v4936_v0, %v4821_v48 }
 0x215   : > { %v4393_v42 = vpop.f32.mrf.mxu1 }
 0x219   : > { %v4803_v22 = vpop.f32.mrf.mxu3 }
 0x21a   : > { %v4822_v29 = vadd.f32 %v4803_v22, %v9639_v7 }
 0x21b   : > { %v4639_v27 = vpop.f32.mrf.mxu2  ;;  %v4941_v32 = vpop.f32.mrf.mxu0 }
 0x21c   : > { %v4957_v50 = vadd.f32 %v9643_v47, %v4822_v29 }
 0x21d   : > { %v4396_v52 = vpop.f32.mrf.mxu1 }
 0x21e   : > { %v4407_v18 = vadd.f32 %v4396_v52, %v4272_v19 }
 0x221   : > { %v4806_v9 = vpop.f32.mrf.mxu3 }
 0x222   : > { %v4823_v6 = vadd.f32 %v4806_v9, %v4649_v23  ;;  %v4406_v23 = vadd.f32 %v4393_v42, %v9641_v60 }
 0x223   : > { %v4642_v53 = vpop.f32.mrf.mxu2  ;;  %v4943_v61 = vpop.f32.mrf.mxu0 }
 0x224   : > { %v4958_v10 = vadd.f32 %v4941_v32, %v4823_v6  ;;  %v4653_v1 = vadd.f32 %v4642_v53, %v4407_v18  ;;  %v4652_v39 = vadd.f32 %v4639_v27, %v4406_v23 }
 0x225   : > { %v4398_v43 = vpop.f32.mrf.mxu1 }
 0x226   : > { %v4408_v57 = vadd.f32 %v4398_v43, %v4273_v28 }
 0x229   : > { %v4808_v46 = vpop.f32.mrf.mxu3 }
 0x22a   : > { %v4824_v54 = vadd.f32 %v4808_v46, %v4650_v35 }
 0x22b   : > { %v4644_v21 = vpop.f32.mrf.mxu2  ;;  %v4946_v24 = vpop.f32.mrf.mxu0 }
 0x22c   : > { %v4959_v5 = vadd.f32 %v4943_v61, %v4824_v54  ;;  %v4654_v41 = vadd.f32 %v4644_v21, %v4408_v57 }
 0x22d   : > { %v5187_v51 = vpop.f32.mrf.mxu1 }
 0x22e   : > { %v5204_v36 = vadd.f32 %v5187_v51, %v4958_v10 }
 0x231   : > { %v4811_v45 = vpop.f32.mrf.mxu3 }
 0x232   : > { %v4825_v2 = vadd.f32 %v4811_v45, %v4651_v3 }
 0x233   : > { %v5356_v56 = vpop.f32.mrf.mxu2  ;;  %v4948_v63 = vpop.f32.mrf.mxu0 }
 0x234   : > { %v4960_v37 = vadd.f32 %v4946_v24, %v4825_v2 }
 0x235   : > { %v5189_v25 = vpop.f32.mrf.mxu1 }
 0x236   : > { %v5205_v15 = vadd.f32 %v5189_v25, %v4959_v5 }
 0x239   : > { %v4813_v38 = vpop.f32.mrf.mxu3 }
 0x23a   : > { %v4826_v19 = vadd.f32 %v4813_v38, %v4652_v39 }
 0x23b   : > { %v5358_v30 = vpop.f32.mrf.mxu2  ;;  %v4951_v8 = vpop.f32.mrf.mxu0 }
 0x23c   : > { %v4961_v27 = vadd.f32 %v4948_v63, %v4826_v19 }
 0x23d   : > { %v5192_v31 = vpop.f32.mrf.mxu1 }
 0x241   : > { %v4816_v14 = vpop.f32.mrf.mxu3 }
 0x242   : > { %v4827_v20 = vadd.f32 %v4816_v14, %v4653_v1 }
 0x243   : > { %v5361_v17 = vpop.f32.mrf.mxu2  ;;  %v4953_v34 = vpop.f32.mrf.mxu0 }
 0x244   : > { %v5378_v26 = vadd.f32 %v5361_v17, %v5204_v36  ;;  %v4962_v22 = vadd.f32 %v4951_v8, %v4827_v20 }
 0x245   : > { %v5194_v62 = vpop.f32.mrf.mxu1 }
 0x246   : > { %v5386_v3 = vpack.c.bf16 %v5378_v26, %v5378_v26  ;;  %v5207_v24 = vadd.f32 %v5194_v62, %v4961_v27 }
 0x248   : > { %v5402_v47 = vunpack.c.l.bf16 %v5386_v3 }
 0x249   : > { %v4818_v58 = vpop.f32.mrf.mxu3 }
 0x24a   : > { %v4828_v44 = vadd.f32 %v4818_v58, %v4654_v41  ;;  %v5424_v17 = vmul.f32 %v5402_v47, %v5402_v47 }
 0x24b   : > { %v5363_v33 = vpop.f32.mrf.mxu2  ;;  %v5182_v16 = vpop.f32.mrf.mxu0 }
 0x24c   : > { %v5379_v40 = vadd.f32 %v5363_v33, %v5205_v15  ;;  %v5202_v12 = vadd.f32 %v5182_v16, %v4956_v49  ;;  %v5206_v49 = vadd.f32 %v5192_v31, %v4960_v37  ;;  %v4963_v52 = vadd.f32 %v4953_v34, %v4828_v44 }
 0x24d   : > { %v5197_v55 = vpop.f32.mrf.mxu1 }
 0x24e   : > { %v7640_v11 = vpack.c.bf16 %v5379_v40, %v5378_v26  ;;  %v5376_v4 = vadd.f32 %v5356_v56, %v5202_v12  ;;  %v5387_v9 = vpack.c.bf16 %v5379_v40, %v5379_v40  ;;  %v5208_v53 = vadd.f32 %v5197_v55, %v4962_v22 }
 0x250   : > { %7652 = vst [vmem:[%s9654_s7 + $0x8] sm:$0xff] %v7640_v11   ;;  %v5384_v7 = vpack.c.bf16 %v5376_v4, %v5376_v4 }
 0x251   : > { %v5371_v0 = vpop.f32.mrf.mxu3 }
 0x252   : > { %v5400_v61 = vunpack.c.l.bf16 %v5384_v7  ;;  %v5382_v56 = vadd.f32 %v5371_v0, %v5208_v53 }
 0x253   : > { %v5366_v59 = vpop.f32.mrf.mxu2  ;;  %v5184_v48 = vpop.f32.mrf.mxu0 }
 0x254   : > { %v5203_v28 = vadd.f32 %v5184_v48, %v4957_v50  ;;  %v5380_v42 = vadd.f32 %v5366_v59, %v5206_v49  ;;  %v5422_v63 = vmul.f32 %v5400_v61, %v5400_v61  ;;  %v5390_v62 = vpack.c.bf16 %v5382_v56, %v5382_v56 }
 0x255   : > { %v5199_v60 = vpop.f32.mrf.mxu1 }
 0x256   : > { %v5377_v32 = vadd.f32 %v5358_v30, %v5203_v28  ;;  %v5209_v21 = vadd.f32 %v5199_v60, %v4963_v52  ;;  %v5388_v45 = vpack.c.bf16 %v5380_v42, %v5380_v42  ;;  %v5403_v30 = vunpack.c.l.bf16 %v5387_v9 }
 0x257   : > { %v5406_v16 = vunpack.c.l.bf16 %v5390_v62 }
 0x258   : > { %v5385_v43 = vpack.c.bf16 %v5377_v32, %v5377_v32  ;;  %v7635_v46 = vpack.c.bf16 %v5377_v32, %v5376_v4  ;;  %v5404_v34 = vunpack.c.l.bf16 %v5388_v45  ;;  %v5425_v36 = vmul.f32 %v5403_v30, %v5403_v30 }
 0x259   : > { %v5373_v51 = vpop.f32.mrf.mxu3  ;;  %v5428_v2 = vmul.f32 %v5406_v16, %v5406_v16 }
 0x25a   : > { %7636 = vst [vmem:[%s9654_s7] sm:$0xff] %v7635_v46   ;;  %v5401_v25 = vunpack.c.l.bf16 %v5385_v43  ;;  %v5383_v8 = vadd.f32 %v5373_v51, %v5209_v21  ;;  %v5426_v40 = vmul.f32 %v5404_v34, %v5404_v34 }
 0x25b   : > { %v5368_v38 = vpop.f32.mrf.mxu2 }
 0x25c   : > { %v5381_v31 = vadd.f32 %v5368_v38, %v5207_v24  ;;  %v5408_v13 = vadd.f32 %v5401_v25, %v5400_v61  ;;  %v5423_v35 = vmul.f32 %v5401_v25, %v5401_v25  ;;  %v7650_v14 = vpack.c.bf16 %v5383_v8, %v5382_v56 }
 0x25d   : > { %v5391_v26 = vpack.c.bf16 %v5383_v8, %v5383_v8 }
 0x25e   : > { %v5389_v6 = vpack.c.bf16 %v5381_v31, %v5381_v31  ;;  %v7645_v54 = vpack.c.bf16 %v5381_v31, %v5380_v42  ;;  %v5409_v10 = vadd.f32 %v5408_v13, %v5402_v47  ;;  %v5430_v5 = vadd.f32 %v5423_v35, %v5422_v63  ;;  %7654 = vst [vmem:[%s9654_s7 + $0x18] sm:$0xff] %v7650_v14  }
 0x25f   : > { %v5407_v57 = vunpack.c.l.bf16 %v5391_v26 }
 0x260   : > { %7653 = vst [vmem:[%s9654_s7 + $0x10] sm:$0xff] %v7645_v54   ;;  %v5431_v15 = vadd.f32 %v5430_v5, %v5424_v17  ;;  %v5405_v58 = vunpack.c.l.bf16 %v5389_v6  ;;  %v5410_v33 = vadd.f32 %v5409_v10, %v5403_v30 }
 0x261   : > { %v5429_v4 = vmul.f32 %v5407_v57, %v5407_v57 }
 0x262   : > { %v5411_v12 = vadd.f32 %v5410_v33, %v5404_v34  ;;  %v5432_v55 = vadd.f32 %v5431_v15, %v5425_v36  ;;  %v5427_v11 = vmul.f32 %v5405_v58, %v5405_v58 }
 0x264   : > { %v5412_v18 = vadd.f32 %v5411_v12, %v5405_v58  ;;  %v5433_v29 = vadd.f32 %v5432_v55, %v5426_v40 }
 0x266   : > { %v5434_v23 = vadd.f32 %v5433_v29, %v5427_v11  ;;  %v5413_v1 = vadd.f32 %v5412_v18, %v5406_v16 }
 0x268   : > { %v5414_v41 = vadd.f32 %v5413_v1, %v5407_v57  ;;  %v5435_v39 = vadd.f32 %v5434_v23, %v5428_v2 }
 0x26a   : > { %v5415_v20 = vrot.slane %v5414_v41, 4  ;;  %v5436_v0 = vadd.f32 %v5435_v39, %v5429_v4 }
 0x26c   : > { %v5416_v37 = vadd.f32 %v5415_v20, %v5414_v41  ;;  %v5437_v44 = vrot.slane %v5436_v0, 4 }
 0x26e   : > { %v5417_v59 = vrot.slane %v5416_v37, 2  ;;  %v5438_v50 = vadd.f32 %v5437_v44, %v5436_v0 }
 0x270   : > { %v5418_v19 = vadd.f32 %v5417_v59, %v5416_v37  ;;  %v5439_v48 = vrot.slane %v5438_v50, 2 }
 0x272   : > { %v5419_v49 = vrot.slane %v5418_v19, 1  ;;  %v5440_v7 = vadd.f32 %v5439_v48, %v5438_v50 }
 0x274   : > { %v5420_v28 = vadd.f32 %v5419_v49, %v5418_v19  ;;  %v5441_v3 = vrot.slane %v5440_v7, 1 }
 0x276   : > { %5421 = vst [vmem:[%s402_s12] sm:$0xff] %v5420_v28  ;;  %v5442_v22 = vadd.f32 %v5441_v3, %v5440_v7 }
 0x278   : > { %5443 = vst [vmem:[%s410_s14] sm:$0xff] %v5442_v22 }
 0x279 PF: > { %s17_s25 = sadd.s32 1, %s7761_s25   ;;  %s9698_s21 = smov %s7753_s23 }
 0x27a   : > { %p14_p10 = scmp.ge.s32.totalorder %s17_s25, 10   ;;  %s9699_s22 = smov %s7757_s24 }
 0x27b   : > { %s9700_s23 = smov %s9703_s26  ;;  %s9701_s24 = smov %s9707_s27 }
 0x27c   :  { %16 = sbr.rel (!%p14_p10) target bundleno = 3 (0x3), region = 128 }

</bundles_post_ra>
